<compile_context>
chip_gen: v7x
topology: tpu7x:2x2x1
jax: 0.10.0
libtpu: 0.0.40
codegen_flags: <defaults>
</compile_context>

<pallas_src>
import jax
import jax.numpy as jnp
from jax import lax
from jax.experimental import pallas as pl
from jax.experimental.pallas import tpu as pltpu

BN_EPS = 1e-5


# ----------------------------------------------------------------------------
# Conv kernel factory.
#   Layout: x is "padded-flat" (1, Lp, Cin) with Lp = (H+2)*(W+2); every 3x3
#   tap (dy, dx) is the contiguous slice x[F0+off : F0+off+Macc] with
#   off = (dy-1)*(W+2) + (dx-1), F0 = W+3, Macc = Lp - 2*F0.
#   Outputs: y (1, Lp, Cout) bf16 raw conv (zero borders), st (1, 2, Cout) f32
#   = [sum, sumsq] over the H*W valid pixels of this sample.
#   If fuse_epilogue: the previous layer's folded BN+ReLU (scale, shift) is
#   applied to the loaded rows first (deferred layer-1 epilogue).
# ----------------------------------------------------------------------------
def make_conv_kernel(H, W, cin, cout, fuse_epilogue):
    Wp = W + 2
    Lp = (H + 2) * Wp
    F0 = Wp + 1
    Macc = Lp - 2 * F0

    def conv_from(read, mk_ref, w_ref, y_ref, st_ref):
        acc = jnp.zeros((Macc, cout), jnp.float32)
        t = 0
        for dy in range(3):
            for dx in range(3):
                off = (dy - 1) * Wp + (dx - 1)
                patch = read(F0 + off)                        # (Macc, cin) bf16
                acc = acc + jnp.dot(patch, w_ref[t],
                                    preferred_element_type=jnp.float32)
                t += 1
        # Zero the junk rows (pad-column positions folded into the flat M dim).
        acc = acc * mk_ref[F0:F0 + Macc, :]
        edge = jnp.zeros((F0, cout), y_ref.dtype)
        y_ref[0, 0:F0, :] = edge
        y_ref[0, F0 + Macc:Lp, :] = edge
        y_ref[0, F0:F0 + Macc, :] = acc.astype(y_ref.dtype)
        st_ref[0, 0:1, :] = jnp.sum(acc, axis=0, keepdims=True)
        st_ref[0, 1:2, :] = jnp.sum(acc * acc, axis=0, keepdims=True)

    if fuse_epilogue:
        def kernel(x_ref, mk_ref, sc_ref, sh_ref, w_ref, y_ref, st_ref, a_ref):
            # Deferred previous-layer epilogue: BN (folded scale/shift) + ReLU,
            # then re-mask so the zero halo stays exactly zero.
            x = x_ref[0].astype(jnp.float32)                     # (Lp, cin)
            a = jnp.maximum(x * sc_ref[...] + sh_ref[...], 0.0) * mk_ref[...]
            a_ref[...] = a.astype(jnp.bfloat16)
            conv_from(lambda s: a_ref[s:s + Macc, :],
                      mk_ref, w_ref, y_ref, st_ref)
    else:
        def kernel(x_ref, mk_ref, w_ref, y_ref, st_ref):
            conv_from(lambda s: x_ref[0, s:s + Macc, :],
                      mk_ref, w_ref, y_ref, st_ref)
    return kernel


def conv_stats_layer(x_flat, w_flat, mask, H, W, scale=None, shift=None):
    """x_flat: (N, Lp, Cin) bf16 padded-flat (zero borders); w_flat: (9, Cin, Cout)
    bf16; mask: (Lp, 1) f32 interior mask.  Returns (y_raw bf16 (N, Lp, Cout),
    stats f32 (N, 2, Cout))."""
    N, Lp, cin = x_flat.shape
    cout = w_flat.shape[-1]
    Wp = W + 2
    F0 = Wp + 1
    Macc = Lp - 2 * F0
    fuse = scale is not None

    kernel = make_conv_kernel(H, W, cin, cout, fuse)

    in_specs = [pl.BlockSpec((1, Lp, cin), lambda n: (n, 0, 0)),
                pl.BlockSpec((Lp, 1), lambda n: (0, 0))]
    args = [x_flat, mask]
    if fuse:
        in_specs += [pl.BlockSpec((1, cin), lambda n: (0, 0)),
                     pl.BlockSpec((1, cin), lambda n: (0, 0))]
        args += [scale, shift]
    in_specs.append(pl.BlockSpec((9, cin, cout), lambda n: (0, 0, 0)))
    args.append(w_flat)

    scratch = [pltpu.VMEM((Lp, cin), jnp.bfloat16)] if fuse else []

    flops = 2 * N * Macc * 9 * cin * cout
    bytes_acc = (x_flat.size * 2 + N * (w_flat.size * 2 + Lp * 4)
                 + N * Lp * cout * 2 + N * 2 * cout * 4)

    return pl.pallas_call(
        kernel,
        out_shape=(jax.ShapeDtypeStruct((N, Lp, cout), jnp.bfloat16),
                   jax.ShapeDtypeStruct((N, 2, cout), jnp.float32)),
        grid=(N,),
        in_specs=in_specs,
        out_specs=(pl.BlockSpec((1, Lp, cout), lambda n: (n, 0, 0)),
                   pl.BlockSpec((1, 2, cout), lambda n: (n, 0, 0))),
        scratch_shapes=scratch,
        compiler_params=pltpu.CompilerParams(
            dimension_semantics=("parallel",),
            vmem_limit_bytes=32 * 1024 * 1024),
        cost_estimate=pl.CostEstimate(flops=int(flops), transcendentals=0,
                                      bytes_accessed=int(bytes_acc)),
    )(*args)


# ----------------------------------------------------------------------------
# Final epilogue (layer-2 BN + ReLU) over the padded-flat layout; border /
# junk positions get garbage but are discarded by the interior slice outside.
# ----------------------------------------------------------------------------
def bn_relu_kernel(y_ref, sc_ref, sh_ref, o_ref):
    y = y_ref[...].astype(jnp.float32)
    o_ref[...] = jnp.maximum(y * sc_ref[...] + sh_ref[...], 0.0)


def bn_relu(y_flat, scale, shift):
    N, Lp, C = y_flat.shape
    return pl.pallas_call(
        bn_relu_kernel,
        out_shape=jax.ShapeDtypeStruct((N, Lp, C), jnp.float32),
        grid=(N,),
        in_specs=[pl.BlockSpec((1, Lp, C), lambda n: (n, 0, 0)),
                  pl.BlockSpec((1, C), lambda n: (0, 0)),
                  pl.BlockSpec((1, C), lambda n: (0, 0))],
        out_specs=pl.BlockSpec((1, Lp, C), lambda n: (n, 0, 0)),
        compiler_params=pltpu.CompilerParams(
            dimension_semantics=("parallel",),
            vmem_limit_bytes=32 * 1024 * 1024),
    )(y_flat, scale, shift)


def fold_bn(stats, gamma, beta, count):
    """stats: (N, 2, C) per-sample [sum, sumsq] -> folded (scale, shift) (1, C)."""
    s = jnp.sum(stats, axis=0)                       # (2, C)
    mean = s[0] / count
    var = jnp.maximum(s[1] / count - mean * mean, 0.0)
    inv = lax.rsqrt(var + BN_EPS)
    scale = gamma.astype(jnp.float32) * inv
    shift = beta.astype(jnp.float32) - mean * scale
    return scale.reshape(1, -1), shift.reshape(1, -1)


# ----------------------------------------------------------------------------
# DoubleConv forward:  (N, Cin, H, W) -> (N, Cout, H, W)
# params = ((w1, b1, g1, bt1), (w2, b2, g2, bt2)), conv weights in HWIO.
# Biases are accepted but unused: train-mode BN cancels them exactly.
# ----------------------------------------------------------------------------
def double_conv_forward(x_nchw, params):
    N, Cin, H, W = x_nchw.shape
    (w1, _b1, g1, bt1), (w2, _b2, g2, bt2) = params
    Wp, Hp = W + 2, H + 2
    Lp = Hp * Wp
    count = float(N * H * W)

    # Interior mask over padded-flat positions, computed once in XLA.
    fidx = jnp.arange(Lp, dtype=jnp.int32)
    p, q = fidx // Wp, fidx % Wp
    mask = ((p >= 1) & (p <= H) & (q >= 1) & (q <= W))
    mask = mask.astype(jnp.float32).reshape(Lp, 1)

    # Layer-1 input: NHWC bf16, spatially zero-padded, flattened over (H+2, W+2).
    x_nhwc = jnp.transpose(x_nchw, (0, 2, 3, 1)).astype(jnp.bfloat16)
    x_flat = jnp.pad(x_nhwc, ((0, 0), (1, 1), (1, 1), (0, 0))).reshape(N, Lp, Cin)

    w1f = w1.astype(jnp.bfloat16).reshape(9, w1.shape[2], w1.shape[3])
    w2f = w2.astype(jnp.bfloat16).reshape(9, w2.shape[2], w2.shape[3])

    # Layer 1: conv + batch stats (raw output, bf16, zero-bordered padded-flat).
    y1, st1 = conv_stats_layer(x_flat, w1f, mask, H, W)
    sc1, sh1 = fold_bn(st1, g1, bt1, count)

    # Layer 2: fused [layer-1 BN+ReLU on loaded rows] + conv + batch stats.
    y2, st2 = conv_stats_layer(y1, w2f, mask, H, W, scale=sc1, shift=sh1)
    sc2, sh2 = fold_bn(st2, g2, bt2, count)

    # Final epilogue: BN2 + ReLU, then extract the interior and go back to NCHW.
    out_flat = bn_relu(y2, sc2, sh2)
    out = out_flat.reshape(N, Hp, Wp, -1)[:, 1:H + 1, 1:W + 1, :]
    return jnp.transpose(out, (0, 3, 1, 2))


# ----------------------------------------------------------------------------
# Pure-JAX reference (bf16 conv operands like the kernel, f32 elsewhere).
# Keeps the conv bias to demonstrate that train-mode BN cancels it.
# ----------------------------------------------------------------------------
def _ref_conv_bn_relu(x_nhwc, w, b, g, bt):
    y = lax.conv_general_dilated(
        x_nhwc.astype(jnp.bfloat16), w.astype(jnp.bfloat16),
        window_strides=(1, 1), padding="SAME",
        dimension_numbers=("NHWC", "HWIO", "NHWC"),
        preferred_element_type=jnp.float32)
    y = y + b[None, None, None, :]
    mean = jnp.mean(y, axis=(0, 1, 2), keepdims=True)
    var = jnp.mean((y - mean) ** 2, axis=(0, 1, 2), keepdims=True)
    y = (y - mean) * lax.rsqrt(var + BN_EPS) * g + bt
    return jnp.maximum(y, 0.0)


def _ref_double_conv(x_nchw, params):
    (w1, b1, g1, bt1), (w2, b2, g2, bt2) = params
    x = jnp.transpose(x_nchw, (0, 2, 3, 1))
    y = _ref_conv_bn_relu(x, w1, b1, g1, bt1)
    y = _ref_conv_bn_relu(y, w2, b2, g2, bt2)
    return jnp.transpose(y, (0, 3, 1, 2))


# ----------------------------------------------------------------------------
if __name__ == "__main__":
    # DoubleConv(in_channels=4, out_channels=8, bottle_neck=False)
    in_channels, out_channels = 4, 8
    N, H, W = 2, 16, 16

    key = jax.random.PRNGKey(0)
    kx, kw1, kb1, kw2, kb2 = jax.random.split(key, 5)

    x = jax.random.normal(kx, (N, in_channels, H, W), dtype=jnp.float32)

    # Conv weights in HWIO (3, 3, Cin, Cout); BN affine = PyTorch defaults.
    w1 = 0.1 * jax.random.normal(kw1, (3, 3, in_channels, out_channels), jnp.float32)
    b1 = 0.1 * jax.random.normal(kb1, (out_channels,), jnp.float32)
    g1 = jnp.ones((out_channels,), jnp.float32)
    bt1 = jnp.zeros((out_channels,), jnp.float32)

    w2 = 0.1 * jax.random.normal(kw2, (3, 3, out_channels, out_channels), jnp.float32)
    b2 = 0.1 * jax.random.normal(kb2, (out_channels,), jnp.float32)
    g2 = jnp.ones((out_channels,), jnp.float32)
    bt2 = jnp.zeros((out_channels,), jnp.float32)

    params = ((w1, b1, g1, bt1), (w2, b2, g2, bt2))

    out = jax.jit(double_conv_forward)(x, params)
    out = jax.block_until_ready(out)
    assert out.shape == (N, out_channels, H, W)
    assert out.dtype == jnp.float32

    ref = _ref_double_conv(x, params)
    # bf16 MXU operands in both paths + bf16 storage of the intermediate raw
    # conv activations -> small accumulation/rounding differences.
    assert jnp.all(jnp.isfinite(out))
    assert jnp.allclose(out, ref, rtol=2e-2, atol=2e-2), "mismatch vs reference"
    # TODO(synk): BatchNorm2d running_mean/running_var buffer updates are stateful
    # training bookkeeping and are not part of this forward-activation kernel.

    print("KERNEL_OK")
</pallas_src>

<mosaic_0001>
module attributes {stable_mosaic.version = 11 : i64} {
  func.func @kernel(%arg0: i32, %arg1: memref<1x324x4xbf16, #tpu.memory_space<vmem>>, %arg2: memref<324x1xf32, #tpu.memory_space<vmem>>, %arg3: memref<9x4x8xbf16, #tpu.memory_space<vmem>>, %arg4: memref<1x324x8xbf16, #tpu.memory_space<vmem>>, %arg5: memref<1x2x8xf32, #tpu.memory_space<vmem>>) attributes {dimension_semantics = [#tpu.dimension_semantics<parallel>], iteration_bounds = array<i64: 2>, scalar_prefetch = 0 : i64, scratch_operands = 0 : i64, tpu.core_type = #tpu.core_type<tc>, window_params = [{transform_indices = @transform_0, window_bounds = array<i64: 1, 324, 4>}, {pipeline_mode = #tpu.pipeline_mode<synchronous>, transform_indices = @transform_1, window_bounds = array<i64: 324, 1>}, {pipeline_mode = #tpu.pipeline_mode<synchronous>, transform_indices = @transform_2, window_bounds = array<i64: 9, 4, 8>}, {transform_indices = @transform_3, window_bounds = array<i64: 1, 324, 8>}, {transform_indices = @transform_4, window_bounds = array<i64: 1, 2, 8>}]} {
    %cst = arith.constant 0.000000e+00 : f32
    %0 = vector.broadcast %cst : f32 to vector<286x8xf32>
    %c0 = arith.constant 0 : index
    %c0_0 = arith.constant 0 : index
    %c0_1 = arith.constant 0 : index
    %1 = vector.load %arg1[%c0, %c0_0, %c0_1] : memref<1x324x4xbf16, #tpu.memory_space<vmem>>, vector<1x286x4xbf16>
    %2 = vector.shape_cast %1 : vector<1x286x4xbf16> to vector<286x4xbf16>
    %c0_2 = arith.constant 0 : index
    %c0_3 = arith.constant 0 : index
    %c0_4 = arith.constant 0 : index
    %3 = vector.load %arg3[%c0_2, %c0_3, %c0_4] : memref<9x4x8xbf16, #tpu.memory_space<vmem>>, vector<1x4x8xbf16>
    %4 = vector.shape_cast %3 : vector<1x4x8xbf16> to vector<4x8xbf16>
    %cst_5 = arith.constant dense<0.000000e+00> : vector<286x8xf32>
    %5 = tpu.matmul %2, %4, %cst_5 {dimension_numbers = #tpu.dot_dimension_numbers<[1], [0], [0], [1], [0, 0, 1, 1], [], []>} : vector<286x4xbf16>, vector<4x8xbf16>, vector<286x8xf32> -> vector<286x8xf32>
    %6 = arith.addf %0, %5 : vector<286x8xf32>
    %c0_6 = arith.constant 0 : index
    %c1 = arith.constant 1 : index
    %c0_7 = arith.constant 0 : index
    %7 = vector.load %arg1[%c0_6, %c1, %c0_7] : memref<1x324x4xbf16, #tpu.memory_space<vmem>>, vector<1x286x4xbf16>
    %8 = vector.shape_cast %7 : vector<1x286x4xbf16> to vector<286x4xbf16>
    %c1_8 = arith.constant 1 : index
    %c0_9 = arith.constant 0 : index
    %c0_10 = arith.constant 0 : index
    %9 = vector.load %arg3[%c1_8, %c0_9, %c0_10] : memref<9x4x8xbf16, #tpu.memory_space<vmem>>, vector<1x4x8xbf16>
    %10 = vector.shape_cast %9 : vector<1x4x8xbf16> to vector<4x8xbf16>
    %cst_11 = arith.constant dense<0.000000e+00> : vector<286x8xf32>
    %11 = tpu.matmul %8, %10, %cst_11 {dimension_numbers = #tpu.dot_dimension_numbers<[1], [0], [0], [1], [0, 0, 1, 1], [], []>} : vector<286x4xbf16>, vector<4x8xbf16>, vector<286x8xf32> -> vector<286x8xf32>
    %12 = arith.addf %6, %11 : vector<286x8xf32>
    %c0_12 = arith.constant 0 : index
    %c2 = arith.constant 2 : index
    %c0_13 = arith.constant 0 : index
    %13 = vector.load %arg1[%c0_12, %c2, %c0_13] : memref<1x324x4xbf16, #tpu.memory_space<vmem>>, vector<1x286x4xbf16>
    %14 = vector.shape_cast %13 : vector<1x286x4xbf16> to vector<286x4xbf16>
    %c2_14 = arith.constant 2 : index
    %c0_15 = arith.constant 0 : index
    %c0_16 = arith.constant 0 : index
    %15 = vector.load %arg3[%c2_14, %c0_15, %c0_16] : memref<9x4x8xbf16, #tpu.memory_space<vmem>>, vector<1x4x8xbf16>
    %16 = vector.shape_cast %15 : vector<1x4x8xbf16> to vector<4x8xbf16>
    %cst_17 = arith.constant dense<0.000000e+00> : vector<286x8xf32>
    %17 = tpu.matmul %14, %16, %cst_17 {dimension_numbers = #tpu.dot_dimension_numbers<[1], [0], [0], [1], [0, 0, 1, 1], [], []>} : vector<286x4xbf16>, vector<4x8xbf16>, vector<286x8xf32> -> vector<286x8xf32>
    %18 = arith.addf %12, %17 : vector<286x8xf32>
    %c0_18 = arith.constant 0 : index
    %c18 = arith.constant 18 : index
    %c0_19 = arith.constant 0 : index
    %19 = vector.load %arg1[%c0_18, %c18, %c0_19] : memref<1x324x4xbf16, #tpu.memory_space<vmem>>, vector<1x286x4xbf16>
    %20 = vector.shape_cast %19 : vector<1x286x4xbf16> to vector<286x4xbf16>
    %c3 = arith.constant 3 : index
    %c0_20 = arith.constant 0 : index
    %c0_21 = arith.constant 0 : index
    %21 = vector.load %arg3[%c3, %c0_20, %c0_21] : memref<9x4x8xbf16, #tpu.memory_space<vmem>>, vector<1x4x8xbf16>
    %22 = vector.shape_cast %21 : vector<1x4x8xbf16> to vector<4x8xbf16>
    %cst_22 = arith.constant dense<0.000000e+00> : vector<286x8xf32>
    %23 = tpu.matmul %20, %22, %cst_22 {dimension_numbers = #tpu.dot_dimension_numbers<[1], [0], [0], [1], [0, 0, 1, 1], [], []>} : vector<286x4xbf16>, vector<4x8xbf16>, vector<286x8xf32> -> vector<286x8xf32>
    %24 = arith.addf %18, %23 : vector<286x8xf32>
    %c0_23 = arith.constant 0 : index
    %c19 = arith.constant 19 : index
    %c0_24 = arith.constant 0 : index
    %25 = vector.load %arg1[%c0_23, %c19, %c0_24] : memref<1x324x4xbf16, #tpu.memory_space<vmem>>, vector<1x286x4xbf16>
    %26 = vector.shape_cast %25 : vector<1x286x4xbf16> to vector<286x4xbf16>
    %c4 = arith.constant 4 : index
    %c0_25 = arith.constant 0 : index
    %c0_26 = arith.constant 0 : index
    %27 = vector.load %arg3[%c4, %c0_25, %c0_26] : memref<9x4x8xbf16, #tpu.memory_space<vmem>>, vector<1x4x8xbf16>
    %28 = vector.shape_cast %27 : vector<1x4x8xbf16> to vector<4x8xbf16>
    %cst_27 = arith.constant dense<0.000000e+00> : vector<286x8xf32>
    %29 = tpu.matmul %26, %28, %cst_27 {dimension_numbers = #tpu.dot_dimension_numbers<[1], [0], [0], [1], [0, 0, 1, 1], [], []>} : vector<286x4xbf16>, vector<4x8xbf16>, vector<286x8xf32> -> vector<286x8xf32>
    %30 = arith.addf %24, %29 : vector<286x8xf32>
    %c0_28 = arith.constant 0 : index
    %c20 = arith.constant 20 : index
    %c0_29 = arith.constant 0 : index
    %31 = vector.load %arg1[%c0_28, %c20, %c0_29] : memref<1x324x4xbf16, #tpu.memory_space<vmem>>, vector<1x286x4xbf16>
    %32 = vector.shape_cast %31 : vector<1x286x4xbf16> to vector<286x4xbf16>
    %c5 = arith.constant 5 : index
    %c0_30 = arith.constant 0 : index
    %c0_31 = arith.constant 0 : index
    %33 = vector.load %arg3[%c5, %c0_30, %c0_31] : memref<9x4x8xbf16, #tpu.memory_space<vmem>>, vector<1x4x8xbf16>
    %34 = vector.shape_cast %33 : vector<1x4x8xbf16> to vector<4x8xbf16>
    %cst_32 = arith.constant dense<0.000000e+00> : vector<286x8xf32>
    %35 = tpu.matmul %32, %34, %cst_32 {dimension_numbers = #tpu.dot_dimension_numbers<[1], [0], [0], [1], [0, 0, 1, 1], [], []>} : vector<286x4xbf16>, vector<4x8xbf16>, vector<286x8xf32> -> vector<286x8xf32>
    %36 = arith.addf %30, %35 : vector<286x8xf32>
    %c0_33 = arith.constant 0 : index
    %c36 = arith.constant 36 : index
    %c0_34 = arith.constant 0 : index
    %37 = vector.load %arg1[%c0_33, %c36, %c0_34] : memref<1x324x4xbf16, #tpu.memory_space<vmem>>, vector<1x286x4xbf16>
    %38 = vector.shape_cast %37 : vector<1x286x4xbf16> to vector<286x4xbf16>
    %c6 = arith.constant 6 : index
    %c0_35 = arith.constant 0 : index
    %c0_36 = arith.constant 0 : index
    %39 = vector.load %arg3[%c6, %c0_35, %c0_36] : memref<9x4x8xbf16, #tpu.memory_space<vmem>>, vector<1x4x8xbf16>
    %40 = vector.shape_cast %39 : vector<1x4x8xbf16> to vector<4x8xbf16>
    %cst_37 = arith.constant dense<0.000000e+00> : vector<286x8xf32>
    %41 = tpu.matmul %38, %40, %cst_37 {dimension_numbers = #tpu.dot_dimension_numbers<[1], [0], [0], [1], [0, 0, 1, 1], [], []>} : vector<286x4xbf16>, vector<4x8xbf16>, vector<286x8xf32> -> vector<286x8xf32>
    %42 = arith.addf %36, %41 : vector<286x8xf32>
    %c0_38 = arith.constant 0 : index
    %c37 = arith.constant 37 : index
    %c0_39 = arith.constant 0 : index
    %43 = vector.load %arg1[%c0_38, %c37, %c0_39] : memref<1x324x4xbf16, #tpu.memory_space<vmem>>, vector<1x286x4xbf16>
    %44 = vector.shape_cast %43 : vector<1x286x4xbf16> to vector<286x4xbf16>
    %c7 = arith.constant 7 : index
    %c0_40 = arith.constant 0 : index
    %c0_41 = arith.constant 0 : index
    %45 = vector.load %arg3[%c7, %c0_40, %c0_41] : memref<9x4x8xbf16, #tpu.memory_space<vmem>>, vector<1x4x8xbf16>
    %46 = vector.shape_cast %45 : vector<1x4x8xbf16> to vector<4x8xbf16>
    %cst_42 = arith.constant dense<0.000000e+00> : vector<286x8xf32>
    %47 = tpu.matmul %44, %46, %cst_42 {dimension_numbers = #tpu.dot_dimension_numbers<[1], [0], [0], [1], [0, 0, 1, 1], [], []>} : vector<286x4xbf16>, vector<4x8xbf16>, vector<286x8xf32> -> vector<286x8xf32>
    %48 = arith.addf %42, %47 : vector<286x8xf32>
    %c0_43 = arith.constant 0 : index
    %c38 = arith.constant 38 : index
    %c0_44 = arith.constant 0 : index
    %49 = vector.load %arg1[%c0_43, %c38, %c0_44] : memref<1x324x4xbf16, #tpu.memory_space<vmem>>, vector<1x286x4xbf16>
    %50 = vector.shape_cast %49 : vector<1x286x4xbf16> to vector<286x4xbf16>
    %c8 = arith.constant 8 : index
    %c0_45 = arith.constant 0 : index
    %c0_46 = arith.constant 0 : index
    %51 = vector.load %arg3[%c8, %c0_45, %c0_46] : memref<9x4x8xbf16, #tpu.memory_space<vmem>>, vector<1x4x8xbf16>
    %52 = vector.shape_cast %51 : vector<1x4x8xbf16> to vector<4x8xbf16>
    %cst_47 = arith.constant dense<0.000000e+00> : vector<286x8xf32>
    %53 = tpu.matmul %50, %52, %cst_47 {dimension_numbers = #tpu.dot_dimension_numbers<[1], [0], [0], [1], [0, 0, 1, 1], [], []>} : vector<286x4xbf16>, vector<4x8xbf16>, vector<286x8xf32> -> vector<286x8xf32>
    %54 = arith.addf %48, %53 : vector<286x8xf32>
    %c19_48 = arith.constant 19 : index
    %c0_49 = arith.constant 0 : index
    %55 = vector.load %arg2[%c19_48, %c0_49] : memref<324x1xf32, #tpu.memory_space<vmem>>, vector<286x1xf32>
    %56 = vector.broadcast %55 : vector<286x1xf32> to vector<286x8xf32>
    %57 = arith.mulf %54, %56 : vector<286x8xf32>
    %cst_50 = arith.constant 0.000000e+00 : bf16
    %58 = vector.broadcast %cst_50 : bf16 to vector<19x8xbf16>
    %c0_51 = arith.constant 0 : index
    %c0_52 = arith.constant 0 : index
    %c0_53 = arith.constant 0 : index
    %59 = vector.load %arg4[%c0_51, %c0_52, %c0_53] : memref<1x324x8xbf16, #tpu.memory_space<vmem>>, vector<1x19x8xbf16>
    %60 = vector.shape_cast %59 : vector<1x19x8xbf16> to vector<19x8xbf16>
    %61 = vector.shape_cast %58 : vector<19x8xbf16> to vector<1x19x8xbf16>
    tpu.vector_store %arg4[%c0_51, %c0_52, %c0_53], %61 {strides = array<i32>} : memref<1x324x8xbf16, #tpu.memory_space<vmem>>, vector<1x19x8xbf16>,
    %c0_54 = arith.constant 0 : index
    %c305 = arith.constant 305 : index
    %c0_55 = arith.constant 0 : index
    %62 = vector.load %arg4[%c0_54, %c305, %c0_55] : memref<1x324x8xbf16, #tpu.memory_space<vmem>>, vector<1x19x8xbf16>
    %63 = vector.shape_cast %62 : vector<1x19x8xbf16> to vector<19x8xbf16>
    %64 = vector.shape_cast %58 : vector<19x8xbf16> to vector<1x19x8xbf16>
    tpu.vector_store %arg4[%c0_54, %c305, %c0_55], %64 {strides = array<i32>} : memref<1x324x8xbf16, #tpu.memory_space<vmem>>, vector<1x19x8xbf16>,
    %65 = arith.truncf %57 : vector<286x8xf32> to vector<286x8xbf16>
    %c0_56 = arith.constant 0 : index
    %c19_57 = arith.constant 19 : index
    %c0_58 = arith.constant 0 : index
    %66 = vector.load %arg4[%c0_56, %c19_57, %c0_58] : memref<1x324x8xbf16, #tpu.memory_space<vmem>>, vector<1x286x8xbf16>
    %67 = vector.shape_cast %66 : vector<1x286x8xbf16> to vector<286x8xbf16>
    %68 = vector.shape_cast %65 : vector<286x8xbf16> to vector<1x286x8xbf16>
    tpu.vector_store %arg4[%c0_56, %c19_57, %c0_58], %68 {strides = array<i32>} : memref<1x324x8xbf16, #tpu.memory_space<vmem>>, vector<1x286x8xbf16>,
    %cst_59 = arith.constant dense<0.000000e+00> : vector<8xf32>
    %69 = vector.multi_reduction <add>, %57, %cst_59 [0] : vector<286x8xf32> to vector<8xf32>
    %70 = vector.shape_cast %69 : vector<8xf32> to vector<1x8xf32>
    %c0_60 = arith.constant 0 : index
    %c0_61 = arith.constant 0 : index
    %c0_62 = arith.constant 0 : index
    %71 = vector.load %arg5[%c0_60, %c0_61, %c0_62] : memref<1x2x8xf32, #tpu.memory_space<vmem>>, vector<1x1x8xf32>
    %72 = vector.shape_cast %71 : vector<1x1x8xf32> to vector<1x8xf32>
    %73 = vector.shape_cast %70 : vector<1x8xf32> to vector<1x1x8xf32>
    tpu.vector_store %arg5[%c0_60, %c0_61, %c0_62], %73 {strides = array<i32>} : memref<1x2x8xf32, #tpu.memory_space<vmem>>, vector<1x1x8xf32>,
    %74 = arith.mulf %57, %57 : vector<286x8xf32>
    %cst_63 = arith.constant dense<0.000000e+00> : vector<8xf32>
    %75 = vector.multi_reduction <add>, %74, %cst_63 [0] : vector<286x8xf32> to vector<8xf32>
    %76 = vector.shape_cast %75 : vector<8xf32> to vector<1x8xf32>
    %c0_64 = arith.constant 0 : index
    %c1_65 = arith.constant 1 : index
    %c0_66 = arith.constant 0 : index
    %77 = vector.load %arg5[%c0_64, %c1_65, %c0_66] : memref<1x2x8xf32, #tpu.memory_space<vmem>>, vector<1x1x8xf32>
    %78 = vector.shape_cast %77 : vector<1x1x8xf32> to vector<1x8xf32>
    %79 = vector.shape_cast %76 : vector<1x8xf32> to vector<1x1x8xf32>
    tpu.vector_store %arg5[%c0_64, %c1_65, %c0_66], %79 {strides = array<i32>} : memref<1x2x8xf32, #tpu.memory_space<vmem>>, vector<1x1x8xf32>,
    return
  }
  func.func @transform_0(%arg0: i32) -> (i32, i32, i32) {
    %c0_i32 = arith.constant 0 : i32
    %c0_i32_0 = arith.constant 0 : i32
    %c0_i32_1 = arith.constant 0 : i32
    return %arg0, %c0_i32, %c0_i32_0 : i32, i32, i32
  }
  func.func @transform_1(%arg0: i32) -> (i32, i32) {
    %c0_i32 = arith.constant 0 : i32
    %c0_i32_0 = arith.constant 0 : i32
    %c0_i32_1 = arith.constant 0 : i32
    return %c0_i32, %c0_i32_0 : i32, i32
  }
  func.func @transform_2(%arg0: i32) -> (i32, i32, i32) {
    %c0_i32 = arith.constant 0 : i32
    %c0_i32_0 = arith.constant 0 : i32
    %c0_i32_1 = arith.constant 0 : i32
    %c0_i32_2 = arith.constant 0 : i32
    return %c0_i32, %c0_i32_0, %c0_i32_1 : i32, i32, i32
  }
  func.func @transform_3(%arg0: i32) -> (i32, i32, i32) {
    %c0_i32 = arith.constant 0 : i32
    %c0_i32_0 = arith.constant 0 : i32
    %c0_i32_1 = arith.constant 0 : i32
    return %arg0, %c0_i32, %c0_i32_0 : i32, i32, i32
  }
  func.func @transform_4(%arg0: i32) -> (i32, i32, i32) {
    %c0_i32 = arith.constant 0 : i32
    %c0_i32_0 = arith.constant 0 : i32
    %c0_i32_1 = arith.constant 0 : i32
    return %arg0, %c0_i32, %c0_i32_0 : i32, i32, i32
  }
}

module attributes {stable_mosaic.version = 11 : i64} {
  func.func @kernel(%arg0: i32, %arg1: memref<1x324x8xbf16, #tpu.memory_space<vmem>>, %arg2: memref<324x1xf32, #tpu.memory_space<vmem>>, %arg3: memref<1x8xf32, #tpu.memory_space<vmem>>, %arg4: memref<1x8xf32, #tpu.memory_space<vmem>>, %arg5: memref<9x8x8xbf16, #tpu.memory_space<vmem>>, %arg6: memref<1x324x8xbf16, #tpu.memory_space<vmem>>, %arg7: memref<1x2x8xf32, #tpu.memory_space<vmem>>, %arg8: memref<324x8xbf16, #tpu.memory_space<vmem>>) attributes {dimension_semantics = [#tpu.dimension_semantics<parallel>], iteration_bounds = array<i64: 2>, scalar_prefetch = 0 : i64, scratch_operands = 1 : i64, tpu.core_type = #tpu.core_type<tc>, window_params = [{transform_indices = @transform_0, window_bounds = array<i64: 1, 324, 8>}, {pipeline_mode = #tpu.pipeline_mode<synchronous>, transform_indices = @transform_1, window_bounds = array<i64: 324, 1>}, {pipeline_mode = #tpu.pipeline_mode<synchronous>, transform_indices = @transform_2, window_bounds = array<i64: 1, 8>}, {pipeline_mode = #tpu.pipeline_mode<synchronous>, transform_indices = @transform_3, window_bounds = array<i64: 1, 8>}, {pipeline_mode = #tpu.pipeline_mode<synchronous>, transform_indices = @transform_4, window_bounds = array<i64: 9, 8, 8>}, {transform_indices = @transform_5, window_bounds = array<i64: 1, 324, 8>}, {transform_indices = @transform_6, window_bounds = array<i64: 1, 2, 8>}]} {
    %c0 = arith.constant 0 : index
    %c0_0 = arith.constant 0 : index
    %c0_1 = arith.constant 0 : index
    %0 = vector.load %arg1[%c0, %c0_0, %c0_1] : memref<1x324x8xbf16, #tpu.memory_space<vmem>>, vector<1x324x8xbf16>
    %1 = vector.shape_cast %0 : vector<1x324x8xbf16> to vector<324x8xbf16>
    %2 = arith.extf %1 : vector<324x8xbf16> to vector<324x8xf32>
    %c0_2 = arith.constant 0 : index
    %c0_3 = arith.constant 0 : index
    %3 = vector.load %arg3[%c0_2, %c0_3] : memref<1x8xf32, #tpu.memory_space<vmem>>, vector<1x8xf32>
    %4 = vector.broadcast %3 : vector<1x8xf32> to vector<324x8xf32>
    %5 = arith.mulf %2, %4 : vector<324x8xf32>
    %c0_4 = arith.constant 0 : index
    %c0_5 = arith.constant 0 : index
    %6 = vector.load %arg4[%c0_4, %c0_5] : memref<1x8xf32, #tpu.memory_space<vmem>>, vector<1x8xf32>
    %7 = vector.broadcast %6 : vector<1x8xf32> to vector<324x8xf32>
    %8 = arith.addf %5, %7 : vector<324x8xf32>
    %cst = arith.constant 0.000000e+00 : f32
    %9 = vector.broadcast %cst : f32 to vector<324x8xf32>
    %10 = arith.maximumf %8, %9 : vector<324x8xf32>
    %c0_6 = arith.constant 0 : index
    %c0_7 = arith.constant 0 : index
    %11 = vector.load %arg2[%c0_6, %c0_7] : memref<324x1xf32, #tpu.memory_space<vmem>>, vector<324x1xf32>
    %12 = vector.broadcast %11 : vector<324x1xf32> to vector<324x8xf32>
    %13 = arith.mulf %10, %12 : vector<324x8xf32>
    %14 = arith.truncf %13 : vector<324x8xf32> to vector<324x8xbf16>
    %c0_8 = arith.constant 0 : index
    %c0_9 = arith.constant 0 : index
    %15 = vector.load %arg8[%c0_8, %c0_9] : memref<324x8xbf16, #tpu.memory_space<vmem>>, vector<324x8xbf16>
    tpu.vector_store %arg8[%c0_8, %c0_9], %14 {strides = array<i32>} : memref<324x8xbf16, #tpu.memory_space<vmem>>, vector<324x8xbf16>,
    %cst_10 = arith.constant 0.000000e+00 : f32
    %16 = vector.broadcast %cst_10 : f32 to vector<286x8xf32>
    %c0_11 = arith.constant 0 : index
    %c0_12 = arith.constant 0 : index
    %17 = vector.load %arg8[%c0_11, %c0_12] : memref<324x8xbf16, #tpu.memory_space<vmem>>, vector<286x8xbf16>
    %c0_13 = arith.constant 0 : index
    %c0_14 = arith.constant 0 : index
    %c0_15 = arith.constant 0 : index
    %18 = vector.load %arg5[%c0_13, %c0_14, %c0_15] : memref<9x8x8xbf16, #tpu.memory_space<vmem>>, vector<1x8x8xbf16>
    %19 = vector.shape_cast %18 : vector<1x8x8xbf16> to vector<8x8xbf16>
    %cst_16 = arith.constant dense<0.000000e+00> : vector<286x8xf32>
    %20 = tpu.matmul %17, %19, %cst_16 {dimension_numbers = #tpu.dot_dimension_numbers<[1], [0], [0], [1], [0, 0, 1, 1], [], []>} : vector<286x8xbf16>, vector<8x8xbf16>, vector<286x8xf32> -> vector<286x8xf32>
    %21 = arith.addf %16, %20 : vector<286x8xf32>
    %c1 = arith.constant 1 : index
    %c0_17 = arith.constant 0 : index
    %22 = vector.load %arg8[%c1, %c0_17] : memref<324x8xbf16, #tpu.memory_space<vmem>>, vector<286x8xbf16>
    %c1_18 = arith.constant 1 : index
    %c0_19 = arith.constant 0 : index
    %c0_20 = arith.constant 0 : index
    %23 = vector.load %arg5[%c1_18, %c0_19, %c0_20] : memref<9x8x8xbf16, #tpu.memory_space<vmem>>, vector<1x8x8xbf16>
    %24 = vector.shape_cast %23 : vector<1x8x8xbf16> to vector<8x8xbf16>
    %cst_21 = arith.constant dense<0.000000e+00> : vector<286x8xf32>
    %25 = tpu.matmul %22, %24, %cst_21 {dimension_numbers = #tpu.dot_dimension_numbers<[1], [0], [0], [1], [0, 0, 1, 1], [], []>} : vector<286x8xbf16>, vector<8x8xbf16>, vector<286x8xf32> -> vector<286x8xf32>
    %26 = arith.addf %21, %25 : vector<286x8xf32>
    %c2 = arith.constant 2 : index
    %c0_22 = arith.constant 0 : index
    %27 = vector.load %arg8[%c2, %c0_22] : memref<324x8xbf16, #tpu.memory_space<vmem>>, vector<286x8xbf16>
    %c2_23 = arith.constant 2 : index
    %c0_24 = arith.constant 0 : index
    %c0_25 = arith.constant 0 : index
    %28 = vector.load %arg5[%c2_23, %c0_24, %c0_25] : memref<9x8x8xbf16, #tpu.memory_space<vmem>>, vector<1x8x8xbf16>
    %29 = vector.shape_cast %28 : vector<1x8x8xbf16> to vector<8x8xbf16>
    %cst_26 = arith.constant dense<0.000000e+00> : vector<286x8xf32>
    %30 = tpu.matmul %27, %29, %cst_26 {dimension_numbers = #tpu.dot_dimension_numbers<[1], [0], [0], [1], [0, 0, 1, 1], [], []>} : vector<286x8xbf16>, vector<8x8xbf16>, vector<286x8xf32> -> vector<286x8xf32>
    %31 = arith.addf %26, %30 : vector<286x8xf32>
    %c18 = arith.constant 18 : index
    %c0_27 = arith.constant 0 : index
    %32 = vector.load %arg8[%c18, %c0_27] : memref<324x8xbf16, #tpu.memory_space<vmem>>, vector<286x8xbf16>
    %c3 = arith.constant 3 : index
    %c0_28 = arith.constant 0 : index
    %c0_29 = arith.constant 0 : index
    %33 = vector.load %arg5[%c3, %c0_28, %c0_29] : memref<9x8x8xbf16, #tpu.memory_space<vmem>>, vector<1x8x8xbf16>
    %34 = vector.shape_cast %33 : vector<1x8x8xbf16> to vector<8x8xbf16>
    %cst_30 = arith.constant dense<0.000000e+00> : vector<286x8xf32>
    %35 = tpu.matmul %32, %34, %cst_30 {dimension_numbers = #tpu.dot_dimension_numbers<[1], [0], [0], [1], [0, 0, 1, 1], [], []>} : vector<286x8xbf16>, vector<8x8xbf16>, vector<286x8xf32> -> vector<286x8xf32>
    %36 = arith.addf %31, %35 : vector<286x8xf32>
    %c19 = arith.constant 19 : index
    %c0_31 = arith.constant 0 : index
    %37 = vector.load %arg8[%c19, %c0_31] : memref<324x8xbf16, #tpu.memory_space<vmem>>, vector<286x8xbf16>
    %c4 = arith.constant 4 : index
    %c0_32 = arith.constant 0 : index
    %c0_33 = arith.constant 0 : index
    %38 = vector.load %arg5[%c4, %c0_32, %c0_33] : memref<9x8x8xbf16, #tpu.memory_space<vmem>>, vector<1x8x8xbf16>
    %39 = vector.shape_cast %38 : vector<1x8x8xbf16> to vector<8x8xbf16>
    %cst_34 = arith.constant dense<0.000000e+00> : vector<286x8xf32>
    %40 = tpu.matmul %37, %39, %cst_34 {dimension_numbers = #tpu.dot_dimension_numbers<[1], [0], [0], [1], [0, 0, 1, 1], [], []>} : vector<286x8xbf16>, vector<8x8xbf16>, vector<286x8xf32> -> vector<286x8xf32>
    %41 = arith.addf %36, %40 : vector<286x8xf32>
    %c20 = arith.constant 20 : index
    %c0_35 = arith.constant 0 : index
    %42 = vector.load %arg8[%c20, %c0_35] : memref<324x8xbf16, #tpu.memory_space<vmem>>, vector<286x8xbf16>
    %c5 = arith.constant 5 : index
    %c0_36 = arith.constant 0 : index
    %c0_37 = arith.constant 0 : index
    %43 = vector.load %arg5[%c5, %c0_36, %c0_37] : memref<9x8x8xbf16, #tpu.memory_space<vmem>>, vector<1x8x8xbf16>
    %44 = vector.shape_cast %43 : vector<1x8x8xbf16> to vector<8x8xbf16>
    %cst_38 = arith.constant dense<0.000000e+00> : vector<286x8xf32>
    %45 = tpu.matmul %42, %44, %cst_38 {dimension_numbers = #tpu.dot_dimension_numbers<[1], [0], [0], [1], [0, 0, 1, 1], [], []>} : vector<286x8xbf16>, vector<8x8xbf16>, vector<286x8xf32> -> vector<286x8xf32>
    %46 = arith.addf %41, %45 : vector<286x8xf32>
    %c36 = arith.constant 36 : index
    %c0_39 = arith.constant 0 : index
    %47 = vector.load %arg8[%c36, %c0_39] : memref<324x8xbf16, #tpu.memory_space<vmem>>, vector<286x8xbf16>
    %c6 = arith.constant 6 : index
    %c0_40 = arith.constant 0 : index
    %c0_41 = arith.constant 0 : index
    %48 = vector.load %arg5[%c6, %c0_40, %c0_41] : memref<9x8x8xbf16, #tpu.memory_space<vmem>>, vector<1x8x8xbf16>
    %49 = vector.shape_cast %48 : vector<1x8x8xbf16> to vector<8x8xbf16>
    %cst_42 = arith.constant dense<0.000000e+00> : vector<286x8xf32>
    %50 = tpu.matmul %47, %49, %cst_42 {dimension_numbers = #tpu.dot_dimension_numbers<[1], [0], [0], [1], [0, 0, 1, 1], [], []>} : vector<286x8xbf16>, vector<8x8xbf16>, vector<286x8xf32> -> vector<286x8xf32>
    %51 = arith.addf %46, %50 : vector<286x8xf32>
    %c37 = arith.constant 37 : index
    %c0_43 = arith.constant 0 : index
    %52 = vector.load %arg8[%c37, %c0_43] : memref<324x8xbf16, #tpu.memory_space<vmem>>, vector<286x8xbf16>
    %c7 = arith.constant 7 : index
    %c0_44 = arith.constant 0 : index
    %c0_45 = arith.constant 0 : index
    %53 = vector.load %arg5[%c7, %c0_44, %c0_45] : memref<9x8x8xbf16, #tpu.memory_space<vmem>>, vector<1x8x8xbf16>
    %54 = vector.shape_cast %53 : vector<1x8x8xbf16> to vector<8x8xbf16>
    %cst_46 = arith.constant dense<0.000000e+00> : vector<286x8xf32>
    %55 = tpu.matmul %52, %54, %cst_46 {dimension_numbers = #tpu.dot_dimension_numbers<[1], [0], [0], [1], [0, 0, 1, 1], [], []>} : vector<286x8xbf16>, vector<8x8xbf16>, vector<286x8xf32> -> vector<286x8xf32>
    %56 = arith.addf %51, %55 : vector<286x8xf32>
    %c38 = arith.constant 38 : index
    %c0_47 = arith.constant 0 : index
    %57 = vector.load %arg8[%c38, %c0_47] : memref<324x8xbf16, #tpu.memory_space<vmem>>, vector<286x8xbf16>
    %c8 = arith.constant 8 : index
    %c0_48 = arith.constant 0 : index
    %c0_49 = arith.constant 0 : index
    %58 = vector.load %arg5[%c8, %c0_48, %c0_49] : memref<9x8x8xbf16, #tpu.memory_space<vmem>>, vector<1x8x8xbf16>
    %59 = vector.shape_cast %58 : vector<1x8x8xbf16> to vector<8x8xbf16>
    %cst_50 = arith.constant dense<0.000000e+00> : vector<286x8xf32>
    %60 = tpu.matmul %57, %59, %cst_50 {dimension_numbers = #tpu.dot_dimension_numbers<[1], [0], [0], [1], [0, 0, 1, 1], [], []>} : vector<286x8xbf16>, vector<8x8xbf16>, vector<286x8xf32> -> vector<286x8xf32>
    %61 = arith.addf %56, %60 : vector<286x8xf32>
    %c19_51 = arith.constant 19 : index
    %c0_52 = arith.constant 0 : index
    %62 = vector.load %arg2[%c19_51, %c0_52] : memref<324x1xf32, #tpu.memory_space<vmem>>, vector<286x1xf32>
    %63 = vector.broadcast %62 : vector<286x1xf32> to vector<286x8xf32>
    %64 = arith.mulf %61, %63 : vector<286x8xf32>
    %cst_53 = arith.constant 0.000000e+00 : bf16
    %65 = vector.broadcast %cst_53 : bf16 to vector<19x8xbf16>
    %c0_54 = arith.constant 0 : index
    %c0_55 = arith.constant 0 : index
    %c0_56 = arith.constant 0 : index
    %66 = vector.load %arg6[%c0_54, %c0_55, %c0_56] : memref<1x324x8xbf16, #tpu.memory_space<vmem>>, vector<1x19x8xbf16>
    %67 = vector.shape_cast %66 : vector<1x19x8xbf16> to vector<19x8xbf16>
    %68 = vector.shape_cast %65 : vector<19x8xbf16> to vector<1x19x8xbf16>
    tpu.vector_store %arg6[%c0_54, %c0_55, %c0_56], %68 {strides = array<i32>} : memref<1x324x8xbf16, #tpu.memory_space<vmem>>, vector<1x19x8xbf16>,
    %c0_57 = arith.constant 0 : index
    %c305 = arith.constant 305 : index
    %c0_58 = arith.constant 0 : index
    %69 = vector.load %arg6[%c0_57, %c305, %c0_58] : memref<1x324x8xbf16, #tpu.memory_space<vmem>>, vector<1x19x8xbf16>
    %70 = vector.shape_cast %69 : vector<1x19x8xbf16> to vector<19x8xbf16>
    %71 = vector.shape_cast %65 : vector<19x8xbf16> to vector<1x19x8xbf16>
    tpu.vector_store %arg6[%c0_57, %c305, %c0_58], %71 {strides = array<i32>} : memref<1x324x8xbf16, #tpu.memory_space<vmem>>, vector<1x19x8xbf16>,
    %72 = arith.truncf %64 : vector<286x8xf32> to vector<286x8xbf16>
    %c0_59 = arith.constant 0 : index
    %c19_60 = arith.constant 19 : index
    %c0_61 = arith.constant 0 : index
    %73 = vector.load %arg6[%c0_59, %c19_60, %c0_61] : memref<1x324x8xbf16, #tpu.memory_space<vmem>>, vector<1x286x8xbf16>
    %74 = vector.shape_cast %73 : vector<1x286x8xbf16> to vector<286x8xbf16>
    %75 = vector.shape_cast %72 : vector<286x8xbf16> to vector<1x286x8xbf16>
    tpu.vector_store %arg6[%c0_59, %c19_60, %c0_61], %75 {strides = array<i32>} : memref<1x324x8xbf16, #tpu.memory_space<vmem>>, vector<1x286x8xbf16>,
    %cst_62 = arith.constant dense<0.000000e+00> : vector<8xf32>
    %76 = vector.multi_reduction <add>, %64, %cst_62 [0] : vector<286x8xf32> to vector<8xf32>
    %77 = vector.shape_cast %76 : vector<8xf32> to vector<1x8xf32>
    %c0_63 = arith.constant 0 : index
    %c0_64 = arith.constant 0 : index
    %c0_65 = arith.constant 0 : index
    %78 = vector.load %arg7[%c0_63, %c0_64, %c0_65] : memref<1x2x8xf32, #tpu.memory_space<vmem>>, vector<1x1x8xf32>
    %79 = vector.shape_cast %78 : vector<1x1x8xf32> to vector<1x8xf32>
    %80 = vector.shape_cast %77 : vector<1x8xf32> to vector<1x1x8xf32>
    tpu.vector_store %arg7[%c0_63, %c0_64, %c0_65], %80 {strides = array<i32>} : memref<1x2x8xf32, #tpu.memory_space<vmem>>, vector<1x1x8xf32>,
    %81 = arith.mulf %64, %64 : vector<286x8xf32>
    %cst_66 = arith.constant dense<0.000000e+00> : vector<8xf32>
    %82 = vector.multi_reduction <add>, %81, %cst_66 [0] : vector<286x8xf32> to vector<8xf32>
    %83 = vector.shape_cast %82 : vector<8xf32> to vector<1x8xf32>
    %c0_67 = arith.constant 0 : index
    %c1_68 = arith.constant 1 : index
    %c0_69 = arith.constant 0 : index
    %84 = vector.load %arg7[%c0_67, %c1_68, %c0_69] : memref<1x2x8xf32, #tpu.memory_space<vmem>>, vector<1x1x8xf32>
    %85 = vector.shape_cast %84 : vector<1x1x8xf32> to vector<1x8xf32>
    %86 = vector.shape_cast %83 : vector<1x8xf32> to vector<1x1x8xf32>
    tpu.vector_store %arg7[%c0_67, %c1_68, %c0_69], %86 {strides = array<i32>} : memref<1x2x8xf32, #tpu.memory_space<vmem>>, vector<1x1x8xf32>,
    return
  }
  func.func @transform_0(%arg0: i32) -> (i32, i32, i32) {
    %c0_i32 = arith.constant 0 : i32
    %c0_i32_0 = arith.constant 0 : i32
    %c0_i32_1 = arith.constant 0 : i32
    return %arg0, %c0_i32, %c0_i32_0 : i32, i32, i32
  }
  func.func @transform_1(%arg0: i32) -> (i32, i32) {
    %c0_i32 = arith.constant 0 : i32
    %c0_i32_0 = arith.constant 0 : i32
    %c0_i32_1 = arith.constant 0 : i32
    return %c0_i32, %c0_i32_0 : i32, i32
  }
  func.func @transform_2(%arg0: i32) -> (i32, i32) {
    %c0_i32 = arith.constant 0 : i32
    %c0_i32_0 = arith.constant 0 : i32
    %c0_i32_1 = arith.constant 0 : i32
    return %c0_i32, %c0_i32_0 : i32, i32
  }
  func.func @transform_3(%arg0: i32) -> (i32, i32) {
    %c0_i32 = arith.constant 0 : i32
    %c0_i32_0 = arith.constant 0 : i32
    %c0_i32_1 = arith.constant 0 : i32
    return %c0_i32, %c0_i32_0 : i32, i32
  }
  func.func @transform_4(%arg0: i32) -> (i32, i32, i32) {
    %c0_i32 = arith.constant 0 : i32
    %c0_i32_0 = arith.constant 0 : i32
    %c0_i32_1 = arith.constant 0 : i32
    %c0_i32_2 = arith.constant 0 : i32
    return %c0_i32, %c0_i32_0, %c0_i32_1 : i32, i32, i32
  }
  func.func @transform_5(%arg0: i32) -> (i32, i32, i32) {
    %c0_i32 = arith.constant 0 : i32
    %c0_i32_0 = arith.constant 0 : i32
    %c0_i32_1 = arith.constant 0 : i32
    return %arg0, %c0_i32, %c0_i32_0 : i32, i32, i32
  }
  func.func @transform_6(%arg0: i32) -> (i32, i32, i32) {
    %c0_i32 = arith.constant 0 : i32
    %c0_i32_0 = arith.constant 0 : i32
    %c0_i32_1 = arith.constant 0 : i32
    return %arg0, %c0_i32, %c0_i32_0 : i32, i32, i32
  }
}

module attributes {stable_mosaic.version = 11 : i64} {
  func.func @bn_relu_kernel(%arg0: i32, %arg1: memref<1x324x8xbf16, #tpu.memory_space<vmem>>, %arg2: memref<1x8xf32, #tpu.memory_space<vmem>>, %arg3: memref<1x8xf32, #tpu.memory_space<vmem>>, %arg4: memref<1x324x8xf32, #tpu.memory_space<vmem>>) attributes {dimension_semantics = [#tpu.dimension_semantics<parallel>], iteration_bounds = array<i64: 2>, scalar_prefetch = 0 : i64, scratch_operands = 0 : i64, tpu.core_type = #tpu.core_type<tc>, window_params = [{transform_indices = @transform_0, window_bounds = array<i64: 1, 324, 8>}, {pipeline_mode = #tpu.pipeline_mode<synchronous>, transform_indices = @transform_1, window_bounds = array<i64: 1, 8>}, {pipeline_mode = #tpu.pipeline_mode<synchronous>, transform_indices = @transform_2, window_bounds = array<i64: 1, 8>}, {transform_indices = @transform_3, window_bounds = array<i64: 1, 324, 8>}]} {
    %c0 = arith.constant 0 : index
    %c0_0 = arith.constant 0 : index
    %c0_1 = arith.constant 0 : index
    %0 = vector.load %arg1[%c0, %c0_0, %c0_1] : memref<1x324x8xbf16, #tpu.memory_space<vmem>>, vector<1x324x8xbf16>
    %1 = arith.extf %0 : vector<1x324x8xbf16> to vector<1x324x8xf32>
    %c0_2 = arith.constant 0 : index
    %c0_3 = arith.constant 0 : index
    %2 = vector.load %arg2[%c0_2, %c0_3] : memref<1x8xf32, #tpu.memory_space<vmem>>, vector<1x8xf32>
    %3 = vector.shape_cast %2 : vector<1x8xf32> to vector<1x1x8xf32>
    %4 = vector.broadcast %3 : vector<1x1x8xf32> to vector<1x324x8xf32>
    %5 = arith.mulf %1, %4 : vector<1x324x8xf32>
    %c0_4 = arith.constant 0 : index
    %c0_5 = arith.constant 0 : index
    %6 = vector.load %arg3[%c0_4, %c0_5] : memref<1x8xf32, #tpu.memory_space<vmem>>, vector<1x8xf32>
    %7 = vector.shape_cast %6 : vector<1x8xf32> to vector<1x1x8xf32>
    %8 = vector.broadcast %7 : vector<1x1x8xf32> to vector<1x324x8xf32>
    %9 = arith.addf %5, %8 : vector<1x324x8xf32>
    %cst = arith.constant 0.000000e+00 : f32
    %10 = vector.broadcast %cst : f32 to vector<1x324x8xf32>
    %11 = arith.maximumf %9, %10 : vector<1x324x8xf32>
    %c0_6 = arith.constant 0 : index
    %c0_7 = arith.constant 0 : index
    %c0_8 = arith.constant 0 : index
    %12 = vector.load %arg4[%c0_6, %c0_7, %c0_8] : memref<1x324x8xf32, #tpu.memory_space<vmem>>, vector<1x324x8xf32>
    tpu.vector_store %arg4[%c0_6, %c0_7, %c0_8], %11 {strides = array<i32>} : memref<1x324x8xf32, #tpu.memory_space<vmem>>, vector<1x324x8xf32>,
    return
  }
  func.func @transform_0(%arg0: i32) -> (i32, i32, i32) {
    %c0_i32 = arith.constant 0 : i32
    %c0_i32_0 = arith.constant 0 : i32
    %c0_i32_1 = arith.constant 0 : i32
    return %arg0, %c0_i32, %c0_i32_0 : i32, i32, i32
  }
  func.func @transform_1(%arg0: i32) -> (i32, i32) {
    %c0_i32 = arith.constant 0 : i32
    %c0_i32_0 = arith.constant 0 : i32
    %c0_i32_1 = arith.constant 0 : i32
    return %c0_i32, %c0_i32_0 : i32, i32
  }
  func.func @transform_2(%arg0: i32) -> (i32, i32) {
    %c0_i32 = arith.constant 0 : i32
    %c0_i32_0 = arith.constant 0 : i32
    %c0_i32_1 = arith.constant 0 : i32
    return %c0_i32, %c0_i32_0 : i32, i32
  }
  func.func @transform_3(%arg0: i32) -> (i32, i32, i32) {
    %c0_i32 = arith.constant 0 : i32
    %c0_i32_0 = arith.constant 0 : i32
    %c0_i32_1 = arith.constant 0 : i32
    return %arg0, %c0_i32, %c0_i32_0 : i32, i32, i32
  }
}

</mosaic_0001>

<bundles_post_ra>
// kernel: double_conv_forward.5
= control target key start
LH: loop header
LB: loop body
LE: loop exit
PB: predicated region body
PF: predicated region fallthrough
CT: control target
= control target key end

     0   :  { %s636_s12 = smov 0   ;;  %s855_s0 = inlined_call_operand.vmem [shape: bf16[2,324,8], index: 0, kind: input, shape index: {}]   ;;  %s856_s1 = inlined_call_operand.vmem [shape: f32[1,8], index: 1, kind: input, shape index: {}]   ;;  %s857_s2 = inlined_call_operand.vmem [shape: f32[1,8], index: 2, kind: input, shape index: {}]   ;;  %s858_s3 = inlined_call_operand.vmem [shape: f32[2,324,8], index: 3, kind: output, shape index: {}]  }
   0x1 LB: > { %s488_s13 = sadd.s32 4294967295, %s614_s12   ;;  %p492_p0 = scmp.ge.s32.totalorder %s614_s12, 1  ;;  %s614_s12 = sphi %s636_s12, %s13_s12  }
   0x2   : > { %p137_p1 = scmp.lt.s32.totalorder %s614_s12, 3 }
   0x4   : > { %p138_p2 = pnand %p492_p0, %p137_p1 }
   0x5   : > { %p161_p3 = scmp.lt.s32.totalorder (!%p138_p2), %s488_s13, 1  ;;  %v655_v0 = vld [vmem:[%s856_s1] ss:$0 sm:$0xff] (!%p138_p2)  ;;  %vm390_vm0 = vcmask (!%p138_p2), 64512   ;;  %vm431_vm1 = vcmask (!%p138_p2), 60416  }
   0x6   : > { %141 = sbr.rel (%p138_p2) target bundleno = 65 (0x41), region = 32  ;;  %v665_v9 = vld [vmem:[%s857_s2] ss:$0 sm:$0xff] (!%p138_p2) }
   0xd   : > { %s860_s13 = smov (!%p161_p3, %s488_s13), 1 }
   0xe   : > { %s598_s14 = smul.u32 164, %s860_s13 }
   0xf   : > { %s599_s20 = smul.u32 328, %s860_s13 }
  0x10   : > { %s650_s17 = scalar_lea.vmem %s855_s0, %s598_s14 }
  0x11   : > { %v500_v1 = vld [vmem:[%s650_s17] sm:$0xff]   ;;  %v579_v2 = vld [vmem:[%s650_s17 + $0x8] sm:$0xff]   ;;  %v580_v3 = vld [vmem:[%s650_s17 + $0x10] sm:$0xff]   ;;  %s682_s25 = scalar_lea.vmem %s858_s3, %s599_s20 }
  0x12   : > { %v501_v4 = vunpack.c.l.bf16 %v500_v1  ;;  %v502_v5 = vunpack.c.h.bf16 %v500_v1  ;;  %v505_v6 = vunpack.c.l.bf16 %v579_v2  ;;  %v506_v7 = vunpack.c.h.bf16 %v579_v2  ;;  %v581_v8 = vld [vmem:[%s650_s17 + $0x18] sm:$0xff]   ;;  %v582_v30 = vld [vmem:[%s650_s17 + $0x20] sm:$0xff]   ;;  %v583_v31 = vld [vmem:[%s650_s17 + $0x28] sm:$0xff]  }
  0x13   : > { %v509_v10 = vunpack.c.l.bf16 %v580_v3  ;;  %v510_v11 = vunpack.c.h.bf16 %v580_v3  ;;  %v513_v12 = vunpack.c.l.bf16 %v581_v8  ;;  %v514_v13 = vunpack.c.h.bf16 %v581_v8  ;;  %v584_v36 = vld [vmem:[%s650_s17 + $0x30] sm:$0xff]   ;;  %v585_v37 = vld [vmem:[%s650_s17 + $0x38] sm:$0xff]   ;;  %v586_v3 = vld [vmem:[%s650_s17 + $0x40] sm:$0xff]  }
  0x14   : > { %v260_v14 = vmul.f32 %v501_v4, %v655_v0  ;;  %v261_v15 = vmul.f32 %v502_v5, %v655_v0  ;;  %v262_v16 = vmul.f32 %v505_v6, %v655_v0  ;;  %v263_v17 = vmul.f32 %v506_v7, %v655_v0  ;;  %v587_v4 = vld [vmem:[%s650_s17 + $0x48] sm:$0xff]  }
  0x15   : > { %v264_v18 = vmul.f32 %v509_v10, %v655_v0  ;;  %v265_v19 = vmul.f32 %v510_v11, %v655_v0  ;;  %v266_v20 = vmul.f32 %v513_v12, %v655_v0  ;;  %v267_v21 = vmul.f32 %v514_v13, %v655_v0  ;;  %v588_v10 = vld [vmem:[%s650_s17 + $0x50] sm:$0xff]   ;;  %v589_v11 = vld [vmem:[%s650_s17 + $0x58] sm:$0xff]  }
  0x16   : > { %v308_v22 = vadd.f32 %v665_v9, %v260_v14  ;;  %v309_v23 = vadd.f32 %v665_v9, %v261_v15  ;;  %v310_v24 = vadd.f32 %v665_v9, %v262_v16  ;;  %v311_v25 = vadd.f32 %v665_v9, %v263_v17 }
  0x17   : > { %v312_v26 = vadd.f32 %v665_v9, %v264_v18  ;;  %v313_v27 = vadd.f32 %v665_v9, %v265_v19  ;;  %v314_v28 = vadd.f32 %v665_v9, %v266_v20  ;;  %v315_v29 = vadd.f32 %v665_v9, %v267_v21 }
  0x18   : > { %v349_v32 = vmax.f32 %v308_v22, 0.0  ;;  %v350_v33 = vmax.f32 %v309_v23, 0.0  ;;  %v351_v34 = vmax.f32 %v310_v24, 0.0  ;;  %v352_v35 = vmax.f32 %v311_v25, 0.0 }
  0x19   : > { %v353_v38 = vmax.f32 %v312_v26, 0.0  ;;  %v354_v39 = vmax.f32 %v313_v27, 0.0  ;;  %v355_v40 = vmax.f32 %v314_v28, 0.0  ;;  %v356_v41 = vmax.f32 %v315_v29, 0.0 }
  0x1a   : > { %391 = vst.msk [vmem:[%s682_s25] sm:$0xff] %vm390_vm0, %v349_v32  ;;  %392 = vst.msk [vmem:[%s682_s25 + $0x8] sm:$0xff] %vm390_vm0, %v350_v33  ;;  %v517_v42 = vunpack.c.l.bf16 %v582_v30  ;;  %v518_v43 = vunpack.c.h.bf16 %v582_v30  ;;  %v521_v44 = vunpack.c.l.bf16 %v583_v31  ;;  %v522_v45 = vunpack.c.h.bf16 %v583_v31 }
  0x1b   : > { %393 = vst.msk [vmem:[%s682_s25 + $0x10] sm:$0xff] %vm390_vm0, %v351_v34  ;;  %394 = vst.msk [vmem:[%s682_s25 + $0x18] sm:$0xff] %vm390_vm0, %v352_v35  ;;  %v525_v46 = vunpack.c.l.bf16 %v584_v36  ;;  %v526_v47 = vunpack.c.h.bf16 %v584_v36  ;;  %v529_v48 = vunpack.c.l.bf16 %v585_v37  ;;  %v530_v49 = vunpack.c.h.bf16 %v585_v37 }
  0x1c   : > { %395 = vst.msk [vmem:[%s682_s25 + $0x20] sm:$0xff] %vm390_vm0, %v353_v38  ;;  %396 = vst.msk [vmem:[%s682_s25 + $0x28] sm:$0xff] %vm390_vm0, %v354_v39  ;;  %v268_v50 = vmul.f32 %v517_v42, %v655_v0  ;;  %v269_v51 = vmul.f32 %v518_v43, %v655_v0  ;;  %v270_v52 = vmul.f32 %v521_v44, %v655_v0  ;;  %v533_v16 = vunpack.c.l.bf16 %v586_v3 }
  0x1d   : > { %397 = vst.msk [vmem:[%s682_s25 + $0x30] sm:$0xff] %vm390_vm0, %v355_v40  ;;  %398 = vst.msk [vmem:[%s682_s25 + $0x38] sm:$0xff] %vm390_vm0, %v356_v41  ;;  %v271_v53 = vmul.f32 %v522_v45, %v655_v0  ;;  %v272_v54 = vmul.f32 %v525_v46, %v655_v0  ;;  %v273_v55 = vmul.f32 %v526_v47, %v655_v0  ;;  %v534_v17 = vunpack.c.h.bf16 %v586_v3  ;;  %v590_v40 = vld [vmem:[%s650_s17 + $0x60] sm:$0xff]   ;;  %v591_v41 = vld [vmem:[%s650_s17 + $0x68] sm:$0xff]  }
  0x1e   : > { %v274_v56 = vmul.f32 %v529_v48, %v655_v0  ;;  %v275_v57 = vmul.f32 %v530_v49, %v655_v0  ;;  %v316_v58 = vadd.f32 %v665_v9, %v268_v50  ;;  %v317_v59 = vadd.f32 %v665_v9, %v269_v51  ;;  %v592_v46 = vld [vmem:[%s650_s17 + $0x70] sm:$0xff]   ;;  %v593_v47 = vld [vmem:[%s650_s17 + $0x78] sm:$0xff]  }
  0x1f   : > { %v318_v60 = vadd.f32 %v665_v9, %v270_v52  ;;  %v319_v61 = vadd.f32 %v665_v9, %v271_v53  ;;  %v320_v62 = vadd.f32 %v665_v9, %v272_v54  ;;  %v321_v63 = vadd.f32 %v665_v9, %v273_v55 }
  0x20   : > { %v322_v1 = vadd.f32 %v665_v9, %v274_v56  ;;  %v323_v2 = vadd.f32 %v665_v9, %v275_v57  ;;  %v357_v5 = vmax.f32 %v316_v58, 0.0  ;;  %v358_v6 = vmax.f32 %v317_v59, 0.0 }
  0x21   : > { %v359_v7 = vmax.f32 %v318_v60, 0.0  ;;  %v360_v8 = vmax.f32 %v319_v61, 0.0  ;;  %v361_v12 = vmax.f32 %v320_v62, 0.0  ;;  %v362_v13 = vmax.f32 %v321_v63, 0.0 }
  0x22   : > { %v363_v14 = vmax.f32 %v322_v1, 0.0  ;;  %v364_v15 = vmax.f32 %v323_v2, 0.0  ;;  %399 = vst.msk [vmem:[%s682_s25 + $0x40] sm:$0xff] %vm390_vm0, %v357_v5  ;;  %400 = vst.msk [vmem:[%s682_s25 + $0x48] sm:$0xff] %vm390_vm0, %v358_v6  ;;  %v537_v18 = vunpack.c.l.bf16 %v587_v4  ;;  %v538_v19 = vunpack.c.h.bf16 %v587_v4 }
  0x23   : > { %401 = vst.msk [vmem:[%s682_s25 + $0x50] sm:$0xff] %vm390_vm0, %v359_v7  ;;  %402 = vst.msk [vmem:[%s682_s25 + $0x58] sm:$0xff] %vm390_vm0, %v360_v8  ;;  %v541_v20 = vunpack.c.l.bf16 %v588_v10  ;;  %v542_v21 = vunpack.c.h.bf16 %v588_v10  ;;  %v545_v22 = vunpack.c.l.bf16 %v589_v11  ;;  %v546_v23 = vunpack.c.h.bf16 %v589_v11 }
  0x24   : > { %403 = vst.msk [vmem:[%s682_s25 + $0x60] sm:$0xff] %vm390_vm0, %v361_v12  ;;  %404 = vst.msk [vmem:[%s682_s25 + $0x68] sm:$0xff] %vm390_vm0, %v362_v13  ;;  %v276_v24 = vmul.f32 %v533_v16, %v655_v0  ;;  %v277_v25 = vmul.f32 %v534_v17, %v655_v0  ;;  %v278_v26 = vmul.f32 %v537_v18, %v655_v0  ;;  %v549_v52 = vunpack.c.l.bf16 %v590_v40 }
  0x25   : > { %405 = vst.msk [vmem:[%s682_s25 + $0x70] sm:$0xff] %vm390_vm0, %v363_v14  ;;  %406 = vst.msk [vmem:[%s682_s25 + $0x78] sm:$0xff] %vm390_vm0, %v364_v15  ;;  %v279_v27 = vmul.f32 %v538_v19, %v655_v0  ;;  %v280_v28 = vmul.f32 %v541_v20, %v655_v0  ;;  %v281_v29 = vmul.f32 %v542_v21, %v655_v0  ;;  %v550_v53 = vunpack.c.h.bf16 %v590_v40  ;;  %v594_v14 = vld [vmem:[%s650_s17 + $0x80] sm:$0xff]   ;;  %v595_v15 = vld [vmem:[%s650_s17 + $0x88] sm:$0xff]  }
  0x26   : > { %v282_v30 = vmul.f32 %v545_v22, %v655_v0  ;;  %v283_v31 = vmul.f32 %v546_v23, %v655_v0  ;;  %v324_v32 = vadd.f32 %v665_v9, %v276_v24  ;;  %v325_v33 = vadd.f32 %v665_v9, %v277_v25  ;;  %v596_v20 = vld [vmem:[%s650_s17 + $0x90] sm:$0xff]   ;;  %v597_v21 = vld [vmem:[%s650_s17 + $0x98] sm:$0xff]  }
  0x27   : > { %v326_v34 = vadd.f32 %v665_v9, %v278_v26  ;;  %v327_v35 = vadd.f32 %v665_v9, %v279_v27  ;;  %v328_v36 = vadd.f32 %v665_v9, %v280_v28  ;;  %v329_v37 = vadd.f32 %v665_v9, %v281_v29 }
  0x28   : > { %v330_v38 = vadd.f32 %v665_v9, %v282_v30  ;;  %v331_v39 = vadd.f32 %v665_v9, %v283_v31  ;;  %v365_v42 = vmax.f32 %v324_v32, 0.0  ;;  %v366_v43 = vmax.f32 %v325_v33, 0.0 }
  0x29   : > { %v367_v44 = vmax.f32 %v326_v34, 0.0  ;;  %v368_v45 = vmax.f32 %v327_v35, 0.0  ;;  %v369_v48 = vmax.f32 %v328_v36, 0.0  ;;  %v370_v49 = vmax.f32 %v329_v37, 0.0 }
  0x2a   : > { %v371_v50 = vmax.f32 %v330_v38, 0.0  ;;  %v372_v51 = vmax.f32 %v331_v39, 0.0  ;;  %407 = vst.msk [vmem:[%s682_s25 + $0x80] sm:$0xff] %vm390_vm0, %v365_v42  ;;  %408 = vst.msk [vmem:[%s682_s25 + $0x88] sm:$0xff] %vm390_vm0, %v366_v43  ;;  %v553_v54 = vunpack.c.l.bf16 %v591_v41  ;;  %v554_v55 = vunpack.c.h.bf16 %v591_v41 }
  0x2b   : > { %409 = vst.msk [vmem:[%s682_s25 + $0x90] sm:$0xff] %vm390_vm0, %v367_v44  ;;  %410 = vst.msk [vmem:[%s682_s25 + $0x98] sm:$0xff] %vm390_vm0, %v368_v45  ;;  %v557_v56 = vunpack.c.l.bf16 %v592_v46  ;;  %v558_v57 = vunpack.c.h.bf16 %v592_v46  ;;  %v561_v58 = vunpack.c.l.bf16 %v593_v47  ;;  %v562_v59 = vunpack.c.h.bf16 %v593_v47 }
  0x2c   : > { %411 = vst.msk [vmem:[%s682_s25 + $0xa0] sm:$0xff] %vm390_vm0, %v369_v48  ;;  %412 = vst.msk [vmem:[%s682_s25 + $0xa8] sm:$0xff] %vm390_vm0, %v370_v49  ;;  %v284_v60 = vmul.f32 %v549_v52, %v655_v0  ;;  %v285_v61 = vmul.f32 %v550_v53, %v655_v0  ;;  %v286_v62 = vmul.f32 %v553_v54, %v655_v0  ;;  %v565_v26 = vunpack.c.l.bf16 %v594_v14 }
  0x2d   : > { %413 = vst.msk [vmem:[%s682_s25 + $0xb0] sm:$0xff] %vm390_vm0, %v371_v50  ;;  %414 = vst.msk [vmem:[%s682_s25 + $0xb8] sm:$0xff] %vm390_vm0, %v372_v51  ;;  %v287_v63 = vmul.f32 %v554_v55, %v655_v0  ;;  %v288_v1 = vmul.f32 %v557_v56, %v655_v0  ;;  %v289_v2 = vmul.f32 %v558_v57, %v655_v0  ;;  %v566_v27 = vunpack.c.h.bf16 %v594_v14  ;;  %v211_v50 = vld [vmem:[%s650_s17 + $0xa0] sm:$0x3] }
  0x2e   : > { %v290_v3 = vmul.f32 %v561_v58, %v655_v0  ;;  %v291_v4 = vmul.f32 %v562_v59, %v655_v0  ;;  %v332_v5 = vadd.f32 %v665_v9, %v284_v60  ;;  %v333_v6 = vadd.f32 %v665_v9, %v285_v61 }
  0x2f   : > { %v334_v7 = vadd.f32 %v665_v9, %v286_v62  ;;  %v335_v8 = vadd.f32 %v665_v9, %v287_v63  ;;  %v336_v10 = vadd.f32 %v665_v9, %v288_v1  ;;  %v337_v11 = vadd.f32 %v665_v9, %v289_v2 }
  0x30   : > { %v338_v12 = vadd.f32 %v665_v9, %v290_v3  ;;  %v339_v13 = vadd.f32 %v665_v9, %v291_v4  ;;  %v373_v16 = vmax.f32 %v332_v5, 0.0  ;;  %v374_v17 = vmax.f32 %v333_v6, 0.0 }
  0x31   : > { %v375_v18 = vmax.f32 %v334_v7, 0.0  ;;  %v376_v19 = vmax.f32 %v335_v8, 0.0  ;;  %v377_v22 = vmax.f32 %v336_v10, 0.0  ;;  %v378_v23 = vmax.f32 %v337_v11, 0.0 }
  0x32   : > { %v379_v24 = vmax.f32 %v338_v12, 0.0  ;;  %v380_v25 = vmax.f32 %v339_v13, 0.0  ;;  %415 = vst.msk [vmem:[%s682_s25 + $0xc0] sm:$0xff] %vm390_vm0, %v373_v16  ;;  %416 = vst.msk [vmem:[%s682_s25 + $0xc8] sm:$0xff] %vm390_vm0, %v374_v17  ;;  %v569_v28 = vunpack.c.l.bf16 %v595_v15  ;;  %v570_v29 = vunpack.c.h.bf16 %v595_v15 }
  0x33   : > { %417 = vst.msk [vmem:[%s682_s25 + $0xd0] sm:$0xff] %vm390_vm0, %v375_v18  ;;  %418 = vst.msk [vmem:[%s682_s25 + $0xd8] sm:$0xff] %vm390_vm0, %v376_v19  ;;  %v573_v30 = vunpack.c.l.bf16 %v596_v20  ;;  %v574_v31 = vunpack.c.h.bf16 %v596_v20  ;;  %v577_v32 = vunpack.c.l.bf16 %v597_v21  ;;  %v578_v33 = vunpack.c.h.bf16 %v597_v21 }
  0x34   : > { %419 = vst.msk [vmem:[%s682_s25 + $0xe0] sm:$0xff] %vm390_vm0, %v377_v22  ;;  %420 = vst.msk [vmem:[%s682_s25 + $0xe8] sm:$0xff] %vm390_vm0, %v378_v23  ;;  %v292_v34 = vmul.f32 %v565_v26, %v655_v0  ;;  %v293_v35 = vmul.f32 %v566_v27, %v655_v0  ;;  %v294_v36 = vmul.f32 %v569_v28, %v655_v0  ;;  %v252_v59 = vunpack.c.l.bf16 %v211_v50 }
  0x35   : > { %421 = vst.msk [vmem:[%s682_s25 + $0xf0] sm:$0xff] %vm390_vm0, %v379_v24  ;;  %422 = vst.msk [vmem:[%s682_s25 + $0xf8] sm:$0xff] %vm390_vm0, %v380_v25  ;;  %v295_v37 = vmul.f32 %v570_v29, %v655_v0  ;;  %v296_v38 = vmul.f32 %v573_v30, %v655_v0  ;;  %v297_v39 = vmul.f32 %v574_v31, %v655_v0 }
  0x36   : > { %v298_v40 = vmul.f32 %v577_v32, %v655_v0  ;;  %v299_v41 = vmul.f32 %v578_v33, %v655_v0  ;;  %v340_v42 = vadd.f32 %v665_v9, %v292_v34  ;;  %v341_v43 = vadd.f32 %v665_v9, %v293_v35 }
  0x37   : > { %v342_v44 = vadd.f32 %v665_v9, %v294_v36  ;;  %v343_v45 = vadd.f32 %v665_v9, %v295_v37  ;;  %v344_v46 = vadd.f32 %v665_v9, %v296_v38  ;;  %v345_v47 = vadd.f32 %v665_v9, %v297_v39 }
  0x38   : > { %v346_v48 = vadd.f32 %v665_v9, %v298_v40  ;;  %v347_v49 = vadd.f32 %v665_v9, %v299_v41  ;;  %v381_v51 = vmax.f32 %v340_v42, 0.0  ;;  %v382_v52 = vmax.f32 %v341_v43, 0.0 }
  0x39   : > { %v383_v53 = vmax.f32 %v342_v44, 0.0  ;;  %v384_v54 = vmax.f32 %v343_v45, 0.0  ;;  %v385_v55 = vmax.f32 %v344_v46, 0.0  ;;  %v386_v56 = vmax.f32 %v345_v47, 0.0 }
  0x3a   : > { %v387_v57 = vmax.f32 %v346_v48, 0.0  ;;  %v388_v58 = vmax.f32 %v347_v49, 0.0  ;;  %423 = vst.msk [vmem:[%s682_s25 + $0x100] sm:$0xff] %vm390_vm0, %v381_v51  ;;  %424 = vst.msk [vmem:[%s682_s25 + $0x108] sm:$0xff] %vm390_vm0, %v382_v52  ;;  %v300_v60 = vmul.f32 %v655_v0, %v252_v59 }
  0x3b   : > { %425 = vst.msk [vmem:[%s682_s25 + $0x110] sm:$0xff] %vm390_vm0, %v383_v53  ;;  %426 = vst.msk [vmem:[%s682_s25 + $0x118] sm:$0xff] %vm390_vm0, %v384_v54 }
  0x3c   : > { %427 = vst.msk [vmem:[%s682_s25 + $0x120] sm:$0xff] %vm390_vm0, %v385_v55  ;;  %428 = vst.msk [vmem:[%s682_s25 + $0x128] sm:$0xff] %vm390_vm0, %v386_v56  ;;  %v348_v61 = vadd.f32 %v665_v9, %v300_v60 }
  0x3d   : > { %429 = vst.msk [vmem:[%s682_s25 + $0x130] sm:$0xff] %vm390_vm0, %v387_v57  ;;  %430 = vst.msk [vmem:[%s682_s25 + $0x138] sm:$0xff] %vm390_vm0, %v388_v58 }
  0x3e   : > { %v389_v62 = vmax.f32 %v348_v61, 0.0 }
  0x40   : > { %432 = vst.msk [vmem:[%s682_s25 + $0x140] sm:$0xf] %vm431_vm1, %v389_v62 }
  0x41 PF: > { %s13_s12 = sadd.s32 1, %s614_s12  }
  0x42   : > { %p10_p4 = scmp.ge.s32.totalorder %s13_s12, 4  }
  0x44   :  { %12 = sbr.rel (!%p10_p4) target bundleno = 1 (0x1), region = 62 }

// kernel: double_conv_forward.3
= control target key start
LH: loop header
LB: loop body
LE: loop exit
PB: predicated region body
PF: predicated region fallthrough
CT: control target
= control target key end

     0   :  { %s6150_s15 = smov 0   ;;  %s7569_s0 = inlined_call_operand.vmem [shape: bf16[2,324,4], index: 0, kind: input, shape index: {}]   ;;  %s7570_s1 = inlined_call_operand.vmem [shape: f32[324,1], index: 1, kind: input, shape index: {}]   ;;  %s7571_s2 = inlined_call_operand.vmem [shape: bf16[9,4,8], index: 2, kind: input, shape index: {}]   ;;  %s7572_s3 = inlined_call_operand.vmem [shape: bf16[2,324,8], index: 3, kind: output, shape index: {0}]   ;;  %s7573_s4 = inlined_call_operand.vmem [shape: f32[2,2,8], index: 4, kind: output, shape index: {1}]  }
   0x1 LB: > { %s4872_s16 = sadd.s32 4294967295, %s6122_s15   ;;  %p4876_p0 = scmp.ge.s32.totalorder %s6122_s15, 1  ;;  %s6122_s15 = sphi %s6150_s15, %s15_s15  }
   0x2   : > { %p165_p1 = scmp.lt.s32.totalorder %s6122_s15, 3 }
   0x4   : > { %p166_p2 = pnand %p4876_p0, %p165_p1 }
   0x5   : > { %vm539_vm0 = vcmask (!%p166_p2), 1041408   ;;  %v4993_v0 = vld [vmem:[%s7571_s2 + $0x8] sm:$0x3] (!%p166_p2)  ;;  %v4880_v1 = vld [vmem:[%s7571_s2 + $0x2] sm:$0x3] (!%p166_p2)  ;;  %p195_p3 = scmp.lt.s32.totalorder (!%p166_p2), %s4872_s16, 1 }
   0x6   : > { %169 = sbr.rel (%p166_p2) target bundleno = 652 (0x28c), region = 32  ;;  %6010 = vmatprep.subr.msk.bf16.mxu0 (!%p166_p2), %vm539_vm0, %v4993_v0  ;;  %6006 = vmatprep.subr.msk.bf16.mxu1 (!%p166_p2), %vm539_vm0, %v4880_v1  ;;  %v6167_v2 = vsel (!%p166_p2), %vm539_vm0, %v4993_v0, 0  ;;  %v541_v3 = vsel (!%p166_p2), %vm539_vm0, %v4880_v1, 0  ;;  %v5031_v4 = vld [vmem:[%s7571_s2 + $0xa] sm:$0x3] (!%p166_p2)  ;;  %vm484_vm2 = vcmask (!%p166_p2), 31744  }
   0x7   : > { %5527 = vmatpush3.bf16.msra.mxu0 (!%p166_p2), %v6167_v2  ;;  %5375 = vmatpush3.bf16.msra.mxu1 (!%p166_p2), %v541_v3  ;;  %v246_v5 = vld [vmem:[%s7571_s2] sm:$0x3] (!%p166_p2)  ;;  %vm340_vm1 = vsmask.f32 (!%p166_p2), 7424  ;;  %v6190_v6 = vsel (!%p166_p2), %vm539_vm0, %v5031_v4, 0  ;;  %vm2260_vm4 = vcmask (!%p166_p2), 1045504  }
   0x8   : > { %6012 = vmatprep.subr.msk.bf16.mxu0 (!%p166_p2), %vm539_vm0, %v5031_v4  ;;  %6007 = vmatprep.subr.msk.bf16.mxu1 (!%p166_p2), %vm539_vm0, %v246_v5  ;;  %vm1817_vm3 = vsmask.f32 (!%p166_p2), 6400  ;;  %v761_v12 = vsel (!%p166_p2), %vm539_vm0, %v246_v5, 0  ;;  %v6234_v39 = vld [vmem:[%s7571_s2 + $0x4] sm:$0x3] (!%p166_p2)  ;;  %vm946_vm5 = vcmask (!%p166_p2), 1046528  }
   0x9   : > { %v6268_v1 = vld [vmem:[%s7571_s2 + $0xc] sm:$0x3] (!%p166_p2)  ;;  %vm4020_vm6 = vcmask (!%p166_p2), 60416   ;;  %vm4023_vm7 = vcmask (!%p166_p2), 58368   ;;  %vm4024_vm8 = vsmask.f32 (!%p166_p2), 1280 }
   0xa   : > { %vm4025_vm9 = vmand (!%p166_p2), %vm4023_vm7, %vm4024_vm8  ;;  %vm3013_vm10 = vsmask.f32 (!%p166_p2), 5376  ;;  %vm3460_vm11 = vcmask (!%p166_p2), 1044480   ;;  %vm4030_vm12 = vsmask.f32 (!%p166_p2), 7938  ;;  %vm4591_vm15 = vcmask (!%p166_p2), 64512  }
   0xb   : > { %vm4031_vm13 = vmand (!%p166_p2), %vm4020_vm6, %vm4030_vm12  ;;  %vm4146_vm14 = vsmask.f32 (!%p166_p2), 5392 }
   0xd   : > { %s7581_s16 = smov (!%p195_p3, %s4872_s16), 1 }
   0xe   : > { %s6016_s25 = smul.u32 164, %s7581_s16 }
  0x10   : > { %s6187_s28 = scalar_lea.vmem %s7569_s0, %s6016_s25  ;;  %s6624_s17 = scalar_lea.vmem %s7572_s3, %s6016_s25 }
  0x11   : > { %v210_v7 = vld [vmem:[%s6187_s28] sm:$0xf]  ;;  %v6194_v8 = vld [vmem:[%s6187_s28 + $0x4] sm:$0xf]  ;;  %v6200_v10 = vld [vmem:[%s6187_s28 + $0x8] sm:$0xff]  }
  0x12   : > { %v6197_v9 = vcombine.low %v210_v7, %v6194_v8  ;;  %v1685_v11 = vld [vmem:[%s6187_s28 + $0x8] sm:$0xe]  ;;  %v6205_v13 = vld [vmem:[%s6187_s28 + $0xc] sm:$0xf]  ;;  %v349_v16 = vshll.u32 %v6200_v10, 16  ;;  %v353_v17 = vshrl.u32 %v6200_v10, 16 }
  0x13   : > { %v6212_v18 = vld [vmem:[%s6187_s28 + $0x10] sm:$0xff]   ;;  %v4994_v20 = vcombine.low %v1685_v11, %v6205_v13  ;;  %v6222_v28 = vld [vmem:[%s6187_s28 + $0x18] sm:$0xff]   ;;  %v6228_v34 = vld [vmem:[%s6187_s28 + $0x20] sm:$0xff]  }
  0x14   : > { %v342_v14 = vshrl.u32 %v6197_v9, 16  ;;  %v344_v15 = vshll.u32 %v6197_v9, 16  ;;  %v6215_v19 = vld [vmem:[%s6187_s28 + $0x10] sm:$0xff]   ;;  %v351_v22 = vrot.slane %v349_v16, 1  ;;  %v1827_v23 = vshrl.u32 %v6212_v18, 16  ;;  %v6225_v33 = vld [vmem:[%s6187_s28 + $0x18] sm:$0xff]  }
  0x15   : > { %v1830_v24 = vshll.u32 %v6212_v18, 16  ;;  %v1819_v25 = vshrl.u32 %v4994_v20, 16  ;;  %v1822_v26 = vshll.u32 %v4994_v20, 16  ;;  %v357_v27 = vshll.u32 %v6215_v19, 16  ;;  %v6243_v48 = vld [vmem:[%s6187_s28 + $0x20] sm:$0xff]   ;;  %v6246_v49 = vld [vmem:[%s6187_s28 + $0x28] sm:$0xff]  }
  0x16   : > { %v346_v21 = vrot.slane %v344_v15, 1  ;;  %v355_v30 = vor.u32 %v353_v17, %v351_v22  ;;  %v1829_v31 = vrot.slane %v1827_v23, 1  ;;  %v1836_v38 = vshrl.u32 %v6222_v28, 16  ;;  %v6252_v54 = vld [vmem:[%s6187_s28 + $0x28] sm:$0xff]   ;;  %v6258_v59 = vld [vmem:[%s6187_s28 + $0x30] sm:$0xff]  }
  0x17   : > { %v1832_v32 = vrot.slane %v1830_v24, 2  ;;  %v1821_v35 = vrot.slane %v1819_v25, 1  ;;  %v1824_v36 = vrot.slane %v1822_v26, 2  ;;  %v359_v37 = vrot.slane %v357_v27, 1  ;;  %v6263_v0 = vld [vmem:[%s6187_s28 + $0x30] sm:$0xff]  }
  0x18   : > { %v347_v29 = vor.u32 %v346_v21, %v342_v14  ;;  %v1839_v42 = vshll.u32 %v6222_v28, 16  ;;  %v361_v43 = vshrl.u32 %v6215_v19, 16  ;;  %v1838_v46 = vrot.slane %v1836_v38, 1 }
  0x19   : > { %v1833_v41 = vor.u32 %v1832_v32, %v1829_v31  ;;  %v1825_v44 = vor.u32 %v1824_v36, %v1821_v35  ;;  %v360_v45 = vsel %vm340_vm1, %v355_v30, %v359_v37  ;;  %v365_v47 = vshll.u32 %v6225_v33, 16  ;;  %v6291_v32 = vld [vmem:[%s6187_s28 + $0x38] sm:$0xff]  }
  0x1a   : > { %v352_v40 = vsel %vm340_vm1, %v347_v29, %v351_v22  ;;  %v1841_v50 = vrot.slane %v1839_v42, 2  ;;  %v363_v51 = vor.u32 %v361_v43, %v359_v37  ;;  %v1845_v52 = vshrl.u32 %v6228_v34, 16  ;;  %v6282_v22 = vld [vmem:[%s6187_s28 + $0x38] sm:$0xff]   ;;  %v6302_v43 = vld [vmem:[%s6187_s28 + $0x40] sm:$0xff]  }
  0x1b   : > { %5376 = vmatprep.mubr.msk.bf16.mxu1 %vm484_vm2, %v352_v40  ;;  %v1848_v53 = vshll.u32 %v6228_v34, 16  ;;  %v1834_v55 = vsel %vm1817_vm3, %v1825_v44, %v1833_v41  ;;  %v367_v56 = vrot.slane %v365_v47, 1  ;;  %v369_v57 = vshrl.u32 %v6225_v33, 16 }
  0x1c   : > { %5377 = vmatmul.mubr.msk.bf16.vlgmr.msra.gmra.mrb[0].mxu1 %vm484_vm2, %v360_v45  ;;  %v373_v58 = vshll.u32 %v6243_v48, 16  ;;  %5528 = vmatprep.mubr.msk.bf16.mxu0 %vm484_vm2, %v1834_v55  ;;  %v1842_v60 = vor.u32 %v1841_v50, %v1838_v46  ;;  %v1847_v61 = vrot.slane %v1845_v52, 1  ;;  %v1854_v63 = vshrl.u32 %v6246_v49, 16  ;;  %v6307_v50 = vld [vmem:[%s6187_s28 + $0x40] sm:$0xff]  }
  0x1d   : > { %5413 = vmatpush3.bf16.msra.mxu1 %v761_v12  ;;  %v1850_v62 = vrot.slane %v1848_v53, 2  ;;  %v368_v3 = vsel %vm340_vm1, %v363_v51, %v367_v56  ;;  %v371_v4 = vor.u32 %v369_v57, %v367_v56  ;;  %v1857_v7 = vshll.u32 %v6246_v49, 16 }
  0x1e   : > { %6008 = vmatprep.subr.msk.bf16.mxu1 %vm539_vm0, %v6234_v39  ;;  %v375_v5 = vrot.slane %v373_v58, 1  ;;  %v1843_v11 = vsel %vm1817_vm3, %v1833_v41, %v1842_v60  ;;  %5380 = vmatprep.mubr.msk.bf16.mxu1 %vm484_vm2, %v368_v3  ;;  %v1856_v14 = vrot.slane %v1854_v63, 1  ;;  %v377_v15 = vshrl.u32 %v6243_v48, 16 }
  0x1f   : > { %v1851_v12 = vor.u32 %v1850_v62, %v1847_v61  ;;  %5529 = vmatmul.mubr.msk.bf16.vlgmr.msra.gmra.mrb[0].mxu0 %vm484_vm2, %v1843_v11  ;;  %v1859_v17 = vrot.slane %v1857_v7, 2  ;;  %v381_v20 = vshll.u32 %v6252_v54, 16  ;;  %v1863_v21 = vshrl.u32 %v6258_v59, 16  ;;  %v6315_v61 = vld [vmem:[%s6187_s28 + $0x48] sm:$0xff]  }
  0x20   : > { %v376_v16 = vsel %vm340_vm1, %v371_v4, %v375_v5  ;;  %5565 = vmatpush3.bf16.msra.mxu0 %v6190_v6  ;;  %v379_v24 = vor.u32 %v377_v15, %v375_v5  ;;  %v1866_v25 = vshll.u32 %v6258_v59, 16  ;;  %v385_v26 = vshrl.u32 %v6252_v54, 16  ;;  %v6318_v62 = vld [vmem:[%s6187_s28 + $0x48] sm:$0xff]  }
  0x21   : > { %v1852_v23 = vsel %vm1817_vm3, %v1842_v60, %v1851_v12  ;;  %v1860_v27 = vor.u32 %v1859_v17, %v1856_v14  ;;  %v383_v29 = vrot.slane %v381_v20, 1  ;;  %v1865_v30 = vrot.slane %v1863_v21, 1  ;;  %6013 = vmatprep.subr.msk.bf16.mxu0 %vm539_vm0, %v6268_v1 }
  0x22   : > { %5532 = vmatprep.mubr.msk.bf16.mxu0 %vm484_vm2, %v1852_v23  ;;  %v389_v31 = vshll.u32 %v6263_v0, 16  ;;  %v1868_v6 = vrot.slane %v1866_v25, 2  ;;  %v1872_v35 = vshrl.u32 %v6282_v22, 16  ;;  %v1875_v36 = vshll.u32 %v6282_v22, 16  ;;  %v6335_v23 = vld [vmem:[%s6187_s28 + $0x50] sm:$0xff]  }
  0x23   : > { %v393_v37 = vshrl.u32 %v6263_v0, 16  ;;  %v1861_v38 = vsel %vm1817_vm3, %v1851_v12, %v1860_v27  ;;  %v384_v40 = vsel %vm340_vm1, %v379_v24, %v383_v29  ;;  %v387_v41 = vor.u32 %v385_v26, %v383_v29  ;;  %v6327_v12 = vld [vmem:[%s6187_s28 + $0x50] sm:$0xff]   ;;  %v6340_v26 = vld [vmem:[%s6187_s28 + $0x58] sm:$0xff]  }
  0x24   : > { %5381 = vmatmul.mubr.msk.bf16.gmra.mrb[4].mxu1 %vm484_vm2, %v376_v16  ;;  %v391_v42 = vrot.slane %v389_v31, 1  ;;  %v1869_v44 = vor.u32 %v1868_v6, %v1865_v30  ;;  %v1874_v45 = vrot.slane %v1872_v35, 1  ;;  %v1877_v46 = vrot.slane %v1875_v36, 2 }
  0x25   : > { %5384 = vmatprep.mubr.msk.bf16.mxu1 %vm484_vm2, %v384_v40  ;;  %v397_v47 = vshll.u32 %v6291_v32, 16  ;;  %v1881_v53 = vshrl.u32 %v6302_v43, 16  ;;  %v1884_v55 = vshll.u32 %v6302_v43, 16  ;;  %v401_v60 = vshrl.u32 %v6291_v32, 16 }
  0x26   : > { %v392_v51 = vsel %vm340_vm1, %v387_v41, %v391_v42  ;;  %v395_v52 = vor.u32 %v393_v37, %v391_v42  ;;  %v1870_v56 = vsel %vm1817_vm3, %v1860_v27, %v1869_v44  ;;  %v1878_v57 = vor.u32 %v1877_v46, %v1874_v45 }
  0x27   : > { %v399_v58 = vrot.slane %v397_v47, 1  ;;  %5533 = vmatmul.mubr.msk.bf16.gmra.mrb[4].mxu0 %vm484_vm2, %v1861_v38  ;;  %v1883_v63 = vrot.slane %v1881_v53, 1  ;;  %v1886_v3 = vrot.slane %v1884_v55, 2  ;;  %v405_v4 = vshll.u32 %v6307_v50, 16  ;;  %v6345_v38 = vld [vmem:[%s6187_s28 + $0x58] sm:$0xff]  }
  0x28   : > { %v409_v5 = vshrl.u32 %v6307_v50, 16  ;;  %5536 = vmatprep.mubr.msk.bf16.mxu0 %vm484_vm2, %v1870_v56  ;;  %v1890_v11 = vshrl.u32 %v6315_v61, 16  ;;  %v1893_v15 = vshll.u32 %v6315_v61, 16  ;;  %v413_v16 = vshll.u32 %v6318_v62, 16  ;;  %v2254_v55 = vld [vmem:[%s6187_s28 + $0x8] sm:$0xc] }
  0x29   : > { %v400_v7 = vsel %vm340_vm1, %v395_v52, %v399_v58  ;;  %v1887_v14 = vor.u32 %v1886_v3, %v1883_v63  ;;  %v407_v17 = vrot.slane %v405_v4, 1  ;;  %v1899_v20 = vshrl.u32 %v6327_v12, 16  ;;  %v6359_v56 = vld [vmem:[%s6187_s28 + $0x60] sm:$0xff]  }
  0x2a   : > { %v1902_v21 = vshll.u32 %v6327_v12, 16  ;;  %v1879_v24 = vsel %vm1817_vm3, %v1869_v44, %v1878_v57  ;;  %v403_v25 = vor.u32 %v401_v60, %v399_v58  ;;  %v1892_v27 = vrot.slane %v1890_v11, 1 }
  0x2b   : > { %v1895_v29 = vrot.slane %v1893_v15, 2  ;;  %v411_v30 = vor.u32 %v409_v5, %v407_v17  ;;  %v415_v31 = vrot.slane %v413_v16, 1  ;;  %v1888_v6 = vsel %vm1817_vm3, %v1878_v57, %v1887_v14  ;;  %v6364_v5 = vld [vmem:[%s6187_s28 + $0x68] sm:$0xff]  }
  0x2c   : > { %5385 = vmatmul.mubr.msk.bf16.gmra.mrb[8].mxu1 %vm484_vm2, %v392_v51  ;;  %v1901_v35 = vrot.slane %v1899_v20, 1  ;;  %v1904_v36 = vrot.slane %v1902_v21, 2  ;;  %v421_v37 = vshll.u32 %v6335_v23, 16  ;;  %v408_v40 = vsel %vm340_vm1, %v403_v25, %v407_v17 }
  0x2d   : > { %5388 = vmatprep.mubr.msk.bf16.mxu1 %vm484_vm2, %v400_v7  ;;  %v417_v41 = vshrl.u32 %v6318_v62, 16  ;;  %v1908_v42 = vshrl.u32 %v6340_v26, 16  ;;  %v1911_v44 = vshll.u32 %v6340_v26, 16  ;;  %v1896_v45 = vor.u32 %v1895_v29, %v1892_v27  ;;  %v6381_v29 = vld [vmem:[%s6187_s28 + $0x70] sm:$0xff]  }
  0x2e   : > { %v416_v46 = vsel %vm340_vm1, %v411_v30, %v415_v31  ;;  %v425_v47 = vshrl.u32 %v6335_v23, 16  ;;  %v429_v51 = vshll.u32 %v6345_v38, 16  ;;  %v1905_v52 = vor.u32 %v1904_v36, %v1901_v35  ;;  %v6387_v36 = vld [vmem:[%s6187_s28 + $0x78] sm:$0xff]  }
  0x2f   : > { %5537 = vmatmul.mubr.msk.bf16.gmra.mrb[8].mxu0 %vm484_vm2, %v1879_v24  ;;  %v423_v53 = vrot.slane %v421_v37, 1  ;;  %v419_v57 = vor.u32 %v417_v41, %v415_v31  ;;  %v1910_v58 = vrot.slane %v1908_v42, 1  ;;  %v1913_v60 = vrot.slane %v1911_v44, 2 }
  0x30   : > { %5540 = vmatprep.mubr.msk.bf16.mxu0 %vm484_vm2, %v1888_v6  ;;  %v1897_v63 = vsel %vm1817_vm3, %v1887_v14, %v1896_v45  ;;  %v431_v4 = vrot.slane %v429_v51, 1  ;;  %v1906_v7 = vsel %vm1817_vm3, %v1896_v45, %v1905_v52  ;;  %v5032_v11 = vcombine.low %v2254_v55, %v6205_v13  ;;  %v6401_v51 = vld [vmem:[%s6187_s28 + $0x80] sm:$0xff]  }
  0x31   : > { %v427_v3 = vor.u32 %v425_v47, %v423_v53  ;;  %v437_v15 = vshll.u32 %v6359_v56, 16  ;;  %v424_v16 = vsel %vm340_vm1, %v419_v57, %v423_v53  ;;  %v433_v17 = vshrl.u32 %v6345_v38, 16  ;;  %v247_v53 = vld [vmem:[%s6187_s28 + $0x8c] sm:$0xf] }
  0x32   : > { %v6373_v14 = vor.u32 %v1913_v60, %v1910_v58  ;;  %v441_v21 = vshrl.u32 %v6359_v56, 16  ;;  %v445_v24 = vshll.u32 %v6364_v5, 16  ;;  %v2261_v13 = vrot.slane %v5032_v11, 2 }
  0x33   : > { %v432_v20 = vsel %vm340_vm1, %v427_v3, %v431_v4  ;;  %v2262_v25 = vrot.slane %v6212_v18, 2  ;;  %v439_v27 = vrot.slane %v437_v15, 1  ;;  %v435_v30 = vor.u32 %v433_v17, %v431_v4 }
  0x34   : > { %5389 = vmatmul.mubr.msk.bf16.gmra.mrb[12].mxu1 %vm484_vm2, %v408_v40  ;;  %v1915_v31 = vsel %vm1817_vm3, %v1905_v52, %v6373_v14  ;;  %v447_v35 = vrot.slane %v445_v24, 1  ;;  %v453_v37 = vshll.u32 %v6381_v29, 16  ;;  %v449_v41 = vshrl.u32 %v6364_v5, 16  ;;  %v6404_v52 = vld [vmem:[%s6187_s28 + $0x88] sm:$0xf] }
  0x35   : > { %5392 = vmatprep.mubr.msk.bf16.mxu1 %vm484_vm2, %v416_v46  ;;  %v443_v6 = vor.u32 %v441_v21, %v439_v27  ;;  %v2263_v18 = vsel %vm2260_vm4, %v2261_v13, %v2262_v25  ;;  %v440_v40 = vsel %vm340_vm1, %v435_v30, %v439_v27  ;;  %v2264_v42 = vrot.slane %v6222_v28, 2 }
  0x36   : > { %v457_v45 = vshrl.u32 %v6381_v29, 16  ;;  %v461_v46 = vshll.u32 %v6387_v36, 16  ;;  %v2266_v47 = vrot.slane %v6228_v34, 2  ;;  %v455_v55 = vrot.slane %v453_v37, 1  ;;  %v6416_v34 = vld [vmem:[%s7571_s2 + $0xe] sm:$0x3] }
  0x37   : > { %5541 = vmatmul.mubr.msk.bf16.gmra.mrb[12].mxu0 %vm484_vm2, %v1897_v63  ;;  %v448_v44 = vsel %vm340_vm1, %v443_v6, %v447_v35  ;;  %v451_v57 = vor.u32 %v449_v41, %v447_v35  ;;  %v2265_v28 = vsel %vm2260_vm4, %v2262_v25, %v2264_v42  ;;  %v6411_v63 = vcombine.low %v6404_v52, %v247_v53  ;;  %v6060_v53 = vld [vmem:[%s6187_s28 + $0x70] sm:$0xff]  }
  0x38   : > { %5544 = vmatprep.mubr.msk.bf16.mxu0 %vm484_vm2, %v1906_v7  ;;  %v459_v58 = vor.u32 %v457_v45, %v455_v55  ;;  %v463_v60 = vrot.slane %v461_v46, 1  ;;  %v2792_v3 = vsel %vm539_vm0, %v6268_v1, 0  ;;  %v2267_v4 = vsel %vm2260_vm4, %v2264_v42, %v2266_v47  ;;  %v6058_v45 = vld [vmem:[%s6187_s28 + $0x60] sm:$0xff]  }
  0x39   : > { %v469_v7 = vshll.u32 %v6401_v51, 16  ;;  %v456_v11 = vsel %vm340_vm1, %v451_v57, %v455_v55  ;;  %v2268_v15 = vrot.slane %v6246_v49, 2  ;;  %v477_v1 = vshll.u32 %v6411_v63, 16 }
  0x3a   : > { %v464_v17 = vsel %vm340_vm1, %v459_v58, %v463_v60  ;;  %v2270_v21 = vrot.slane %v6258_v59, 2  ;;  %v2272_v59 = vrot.slane %v6282_v22, 2  ;;  %v2274_v35 = vrot.slane %v6302_v43, 2 }
  0x3b   : > { %v471_v24 = vrot.slane %v469_v7, 1  ;;  %v2269_v13 = vsel %vm2260_vm4, %v2266_v47, %v2268_v15  ;;  %v479_v27 = vrot.slane %v477_v1, 1  ;;  %v2276_v22 = vrot.slane %v6315_v61, 2  ;;  %v6059_v47 = vld [vmem:[%s6187_s28 + $0x68] sm:$0xff]  }
  0x3c   : > { %5393 = vmatmul.mubr.msk.bf16.gmra.mrb[16].mxu1 %vm484_vm2, %v424_v16  ;;  %v465_v16 = vshrl.u32 %v6387_v36, 16  ;;  %v2271_v30 = vsel %vm2260_vm4, %v2268_v15, %v2270_v21  ;;  %v2273_v37 = vsel %vm2260_vm4, %v2270_v21, %v2272_v59  ;;  %v2278_v42 = vrot.slane %v6327_v12, 2  ;;  %v6063_v15 = vld [vmem:[%s6187_s28 + $0x88] sm:$0xff]   ;;  %v2568_v21 = vld [vmem:[%s6187_s28 + $0x10] sm:$0xc] }
  0x3d   : > { %5396 = vmatprep.mubr.msk.bf16.mxu1 %vm484_vm2, %v432_v20  ;;  %v473_v20 = vshrl.u32 %v6401_v51, 16  ;;  %v2277_v43 = vsel %vm2260_vm4, %v2274_v35, %v2276_v22  ;;  %v2280_v61 = vrot.slane %v6340_v26, 2  ;;  %v1037_v12 = vsel %vm539_vm0, %v6234_v39, 0 }
  0x3e   : > { %v467_v49 = vor.u32 %v465_v16, %v463_v60  ;;  %v2282_v46 = vrot.slane %v6058_v45, 2  ;;  %v2284_v55 = vrot.slane %v6059_v47, 2  ;;  %v2286_v57 = vrot.slane %v6060_v53, 2  ;;  %v6568_v47 = vld [vmem:[%s6187_s28 + $0x40] sm:$0xff]   ;;  %v6572_v53 = vld [vmem:[%s6187_s28 + $0x48] sm:$0xff]  }
  0x3f   : > { %5545 = vmatmul.mubr.msk.bf16.gmra.mrb[16].mxu0 %vm484_vm2, %v1915_v31  ;;  %v475_v25 = vor.u32 %v473_v20, %v471_v24  ;;  %v2281_v26 = vsel %vm2260_vm4, %v2278_v42, %v2280_v61  ;;  %v2292_v20 = vrot.slane %v6063_v15, 2 }
  0x40   : > { %5566 = vmatprep.mubr.msk.bf16.mxu0 %vm484_vm2, %v2263_v18  ;;  %v472_v31 = vsel %vm340_vm1, %v467_v49, %v471_v24  ;;  %v481_v18 = vshrl.u32 %v6411_v63, 16  ;;  %v2283_v39 = vsel %vm2260_vm4, %v2280_v61, %v2282_v46  ;;  %v2285_v58 = vsel %vm2260_vm4, %v2282_v46, %v2284_v55  ;;  %v6504_v24 = vld [vmem:[%s6187_s28 + $0x14] sm:$0xf]  ;;  %v6549_v61 = vld [vmem:[%s6187_s28 + $0x38] sm:$0xff]  }
  0x41   : > { %v480_v6 = vsel %vm340_vm1, %v475_v25, %v479_v27  ;;  %v2287_v60 = vsel %vm2260_vm4, %v2284_v55, %v2286_v57  ;;  %v940_v55 = vld [vmem:[%s6187_s28] sm:$0xe]  ;;  %vm4545_vm1 = vsmask.f32 7942 }
  0x42   : > { %v483_v41 = vor.u32 %v481_v18, %v479_v27  ;;  %v6512_v27 = vcombine.low %v2568_v21, %v6504_v24  ;;  %v6527_v18 = vld [vmem:[%s6187_s28 + $0x20] sm:$0xff]  }
  0x43   : > { %v6604_v21 = vld [vmem:[%s6187_s28 + $0x60] sm:$0xff]  }
  0x44   : > { %5397 = vmatmul.mubr.msk.bf16.gmra.mrb[20].mxu1 %vm484_vm2, %v440_v40  ;;  %v2275_v40 = vsel %vm2260_vm4, %v2272_v59, %v2274_v35  ;;  %v2700_v59 = vrot.slane %v6512_v27, 2 }
  0x45   : > { %5400 = vmatprep.mubr.msk.bf16.mxu1 %vm484_vm2, %v448_v44  ;;  %v2279_v44 = vsel %vm2260_vm4, %v2276_v22, %v2278_v42 }
  0x47   : > { %5567 = vmatmul.mubr.msk.bf16.vlgmr.msra.gmra.mrb[0].mxu0 %vm484_vm2, %v2265_v28  ;;  %v6061_v28 = vld [vmem:[%s6187_s28 + $0x78] sm:$0xff]  }
  0x48   : > { %5603 = vmatpush3.bf16.msra.mxu0 %v2792_v3  ;;  %5570 = vmatprep.mubr.msk.bf16.mxu0 %vm484_vm2, %v2267_v4  ;;  %v6062_v3 = vld [vmem:[%s6187_s28 + $0x80] sm:$0xff]   ;;  %v2288_v4 = vrot.slane %v6061_v28, 2  ;;  %v4937_v28 = vcombine.low %v940_v55, %v6194_v8  ;;  %v6592_v8 = vld [vmem:[%s6187_s28 + $0x58] sm:$0xff]  }
  0x49   : > { %6014 = vmatprep.subr.msk.bf16.mxu0 %vm539_vm0, %v6416_v34  ;;  %v2290_v7 = vrot.slane %v6062_v3, 2 }
  0x4b   : > { %v2291_v16 = vsel %vm2260_vm4, %v2288_v4, %v2290_v7  ;;  %v2293_v49 = vsel %vm2260_vm4, %v2290_v7, %v2292_v20  ;;  %v947_v7 = vrot.slane %v4937_v28, 1  ;;  %v3769_v28 = vld [vmem:[%s7570_s1 + $0x1b] sm:$0xff] }
  0x4c   : > { %5401 = vmatmul.mubr.msk.bf16.gmra.mrb[24].mxu1 %vm484_vm2, %v456_v11  ;;  %v2289_v11 = vsel %vm2260_vm4, %v2286_v57, %v2288_v4  ;;  %v2711_v57 = vrot.slane %v6568_v47, 2  ;;  %v6587_v4 = vld [vmem:[%s6187_s28 + $0x50] sm:$0xff]  }
  0x4d   : > { %5404 = vmatprep.mubr.msk.bf16.mxu1 %vm484_vm2, %v464_v17  ;;  %v6064_v17 = vld [vmem:[%s6187_s28 + $0x90] sm:$0xff]  }
  0x4e   : > { %v2294_v1 = vrot.slane %v6064_v17, 2  ;;  %v2715_v17 = vrot.slane %v6587_v4, 2 }
  0x4f   : > { %5571 = vmatmul.mubr.msk.bf16.gmra.mrb[4].mxu0 %vm484_vm2, %v2269_v13  ;;  %v6065_v13 = vld [vmem:[%s6187_s28 + $0x98] ss:$0 sps:$4 sm:$0x11]  }
  0x50   : > { %5574 = vmatprep.mubr.msk.bf16.mxu0 %vm484_vm2, %v2271_v30  ;;  %v2295_v25 = vsel %vm2260_vm4, %v2292_v20, %v2294_v1  ;;  %v6515_v30 = vld [vmem:[%s6187_s28 + $0x18] sm:$0xff]  }
  0x54   : > { %5405 = vmatmul.mubr.msk.bf16.gmra.mrb[28].mxu1 %vm484_vm2, %v472_v31  ;;  %v2296_v31 = vrot.slane %v6065_v13, 2 }
  0x55   : > { %5408 = vmatprep.mubr.msk.bf16.mxu1 %vm484_vm2, %v480_v6  ;;  %v2701_v6 = vrot.slane %v6515_v30, 2 }
  0x56   : > { %v2297_v35 = vsel %vm2260_vm4, %v2294_v1, %v2296_v31  ;;  %v2717_v1 = vrot.slane %v6592_v8, 2 }
  0x57   : > { %5575 = vmatmul.mubr.msk.bf16.gmra.mrb[8].mxu0 %vm484_vm2, %v2273_v37  ;;  %v2702_v37 = vsel %vm2260_vm4, %v2700_v59, %v2701_v6  ;;  %v2719_v59 = vrot.slane %v6604_v21, 2 }
  0x58   : > { %5578 = vmatprep.mubr.msk.bf16.mxu0 %vm484_vm2, %v2275_v40  ;;  %v6531_v40 = vld [vmem:[%s6187_s28 + $0x28] sm:$0xff]   ;;  %v2718_v13 = vsel %vm2260_vm4, %v2715_v17, %v2717_v1 }
  0x59   : > { %v2705_v22 = vrot.slane %v6531_v40, 2 }
  0x5c   : > { %5409 = vmatmul.mubr.msk.bf16.gmra.mrb[32].mxu1 %vm484_vm2, %v483_v41  ;;  %v2703_v41 = vrot.slane %v6527_v18, 2 }
  0x5d   : > { %5414 = vmatprep.mubr.msk.bf16.mxu1 %vm484_vm2, %v6197_v9  ;;  %v6466_v9 = vld [vmem:[%s7571_s2 + $0x6] sm:$0x3] }
  0x5e   : > { %v2704_v42 = vsel %vm2260_vm4, %v2701_v6, %v2703_v41  ;;  %v2706_v45 = vsel %vm2260_vm4, %v2703_v41, %v2705_v22  ;;  %v954_v41 = vrot.slane %v6243_v48, 1 }
  0x5f   : > { %5579 = vmatmul.mubr.msk.bf16.gmra.mrb[12].mxu0 %vm484_vm2, %v2277_v43  ;;  %v6543_v43 = vld [vmem:[%s6187_s28 + $0x30] sm:$0xff]  }
  0x60   : > { %5582 = vmatprep.mubr.msk.bf16.mxu0 %vm484_vm2, %v2279_v44  ;;  %v3239_v44 = vsel %vm539_vm0, %v6416_v34, 0  ;;  %v2707_v46 = vrot.slane %v6543_v43, 2 }
  0x62   : > { %v2708_v34 = vsel %vm2260_vm4, %v2705_v22, %v2707_v46  ;;  %v2720_v22 = vsel %vm2260_vm4, %v2717_v1, %v2719_v59 }
  0x64   : > { %5415 = vmatmul.mubr.msk.bf16.vlgmr.msra.gmra.mrb[0].mxu1 %vm484_vm2, %v6200_v10 }
  0x65   : > { %5418 = vmatprep.mubr.msk.bf16.mxu1 %vm484_vm2, %v6215_v19  ;;  %5451 = vmatpush3.bf16.msra.mxu1 %v1037_v12  ;;  %v6554_v12 = vld [vmem:[%s7571_s2 + $0x10] sm:$0x3] }
  0x66   : > { %6009 = vmatprep.subr.msk.bf16.mxu1 %vm539_vm0, %v6466_v9 }
  0x67   : > { %5583 = vmatmul.mubr.msk.bf16.gmra.mrb[16].mxu0 %vm484_vm2, %v2281_v26  ;;  %v2709_v26 = vrot.slane %v6549_v61, 2 }
  0x68   : > { %5586 = vmatprep.mubr.msk.bf16.mxu0 %vm484_vm2, %v2283_v39 }
  0x69   : > { %v2710_v39 = vsel %vm2260_vm4, %v2707_v46, %v2709_v26  ;;  %v2712_v3 = vsel %vm2260_vm4, %v2709_v26, %v2711_v57  ;;  %v6651_v26 = vld [vmem:[%s6187_s28 + $0x78] sm:$0xff]  }
  0x6c   : > { %5419 = vmatmul.mubr.msk.bf16.gmra.mrb[4].mxu1 %vm484_vm2, %v6225_v33 }
  0x6d   : > { %5422 = vmatprep.mubr.msk.bf16.mxu1 %vm484_vm2, %v6243_v48 }
  0x6f   : > { %5587 = vmatmul.mubr.msk.bf16.gmra.mrb[20].mxu0 %vm484_vm2, %v2285_v58  ;;  %v2713_v58 = vrot.slane %v6572_v53, 2 }
  0x70   : > { %5590 = vmatprep.mubr.msk.bf16.mxu0 %vm484_vm2, %v2287_v60  ;;  %v245_v60 = vld [vmem:[%s6187_s28 + $0x8c] sm:$0x7] }
  0x71   : > { %v2714_v15 = vsel %vm2260_vm4, %v2711_v57, %v2713_v58  ;;  %v2725_v57 = vrot.slane %v6651_v26, 2 }
  0x74   : > { %5423 = vmatmul.mubr.msk.bf16.gmra.mrb[8].mxu1 %vm484_vm2, %v6252_v54 }
  0x75   : > { %5426 = vmatprep.mubr.msk.bf16.mxu1 %vm484_vm2, %v6263_v0 }
  0x77   : > { %5591 = vmatmul.mubr.msk.bf16.gmra.mrb[24].mxu0 %vm484_vm2, %v2289_v11  ;;  %v948_v11 = vrot.slane %v6200_v10, 1  ;;  %v950_v10 = vrot.slane %v6215_v19, 1  ;;  %v1470_v19 = vsel %vm539_vm0, %v6466_v9, 0  ;;  %v6124_v9 = vmov 0  }
  0x78   : > { %5594 = vmatprep.mubr.msk.bf16.mxu0 %vm484_vm2, %v2291_v16  ;;  %v4917_v16 = vcombine.low %v6404_v52, %v245_v60  ;;  %v952_v52 = vrot.slane %v6225_v33, 1  ;;  %6026 = vset.pattern.permute.xlu0 %v6124_v9  ;;  %4021 = vst.msk [vmem:[%s6624_s17] sm:$0xf] %vm4020_vm6, %v6124_v9  ;;  %4022 = vst.msk [vmem:[%s6624_s17 + $0x4] sm:$0xf] %vm4020_vm6, %v6124_v9 }
  0x79   : > { %v949_v20 = vsel %vm946_vm5, %v947_v7, %v948_v11  ;;  %v951_v31 = vsel %vm946_vm5, %v948_v11, %v950_v10  ;;  %4035 = vst.msk [vmem:[%s6624_s17 + $0x9c] sm:$0xf] %vm4020_vm6, %v6124_v9  ;;  %6027 = vset.pattern.permute.xlu1 %v6124_v9  ;;  %v960_v7 = vrot.slane %v6291_v32, 1 }
  0x7a   : > { %v953_v6 = vsel %vm946_vm5, %v950_v10, %v952_v52  ;;  %4037 = vst.msk [vmem:[%s6624_s17 + $0xa0] sm:$0x3] %vm4023_vm7, %v6124_v9  ;;  %v955_v48 = vsel %vm946_vm5, %v952_v52, %v954_v41  ;;  %v3773_v10 = vld [vmem:[%s7570_s1 + $0x3b] sm:$0xff]  ;;  %v3774_v52 = vld [vmem:[%s7570_s1 + $0x43] sm:$0xff]  ;;  %v3776_v9 = vld [vmem:[%s7570_s1 + $0x53] sm:$0xff] }
  0x7b   : > { %vm4586_vm7 = vsmask.f32 256 }
  0x7c   : > { %5427 = vmatmul.mubr.msk.bf16.gmra.mrb[12].mxu1 %vm484_vm2, %v6291_v32 }
  0x7d   : > { %5430 = vmatprep.mubr.msk.bf16.mxu1 %vm484_vm2, %v6307_v50 }
  0x7f   : > { %5595 = vmatmul.mubr.msk.bf16.gmra.mrb[28].mxu0 %vm484_vm2, %v2293_v49  ;;  %v2716_v49 = vsel %vm2260_vm4, %v2713_v58, %v2715_v17  ;;  %v958_v58 = vrot.slane %v6263_v0, 1  ;;  %v3771_v0 = vld [vmem:[%s7570_s1 + $0x2b] sm:$0xff]  ;;  %v3772_v17 = vld [vmem:[%s7570_s1 + $0x33] sm:$0xff] }
  0x80   : > { %5598 = vmatprep.mubr.msk.bf16.mxu0 %vm484_vm2, %v2295_v25  ;;  %v6610_v25 = vld [vmem:[%s6187_s28 + $0x68] sm:$0xff]  }
  0x81   : > { %v2721_v33 = vrot.slane %v6610_v25, 2 }
  0x83   : > { %v2722_v46 = vsel %vm2260_vm4, %v2719_v59, %v2721_v33  ;;  %v964_v59 = vrot.slane %v6318_v62, 1 }
  0x84   : > { %5431 = vmatmul.mubr.msk.bf16.gmra.mrb[16].mxu1 %vm484_vm2, %v6318_v62 }
  0x85   : > { %5434 = vmatprep.mubr.msk.bf16.mxu1 %vm484_vm2, %v6335_v23 }
  0x87   : > { %5599 = vmatmul.mubr.msk.bf16.gmra.mrb[32].mxu0 %vm484_vm2, %v2297_v35  ;;  %v4026_v35 = vld [vmem:[%s6624_s17 + $0x8] sm:$0x3] }
  0x88   : > { %5604 = vmatprep.mubr.msk.bf16.mxu0 %vm484_vm2, %v2702_v37  ;;  %v4027_v37 = vsel %vm4025_vm9, 0, %v4026_v35 }
  0x89   : > { %4028 = vst [vmem:[%s6624_s17 + $0x8] sm:$0x3] %v4027_v37 }
  0x8c   : > { %5435 = vmatmul.mubr.msk.bf16.gmra.mrb[20].mxu1 %vm484_vm2, %v6345_v38 }
  0x8d   : > { %5438 = vmatprep.mubr.msk.bf16.mxu1 %vm484_vm2, %v6359_v56 }
  0x8f   : > { %5605 = vmatmul.mubr.msk.bf16.vlgmr.msra.gmra.mrb[0].mxu0 %vm484_vm2, %v2704_v42  ;;  %v6642_v42 = vld [vmem:[%s6187_s28 + $0x70] sm:$0xff]  }
  0x90   : > { %5641 = vmatpush3.bf16.msra.mxu0 %v3239_v44  ;;  %5608 = vmatprep.mubr.msk.bf16.mxu0 %vm484_vm2, %v2706_v45  ;;  %v956_v44 = vrot.slane %v6252_v54, 1  ;;  %v6107_v45 = vld [vmem:[%s7571_s2 + $0x8] sm:$0x3] }
  0x91   : > { %6015 = vmatprep.subr.msk.bf16.mxu0 %vm539_vm0, %v6554_v12  ;;  %v3770_v54 = vld [vmem:[%s7570_s1 + $0x23] sm:$0xff] }
  0x92   : > { %v957_v55 = vsel %vm946_vm5, %v954_v41, %v956_v44  ;;  %3816 = vperm.xlu1 %6027, %v3770_v54   ;;  %v3015_v41 = vshrl.u32 %v6512_v27, 16 }
  0x94   : > { %5439 = vmatmul.mubr.msk.bf16.gmra.mrb[24].mxu1 %vm484_vm2, %v6364_v5 }
  0x95   : > { %5442 = vmatprep.mubr.msk.bf16.mxu1 %vm484_vm2, %v6381_v29 }
  0x96   : > { %3821 = vperm.xlu1 %6027, %v3771_v0   ;;  %v3032_v0 = vshrl.u32 %v6527_v18, 16 }
  0x97   : > { %5609 = vmatmul.mubr.msk.bf16.gmra.mrb[4].mxu0 %vm484_vm2, %v2708_v34  ;;  %v3768_v34 = vld [vmem:[%s7570_s1 + $0x13] sm:$0xff] }
  0x98   : > { %5612 = vmatprep.mubr.msk.bf16.mxu0 %vm484_vm2, %v2710_v39  ;;  %v2723_v39 = vrot.slane %v6642_v42, 2  ;;  %3806 = vperm.xlu0 %6026, %v3768_v34   ;;  %v966_v34 = vrot.slane %v6335_v23, 1  ;;  %v3779_v23 = vld [vmem:[%s7570_s1 + $0x6b] sm:$0xff] }
  0x9a   : > { %v2724_v60 = vsel %vm2260_vm4, %v2721_v33, %v2723_v39  ;;  %v2726_v11 = vsel %vm2260_vm4, %v2723_v39, %v2725_v57  ;;  %3831 = vperm.xlu1 %6027, %v3773_v10   ;;  %v6086_v39 = vld [vmem:[%s6187_s28 + $0xa0] ss:$0 sps:$4 sm:$0x11]   ;;  %v3044_v10 = vshll.u32 %v6531_v40, 16 }
  0x9c   : > { %5443 = vmatmul.mubr.msk.bf16.gmra.mrb[28].mxu1 %vm484_vm2, %v6387_v36  ;;  %3811 = vperm.xlu0 %6026, %v3769_v28  }
  0x9d   : > { %5446 = vmatprep.mubr.msk.bf16.mxu1 %vm484_vm2, %v6401_v51 }
  0x9f   : > { %5613 = vmatmul.mubr.msk.bf16.gmra.mrb[8].mxu0 %vm484_vm2, %v2712_v3  ;;  %v6673_v3 = vld [vmem:[%s6187_s28 + $0x80] sm:$0xff]  }
  0xa0   : > { %5616 = vmatprep.mubr.msk.bf16.mxu0 %vm484_vm2, %v2714_v15  ;;  %v6678_v15 = vld [vmem:[%s6187_s28 + $0x88] sm:$0xff]   ;;  %v2727_v32 = vrot.slane %v6673_v3, 2  ;;  %3826 = vperm.xlu0 %6026, %v3772_v17   ;;  %v3035_v17 = vshll.u32 %v6527_v18, 16 }
  0xa1   : > { %v2729_v1 = vrot.slane %v6678_v15, 2 }
  0xa4   : > { %5447 = vmatmul.mubr.msk.bf16.gmra.mrb[32].mxu1 %vm484_vm2, %v4917_v16  ;;  %v959_v16 = vsel %vm946_vm5, %v956_v44, %v958_v58  ;;  %3836 = vperm.xlu0 %6026, %v3774_v52   ;;  %v3023_v44 = vshrl.u32 %v6515_v30, 16  ;;  %v3781_v52 = vld [vmem:[%s7570_s1 + $0x7b] sm:$0xff] }
  0xa5   : > { %5452 = vmatprep.mubr.msk.bf16.mxu1 %vm484_vm2, %v949_v20  ;;  %v961_v20 = vsel %vm946_vm5, %v958_v58, %v960_v7 }
  0xa6   : > { %v3025_v58 = vrot.slane %v3023_v44, 2  ;;  %v3050_v44 = vshrl.u32 %v6543_v43, 16 }
  0xa7   : > { %5617 = vmatmul.mubr.msk.bf16.gmra.mrb[12].mxu0 %vm484_vm2, %v2716_v49  ;;  %v962_v49 = vrot.slane %v6307_v50, 1  ;;  %v3775_v50 = vld [vmem:[%s7570_s1 + $0x4b] sm:$0xff] }
  0xa8   : > { %5620 = vmatprep.mubr.msk.bf16.mxu0 %vm484_vm2, %v2718_v13  ;;  %v2728_v13 = vsel %vm2260_vm4, %v2725_v57, %v2727_v32  ;;  %3841 = vperm.xlu1 %6027, %v3775_v50   ;;  %v3017_v57 = vrot.slane %v3015_v41, 2  ;;  %v972_v50 = vrot.slane %v6364_v5, 1 }
  0xa9   : > { %v963_v33 = vsel %vm946_vm5, %v960_v7, %v962_v49  ;;  %v965_v35 = vsel %vm946_vm5, %v962_v49, %v964_v59  ;;  %3846 = vperm.xlu0 %6026, %v3776_v9   ;;  %v967_v7 = vsel %vm946_vm5, %v964_v59, %v966_v34  ;;  %v3782_v49 = vld [vmem:[%s7570_s1 + $0x83] sm:$0xff] }
  0xac   : > { %5453 = vmatmul.mubr.msk.bf16.vlgmr.msra.gmra.mrb[0].mxu1 %vm484_vm2, %v951_v31  ;;  %v6703_v31 = vld [vmem:[%s6187_s28 + $0x90] sm:$0xff]  }
  0xad   : > { %5456 = vmatprep.mubr.msk.bf16.mxu1 %vm484_vm2, %v953_v6  ;;  %5489 = vmatpush3.bf16.msra.mxu1 %v1470_v19  ;;  %v6707_v6 = vld [vmem:[%s6187_s28 + $0x98] sm:$0xff]   ;;  %v2730_v19 = vsel %vm2260_vm4, %v2727_v32, %v2729_v1  ;;  %v2731_v62 = vrot.slane %v6703_v31, 2 }
  0xae   : > { %6011 = vmatprep.subr.msk.bf16.mxu1 %vm539_vm0, %v6107_v45  ;;  %v2733_v37 = vrot.slane %v6707_v6, 2  ;;  %v3026_v45 = vshll.u32 %v6515_v30, 16 }
  0xaf   : > { %5621 = vmatmul.mubr.msk.bf16.gmra.mrb[16].mxu0 %vm484_vm2, %v2720_v22  ;;  %v3018_v22 = vshll.u32 %v6512_v27, 16  ;;  %v2732_v27 = vsel %vm2260_vm4, %v2729_v1, %v2731_v62  ;;  %v3041_v1 = vshrl.u32 %v6531_v40, 16 }
  0xb0   : > { %5624 = vmatprep.mubr.msk.bf16.mxu0 %vm484_vm2, %v2722_v46  ;;  %v3777_v46 = vld [vmem:[%s7570_s1 + $0x5b] sm:$0xff]  ;;  %v2734_v54 = vsel %vm2260_vm4, %v2731_v62, %v2733_v37 }
  0xb1   : > { %3851 = vperm.xlu1 %6027, %v3777_v46   ;;  %v3020_v28 = vrot.slane %v3018_v22, 3  ;;  %v3043_v62 = vrot.slane %v3041_v1, 2  ;;  %v3080_v1 = vshll.u32 %v6572_v53, 16 }
  0xb3   : > { %v3021_v32 = vor.u32 %v3020_v28, %v3017_v57  ;;  %v3052_v57 = vrot.slane %v3050_v44, 2  ;;  %v6088_v44 = vld [vmem:[%s6187_s28 + $0x10] sm:$0xff]  }
  0xb4   : > { %5457 = vmatmul.mubr.msk.bf16.gmra.mrb[4].mxu1 %vm484_vm2, %v955_v48  ;;  %v3778_v48 = vld [vmem:[%s7570_s1 + $0x63] sm:$0xff] }
  0xb5   : > { %5460 = vmatprep.mubr.msk.bf16.mxu1 %vm484_vm2, %v957_v55  ;;  %v968_v55 = vrot.slane %v6345_v38, 1  ;;  %3856 = vperm.xlu0 %6026, %v3778_v48   ;;  %v2735_v38 = vrot.slane %v6086_v39, 2  ;;  %v3059_v48 = vshrl.u32 %v6549_v61, 16  ;;  %v974_v39 = vrot.slane %v6381_v29, 1 }
  0xb6   : > { %3861 = vperm.xlu1 %6027, %v3779_v23   ;;  %v3068_v29 = vshrl.u32 %v6568_v47, 16 }
  0xb7   : > { %5625 = vmatmul.mubr.msk.bf16.gmra.mrb[20].mxu0 %vm484_vm2, %v2724_v60  ;;  %v3028_v60 = vrot.slane %v3026_v45, 3  ;;  %v2736_v59 = vsel %vm2260_vm4, %v2733_v37, %v2735_v38  ;;  %v3784_v37 = vld [vmem:[%s7570_s1 + $0x93] sm:$0xff]  ;;  %v3053_v45 = vshll.u32 %v6543_v43, 16  ;;  %v3061_v23 = vrot.slane %v3059_v48, 2 }
  0xb8   : > { %5628 = vmatprep.mubr.msk.bf16.mxu0 %vm484_vm2, %v2726_v11  ;;  %v3780_v11 = vld [vmem:[%s7570_s1 + $0x73] sm:$0xff]  ;;  %v975_v38 = vsel %vm946_vm5, %v972_v50, %v974_v39  ;;  %v3098_v48 = vshll.u32 %v6592_v8, 16  ;;  %vm4661_vm4 = vcmask 62464  }
  0xb9   : > { %3866 = vperm.xlu0 %6026, %v3780_v11   ;;  %v3055_v28 = vrot.slane %v3053_v45, 3 }
  0xba   : > { %3871 = vperm.xlu1 %6027, %v3781_v52   ;;  %v3790_v52 = vld [vmem:[%s7570_s1 + $0xc3] sm:$0xff] }
  0xbc   : > { %5461 = vmatmul.mubr.msk.bf16.gmra.mrb[8].mxu1 %vm484_vm2, %v959_v16  ;;  %v969_v16 = vsel %vm946_vm5, %v966_v34, %v968_v55  ;;  %v3062_v34 = vshll.u32 %v6549_v61, 16 }
  0xbd   : > { %5464 = vmatprep.mubr.msk.bf16.mxu1 %vm484_vm2, %v961_v20  ;;  %v3029_v20 = vor.u32 %v3028_v60, %v3025_v58  ;;  %3876 = vperm.xlu0 %6026, %v3782_v49   ;;  %v976_v58 = vrot.slane %v6387_v36, 1  ;;  %v3553_v60 = vsel %vm539_vm0, %v6554_v12, 0  ;;  %v3787_v36 = vld [vmem:[%s7570_s1 + $0xab] sm:$0xff]  ;;  %v3788_v12 = vld [vmem:[%s7570_s1 + $0xb3] sm:$0xff]  ;;  %v978_v49 = vrot.slane %v6401_v51, 1 }
  0xbe   : > { %v3064_v11 = vrot.slane %v3062_v34, 3  ;;  %v3791_v51 = vld [vmem:[%s7570_s1 + $0xcb] sm:$0xff]  ;;  %v3793_v34 = vld [vmem:[%s7570_s1 + $0xdb] sm:$0xff]  ;;  %vm4544_vm0 = vcmask 60417  }
  0xbf   : > { %5629 = vmatmul.mubr.msk.bf16.gmra.mrb[24].mxu0 %vm484_vm2, %v2728_v13  ;;  %v970_v13 = vrot.slane %v6359_v56, 1  ;;  %v3030_v9 = vsel %vm3013_vm10, %v3021_v32, %v3029_v20  ;;  %v3783_v56 = vld [vmem:[%s7570_s1 + $0x8b] sm:$0xff] }
  0xc0   : > { %5632 = vmatprep.mubr.msk.bf16.mxu0 %vm484_vm2, %v2730_v19  ;;  %v3034_v19 = vrot.slane %v3032_v0, 2  ;;  %3881 = vperm.xlu1 %6027, %v3783_v56   ;;  %v3056_v0 = vor.u32 %v3055_v28, %v3052_v57  ;;  %v3065_v32 = vor.u32 %v3064_v11, %v3061_v23  ;;  %v1381_v28 = vrot.slane %v6088_v44, 1  ;;  %v3795_v23 = vld [vmem:[%s7570_s1 + $0xeb] sm:$0xff]  ;;  %v3796_v11 = vld [vmem:[%s7570_s1 + $0xf3] sm:$0xff] }
  0xc1   : > { %v971_v41 = vsel %vm946_vm5, %v968_v55, %v970_v13  ;;  %v973_v22 = vsel %vm946_vm5, %v970_v13, %v972_v50  ;;  %3886 = vperm.xlu0 %6026, %v3784_v37   ;;  %v3070_v13 = vrot.slane %v3068_v29, 2  ;;  %v3086_v37 = vshrl.u32 %v6587_v4, 16 }
  0xc2   : > { %v3066_v50 = vsel %vm3013_vm10, %v3056_v0, %v3065_v32 }
  0xc4   : > { %5465 = vmatmul.mubr.msk.bf16.gmra.mrb[12].mxu1 %vm484_vm2, %v963_v33  ;;  %v3037_v33 = vrot.slane %v3035_v17, 3  ;;  %v977_v17 = vsel %vm946_vm5, %v974_v39, %v976_v58  ;;  %v3088_v39 = vrot.slane %v3086_v37, 2  ;;  %v3122_v37 = vshrl.u32 %v6642_v42, 16 }
  0xc5   : > { %5468 = vmatprep.mubr.msk.bf16.mxu1 %vm484_vm2, %v965_v35  ;;  %v3046_v35 = vrot.slane %v3044_v10, 3  ;;  %v3789_v10 = vld [vmem:[%s7570_s1 + $0xbb] sm:$0xff] }
  0xc6   : > { %v3038_v5 = vor.u32 %v3037_v33, %v3034_v19  ;;  %v980_v33 = vrot.slane %v6411_v63, 1  ;;  %v3792_v63 = vld [vmem:[%s7570_s1 + $0xd3] sm:$0xff] }
  0xc7   : > { %5633 = vmatmul.mubr.msk.bf16.gmra.mrb[28].mxu0 %vm484_vm2, %v2732_v27  ;;  %v3047_v46 = vor.u32 %v3046_v35, %v3043_v62  ;;  %v3785_v27 = vld [vmem:[%s7570_s1 + $0x9b] sm:$0xff]  ;;  %v3082_v62 = vrot.slane %v3080_v1, 3  ;;  %v979_v35 = vsel %vm946_vm5, %v976_v58, %v978_v49 }
  0xc8   : > { %5636 = vmatprep.mubr.msk.bf16.mxu0 %vm484_vm2, %v2734_v54  ;;  %v3786_v54 = vld [vmem:[%s7570_s1 + $0xa3] sm:$0xff]  ;;  %v3039_v55 = vsel %vm3013_vm10, %v3029_v20, %v3038_v5  ;;  %3891 = vperm.xlu1 %6027, %v3785_v27   ;;  %v3077_v20 = vshrl.u32 %v6572_v53, 16  ;;  %v981_v56 = vsel %vm946_vm5, %v978_v49, %v980_v33  ;;  %v3797_v1 = vld [vmem:[%s7570_s1 + $0xfb] sm:$0xff] }
  0xc9   : > { %3896 = vperm.xlu0 %6026, %v3786_v54   ;;  %v3057_v19 = vsel %vm3013_vm10, %v3047_v46, %v3056_v0  ;;  %v3794_v27 = vld [vmem:[%s7570_s1 + $0xe3] sm:$0xff] }
  0xca   : > { %v6090_v0 = vld [vmem:[%s6187_s28 + $0x20] sm:$0xff]  }
  0xcc   : > { %5469 = vmatmul.mubr.msk.bf16.gmra.mrb[16].mxu1 %vm484_vm2, %v967_v7  ;;  %v3048_v7 = vsel %vm3013_vm10, %v3038_v5, %v3047_v46  ;;  %3901 = vperm.xlu1 %6027, %v3787_v36   ;;  %v3089_v5 = vshll.u32 %v6587_v4, 16  ;;  %v3095_v46 = vshrl.u32 %v6592_v8, 16  ;;  %v3104_v36 = vshrl.u32 %v6604_v21, 16 }
  0xcd   : > { %5472 = vmatprep.mubr.msk.bf16.mxu1 %vm484_vm2, %v969_v16  ;;  %v3071_v16 = vshll.u32 %v6568_v47, 16  ;;  %3906 = vperm.xlu0 %6026, %v3788_v12   ;;  %v3107_v12 = vshll.u32 %v6604_v21, 16 }
  0xcf   : > { %5637 = vmatmul.mubr.msk.bf16.gmra.mrb[32].mxu0 %vm484_vm2, %v2736_v59  ;;  %v3073_v59 = vrot.slane %v3071_v16, 3 }
  0xd0   : > { %5642 = vmatprep.mubr.msk.bf16.mxu0 %vm484_vm2, %v3030_v9  ;;  %v3079_v9 = vrot.slane %v3077_v20, 2  ;;  %3911 = vperm.xlu1 %6027, %v3789_v10   ;;  %v3116_v20 = vshll.u32 %v6610_v25, 16  ;;  %v3798_v10 = vld [vmem:[%s7570_s1 + $0x103] sm:$0xff] }
  0xd1   : > { %3916 = vperm.xlu0 %6026, %v3790_v52  }
  0xd2   : > { %v3083_v45 = vor.u32 %v3082_v62, %v3079_v9  ;;  %v3118_v9 = vrot.slane %v3116_v20, 3  ;;  %v3799_v62 = vld [vmem:[%s7570_s1 + $0x10b] sm:$0xff] }
  0xd4   : > { %5473 = vmatmul.mubr.msk.bf16.gmra.mrb[20].mxu1 %vm484_vm2, %v971_v41  ;;  %v3074_v41 = vor.u32 %v3073_v59, %v3070_v13  ;;  %3921 = vperm.xlu1 %6027, %v3791_v51   ;;  %v3106_v13 = vrot.slane %v3104_v36, 2  ;;  %v3109_v59 = vrot.slane %v3107_v12, 3  ;;  %v6091_v51 = vld [vmem:[%s6187_s28 + $0x28] sm:$0xff]   ;;  %v6094_v36 = vld [vmem:[%s6187_s28 + $0x40] sm:$0xff]  }
  0xd5   : > { %5476 = vmatprep.mubr.msk.bf16.mxu1 %vm484_vm2, %v973_v22  ;;  %v6087_v22 = vld [vmem:[%s6187_s28 + $0x8] sm:$0xfe]   ;;  %3926 = vperm.xlu0 %6026, %v3792_v63  }
  0xd6   : > { %v3075_v54 = vsel %vm3013_vm10, %v3065_v32, %v3074_v41  ;;  %v1380_v57 = vrot.slane %v6087_v22, 1  ;;  %v3084_v58 = vsel %vm3013_vm10, %v3074_v41, %v3083_v45  ;;  %v3113_v32 = vshrl.u32 %v6610_v25, 16  ;;  %v6092_v22 = vld [vmem:[%s6187_s28 + $0x30] sm:$0xff]  }
  0xd7   : > { %5643 = vmatmul.mubr.msk.bf16.vlgmr.msra.gmra.mrb[0].mxu0 %vm484_vm2, %v3039_v55  ;;  %v3091_v55 = vrot.slane %v3089_v5, 3  ;;  %v3110_v63 = vor.u32 %v3109_v59, %v3106_v13  ;;  %v3125_v5 = vshll.u32 %v6642_v42, 16 }
  0xd8   : > { %5679 = vmatpush3.bf16.msra.mxu0 %v3553_v60  ;;  %5646 = vmatprep.mubr.msk.bf16.mxu0 %vm484_vm2, %v3048_v7  ;;  %v3097_v60 = vrot.slane %v3095_v46, 2  ;;  %v3100_v7 = vrot.slane %v3098_v48, 3  ;;  %v1382_v16 = vsel %vm946_vm5, %v1380_v57, %v1381_v28  ;;  %v3134_v46 = vshll.u32 %v6651_v26, 16  ;;  %v3801_v48 = vld [vmem:[%s7570_s1 + $0x11b] sm:$0xff] }
  0xd9   : > { %3931 = vperm.xlu1 %6027, %v3793_v34   ;;  %3936 = vperm.xlu0 %6026, %v3794_v27   ;;  %v3092_v29 = vor.u32 %v3091_v55, %v3088_v39  ;;  %v3802_v34 = vld [vmem:[%s7570_s1 + $0x123] sm:$0xff]  ;;  %v1387_v27 = vrot.slane %v6091_v51, 1  ;;  %v3124_v39 = vrot.slane %v3122_v37, 2  ;;  %v3127_v55 = vrot.slane %v3125_v5, 3 }
  0xda   : > { %v1389_v57 = vrot.slane %v6092_v22, 1 }
  0xdb   : > { %v3093_v49 = vsel %vm3013_vm10, %v3083_v45, %v3092_v29  ;;  %v3131_v45 = vshrl.u32 %v6651_v26, 16 }
  0xdc   : > { %5477 = vmatmul.mubr.msk.bf16.gmra.mrb[24].mxu1 %vm484_vm2, %v975_v38  ;;  %v6089_v38 = vld [vmem:[%s6187_s28 + $0x18] sm:$0xff]  }
  0xdd   : > { %5480 = vmatprep.mubr.msk.bf16.mxu1 %vm484_vm2, %v977_v17  ;;  %v3101_v17 = vor.u32 %v3100_v7, %v3097_v60  ;;  %3941 = vperm.xlu1 %6027, %v3795_v23   ;;  %v1383_v52 = vrot.slane %v6089_v38, 1  ;;  %v3136_v60 = vrot.slane %v3134_v46, 3  ;;  %v3803_v7 = vld [vmem:[%s7570_s1 + $0x12b] sm:$0x3f]  ;;  %v6093_v23 = vld [vmem:[%s6187_s28 + $0x38] sm:$0xff]   ;;  %v1390_v38 = vsel %vm946_vm5, %v1387_v27, %v1389_v57 }
  0xde   : > { %3946 = vperm.xlu0 %6026, %v3796_v11   ;;  %v3128_v11 = vor.u32 %v3127_v55, %v3124_v39  ;;  %v6928_v46 = vld [vmem:[%s6187_s28 + $0xa0] ss:$0 sps:$4 sm:$0x33]   ;;  %v6097_v39 = vld [vmem:[%s6187_s28 + $0x58] sm:$0xff]  }
  0xdf   : > { %5647 = vmatmul.mubr.msk.bf16.gmra.mrb[4].mxu0 %vm484_vm2, %v3057_v19  ;;  %v1385_v19 = vrot.slane %v6090_v0, 1  ;;  %v1384_v41 = vsel %vm946_vm5, %v1381_v28, %v1383_v52  ;;  %v3149_v0 = vshrl.u32 %v6678_v15, 16 }
  0xe0   : > { %5650 = vmatprep.mubr.msk.bf16.mxu0 %vm484_vm2, %v3066_v50  ;;  %v3115_v50 = vrot.slane %v3113_v32, 2  ;;  %v1391_v32 = vrot.slane %v6093_v23, 1  ;;  %v1399_v23 = vrot.slane %v6097_v39, 1 }
  0xe1   : > { %3951 = vperm.xlu1 %6027, %v3797_v1   ;;  %v3151_v13 = vrot.slane %v3149_v0, 2 }
  0xe2   : > { %3956 = vperm.xlu0 %6026, %v3798_v10   ;;  %v3119_v44 = vor.u32 %v3118_v9, %v3115_v50 }
  0xe4   : > { %5481 = vmatmul.mubr.msk.bf16.gmra.mrb[28].mxu1 %vm484_vm2, %v979_v35  ;;  %v3800_v35 = vld [vmem:[%s7570_s1 + $0x113] sm:$0xff]  ;;  %v3120_v28 = vsel %vm3013_vm10, %v3110_v63, %v3119_v44  ;;  %v3129_v20 = vsel %vm3013_vm10, %v3119_v44, %v3128_v11 }
  0xe5   : > { %5484 = vmatprep.mubr.msk.bf16.mxu1 %vm484_vm2, %v981_v56  ;;  %v1386_v56 = vsel %vm946_vm5, %v1383_v52, %v1385_v19  ;;  %3961 = vperm.xlu1 %6027, %v3799_v62   ;;  %v1393_v52 = vrot.slane %v6094_v36, 1  ;;  %v3158_v62 = vshrl.u32 %v6703_v31, 16 }
  0xe6   : > { %3966 = vperm.xlu0 %6026, %v3800_v35   ;;  %v3161_v35 = vshll.u32 %v6703_v31, 16 }
  0xe7   : > { %5651 = vmatmul.mubr.msk.bf16.gmra.mrb[8].mxu0 %vm484_vm2, %v3075_v54  ;;  %v3111_v54 = vsel %vm3013_vm10, %v3101_v17, %v3110_v63  ;;  %v1394_v9 = vsel %vm946_vm5, %v1391_v32, %v1393_v52  ;;  %v3167_v63 = vshrl.u32 %v6707_v6, 16  ;;  %v3160_v22 = vrot.slane %v3158_v62, 2 }
  0xe8   : > { %5654 = vmatprep.mubr.msk.bf16.mxu0 %vm484_vm2, %v3084_v58  ;;  %v3133_v58 = vrot.slane %v3131_v45, 2  ;;  %v3163_v44 = vrot.slane %v3161_v35, 3  ;;  %v3466_v62 = vrot.slane %v6531_v40, 3  ;;  %v3468_v40 = vrot.slane %v6543_v43, 3 }
  0xe9   : > { %3971 = vperm.xlu1 %6027, %v3801_v48  }
  0xea   : > { %3976 = vperm.xlu0 %6026, %v3802_v34   ;;  %v3137_v12 = vor.u32 %v3136_v60, %v3133_v58  ;;  %v3169_v34 = vrot.slane %v3167_v63, 2  ;;  %v3164_v55 = vor.u32 %v3163_v44, %v3160_v22  ;;  %v3179_v58 = vshll.u32 %v6928_v46, 16  ;;  %v6099_v60 = vld [vmem:[%s6187_s28 + $0x60] sm:$0xff]  }
  0xeb   : > { %v3470_v22 = vrot.slane %v6549_v61, 3  ;;  %v3472_v61 = vrot.slane %v6568_v47, 3 }
  0xec   : > { %5485 = vmatmul.mubr.msk.bf16.gmra.mrb[32].mxu1 %vm484_vm2, %v980_v33  ;;  %v3102_v33 = vsel %vm3013_vm10, %v3092_v29, %v3101_v17  ;;  %v3140_v29 = vshrl.u32 %v6673_v3, 16  ;;  %v3152_v17 = vshll.u32 %v6678_v15, 16 }
  0xed   : > { %5490 = vmatprep.mubr.msk.bf16.mxu1 %vm484_vm2, %v1382_v16  ;;  %v3143_v16 = vshll.u32 %v6673_v3, 16  ;;  %3981 = vperm.xlu1 %6027, %v3803_v7   ;;  %v3471_v39 = vsel %vm3460_vm11, %v3468_v40, %v3470_v22 }
  0xee   : > { %v3142_v1 = vrot.slane %v3140_v29, 2  ;;  %v3154_v59 = vrot.slane %v3152_v17, 3  ;;  %v3181_v29 = vrot.slane %v3179_v58, 3  ;;  %v6101_v17 = vld [vmem:[%s6187_s28 + $0x68] sm:$0xff]   ;;  %v3474_v58 = vrot.slane %v6572_v53, 3 }
  0xef   : > { %5655 = vmatmul.mubr.msk.bf16.gmra.mrb[12].mxu0 %vm484_vm2, %v3093_v49  ;;  %v3145_v10 = vrot.slane %v3143_v16, 3  ;;  %v3138_v49 = vsel %vm3013_vm10, %v3128_v11, %v3137_v12  ;;  %v1401_v16 = vrot.slane %v6099_v60, 1  ;;  %v6109_v60 = vld [vmem:[%s6187_s28 + $0x68] sm:$0xff]  }
  0xf0   : > { %5658 = vmatprep.mubr.msk.bf16.mxu0 %vm484_vm2, %v3102_v33  ;;  %v6095_v33 = vld [vmem:[%s6187_s28 + $0x48] sm:$0xff]   ;;  %v3155_v51 = vor.u32 %v3154_v59, %v3151_v13 }
  0xf1   : > { %v3146_v50 = vor.u32 %v3145_v10, %v3142_v1  ;;  %v1395_v37 = vrot.slane %v6095_v33, 1  ;;  %v6102_v1 = vld [vmem:[%s6187_s28 + $0x70] sm:$0xff]   ;;  %v6103_v33 = vld [vmem:[%s6187_s28 + $0x78] sm:$0xff]  }
  0xf2   : > { %v3165_v11 = vsel %vm3013_vm10, %v3155_v51, %v3164_v55  ;;  %v1405_v13 = vrot.slane %v6102_v1, 1  ;;  %v1407_v35 = vrot.slane %v6103_v33, 1 }
  0xf3   : > { %v3147_v5 = vsel %vm3013_vm10, %v3137_v12, %v3146_v50  ;;  %v3156_v48 = vsel %vm3013_vm10, %v3146_v50, %v3155_v51 }
  0xf4   : > { %5491 = vmatmul.mubr.msk.bf16.vlgmr.msra.gmra.mrb[0].mxu1 %vm484_vm2, %v1384_v41  ;;  %v6096_v41 = vld [vmem:[%s6187_s28 + $0x50] sm:$0xff]  }
  0xf5   : > { %5494 = vmatprep.mubr.msk.bf16.mxu1 %vm484_vm2, %v1386_v56  ;;  %5717 = vmatpush3.bf16.msra.mxu1 %v6167_v2  ;;  %v1388_v2 = vsel %vm946_vm5, %v1385_v19, %v1387_v27  ;;  %v1392_v19 = vsel %vm946_vm5, %v1389_v57, %v1391_v32  ;;  %v3170_v56 = vshll.u32 %v6707_v6, 16  ;;  %v1397_v45 = vrot.slane %v6096_v41, 1 }
  0xf7   : > { %5659 = vmatmul.mubr.msk.bf16.gmra.mrb[16].mxu0 %vm484_vm2, %v3111_v54  ;;  %v3172_v27 = vrot.slane %v3170_v56, 3  ;;  %v1396_v54 = vsel %vm946_vm5, %v1393_v52, %v1395_v37  ;;  %v1398_v57 = vsel %vm946_vm5, %v1395_v37, %v1397_v45  ;;  %v1400_v0 = vsel %vm946_vm5, %v1397_v45, %v1399_v23  ;;  %v6105_v56 = vld [vmem:[%s6187_s28 + $0x88] sm:$0xff]  }
  0xf8   : > { %5662 = vmatprep.mubr.msk.bf16.mxu0 %vm484_vm2, %v3120_v28  ;;  %v3176_v28 = vshrl.u32 %v6928_v46, 16  ;;  %v3462_v52 = vrot.slane %v6515_v30, 3  ;;  %v3464_v30 = vrot.slane %v6527_v18, 3  ;;  %v1408_v18 = vsel %vm946_vm5, %v1405_v13, %v1407_v35 }
  0xf9   : > { %v3173_v7 = vor.u32 %v3172_v27, %v3169_v34  ;;  %v1411_v44 = vrot.slane %v6105_v56, 1  ;;  %v3469_v45 = vsel %vm3460_vm11, %v3466_v62, %v3468_v40  ;;  %v6108_v34 = vld [vmem:[%s6187_s28 + $0x60] sm:$0xff]  }
  0xfa   : > { %v3465_v41 = vsel %vm3460_vm11, %v3462_v52, %v3464_v30  ;;  %v3467_v63 = vsel %vm3460_vm11, %v3464_v30, %v3466_v62  ;;  %v1917_v27 = vshrl.u32 %v6108_v34, 16 }
  0xfb   : > { %v3174_v36 = vsel %vm3013_vm10, %v3164_v55, %v3173_v7 }
  0xfc   : > { %5495 = vmatmul.mubr.msk.bf16.gmra.mrb[4].mxu1 %vm484_vm2, %v1388_v2  ;;  %v3454_v2 = vld [vmem:[%s6187_s28 + $0x10] sm:$0x8] }
  0xfd   : > { %5498 = vmatprep.mubr.msk.bf16.mxu1 %vm484_vm2, %v1390_v38  ;;  %v3178_v38 = vrot.slane %v3176_v28, 2  ;;  %v5110_v12 = vcombine.low %v3454_v2, %v6504_v24  ;;  %v1403_v24 = vrot.slane %v6101_v17, 1  ;;  %v1929_v2 = vshll.u32 %v6109_v60, 16 }
  0xff   : > { %5663 = vmatmul.mubr.msk.bf16.gmra.mrb[20].mxu0 %vm484_vm2, %v3129_v20  ;;  %v3182_v32 = vor.u32 %v3181_v29, %v3178_v38  ;;  %v1402_v20 = vsel %vm946_vm5, %v1399_v23, %v1401_v16  ;;  %v3461_v10 = vrot.slane %v5110_v12, 3  ;;  %v1406_v50 = vsel %vm946_vm5, %v1403_v24, %v1405_v13  ;;  %v6110_v38 = vld [vmem:[%s6187_s28 + $0x70] sm:$0xff]  }
 0x100   : > { %5666 = vmatprep.mubr.msk.bf16.mxu0 %vm484_vm2, %v3138_v49  ;;  %v3473_v23 = vsel %vm3460_vm11, %v3470_v22, %v3472_v61  ;;  %v1935_v29 = vshrl.u32 %v6110_v38, 16  ;;  %v1938_v47 = vshll.u32 %v6110_v38, 16  ;;  %v1931_v53 = vrot.slane %v1929_v2, 2 }
 0x101   : > { %v3183_v49 = vsel %vm3013_vm10, %v3173_v7, %v3182_v32  ;;  %v3463_v59 = vsel %vm3460_vm11, %v3461_v10, %v3462_v52  ;;  %v1926_v7 = vshrl.u32 %v6109_v60, 16  ;;  %v3476_v12 = vrot.slane %v6587_v4, 3  ;;  %v6111_v10 = vld [vmem:[%s6187_s28 + $0x78] sm:$0xff]  }
 0x102   : > { %v1937_v17 = vrot.slane %v1935_v29, 1  ;;  %v1940_v32 = vrot.slane %v1938_v47, 2  ;;  %v1944_v52 = vshrl.u32 %v6111_v10, 16  ;;  %v3490_v2 = vrot.slane %v6678_v15, 3 }
 0x103   : > { %v3494_v47 = vrot.slane %v6707_v6, 3 }
 0x104   : > { %5499 = vmatmul.mubr.msk.bf16.gmra.mrb[8].mxu1 %vm484_vm2, %v1392_v19  ;;  %v1404_v19 = vsel %vm946_vm5, %v1401_v16, %v1403_v24  ;;  %v3475_v16 = vsel %vm3460_vm11, %v3472_v61, %v3474_v58  ;;  %v1947_v24 = vshll.u32 %v6111_v10, 16  ;;  %v1941_v13 = vor.u32 %v1940_v32, %v1937_v17 }
 0x105   : > { %5502 = vmatprep.mubr.msk.bf16.mxu1 %vm484_vm2, %v1394_v9  ;;  %v6104_v9 = vld [vmem:[%s6187_s28 + $0x80] sm:$0xff]   ;;  %v1946_v33 = vrot.slane %v1944_v52, 1 }
 0x106   : > { %v1409_v51 = vrot.slane %v6104_v9, 1  ;;  %v1949_v30 = vrot.slane %v1947_v24, 2 }
 0x107   : > { %5667 = vmatmul.mubr.msk.bf16.gmra.mrb[24].mxu0 %vm484_vm2, %v3147_v5  ;;  %v6106_v5 = vld [vmem:[%s6187_s28 + $0x90] sm:$0xff]  }
 0x108   : > { %5670 = vmatprep.mubr.msk.bf16.mxu0 %vm484_vm2, %v3156_v48  ;;  %v1410_v37 = vsel %vm946_vm5, %v1407_v35, %v1409_v51  ;;  %v1413_v48 = vrot.slane %v6106_v5, 1  ;;  %v1412_v43 = vsel %vm946_vm5, %v1409_v51, %v1411_v44  ;;  %v1950_v51 = vor.u32 %v1949_v30, %v1946_v33  ;;  %v6114_v5 = vld [vmem:[%s6187_s28 + $0x90] sm:$0xff]  }
 0x109   : > { %v1971_v22 = vshrl.u32 %v6114_v5, 16 }
 0x10a   : > { %v1414_v55 = vsel %vm946_vm5, %v1411_v44, %v1413_v48  ;;  %vm4585_vm5 = vcmask 57344  }
 0x10c   : > { %5503 = vmatmul.mubr.msk.bf16.gmra.mrb[12].mxu1 %vm484_vm2, %v1396_v54  ;;  %v1920_v54 = vshll.u32 %v6108_v34, 16  ;;  %v3484_v34 = vrot.slane %v6642_v42, 3 }
 0x10d   : > { %5506 = vmatprep.mubr.msk.bf16.mxu1 %vm484_vm2, %v1398_v57  ;;  %v1919_v57 = vrot.slane %v1917_v27, 1 }
 0x10e   : > { %v1922_v28 = vrot.slane %v1920_v54, 2  ;;  %v1973_v54 = vrot.slane %v1971_v22, 1 }
 0x10f   : > { %5671 = vmatmul.mubr.msk.bf16.gmra.mrb[28].mxu0 %vm484_vm2, %v3165_v11 }
 0x110   : > { %5674 = vmatprep.mubr.msk.bf16.mxu0 %vm484_vm2, %v3174_v36  ;;  %v1923_v11 = vor.u32 %v1922_v28, %v1919_v57  ;;  %v1928_v36 = vrot.slane %v1926_v7, 1 }
 0x112   : > { %v1932_v1 = vor.u32 %v1931_v53, %v1928_v36  ;;  %v3496_v36 = vrot.slane %v6928_v46, 3 }
 0x114   : > { %5507 = vmatmul.mubr.msk.bf16.gmra.mrb[16].mxu1 %vm484_vm2, %v1400_v0  ;;  %v1924_v0 = vsel %vm1817_vm3, %v6373_v14, %v1923_v11  ;;  %v1942_v9 = vsel %vm1817_vm3, %v1932_v1, %v1941_v13  ;;  %v3497_v53 = vsel %vm3460_vm11, %v3494_v47, %v3496_v36 }
 0x115   : > { %5510 = vmatprep.mubr.msk.bf16.mxu1 %vm484_vm2, %v1402_v20  ;;  %v3478_v20 = vrot.slane %v6592_v8, 3  ;;  %v1933_v8 = vsel %vm1817_vm3, %v1923_v11, %v1932_v1 }
 0x117   : > { %5675 = vmatmul.mubr.msk.bf16.gmra.mrb[32].mxu0 %vm484_vm2, %v3183_v49  ;;  %v3477_v49 = vsel %vm3460_vm11, %v3474_v58, %v3476_v12  ;;  %v3479_v14 = vsel %vm3460_vm11, %v3476_v12, %v3478_v20  ;;  %v6115_v58 = vld [vmem:[%s6187_s28 + $0x98] ss:$0 sps:$4 sm:$0x11]   ;;  %v3807_v30 = vpop.permute.xlu0 %3806 }
 0x118   : > { %5680 = vmatprep.mubr.msk.bf16.mxu0 %vm484_vm2, %v3463_v59  ;;  %v6112_v59 = vld [vmem:[%s6187_s28 + $0x80] sm:$0xff]   ;;  %v1980_v60 = vshll.u32 %v6115_v58, 16 }
 0x119   : > { %v1953_v4 = vshrl.u32 %v6112_v59, 16 }
 0x11b   : > { %v1955_v62 = vrot.slane %v1953_v4, 1 }
 0x11c   : > { %5511 = vmatmul.mubr.msk.bf16.gmra.mrb[20].mxu1 %vm484_vm2, %v1404_v19  ;;  %v1956_v19 = vshll.u32 %v6112_v59, 16 }
 0x11d   : > { %5514 = vmatprep.mubr.msk.bf16.mxu1 %vm484_vm2, %v1406_v50  ;;  %v3480_v50 = vrot.slane %v6604_v21, 3  ;;  %v1974_v21 = vshll.u32 %v6114_v5, 16 }
 0x11e   : > { %v1958_v35 = vrot.slane %v1956_v19, 2 }
 0x11f   : > { %5681 = vmatmul.mubr.msk.bf16.vlgmr.msra.gmra.mrb[0].mxu0 %vm484_vm2, %v3465_v41  ;;  %v3482_v41 = vrot.slane %v6610_v25, 3  ;;  %v3481_v40 = vsel %vm3460_vm11, %v3478_v20, %v3480_v50  ;;  %v1951_v25 = vsel %vm1817_vm3, %v1941_v13, %v1950_v51 }
 0x120   : > { %5684 = vmatprep.mubr.msk.bf16.mxu0 %vm484_vm2, %v3467_v63  ;;  %v6113_v63 = vld [vmem:[%s6187_s28 + $0x88] sm:$0xff]   ;;  %s4879_s28 = sshll.u32 %s7581_s16, 1 }
 0x121   : > { %v1965_v56 = vshll.u32 %v6113_v63, 16  ;;  %v3483_v44 = vsel %vm3460_vm11, %v3480_v50, %v3482_v41  ;;  %v3812_v50 = vpop.permute.xlu0 %3811  ;;  %s208_s29 = scalar_lea.vmem %s7573_s4, %s4879_s28 }
 0x124   : > { %5515 = vmatmul.mubr.msk.bf16.gmra.mrb[24].mxu1 %vm484_vm2, %v1408_v18  ;;  %v1962_v18 = vshrl.u32 %v6113_v63, 16 }
 0x125   : > { %5518 = vmatprep.mubr.msk.bf16.mxu1 %vm484_vm2, %v1410_v37  ;;  %v1959_v37 = vor.u32 %v1958_v35, %v1955_v62  ;;  %v4032_v35 = vld [vmem:[%s6624_s17 + $0x98] sm:$0xf] }
 0x126   : > { %v4033_v63 = vsel %vm4031_vm13, 0, %v4032_v35 }
 0x127   : > { %5685 = vmatmul.mubr.msk.bf16.gmra.mrb[4].mxu0 %vm484_vm2, %v3469_v45  ;;  %v1964_v45 = vrot.slane %v1962_v18, 1  ;;  %v1960_v27 = vsel %vm1817_vm3, %v1950_v51, %v1959_v37  ;;  %4034 = vst [vmem:[%s6624_s17 + $0x98] sm:$0xf] %v4033_v63 }
 0x128   : > { %5688 = vmatprep.mubr.msk.bf16.mxu0 %vm484_vm2, %v3471_v39  ;;  %v1976_v39 = vrot.slane %v1974_v21, 2 }
 0x12a   : > { %v1977_v57 = vor.u32 %v1976_v39, %v1973_v54 }
 0x12c   : > { %5519 = vmatmul.mubr.msk.bf16.gmra.mrb[28].mxu1 %vm484_vm2, %v1412_v43  ;;  %v3486_v43 = vrot.slane %v6651_v26, 3  ;;  %v3488_v26 = vrot.slane %v6673_v3, 3  ;;  %v3492_v3 = vrot.slane %v6703_v31, 3 }
 0x12d   : > { %5522 = vmatprep.mubr.msk.bf16.mxu1 %vm484_vm2, %v1414_v55  ;;  %v3485_v55 = vsel %vm3460_vm11, %v3482_v41, %v3484_v34 }
 0x12e   : > { %v3487_v28 = vsel %vm3460_vm11, %v3484_v34, %v3486_v43  ;;  %v3489_v11 = vsel %vm3460_vm11, %v3486_v43, %v3488_v26  ;;  %v3491_v38 = vsel %vm3460_vm11, %v3488_v26, %v3490_v2  ;;  %v3493_v15 = vsel %vm3460_vm11, %v3490_v2, %v3492_v3 }
 0x12f   : > { %5689 = vmatmul.mubr.msk.bf16.gmra.mrb[8].mxu0 %vm484_vm2, %v3473_v23  ;;  %v1982_v23 = vrot.slane %v1980_v60, 2 }
 0x130   : > { %5692 = vmatprep.mubr.msk.bf16.mxu0 %vm484_vm2, %v3475_v16  ;;  %v3495_v16 = vsel %vm3460_vm11, %v3492_v3, %v3494_v47 }
 0x131   : > { %v1983_v29 = vsel %vm1817_vm3, %v1977_v57, %v1982_v23 }
 0x134   : > { %5523 = vmatmul.mubr.msk.bf16.gmra.mrb[32].mxu1 %vm484_vm2, %v1413_v48  ;;  %v1967_v48 = vrot.slane %v1965_v56, 2 }
 0x135   : > { %5548 = vmatprep.mubr.msk.bf16.mxu1 %vm484_vm2, %v1924_v0 }
 0x136   : > { %v1968_v61 = vor.u32 %v1967_v48, %v1964_v45 }
 0x137   : > { %5693 = vmatmul.mubr.msk.bf16.gmra.mrb[12].mxu0 %vm484_vm2, %v3477_v49 }
 0x138   : > { %5696 = vmatprep.mubr.msk.bf16.mxu0 %vm484_vm2, %v3479_v14  ;;  %v1969_v42 = vsel %vm1817_vm3, %v1959_v37, %v1968_v61  ;;  %v1978_v7 = vsel %vm1817_vm3, %v1968_v61, %v1977_v57  ;;  %vm7102_vm3 = vmor %vm4024_vm8, %vm4146_vm14 }
 0x139   : > { %vm7535_vm8 = vmand %vm4585_vm5, %vm4586_vm7 }
 0x13c   : > { %5549 = vmatmul.mubr.msk.bf16.vlgmr.msra.gmra.mrb[20].mxu1 %vm484_vm2, %v1933_v8 }
 0x13d   : > { %5552 = vmatprep.mubr.msk.bf16.mxu1 %vm484_vm2, %v1942_v9  ;;  %v3817_v9 = vpop.permute.xlu1 %3816 }
 0x13f   : > { %5697 = vmatmul.mubr.msk.bf16.gmra.mrb[16].mxu0 %vm484_vm2, %v3481_v40  ;;  %v7086_v40 = vpop.permute.xlu0 %3826 }
 0x140   : > { %5700 = vmatprep.mubr.msk.bf16.mxu0 %vm484_vm2, %v3483_v44 }
 0x141   : > { %v3822_v21 = vpop.permute.xlu1 %3821 }
 0x144   : > { %5553 = vmatmul.mubr.msk.bf16.gmra.mrb[24].mxu1 %vm484_vm2, %v1951_v25 }
 0x145   : > { %5556 = vmatprep.mubr.msk.bf16.mxu1 %vm484_vm2, %v1960_v27 }
 0x147   : > { %5701 = vmatmul.mubr.msk.bf16.gmra.mrb[20].mxu0 %vm484_vm2, %v3485_v55 }
 0x148   : > { %5704 = vmatprep.mubr.msk.bf16.mxu0 %vm484_vm2, %v3487_v28 }
 0x14c   : > { %5557 = vmatmul.mubr.msk.bf16.gmra.mrb[28].mxu1 %vm484_vm2, %v1969_v42 }
 0x14d   : > { %5560 = vmatprep.mubr.msk.bf16.mxu1 %vm484_vm2, %v1978_v7  ;;  %v3837_v7 = vpop.permute.xlu0 %3836 }
 0x14f   : > { %5705 = vmatmul.mubr.msk.bf16.gmra.mrb[24].mxu0 %vm484_vm2, %v3489_v11 }
 0x150   : > { %5708 = vmatprep.mubr.msk.bf16.mxu0 %vm484_vm2, %v3491_v38 }
 0x154   : > { %5561 = vmatmul.mubr.msk.bf16.gmra.mrb[32].mxu1 %vm484_vm2, %v1983_v29 }
 0x157   : > { %5709 = vmatmul.mubr.msk.bf16.gmra.mrb[28].mxu0 %vm484_vm2, %v3493_v15 }
 0x158   : > { %5712 = vmatprep.mubr.msk.bf16.mxu0 %vm484_vm2, %v3495_v16 }
 0x15f   : > { %5713 = vmatmul.mubr.msk.bf16.gmra.mrb[32].mxu0 %vm484_vm2, %v3497_v53  ;;  %vm7094_vm2 = vmand %vm4544_vm0, %vm4545_vm1 }
 0x1c7   : > { %v5492_v12 = vpop.f32.mrb[0].mxu1 }
 0x1c8   : > { %v1506_v31 = vpop.f32.mrb[1].mxu1 }
 0x1c9   : > { %v5493_v0 = vpop.f32.mrb[2].mxu1 }
 0x1ca   : > { %v1509_v6 = vpop.f32.mrb[3].mxu1 }
 0x1cf   : > { %v7051_v17 = vpop.f32.mrb[4].mxu1 }
 0x1d0   : > { %v7053_v32 = vpop.f32.mrb[5].mxu1 }
 0x1d1   : > { %v7055_v20 = vpop.f32.mrb[6].mxu1 }
 0x1d2   : > { %v7057_v1 = vpop.f32.mrb[7].mxu1 }
 0x1d7   : > { %v7059_v10 = vpop.f32.mrb[8].mxu1 }
 0x1d8   : > { %v7061_v52 = vpop.f32.mrb[9].mxu1 }
 0x1d9   : > { %v7063_v46 = vpop.f32.mrb[10].mxu1 }
 0x1da   : > { %v7065_v24 = vpop.f32.mrb[11].mxu1 }
 0x1df   : > { %v7067_v49 = vpop.f32.mrb[12].mxu1 }
 0x1e0   : > { %v7069_v13 = vpop.f32.mrb[13].mxu1 }
 0x1e1   : > { %v7071_v59 = vpop.f32.mrb[14].mxu1 }
 0x1e2   : > { %v7073_v4 = vpop.f32.mrb[15].mxu1 }
 0x1e7   : > { %v7075_v19 = vpop.f32.mrb[16].mxu1 }
 0x1e8   : > { %v7077_v14 = vpop.f32.mrb[17].mxu1 }
 0x1e9   : > { %v7079_v8 = vpop.f32.mrb[18].mxu1 }
 0x1ea   : > { %v7081_v33 = vpop.f32.mrb[19].mxu1 }
 0x1f2   : > { %v5682_v62 = vpop.f32.mrb[0].mxu0 }
 0x1f3   : > { %v5718_v41 = vadd.f32 %v5682_v62, %v5492_v12  ;;  %v3589_v51 = vpop.f32.mrb[1].mxu0  ;;  %v3832_v62 = vpop.permute.xlu1 %3831 }
 0x1f4   : > { %v5719_v18 = vadd.f32 %v3589_v51, %v1506_v31  ;;  %v5683_v56 = vpop.f32.mrb[2].mxu0  ;;  %v4547_v31 = vld [vmem:[%s6624_s17 + $0x8] sm:$0xe] }
 0x1f5   : > { %v3986_v37 = vmul.f32 %v5718_v41, %v3817_v9  ;;  %v5720_v5 = vadd.f32 %v5683_v56, %v5493_v0  ;;  %v3592_v22 = vpop.f32.mrb[3].mxu0 }
 0x1f6   : > { %v3984_v44 = vmul.f32 %v5719_v18, %v3807_v30  ;;  %v5721_v25 = vadd.f32 %v3592_v22, %v1509_v6 }
 0x1f7   : > { %v5169_v45 = vpack.c.bf16 %v3986_v37, %v3986_v37  ;;  %v4674_v48 = vmul.f32 %v3986_v37, %v3986_v37  ;;  %v3987_v34 = vmul.f32 %v5720_v5, %v3822_v21  ;;  %v4595_v55 = vsel %vm4591_vm15, %v3986_v37, 0.0 }
 0x1f8   : > { %v5167_v27 = vpack.c.bf16 %v3984_v44, %v3984_v44  ;;  %v4672_v54 = vmul.f32 %v3984_v44, %v3984_v44  ;;  %v3985_v39 = vmul.f32 %v5721_v25, %v3812_v50  ;;  %v4592_v60 = vsel %vm4591_vm15, %v3984_v44, 0.0 }
 0x1f9   : > { %v4168_v43 = vshrl.u32 %v5169_v45, 16  ;;  %v4171_v61 = vshll.u32 %v5169_v45, 16  ;;  %v5170_v57 = vpack.c.bf16 %v3987_v34, %v3987_v34  ;;  %v4711_v28 = vsel %vm4591_vm15, %v4674_v48, 0.0  ;;  %v7111_v45 = vpop.permute.xlu0 %3846 }
 0x1fa   : > { %v4149_v42 = vshrl.u32 %v5167_v27, 16  ;;  %v4152_v58 = vshll.u32 %v5167_v27, 16  ;;  %v5686_v26 = vpop.f32.mrb[4].mxu0  ;;  %v4708_v15 = vsel %vm4591_vm15, %v4672_v54, 0.0  ;;  %v5168_v16 = vpack.c.bf16 %v3985_v39, %v3985_v39 }
 0x1fb   : > { %v4170_v2 = vrot.slane %v4168_v43, 6  ;;  %v4173_v23 = vrot.slane %v4171_v61, 7  ;;  %v4178_v11 = vshrl.u32 %v5170_v57, 16  ;;  %v4181_v38 = vshll.u32 %v5170_v57, 16  ;;  %v3605_v29 = vpop.f32.mrb[5].mxu0 }
 0x1fc   : > { %v4151_v3 = vrot.slane %v4149_v42, 6  ;;  %v4154_v47 = vrot.slane %v4152_v58, 7  ;;  %v5687_v36 = vpop.f32.mrb[6].mxu0  ;;  %v4593_v30 = vsel %vm4591_vm15, %v3985_v39, 0.0  ;;  %v4597_v41 = vsel %vm4591_vm15, %v3987_v34, 0.0 }
 0x1fd   : > { %v4174_v53 = vor.u32 %v4173_v23, %v4170_v2  ;;  %v4180_v0 = vrot.slane %v4178_v11, 6  ;;  %v4183_v6 = vrot.slane %v4181_v38, 7  ;;  %v3608_v50 = vpop.f32.mrb[7].mxu0  ;;  %v4158_v51 = vshrl.u32 %v5168_v16, 16  ;;  %v3842_v11 = vpop.permute.xlu1 %3841 }
 0x1fe   : > { %v4155_v35 = vor.u32 %v4154_v47, %v4151_v3  ;;  %v4161_v63 = vshll.u32 %v5168_v16, 16  ;;  %v4594_v37 = vadd.f32 %v4593_v30, %v4592_v60  ;;  %v4673_v5 = vmul.f32 %v3985_v39, %v3985_v39 }
 0x1ff   : > { %v4176_v18 = vrot.slane %v4174_v53, 4  ;;  %v7107_v56 = vor.u32 %v4183_v6, %v4180_v0  ;;  %v4160_v44 = vrot.slane %v4158_v51, 6  ;;  %v4675_v27 = vmul.f32 %v3987_v34, %v3987_v34 }
 0x200   : > { %v4156_v22 = vrot.slane %v4155_v35, 4  ;;  %v4548_v21 = vsel %vm7094_vm2, %v4155_v35, %v4547_v31  ;;  %v4163_v25 = vrot.slane %v4161_v63, 7  ;;  %v4596_v54 = vadd.f32 %v4595_v55, %v4594_v37 }
 0x201   : > { %4549 = vst [vmem:[%s6624_s17 + $0x8] sm:$0xe] %v4548_v21  ;;  %v4185_v48 = vsel %vm7102_vm3, %v4176_v18, %v7107_v56  ;;  %v4709_v43 = vsel %vm4591_vm15, %v4673_v5, 0.0  ;;  %v5722_v57 = vadd.f32 %v5686_v26, %v7051_v17  ;;  %v5723_v42 = vadd.f32 %v3605_v29, %v7053_v32 }
 0x202   : > { %4552 = vst.msk [vmem:[%s6624_s17 + $0x14] sm:$0xf] %vm4020_vm6, %v4185_v48  ;;  %v4164_v39 = vor.u32 %v4163_v25, %v4160_v44  ;;  %v4710_v61 = vadd.f32 %v4709_v43, %v4708_v15  ;;  %v5690_v58 = vpop.f32.mrb[8].mxu0  ;;  %v4598_v60 = vadd.f32 %v4597_v41, %v4596_v54  ;;  %v5724_v2 = vadd.f32 %v5687_v36, %v7055_v20 }
 0x203   : > { %v5725_v23 = vadd.f32 %v3608_v50, %v7057_v1  ;;  %v5726_v34 = vadd.f32 %v5690_v58, %v7059_v10  ;;  %v7125_v55 = vpop.f32.mrb[9].mxu0  ;;  %v3990_v17 = vmul.f32 %v5722_v57, %v3837_v7  ;;  %v4713_v32 = vsel %vm4591_vm15, %v4675_v27, 0.0 }
 0x204   : > { %v4165_v38 = vsel %vm7102_vm3, %v4156_v22, %v4164_v39  ;;  %v4166_v3 = vrot.slane %v4164_v39, 4  ;;  %v4712_v47 = vadd.f32 %v4711_v28, %v4710_v61  ;;  %v7129_v26 = vpop.f32.mrb[10].mxu0  ;;  %v3988_v20 = vmul.f32 %v5723_v42, %v7086_v40  ;;  %v3857_v28 = vpop.permute.xlu0 %3856 }
 0x205   : > { %4550 = vst.msk [vmem:[%s6624_s17 + $0xc] sm:$0xf] %vm4020_vm6, %v4165_v38  ;;  %v3991_v1 = vmul.f32 %v5724_v2, %v3842_v11  ;;  %v7135_v10 = vpop.f32.mrb[11].mxu0  ;;  %v4186_v29 = vrot.slane %v7107_v56, 4  ;;  %v5173_v16 = vpack.c.bf16 %v3990_v17, %v3990_v17  ;;  %v3989_v36 = vmul.f32 %v5725_v23, %v3832_v62 }
 0x206   : > { %v4175_v15 = vsel %vm7102_vm3, %v4166_v3, %v4174_v53  ;;  %v5171_v7 = vpack.c.bf16 %v3988_v20, %v3988_v20  ;;  %v4599_v12 = vsel %vm4591_vm15, %v3988_v20, 0.0  ;;  %v4676_v31 = vmul.f32 %v3988_v20, %v3988_v20 }
 0x207   : > { %4551 = vst.msk [vmem:[%s6624_s17 + $0x10] sm:$0xf] %vm4020_vm6, %v4175_v15  ;;  %v4714_v0 = vadd.f32 %v4713_v32, %v4712_v47  ;;  %v4208_v6 = vshrl.u32 %v5173_v16, 16  ;;  %v4211_v40 = vshll.u32 %v5173_v16, 16  ;;  %v4600_v30 = vadd.f32 %v4599_v12, %v4598_v60 }
 0x208   : > { %v7143_v50 = vmul.f32 %v5726_v34, %v3857_v28  ;;  %v4188_v35 = vshrl.u32 %v5171_v7, 16  ;;  %v4191_v41 = vshll.u32 %v5171_v7, 16  ;;  %v4715_v51 = vsel %vm4591_vm15, %v4676_v31, 0.0 }
 0x209   : > { %v5174_v53 = vpack.c.bf16 %v3991_v1, %v3991_v1  ;;  %v4210_v63 = vrot.slane %v4208_v6, 6  ;;  %v4213_v62 = vrot.slane %v4211_v40, 7  ;;  %v4678_v18 = vmul.f32 %v3990_v17, %v3990_v17 }
 0x20a   : > { %v4716_v56 = vadd.f32 %v4715_v51, %v4714_v0  ;;  %v7146_v37 = vpop.f32.mrb[12].mxu0  ;;  %v4190_v5 = vrot.slane %v4188_v35, 6  ;;  %v4193_v22 = vrot.slane %v4191_v41, 7  ;;  %v4679_v27 = vmul.f32 %v3991_v1, %v3991_v1  ;;  %v3852_v0 = vpop.permute.xlu1 %3851 }
 0x20b   : > { %v4218_v21 = vshrl.u32 %v5174_v53, 16  ;;  %v4221_v44 = vshll.u32 %v5174_v53, 16  ;;  %v3637_v25 = vpop.f32.mrb[13].mxu0  ;;  %v4214_v48 = vor.u32 %v4213_v62, %v4210_v63  ;;  %v5172_v54 = vpack.c.bf16 %v3989_v36, %v3989_v36  ;;  %v7181_v63 = vpop.permute.xlu0 %3866 }
 0x20c   : > { %v4601_v43 = vsel %vm4591_vm15, %v3989_v36, 0.0  ;;  %v7149_v39 = vpop.f32.mrb[14].mxu0  ;;  %v4194_v61 = vor.u32 %v4193_v22, %v4190_v5  ;;  %v4603_v34 = vsel %vm4591_vm15, %v3990_v17, 0.0  ;;  %v4677_v12 = vmul.f32 %v3989_v36, %v3989_v36 }
 0x20d   : > { %v4220_v57 = vrot.slane %v4218_v21, 6  ;;  %v4223_v42 = vrot.slane %v4221_v44, 7  ;;  %v4602_v58 = vadd.f32 %v4601_v43, %v4600_v30  ;;  %v7151_v60 = vpop.f32.mrb[15].mxu0  ;;  %v4216_v23 = vrot.slane %v4214_v48, 4 }
 0x20e   : > { %v4198_v11 = vshrl.u32 %v5172_v54, 16  ;;  %v4201_v38 = vshll.u32 %v5172_v54, 16  ;;  %v4195_v47 = vsel %vm7102_vm3, %v4186_v29, %v4194_v61  ;;  %v4196_v32 = vrot.slane %v4194_v61, 4 }
 0x20f   : > { %v7153_v2 = vpop.f32.mrb[20].mxu1  ;;  %v7160_v20 = vor.u32 %v4223_v42, %v4220_v57  ;;  %v4604_v15 = vadd.f32 %v4603_v34, %v4602_v58  ;;  %4553 = vst.msk [vmem:[%s6624_s17 + $0x18] sm:$0xf] %vm4020_vm6, %v4195_v47  ;;  %v5177_v17 = vpack.c.bf16 %v7143_v50, %v7143_v50  ;;  %v4719_v29 = vsel %vm4591_vm15, %v4678_v18, 0.0 }
 0x210   : > { %v7156_v3 = vpop.f32.mrb[21].mxu1  ;;  %v4200_v28 = vrot.slane %v4198_v11, 6  ;;  %v4203_v7 = vrot.slane %v4201_v38, 7  ;;  %v4605_v40 = vsel %vm4591_vm15, %v3991_v1, 0.0  ;;  %v4721_v30 = vsel %vm4591_vm15, %v4679_v27, 0.0 }
 0x211   : > { %v7162_v16 = vpop.f32.mrb[22].mxu1  ;;  %v4225_v6 = vsel %vm7102_vm3, %v4216_v23, %v7160_v20  ;;  %v4717_v36 = vsel %vm4591_vm15, %v4677_v12, 0.0  ;;  %v4248_v41 = vshrl.u32 %v5177_v17, 16  ;;  %v4251_v51 = vshll.u32 %v5177_v17, 16 }
 0x212   : > { %v7168_v31 = vpop.f32.mrb[23].mxu1  ;;  %4556 = vst.msk [vmem:[%s6624_s17 + $0x24] sm:$0xf] %vm4020_vm6, %v4225_v6  ;;  %v4204_v35 = vor.u32 %v4203_v7, %v4200_v28  ;;  %v7179_v53 = vpop.f32.mrb[16].mxu0  ;;  %v4226_v62 = vrot.slane %v7160_v20, 4  ;;  %v4718_v18 = vadd.f32 %v4717_v36, %v4716_v56  ;;  %v5727_v1 = vadd.f32 %v7125_v55, %v7061_v52 }
 0x213   : > { %v4606_v5 = vadd.f32 %v4605_v40, %v4604_v15  ;;  %v7186_v22 = vpop.f32.mrb[17].mxu0  ;;  %v4250_v27 = vrot.slane %v4248_v41, 6  ;;  %v4253_v54 = vrot.slane %v4251_v51, 7  ;;  %v5728_v52 = vadd.f32 %v7129_v26, %v7063_v46  ;;  %v3862_v46 = vpop.permute.xlu1 %3861 }
 0x214   : > { %v4205_v21 = vsel %vm7102_vm3, %v4196_v32, %v4204_v35  ;;  %v4206_v44 = vrot.slane %v4204_v35, 4  ;;  %v7190_v43 = vpop.f32.mrb[18].mxu0  ;;  %v4720_v61 = vadd.f32 %v4719_v29, %v4718_v18  ;;  %v3992_v56 = vmul.f32 %v5727_v1, %v7111_v45 }
 0x215   : > { %4554 = vst.msk [vmem:[%s6624_s17 + $0x1c] sm:$0xf] %vm4020_vm6, %v4205_v21  ;;  %v5729_v55 = vadd.f32 %v7135_v10, %v7065_v24  ;;  %v7199_v57 = vpop.f32.mrb[19].mxu0  ;;  %v7205_v23 = vor.u32 %v4253_v54, %v4250_v27  ;;  %v5730_v34 = vadd.f32 %v7146_v37, %v7067_v49  ;;  %v7210_v45 = vadd.f32 %v3637_v25, %v7069_v13  ;;  %v3877_v25 = vpop.permute.xlu0 %3876 }
 0x216   : > { %v4215_v58 = vsel %vm7102_vm3, %v4206_v44, %v4214_v48  ;;  %v5175_v24 = vpack.c.bf16 %v3992_v56, %v3992_v56  ;;  %v4607_v26 = vsel %vm4591_vm15, %v3992_v56, 0.0  ;;  %v4680_v10 = vmul.f32 %v3992_v56, %v3992_v56 }
 0x217   : > { %v7201_v42 = vpop.f32.mrb[24].mxu1  ;;  %4555 = vst.msk [vmem:[%s6624_s17 + $0x20] sm:$0xf] %vm4020_vm6, %v4215_v58  ;;  %v4722_v38 = vadd.f32 %v4721_v30, %v4720_v61  ;;  %v4611_v48 = vsel %vm4591_vm15, %v7143_v50, 0.0  ;;  %v4608_v32 = vadd.f32 %v4607_v26, %v4606_v5  ;;  %v3995_v49 = vmul.f32 %v5728_v52, %v3862_v46 }
 0x218   : > { %v7212_v11 = vpop.f32.mrb[25].mxu1  ;;  %v3993_v37 = vmul.f32 %v5729_v55, %v3852_v0  ;;  %v4682_v15 = vmul.f32 %v7143_v50, %v7143_v50  ;;  %v4228_v28 = vshrl.u32 %v5175_v24, 16  ;;  %v4231_v7 = vshll.u32 %v5175_v24, 16 }
 0x219   : > { %v7217_v47 = vpop.f32.mrb[26].mxu1  ;;  %v4723_v12 = vsel %vm4591_vm15, %v4680_v10, 0.0  ;;  %v4256_v17 = vrot.slane %v7205_v23, 4  ;;  %v5178_v6 = vpack.c.bf16 %v3995_v49, %v3995_v49  ;;  %v7227_v40 = vmul.f32 %v5730_v34, %v3877_v25  ;;  %v3872_v25 = vpop.permute.xlu1 %3871 }
 0x21a   : > { %v7221_v13 = vpop.f32.mrb[27].mxu1  ;;  %v4724_v29 = vadd.f32 %v4723_v12, %v4722_v38  ;;  %v7229_v30 = vpop.f32.mrb[20].mxu0  ;;  %v4230_v35 = vrot.slane %v4228_v28, 6  ;;  %v4233_v0 = vrot.slane %v4231_v7, 7  ;;  %v5176_v36 = vpack.c.bf16 %v3993_v37, %v3993_v37 }
 0x21b   : > { %v4609_v41 = vsel %vm4591_vm15, %v3993_v37, 0.0  ;;  %v7232_v51 = vpop.f32.mrb[21].mxu0  ;;  %v4258_v50 = vshrl.u32 %v5178_v6, 16  ;;  %v4261_v18 = vshll.u32 %v5178_v6, 16  ;;  %v4683_v1 = vmul.f32 %v3995_v49, %v3995_v49 }
 0x21c   : > { %v4610_v5 = vadd.f32 %v4609_v41, %v4608_v32  ;;  %v7234_v21 = vpop.f32.mrb[22].mxu0  ;;  %v4234_v44 = vor.u32 %v4233_v0, %v4230_v35  ;;  %v4238_v27 = vshrl.u32 %v5176_v36, 16  ;;  %v4241_v54 = vshll.u32 %v5176_v36, 16  ;;  %v7259_v36 = vpop.permute.xlu0 %3886 }
 0x21d   : > { %v4681_v61 = vmul.f32 %v3993_v37, %v3993_v37  ;;  %v7236_v56 = vpop.f32.mrb[23].mxu0  ;;  %v4260_v55 = vrot.slane %v4258_v50, 6  ;;  %v4263_v58 = vrot.slane %v4261_v18, 7  ;;  %v5181_v46 = vpack.c.bf16 %v7227_v40, %v7227_v40 }
 0x21e   : > { %v4612_v34 = vadd.f32 %v4611_v48, %v4610_v5  ;;  %v4235_v26 = vsel %vm7102_vm3, %v4226_v62, %v4234_v44  ;;  %v4236_v10 = vrot.slane %v4234_v44, 4  ;;  %v4240_v38 = vrot.slane %v4238_v27, 6 }
 0x21f   : > { %v7238_v52 = vpop.f32.mrb[28].mxu1  ;;  %v4243_v32 = vrot.slane %v4241_v54, 7  ;;  %4557 = vst.msk [vmem:[%s6624_s17 + $0x28] sm:$0xf] %vm4020_vm6, %v4235_v26  ;;  %v7252_v48 = vor.u32 %v4263_v58, %v4260_v55  ;;  %v4725_v28 = vsel %vm4591_vm15, %v4681_v61, 0.0  ;;  %v4288_v7 = vshrl.u32 %v5181_v46, 16 }
 0x220   : > { %v7242_v24 = vpop.f32.mrb[29].mxu1  ;;  %v4291_v12 = vshll.u32 %v5181_v46, 16  ;;  %v4727_v20 = vsel %vm4591_vm15, %v4682_v15, 0.0  ;;  %v4613_v62 = vsel %vm4591_vm15, %v3995_v49, 0.0  ;;  %v4726_v0 = vadd.f32 %v4725_v28, %v4724_v29 }
 0x221   : > { %v7248_v37 = vpop.f32.mrb[30].mxu1  ;;  %v4244_v35 = vor.u32 %v4243_v32, %v4240_v38  ;;  %v4265_v41 = vsel %vm7102_vm3, %v4256_v17, %v7252_v48  ;;  %v4729_v50 = vsel %vm4591_vm15, %v4683_v1, 0.0  ;;  %v4290_v18 = vrot.slane %v4288_v7, 6 }
 0x222   : > { %v7255_v6 = vpop.f32.mrb[31].mxu1  ;;  %v4293_v5 = vrot.slane %v4291_v12, 7  ;;  %v7265_v44 = vpop.f32.mrb[24].mxu0  ;;  %4560 = vst.msk [vmem:[%s6624_s17 + $0x34] sm:$0xf] %vm4020_vm6, %v4265_v41  ;;  %v4728_v27 = vadd.f32 %v4727_v20, %v4726_v0  ;;  %v4619_v29 = vsel %vm4591_vm15, %v7227_v40, 0.0  ;;  %v3996_v1 = vmul.f32 %v7210_v45, %v7181_v63 }
 0x223   : > { %v4245_v15 = vsel %vm7102_vm3, %v4236_v10, %v4244_v35  ;;  %v4246_v49 = vrot.slane %v4244_v35, 4  ;;  %v7273_v54 = vpop.f32.mrb[25].mxu0  ;;  %v4614_v61 = vadd.f32 %v4613_v62, %v4612_v34  ;;  %v5732_v55 = vadd.f32 %v7149_v39, %v7071_v59  ;;  %v3882_v45 = vpop.permute.xlu1 %3881 }
 0x224   : > { %4558 = vst.msk [vmem:[%s6624_s17 + $0x2c] sm:$0xf] %vm4020_vm6, %v4245_v15  ;;  %v7277_v17 = vor.u32 %v4293_v5, %v4290_v18  ;;  %v7283_v58 = vpop.f32.mrb[26].mxu0  ;;  %v4730_v26 = vadd.f32 %v4729_v50, %v4728_v27  ;;  %v5733_v10 = vadd.f32 %v7151_v60, %v7073_v4  ;;  %v5734_v38 = vadd.f32 %v7179_v53, %v7075_v19  ;;  %v3897_v12 = vpop.permute.xlu0 %3896 }
 0x225   : > { %v4255_v46 = vsel %vm7102_vm3, %v4246_v49, %v7205_v23  ;;  %v7292_v32 = vpop.f32.mrb[27].mxu0  ;;  %v4686_v59 = vmul.f32 %v7227_v40, %v7227_v40  ;;  %v5179_v39 = vpack.c.bf16 %v3996_v1, %v3996_v1  ;;  %v4615_v23 = vsel %vm4591_vm15, %v3996_v1, 0.0 }
 0x226   : > { %4559 = vst.msk [vmem:[%s6624_s17 + $0x30] sm:$0xf] %vm4020_vm6, %v4255_v46  ;;  %v4684_v34 = vmul.f32 %v3996_v1, %v3996_v1  ;;  %v4266_v4 = vrot.slane %v7252_v48, 4  ;;  %v4616_v60 = vadd.f32 %v4615_v23, %v4614_v61  ;;  %v3999_v19 = vmul.f32 %v5732_v55, %v3882_v45 }
 0x227   : > { %v7294_v63 = vpop.f32.mrb[32].mxu1  ;;  %v3997_v53 = vmul.f32 %v5733_v10, %v3872_v25  ;;  %v4268_v20 = vshrl.u32 %v5179_v39, 16  ;;  %v4271_v62 = vshll.u32 %v5179_v39, 16  ;;  %v5735_v40 = vadd.f32 %v7186_v22, %v7077_v14 }
 0x228   : > { %v7301_v28 = vpop.f32.mrb[33].mxu1  ;;  %v4731_v35 = vsel %vm4591_vm15, %v4684_v34, 0.0  ;;  %v4296_v41 = vrot.slane %v7277_v17, 4  ;;  %v5182_v18 = vpack.c.bf16 %v3999_v19, %v3999_v19  ;;  %v4002_v48 = vmul.f32 %v5734_v38, %v3897_v12 }
 0x229   : > { %v7304_v7 = vpop.f32.mrb[34].mxu1  ;;  %v4732_v50 = vadd.f32 %v4731_v35, %v4730_v26  ;;  %v4270_v5 = vrot.slane %v4268_v20, 6  ;;  %v4273_v15 = vrot.slane %v4271_v62, 7  ;;  %v5180_v25 = vpack.c.bf16 %v3997_v53, %v3997_v53 }
 0x22a   : > { %v7309_v0 = vpop.f32.mrb[35].mxu1  ;;  %v4617_v49 = vsel %vm4591_vm15, %v3997_v53, 0.0  ;;  %v7313_v27 = vpop.f32.mrb[28].mxu0  ;;  %v4298_v1 = vshrl.u32 %v5182_v18, 16  ;;  %v4301_v61 = vshll.u32 %v5182_v18, 16  ;;  %v4687_v55 = vmul.f32 %v3999_v19, %v3999_v19 }
 0x22b   : > { %v4618_v46 = vadd.f32 %v4617_v49, %v4616_v60  ;;  %v7315_v10 = vpop.f32.mrb[29].mxu0  ;;  %v4274_v14 = vor.u32 %v4273_v15, %v4270_v5  ;;  %v4278_v22 = vshrl.u32 %v5180_v25, 16  ;;  %v4281_v45 = vshll.u32 %v5180_v25, 16  ;;  %v3892_v49 = vpop.permute.xlu1 %3891 }
 0x22c   : > { %v4685_v26 = vmul.f32 %v3997_v53, %v3997_v53  ;;  %v7317_v39 = vpop.f32.mrb[30].mxu0  ;;  %v4300_v38 = vrot.slane %v4298_v1, 6  ;;  %v4303_v23 = vrot.slane %v4301_v61, 7  ;;  %v5185_v12 = vpack.c.bf16 %v4002_v48, %v4002_v48 }
 0x22d   : > { %v4620_v34 = vadd.f32 %v4619_v29, %v4618_v46  ;;  %v7319_v20 = vpop.f32.mrb[31].mxu0  ;;  %v4275_v62 = vsel %vm7102_vm3, %v4266_v4, %v4274_v14  ;;  %v4276_v35 = vrot.slane %v4274_v14, 4  ;;  %v4280_v60 = vrot.slane %v4278_v22, 6  ;;  %v7330_v46 = vpop.permute.xlu0 %3906 }
 0x22e   : > { %v4283_v18 = vrot.slane %v4281_v45, 7  ;;  %4561 = vst.msk [vmem:[%s6624_s17 + $0x38] sm:$0xf] %vm4020_vm6, %v4275_v62  ;;  %v7325_v5 = vor.u32 %v4303_v23, %v4300_v38  ;;  %v4733_v53 = vsel %vm4591_vm15, %v4685_v26, 0.0  ;;  %v4328_v15 = vshrl.u32 %v5185_v12, 16 }
 0x22f   : > { %v4331_v25 = vshll.u32 %v5185_v12, 16  ;;  %v4735_v29 = vsel %vm4591_vm15, %v4686_v59, 0.0  ;;  %v4621_v1 = vsel %vm4591_vm15, %v3999_v19, 0.0  ;;  %v4734_v4 = vadd.f32 %v4733_v53, %v4732_v50 }
 0x230   : > { %v4284_v61 = vor.u32 %v4283_v18, %v4280_v60  ;;  %v4305_v14 = vsel %vm7102_vm3, %v4296_v41, %v7325_v5  ;;  %v4737_v22 = vsel %vm4591_vm15, %v4687_v55, 0.0  ;;  %v4330_v45 = vrot.slane %v4328_v15, 6 }
 0x231   : > { %v4333_v38 = vrot.slane %v4331_v25, 7  ;;  %4564 = vst.msk [vmem:[%s6624_s17 + $0x44] sm:$0xf] %vm4020_vm6, %v4305_v14  ;;  %v4736_v19 = vadd.f32 %v4735_v29, %v4734_v4  ;;  %v4627_v50 = vsel %vm4591_vm15, %v4002_v48, 0.0  ;;  %v4000_v41 = vmul.f32 %v5735_v40, %v7259_v36  ;;  %v3902_v36 = vpop.permute.xlu1 %3901 }
 0x232   : > { %v4285_v26 = vsel %vm7102_vm3, %v4276_v35, %v4284_v61  ;;  %v4286_v59 = vrot.slane %v4284_v61, 4  ;;  %v7341_v23 = vpop.f32.mrb[32].mxu0  ;;  %v4622_v55 = vadd.f32 %v4621_v1, %v4620_v34  ;;  %v5736_v62 = vadd.f32 %v7190_v43, %v7079_v8 }
 0x233   : > { %4562 = vst.msk [vmem:[%s6624_s17 + $0x3c] sm:$0xf] %vm4020_vm6, %v4285_v26  ;;  %v7345_v12 = vor.u32 %v4333_v38, %v4330_v45  ;;  %v7350_v60 = vpop.f32.mrb[33].mxu0  ;;  %v4738_v18 = vadd.f32 %v4737_v22, %v4736_v19  ;;  %v5737_v53 = vadd.f32 %v7199_v57, %v7081_v33  ;;  %v5738_v15 = vadd.f32 %v7229_v30, %v7153_v2  ;;  %v3917_v57 = vpop.permute.xlu0 %3916 }
 0x234   : > { %v4295_v35 = vsel %vm7102_vm3, %v4286_v59, %v7277_v17  ;;  %v7359_v25 = vpop.f32.mrb[34].mxu0  ;;  %v4690_v40 = vmul.f32 %v4002_v48, %v4002_v48  ;;  %v5183_v8 = vpack.c.bf16 %v4000_v41, %v4000_v41  ;;  %v4623_v43 = vsel %vm4591_vm15, %v4000_v41, 0.0 }
 0x235   : > { %4563 = vst.msk [vmem:[%s6624_s17 + $0x40] sm:$0xf] %vm4020_vm6, %v4295_v35  ;;  %v4688_v34 = vmul.f32 %v4000_v41, %v4000_v41  ;;  %v7364_v29 = vpop.f32.mrb[35].mxu0  ;;  %v4306_v17 = vrot.slane %v7325_v5, 4  ;;  %v4624_v1 = vadd.f32 %v4623_v43, %v4622_v55  ;;  %v4003_v61 = vmul.f32 %v5736_v62, %v3902_v36 }
 0x236   : > { %v4001_v33 = vmul.f32 %v5737_v53, %v3892_v49  ;;  %v4308_v4 = vshrl.u32 %v5183_v8, 16  ;;  %v4311_v2 = vshll.u32 %v5183_v8, 16  ;;  %v5739_v14 = vadd.f32 %v7232_v51, %v7156_v3 }
 0x237   : > { %v4739_v30 = vsel %vm4591_vm15, %v4688_v34, 0.0  ;;  %v4336_v48 = vrot.slane %v7345_v12, 4  ;;  %v5186_v45 = vpack.c.bf16 %v4003_v61, %v4003_v61  ;;  %v4006_v38 = vmul.f32 %v5738_v15, %v3917_v57 }
 0x238   : > { %v4740_v22 = vadd.f32 %v4739_v30, %v4738_v18  ;;  %v4310_v26 = vrot.slane %v4308_v4, 6  ;;  %v4313_v59 = vrot.slane %v4311_v2, 7  ;;  %v5184_v19 = vpack.c.bf16 %v4001_v33, %v4001_v33  ;;  %v3912_v2 = vpop.permute.xlu1 %3911 }
 0x239   : > { %v4625_v5 = vsel %vm4591_vm15, %v4001_v33, 0.0  ;;  %v4338_v41 = vshrl.u32 %v5186_v45, 16  ;;  %v4341_v49 = vshll.u32 %v5186_v45, 16  ;;  %v4691_v55 = vmul.f32 %v4003_v61, %v4003_v61 }
 0x23a   : > { %v4626_v62 = vadd.f32 %v4625_v5, %v4624_v1  ;;  %v4314_v35 = vor.u32 %v4313_v59, %v4310_v26  ;;  %v4318_v53 = vshrl.u32 %v5184_v19, 16  ;;  %v4321_v36 = vshll.u32 %v5184_v19, 16  ;;  %v7381_v19 = vpop.permute.xlu0 %3926 }
 0x23b   : > { %v4689_v8 = vmul.f32 %v4001_v33, %v4001_v33  ;;  %v4340_v3 = vrot.slane %v4338_v41, 6  ;;  %v4343_v51 = vrot.slane %v4341_v49, 7  ;;  %v5189_v18 = vpack.c.bf16 %v4006_v38, %v4006_v38 }
 0x23c   : > { %v4628_v43 = vadd.f32 %v4627_v50, %v4626_v62  ;;  %v4315_v15 = vsel %vm7102_vm3, %v4306_v17, %v4314_v35  ;;  %v4316_v34 = vrot.slane %v4314_v35, 4  ;;  %v4320_v57 = vrot.slane %v4318_v53, 6 }
 0x23d   : > { %v4323_v4 = vrot.slane %v4321_v36, 7  ;;  %4565 = vst.msk [vmem:[%s6624_s17 + $0x48] sm:$0xf] %vm4020_vm6, %v4315_v15  ;;  %v7376_v30 = vor.u32 %v4343_v51, %v4340_v3  ;;  %v4741_v1 = vsel %vm4591_vm15, %v4689_v8, 0.0  ;;  %v4368_v45 = vshrl.u32 %v5189_v18, 16  ;;  %v3922_v15 = vpop.permute.xlu1 %3921 }
 0x23e   : > { %v4371_v33 = vshll.u32 %v5189_v18, 16  ;;  %v4743_v50 = vsel %vm4591_vm15, %v4690_v40, 0.0  ;;  %v4629_v26 = vsel %vm4591_vm15, %v4003_v61, 0.0  ;;  %v4742_v17 = vadd.f32 %v4741_v1, %v4740_v22 }
 0x23f   : > { %v4324_v59 = vor.u32 %v4323_v4, %v4320_v57  ;;  %v4345_v5 = vsel %vm7102_vm3, %v4336_v48, %v7376_v30  ;;  %v4745_v41 = vsel %vm4591_vm15, %v4691_v55, 0.0  ;;  %v4370_v49 = vrot.slane %v4368_v45, 6  ;;  %v3937_v4 = vpop.permute.xlu0 %3936 }
 0x240   : > { %v4373_v62 = vrot.slane %v4371_v33, 7  ;;  %4568 = vst.msk [vmem:[%s6624_s17 + $0x54] sm:$0xf] %vm4020_vm6, %v4345_v5  ;;  %v4744_v61 = vadd.f32 %v4743_v50, %v4742_v17  ;;  %v4635_v22 = vsel %vm4591_vm15, %v4006_v38, 0.0  ;;  %v4004_v48 = vmul.f32 %v5739_v14, %v7330_v46 }
 0x241   : > { %v4325_v40 = vsel %vm7102_vm3, %v4316_v34, %v4324_v59  ;;  %v4326_v35 = vrot.slane %v4324_v59, 4  ;;  %v4630_v36 = vadd.f32 %v4629_v26, %v4628_v43  ;;  %v5740_v55 = vadd.f32 %v7234_v21, %v7162_v16 }
 0x242   : > { %4566 = vst.msk [vmem:[%s6624_s17 + $0x4c] sm:$0xf] %vm4020_vm6, %v4325_v40  ;;  %v7394_v53 = vor.u32 %v4373_v62, %v4370_v49  ;;  %v4746_v3 = vadd.f32 %v4745_v41, %v4744_v61  ;;  %v5741_v51 = vadd.f32 %v7236_v56, %v7168_v31  ;;  %v5742_v18 = vadd.f32 %v7265_v44, %v7201_v42 }
 0x243   : > { %v4335_v8 = vsel %vm7102_vm3, %v4326_v35, %v7345_v12  ;;  %v4694_v34 = vmul.f32 %v4006_v38, %v4006_v38  ;;  %v5187_v46 = vpack.c.bf16 %v4004_v48, %v4004_v48  ;;  %v4631_v14 = vsel %vm4591_vm15, %v4004_v48, 0.0 }
 0x244   : > { %4567 = vst.msk [vmem:[%s6624_s17 + $0x50] sm:$0xf] %vm4020_vm6, %v4335_v8  ;;  %v4692_v43 = vmul.f32 %v4004_v48, %v4004_v48  ;;  %v4346_v16 = vrot.slane %v7376_v30, 4  ;;  %v4632_v21 = vadd.f32 %v4631_v14, %v4630_v36  ;;  %v4007_v57 = vmul.f32 %v5740_v55, %v3922_v15 }
 0x245   : > { %v4005_v12 = vmul.f32 %v5741_v51, %v3912_v2  ;;  %v4348_v1 = vshrl.u32 %v5187_v46, 16  ;;  %v4351_v45 = vshll.u32 %v5187_v46, 16  ;;  %v5743_v42 = vadd.f32 %v7273_v54, %v7212_v11  ;;  %v3932_v51 = vpop.permute.xlu1 %3931 }
 0x246   : > { %v4747_v31 = vsel %vm4591_vm15, %v4692_v43, 0.0  ;;  %v4376_v56 = vrot.slane %v7394_v53, 4  ;;  %v5190_v38 = vpack.c.bf16 %v4007_v57, %v4007_v57  ;;  %v4010_v33 = vmul.f32 %v5742_v18, %v3937_v4 }
 0x247   : > { %v4748_v44 = vadd.f32 %v4747_v31, %v4746_v3  ;;  %v4350_v50 = vrot.slane %v4348_v1, 6  ;;  %v4353_v26 = vrot.slane %v4351_v45, 7  ;;  %v5188_v59 = vpack.c.bf16 %v4005_v12, %v4005_v12 }
 0x248   : > { %v4633_v30 = vsel %vm4591_vm15, %v4005_v12, 0.0  ;;  %v4378_v17 = vshrl.u32 %v5190_v38, 16  ;;  %v4381_v2 = vshll.u32 %v5190_v38, 16  ;;  %v4695_v5 = vmul.f32 %v4007_v57, %v4007_v57 }
 0x249   : > { %v4634_v41 = vadd.f32 %v4633_v30, %v4632_v21  ;;  %v4354_v49 = vor.u32 %v4353_v26, %v4350_v50  ;;  %v4358_v62 = vshrl.u32 %v5188_v59, 16  ;;  %v4361_v40 = vshll.u32 %v5188_v59, 16 }
 0x24a   : > { %v4693_v35 = vmul.f32 %v4005_v12, %v4005_v12  ;;  %v4380_v11 = vrot.slane %v4378_v17, 6  ;;  %v4383_v54 = vrot.slane %v4381_v2, 7  ;;  %v5193_v48 = vpack.c.bf16 %v4010_v33, %v4010_v33  ;;  %v7424_v12 = vpop.permute.xlu0 %3946 }
 0x24b   : > { %v4636_v61 = vadd.f32 %v4635_v22, %v4634_v41  ;;  %v4355_v36 = vsel %vm7102_vm3, %v4346_v16, %v4354_v49  ;;  %v4356_v55 = vrot.slane %v4354_v49, 4  ;;  %v4360_v8 = vrot.slane %v4358_v62, 6  ;;  %v3942_v41 = vpop.permute.xlu1 %3941 }
 0x24c   : > { %v4363_v3 = vrot.slane %v4361_v40, 7  ;;  %4569 = vst.msk [vmem:[%s6624_s17 + $0x58] sm:$0xf] %vm4020_vm6, %v4355_v36  ;;  %v7419_v18 = vor.u32 %v4383_v54, %v4380_v11  ;;  %v4749_v15 = vsel %vm4591_vm15, %v4693_v35, 0.0  ;;  %v4408_v46 = vshrl.u32 %v5193_v48, 16 }
 0x24d   : > { %v4411_v14 = vshll.u32 %v5193_v48, 16  ;;  %v4751_v22 = vsel %vm4591_vm15, %v4694_v34, 0.0  ;;  %v4637_v43 = vsel %vm4591_vm15, %v4007_v57, 0.0  ;;  %v4750_v16 = vadd.f32 %v4749_v15, %v4748_v44 }
 0x24e   : > { %v4364_v21 = vor.u32 %v4363_v3, %v4360_v8  ;;  %v4385_v4 = vsel %vm7102_vm3, %v4376_v56, %v7419_v18  ;;  %v4753_v1 = vsel %vm4591_vm15, %v4695_v5, 0.0  ;;  %v4410_v45 = vrot.slane %v4408_v46, 6  ;;  %v3957_v35 = vpop.permute.xlu0 %3956 }
 0x24f   : > { %v4413_v31 = vrot.slane %v4411_v14, 7  ;;  %4572 = vst.msk [vmem:[%s6624_s17 + $0x64] sm:$0xf] %vm4020_vm6, %v4385_v4  ;;  %v4752_v57 = vadd.f32 %v4751_v22, %v4750_v16  ;;  %v4643_v44 = vsel %vm4591_vm15, %v4010_v33, 0.0  ;;  %v4008_v56 = vmul.f32 %v5743_v42, %v7381_v19 }
 0x250   : > { %v4365_v34 = vsel %vm7102_vm3, %v4356_v55, %v4364_v21  ;;  %v4366_v38 = vrot.slane %v4364_v21, 4  ;;  %v4638_v26 = vadd.f32 %v4637_v43, %v4636_v61  ;;  %v5744_v59 = vadd.f32 %v7283_v58, %v7217_v47 }
 0x251   : > { %4570 = vst.msk [vmem:[%s6624_s17 + $0x5c] sm:$0xf] %vm4020_vm6, %v4365_v34  ;;  %v7437_v50 = vor.u32 %v4413_v31, %v4410_v45  ;;  %v4754_v17 = vadd.f32 %v4753_v1, %v4752_v57  ;;  %v5745_v2 = vadd.f32 %v7292_v32, %v7221_v13  ;;  %v5746_v5 = vadd.f32 %v7313_v27, %v7238_v52  ;;  %v3952_v34 = vpop.permute.xlu1 %3951 }
 0x252   : > { %v4375_v30 = vsel %vm7102_vm3, %v4366_v38, %v7394_v53  ;;  %v4698_v49 = vmul.f32 %v4010_v33, %v4010_v33  ;;  %v5191_v19 = vpack.c.bf16 %v4008_v56, %v4008_v56  ;;  %v4639_v42 = vsel %vm4591_vm15, %v4008_v56, 0.0 }
 0x253   : > { %4571 = vst.msk [vmem:[%s6624_s17 + $0x60] sm:$0xf] %vm4020_vm6, %v4375_v30  ;;  %v4696_v62 = vmul.f32 %v4008_v56, %v4008_v56  ;;  %v4386_v47 = vrot.slane %v7419_v18, 4  ;;  %v4640_v58 = vadd.f32 %v4639_v42, %v4638_v26  ;;  %v4011_v40 = vmul.f32 %v5744_v59, %v3942_v41 }
 0x254   : > { %v4009_v53 = vmul.f32 %v5745_v2, %v3932_v51  ;;  %v4388_v11 = vshrl.u32 %v5191_v19, 16  ;;  %v4391_v54 = vshll.u32 %v5191_v19, 16  ;;  %v5747_v52 = vadd.f32 %v7315_v10, %v7242_v24  ;;  %v7467_v2 = vpop.permute.xlu0 %3966 }
 0x255   : > { %v4755_v13 = vsel %vm4591_vm15, %v4696_v62, 0.0  ;;  %v4416_v32 = vrot.slane %v7437_v50, 4  ;;  %v5194_v33 = vpack.c.bf16 %v4011_v40, %v4011_v40  ;;  %v4014_v61 = vmul.f32 %v5746_v5, %v3957_v35 }
 0x256   : > { %v4756_v27 = vadd.f32 %v4755_v13, %v4754_v17  ;;  %v4390_v48 = vrot.slane %v4388_v11, 6  ;;  %v4393_v36 = vrot.slane %v4391_v54, 7  ;;  %v5192_v55 = vpack.c.bf16 %v4009_v53, %v4009_v53 }
 0x257   : > { %v4641_v8 = vsel %vm4591_vm15, %v4009_v53, 0.0  ;;  %v4418_v3 = vshrl.u32 %v5194_v33, 16  ;;  %v4421_v51 = vshll.u32 %v5194_v33, 16  ;;  %v4699_v18 = vmul.f32 %v4011_v40, %v4011_v40  ;;  %v3962_v33 = vpop.permute.xlu1 %3961 }
 0x258   : > { %v4642_v15 = vadd.f32 %v4641_v8, %v4640_v58  ;;  %v4394_v46 = vor.u32 %v4393_v36, %v4390_v48  ;;  %v4398_v14 = vshrl.u32 %v5192_v55, 16  ;;  %v4401_v22 = vshll.u32 %v5192_v55, 16  ;;  %v3977_v8 = vpop.permute.xlu0 %3976 }
 0x259   : > { %v4697_v43 = vmul.f32 %v4009_v53, %v4009_v53  ;;  %v4420_v24 = vrot.slane %v4418_v3, 6  ;;  %v4423_v10 = vrot.slane %v4421_v51, 7  ;;  %v5197_v16 = vpack.c.bf16 %v4014_v61, %v4014_v61 }
 0x25a   : > { %v4644_v21 = vadd.f32 %v4643_v44, %v4642_v15  ;;  %v4395_v4 = vsel %vm7102_vm3, %v4386_v47, %v4394_v46  ;;  %v4396_v1 = vrot.slane %v4394_v46, 4  ;;  %v4400_v45 = vrot.slane %v4398_v14, 6 }
 0x25b   : > { %v4403_v31 = vrot.slane %v4401_v22, 7  ;;  %4573 = vst.msk [vmem:[%s6624_s17 + $0x68] sm:$0xf] %vm4020_vm6, %v4395_v4  ;;  %v7462_v38 = vor.u32 %v4423_v10, %v4420_v24  ;;  %v4757_v57 = vsel %vm4591_vm15, %v4697_v43, 0.0  ;;  %v4448_v56 = vshrl.u32 %v5197_v16, 16 }
 0x25c   : > { %v4451_v26 = vshll.u32 %v5197_v16, 16  ;;  %v4759_v44 = vsel %vm4591_vm15, %v4698_v49, 0.0  ;;  %v4645_v59 = vsel %vm4591_vm15, %v4011_v40, 0.0  ;;  %v4758_v17 = vadd.f32 %v4757_v57, %v4756_v27 }
 0x25d   : > { %v4404_v30 = vor.u32 %v4403_v31, %v4400_v45  ;;  %v4425_v5 = vsel %vm7102_vm3, %v4416_v32, %v7462_v38  ;;  %v4761_v41 = vsel %vm4591_vm15, %v4699_v18, 0.0  ;;  %v4450_v19 = vrot.slane %v4448_v56, 6 }
 0x25e   : > { %v4453_v42 = vrot.slane %v4451_v26, 7  ;;  %4576 = vst.msk [vmem:[%s6624_s17 + $0x74] sm:$0xf] %vm4020_vm6, %v4425_v5  ;;  %v4760_v47 = vadd.f32 %v4759_v44, %v4758_v17  ;;  %v4651_v58 = vsel %vm4591_vm15, %v4014_v61, 0.0  ;;  %v4012_v53 = vmul.f32 %v5747_v52, %v7424_v12  ;;  %v3972_v44 = vpop.permute.xlu1 %3971 }
 0x25f   : > { %v4405_v49 = vsel %vm7102_vm3, %v4396_v1, %v4404_v30  ;;  %v4406_v62 = vrot.slane %v4404_v30, 4  ;;  %v4646_v35 = vadd.f32 %v4645_v59, %v4644_v21  ;;  %v5748_v11 = vadd.f32 %v7317_v39, %v7248_v37 }
 0x260   : > { %4574 = vst.msk [vmem:[%s6624_s17 + $0x6c] sm:$0xf] %vm4020_vm6, %v4405_v49  ;;  %v7480_v40 = vor.u32 %v4453_v42, %v4450_v19  ;;  %v4762_v13 = vadd.f32 %v4761_v41, %v4760_v47  ;;  %v5749_v32 = vadd.f32 %v7319_v20, %v7255_v6  ;;  %v5750_v27 = vadd.f32 %v7341_v23, %v7294_v63 }
 0x261   : > { %v4415_v54 = vsel %vm7102_vm3, %v4406_v62, %v7437_v50  ;;  %v4702_v48 = vmul.f32 %v4014_v61, %v4014_v61  ;;  %v5195_v12 = vpack.c.bf16 %v4012_v53, %v4012_v53  ;;  %v4647_v52 = vsel %vm4591_vm15, %v4012_v53, 0.0 }
 0x262   : > { %4575 = vst.msk [vmem:[%s6624_s17 + $0x70] sm:$0xf] %vm4020_vm6, %v4415_v54  ;;  %v4700_v36 = vmul.f32 %v4012_v53, %v4012_v53  ;;  %v4426_v37 = vrot.slane %v7462_v38, 4  ;;  %v4648_v39 = vadd.f32 %v4647_v52, %v4646_v35  ;;  %v4015_v55 = vmul.f32 %v5748_v11, %v3962_v33 }
 0x263   : > { %v4013_v50 = vmul.f32 %v5749_v32, %v3952_v34  ;;  %v4428_v3 = vshrl.u32 %v5195_v12, 16  ;;  %v4431_v51 = vshll.u32 %v5195_v12, 16  ;;  %v5751_v63 = vadd.f32 %v7350_v60, %v7301_v28  ;;  %v3982_v12 = vpop.permute.xlu1 %3981 }
 0x264   : > { %v4763_v6 = vsel %vm4591_vm15, %v4700_v36, 0.0  ;;  %v4456_v20 = vrot.slane %v7480_v40, 4  ;;  %v5198_v61 = vpack.c.bf16 %v4015_v55, %v4015_v55  ;;  %v4018_v18 = vmul.f32 %v5750_v27, %v3977_v8 }
 0x265   : > { %v4764_v23 = vadd.f32 %v4763_v6, %v4762_v13  ;;  %v4430_v15 = vrot.slane %v4428_v3, 6  ;;  %v4433_v46 = vrot.slane %v4431_v51, 7  ;;  %v5196_v14 = vpack.c.bf16 %v4013_v50, %v4013_v50 }
 0x266   : > { %v4649_v22 = vsel %vm4591_vm15, %v4013_v50, 0.0  ;;  %v4458_v43 = vshrl.u32 %v5198_v61, 16  ;;  %v4461_v24 = vshll.u32 %v5198_v61, 16  ;;  %v4703_v10 = vmul.f32 %v4015_v55, %v4015_v55 }
 0x267   : > { %v4650_v21 = vadd.f32 %v4649_v22, %v4648_v39  ;;  %v4434_v16 = vor.u32 %v4433_v46, %v4430_v15  ;;  %v4438_v4 = vshrl.u32 %v5196_v14, 16  ;;  %v4441_v1 = vshll.u32 %v5196_v14, 16 }
 0x268   : > { %v4701_v45 = vmul.f32 %v4013_v50, %v4013_v50  ;;  %v4460_v28 = vrot.slane %v4458_v43, 6  ;;  %v4463_v60 = vrot.slane %v4461_v24, 7  ;;  %v5201_v34 = vpack.c.bf16 %v4018_v18, %v4018_v18 }
 0x269   : > { %v4652_v31 = vadd.f32 %v4651_v58, %v4650_v21  ;;  %v4435_v38 = vsel %vm7102_vm3, %v4426_v37, %v4434_v16  ;;  %v4436_v57 = vrot.slane %v4434_v16, 4  ;;  %v4440_v56 = vrot.slane %v4438_v4, 6 }
 0x26a   : > { %v4443_v26 = vrot.slane %v4441_v1, 7  ;;  %4577 = vst.msk [vmem:[%s6624_s17 + $0x78] sm:$0xf] %vm4020_vm6, %v4435_v38  ;;  %v4464_v59 = vor.u32 %v4463_v60, %v4460_v28  ;;  %v4765_v30 = vsel %vm4591_vm15, %v4701_v45, 0.0  ;;  %v4488_v17 = vshrl.u32 %v5201_v34, 16 }
 0x26b   : > { %v4491_v5 = vshll.u32 %v5201_v34, 16  ;;  %v4766_v19 = vadd.f32 %v4765_v30, %v4764_v23  ;;  %v4767_v42 = vsel %vm4591_vm15, %v4702_v48, 0.0  ;;  %v4653_v62 = vsel %vm4591_vm15, %v4015_v55, 0.0  ;;  %v4588_v1 = vld [vmem:[%s6624_s17 + $0x98] sm:$0x1] }
 0x26c   : > { %v4444_v41 = vor.u32 %v4443_v26, %v4440_v56  ;;  %v4465_v49 = vsel %vm7102_vm3, %v4456_v20, %v4464_v59  ;;  %v4490_v47 = vrot.slane %v4488_v17, 6  ;;  %v4769_v54 = vsel %vm4591_vm15, %v4703_v10, 0.0 }
 0x26d   : > { %4580 = vst.msk [vmem:[%s6624_s17 + $0x84] sm:$0xf] %vm4020_vm6, %v4465_v49  ;;  %v4768_v35 = vadd.f32 %v4767_v42, %v4766_v19  ;;  %v4493_v11 = vrot.slane %v4491_v5, 7  ;;  %v4016_v13 = vmul.f32 %v5751_v63, %v7467_v2  ;;  %v4654_v32 = vadd.f32 %v4653_v62, %v4652_v31 }
 0x26e   : > { %v4445_v58 = vsel %vm7102_vm3, %v4436_v57, %v4444_v41  ;;  %v4446_v53 = vrot.slane %v4444_v41, 4  ;;  %v5752_v27 = vadd.f32 %v7359_v25, %v7304_v7  ;;  %v5753_v50 = vadd.f32 %v7364_v29, %v7309_v0 }
 0x26f   : > { %4578 = vst.msk [vmem:[%s6624_s17 + $0x7c] sm:$0xf] %vm4020_vm6, %v4445_v58  ;;  %v4770_v48 = vadd.f32 %v4769_v54, %v4768_v35  ;;  %v5199_v52 = vpack.c.bf16 %v4016_v13, %v4016_v13  ;;  %v4655_v36 = vsel %vm4591_vm15, %v4016_v13, 0.0  ;;  %v4704_v37 = vmul.f32 %v4016_v13, %v4016_v13 }
 0x270   : > { %v4455_v33 = vsel %vm7102_vm3, %v4446_v53, %v7480_v40  ;;  %v4494_v39 = vor.u32 %v4493_v11, %v4490_v47  ;;  %v4656_v55 = vadd.f32 %v4655_v36, %v4654_v32  ;;  %v4019_v2 = vmul.f32 %v5752_v27, %v3982_v12 }
 0x271   : > { %4579 = vst.msk [vmem:[%s6624_s17 + $0x80] sm:$0xf] %vm4020_vm6, %v4455_v33  ;;  %v4659_v7 = vsel %vm4591_vm15, %v4018_v18, 0.0  ;;  %v4468_v25 = vshrl.u32 %v5199_v52, 16  ;;  %v4471_v8 = vshll.u32 %v5199_v52, 16  ;;  %v4771_v40 = vsel %vm4591_vm15, %v4704_v37, 0.0 }
 0x272   : > { %v4466_v3 = vrot.slane %v4464_v59, 4  ;;  %v4706_v51 = vmul.f32 %v4018_v18, %v4018_v18  ;;  %v4772_v6 = vadd.f32 %v4771_v40, %v4770_v48  ;;  %v5202_v63 = vpack.c.bf16 %v4019_v2, %v4019_v2 }
 0x273   : > { %v4470_v20 = vrot.slane %v4468_v25, 6  ;;  %v4473_v23 = vrot.slane %v4471_v8, 7  ;;  %v4017_v61 = vmul.f32 %v5753_v50, %v3972_v44  ;;  %v4496_v15 = vrot.slane %v4494_v39, 4 }
 0x274   : > { %v4498_v46 = vshrl.u32 %v5202_v63, 16  ;;  %v4501_v14 = vshll.u32 %v5202_v63, 16  ;;  %v4662_v18 = vsel %vm4661_vm4, %v4019_v2, 0.0  ;;  %v4707_v45 = vmul.f32 %v4019_v2, %v4019_v2 }
 0x275   : > { %v4474_v0 = vor.u32 %v4473_v23, %v4470_v20  ;;  %v5200_v29 = vpack.c.bf16 %v4017_v61, %v4017_v61  ;;  %v4657_v22 = vsel %vm4591_vm15, %v4017_v61, 0.0  ;;  %v4705_v43 = vmul.f32 %v4017_v61, %v4017_v61 }
 0x276   : > { %v4500_v24 = vrot.slane %v4498_v46, 6  ;;  %v4503_v10 = vrot.slane %v4501_v14, 7  ;;  %v4658_v21 = vadd.f32 %v4657_v22, %v4656_v55  ;;  %v4775_v30 = vsel %vm4591_vm15, %v4706_v51, 0.0 }
 0x277   : > { %v4475_v16 = vsel %vm7102_vm3, %v4466_v3, %v4474_v0  ;;  %v4478_v28 = vshrl.u32 %v5200_v29, 16  ;;  %v4481_v60 = vshll.u32 %v5200_v29, 16  ;;  %v4773_v57 = vsel %vm4591_vm15, %v4705_v43, 0.0 }
 0x278   : > { %4581 = vst.msk [vmem:[%s6624_s17 + $0x88] sm:$0xf] %vm4020_vm6, %v4475_v16  ;;  %v4504_v31 = vor.u32 %v4503_v10, %v4500_v24  ;;  %v4506_v34 = vrot.slane %v4500_v24, 4  ;;  %v4660_v38 = vadd.f32 %v4659_v7, %v4658_v21  ;;  %v4476_v56 = vrot.slane %v4474_v0, 4 }
 0x279   : > { %v4480_v26 = vrot.slane %v4478_v28, 6  ;;  %v4483_v44 = vrot.slane %v4481_v60, 7  ;;  %v4774_v59 = vadd.f32 %v4773_v57, %v4772_v6  ;;  %v4777_v49 = vsel %vm4661_vm4, %v4707_v45, 0.0 }
 0x27a   : > { %v4505_v17 = vsel %vm7102_vm3, %v4496_v15, %v4504_v31  ;;  %v4589_v5 = vsel %vm7535_vm8, %v4506_v34, %v4588_v1  ;;  %v4663_v41 = vadd.f32 %v4662_v18, %v4660_v38 }
 0x27b   : > { %4584 = vst.msk [vmem:[%s6624_s17 + $0x94] sm:$0xf] %vm4020_vm6, %v4505_v17  ;;  %4590 = vst [vmem:[%s6624_s17 + $0x98] sm:$0x1] %v4589_v5  ;;  %v4484_v19 = vor.u32 %v4483_v44, %v4480_v26  ;;  %v4776_v42 = vadd.f32 %v4775_v30, %v4774_v59 }
 0x27c   : > { %v4664_v62 = vrot.slane %v4663_v41, 4 }
 0x27d   : > { %v4485_v47 = vsel %vm7102_vm3, %v4476_v56, %v4484_v19  ;;  %v4486_v58 = vrot.slane %v4484_v19, 4  ;;  %v4778_v53 = vadd.f32 %v4777_v49, %v4776_v42 }
 0x27e   : > { %4582 = vst.msk [vmem:[%s6624_s17 + $0x8c] sm:$0xf] %vm4020_vm6, %v4485_v47  ;;  %v4665_v35 = vadd.f32 %v4664_v62, %v4663_v41 }
 0x27f   : > { %v4495_v11 = vsel %vm7102_vm3, %v4486_v58, %v4494_v39  ;;  %v4779_v54 = vrot.slane %v4778_v53, 4 }
 0x280   : > { %4583 = vst.msk [vmem:[%s6624_s17 + $0x90] sm:$0xf] %vm4020_vm6, %v4495_v11  ;;  %v4666_v13 = vrot.slane %v4665_v35, 2 }
 0x281   : > { %v4780_v32 = vadd.f32 %v4779_v54, %v4778_v53 }
 0x282   : > { %v4667_v27 = vadd.f32 %v4666_v13, %v4665_v35 }
 0x283   : > { %v4781_v33 = vrot.slane %v4780_v32, 2 }
 0x284   : > { %v4668_v48 = vrot.slane %v4667_v27, 1 }
 0x285   : > { %v4782_v12 = vadd.f32 %v4781_v33, %v4780_v32 }
 0x286   : > { %v4669_v52 = vadd.f32 %v4668_v48, %v4667_v27 }
 0x287   : > { %v4783_v36 = vrot.slane %v4782_v12, 1 }
 0x288   : > { %4671 = vst.msk [vmem:[%s208_s29] sm:$0x1] %vm4585_vm5, %v4669_v52 }
 0x289   : > { %v4784_v9 = vadd.f32 %v4783_v36, %v4782_v12 }
 0x28b   : > { %4785 = vst.msk [vmem:[%s208_s29 + $0x1] sm:$0x1] %vm4585_vm5, %v4784_v9 }
 0x28c PF: > { %s15_s15 = sadd.s32 1, %s6122_s15  }
 0x28d   : > { %p12_p4 = scmp.ge.s32.totalorder %s15_s15, 4  }
 0x28f   :  { %14 = sbr.rel (!%p12_p4) target bundleno = 1 (0x1), region = 82 }

// kernel: double_conv_forward.4
= control target key start
LH: loop header
LB: loop body
LE: loop exit
PB: predicated region body
PF: predicated region fallthrough
CT: control target
= control target key end

     0   :  { %s7112_s21 = smov 0   ;;  %s9095_s0 = inlined_call_operand.vmem [shape: bf16[2,324,8], index: 0, kind: input, shape index: {}]   ;;  %s9096_s1 = inlined_call_operand.vmem [shape: f32[324,1], index: 1, kind: input, shape index: {}]   ;;  %s9097_s2 = inlined_call_operand.vmem [shape: f32[1,8], index: 2, kind: input, shape index: {}]   ;;  %s9098_s3 = inlined_call_operand.vmem [shape: f32[1,8], index: 3, kind: input, shape index: {}]   ;;  %s9099_s4 = inlined_call_operand.vmem [shape: bf16[9,8,8], index: 4, kind: input, shape index: {}]   ;;  %s9100_s5 = inlined_call_operand.vmem [shape: bf16[2,324,8], index: 5, kind: output, shape index: {0}]   ;;  %s9101_s6 = inlined_call_operand.vmem [shape: f32[2,2,8], index: 6, kind: output, shape index: {1}]  }
   0x1 LB: > { %s5637_s22 = sadd.s32 4294967295, %s7074_s21   ;;  %p5641_p0 = scmp.ge.s32.totalorder %s7074_s21, 1  ;;  %s7074_s21 = sphi %s7112_s21, %s17_s21  }
   0x2   : > { %p215_p1 = scmp.lt.s32.totalorder %s7074_s21, 3 }
   0x4   : > { %p216_p2 = pnand %p5641_p0, %p215_p1 }
   0x6   : > { %219 = sbr.rel (%p216_p2) target bundleno = 799 (0x31f), region = 40 }
   0xd   : > { %p249_p3 = scmp.lt.s32.totalorder %s5637_s22, 1  ;;  %v487_v0 = vld [vmem:[%s9096_s1 + $0x20] sm:$0xff]  ;;  %v485_v1 = vld [vmem:[%s9096_s1 + $0x10] sm:$0xff]  ;;  %v7076_v2 = vmov 0   ;;  %v488_v3 = vld [vmem:[%s9096_s1 + $0x28] sm:$0xff]  ;;  %vm935_vm0 = vcmask 60416  }
   0xe   : > { %6975 = vset.pattern.permute.xlu1 %v7076_v2  ;;  %6974 = vset.pattern.permute.xlu0 %v7076_v2  ;;  %v486_v4 = vld [vmem:[%s9096_s1 + $0x18] sm:$0xff]  ;;  %v489_v6 = vld [vmem:[%s9096_s1 + $0x30] sm:$0xff]  ;;  %v484_v7 = vld [vmem:[%s9096_s1 + $0x8] sm:$0xff]  ;;  %vm1307_vm1 = vcmask 1043456   ;;  %vm976_vm2 = vcmask 58368   ;;  %vm1252_vm6 = vcmask 64512  }
   0xf   : > { %s9199_s22 = smov (!%p249_p3, %s5637_s22), 1  ;;  %546 = vperm.xlu1 %6975, %v487_v0   ;;  %536 = vperm.xlu0 %6974, %v485_v1   ;;  %v490_v5 = vld [vmem:[%s9096_s1 + $0x38] sm:$0xff]  ;;  %v483_v8 = vld [vmem:[%s9096_s1] sm:$0xff]  ;;  %v492_v9 = vld [vmem:[%s9096_s1 + $0x48] sm:$0xff]  ;;  %vm4791_vm3 = vsmask.f32 1280 }
  0x10   : > { %s6964_s7 = smul.u32 164, %s9199_s22  ;;  %v491_v10 = vld [vmem:[%s9096_s1 + $0x40] sm:$0xff]  ;;  %v494_v11 = vld [vmem:[%s9096_s1 + $0x58] sm:$0xff]  ;;  %v493_v12 = vld [vmem:[%s9096_s1 + $0x50] sm:$0xff]  ;;  %vm2585_vm5 = vsmask.f32 6400 }
  0x11   : > { %v496_v13 = vld [vmem:[%s9096_s1 + $0x68] sm:$0xff]  ;;  %v495_v14 = vld [vmem:[%s9096_s1 + $0x60] sm:$0xff]  ;;  %v498_v15 = vld [vmem:[%s9096_s1 + $0x78] sm:$0xff]  ;;  %vm1108_vm7 = vsmask.f32 7424  ;;  %vm3028_vm8 = vcmask 1045504  }
  0x12   : > { %s7142_s10 = scalar_lea.vmem %s9100_s5, %s6964_s7  ;;  %v497_v16 = vld [vmem:[%s9096_s1 + $0x70] sm:$0xff]  ;;  %v500_v17 = vld [vmem:[%s9096_s1 + $0x88] sm:$0xff]  ;;  %v499_v18 = vld [vmem:[%s9096_s1 + $0x80] sm:$0xff]  ;;  %s7275_s23 = scalar_lea.vmem %s9095_s0, %s6964_s7  ;;  %vm3781_vm9 = vsmask.f32 5376  ;;  %vm1714_vm10 = vcmask 1046528  }
  0x13   : > { %551 = vperm.xlu1 %6975, %v488_v3   ;;  %541 = vperm.xlu0 %6974, %v486_v4   ;;  %4788 = vst.msk [vmem:[%s7142_s10] sm:$0xf] %vm935_vm0, %v7076_v2  ;;  %4789 = vst.msk [vmem:[%s7142_s10 + $0x4] sm:$0xf] %vm935_vm0, %v7076_v2  ;;  %v5801_v19 = vld [vmem:[%s9099_s4 + $0x10] sm:$0xf] }
  0x14   : > { %4802 = vst.msk [vmem:[%s7142_s10 + $0x9c] sm:$0xf] %vm935_vm0, %v7076_v2  ;;  %v5688_v20 = vld [vmem:[%s9099_s4 + $0x4] sm:$0xf]  ;;  %v502_v21 = vld [vmem:[%s9096_s1 + $0x98] sm:$0xff]  ;;  %v501_v22 = vld [vmem:[%s9096_s1 + $0x90] sm:$0xff]  ;;  %6958 = vmatprep.subr.msk.bf16.mxu0 %vm1307_vm1, %v5801_v19 }
  0x15   : > { %v7209_v23 = vsel %vm1307_vm1, %v5801_v19, 0  ;;  %6954 = vmatprep.subr.msk.bf16.mxu1 %vm1307_vm1, %v5688_v20  ;;  %v1309_v24 = vsel %vm1307_vm1, %v5688_v20, 0  ;;  %v7217_v25 = vld [vmem:[%s9099_s4 + $0x14] sm:$0xf]  ;;  %v504_v26 = vld [vmem:[%s9096_s1 + $0xa8] sm:$0xff]  ;;  %v503_v27 = vld [vmem:[%s9096_s1 + $0xa0] sm:$0xff] }
  0x16   : > { %9122 = vst [vmem:[#allocation3_spill] sm:$0xff] %v7209_v23  ;;  %6475 = vmatpush3.bf16.msra.mxu0 %v7209_v23  ;;  %6323 = vmatpush3.bf16.msra.mxu1 %v1309_v24  ;;  %v506_v28 = vld [vmem:[%s9096_s1 + $0xb8] sm:$0xff]  ;;  %v505_v29 = vld [vmem:[%s9096_s1 + $0xb0] sm:$0xff]  ;;  %v7236_v30 = vld [vmem:[%s9099_s4] sm:$0xf]  ;;  %vm4228_vm11 = vcmask 1044480  }
  0x17   : > { %561 = vperm.xlu1 %6975, %v490_v5   ;;  %556 = vperm.xlu0 %6974, %v489_v6   ;;  %v508_v31 = vld [vmem:[%s9096_s1 + $0xc8] sm:$0xff]  ;;  %v507_v32 = vld [vmem:[%s9096_s1 + $0xc0] sm:$0xff]  ;;  %v510_v33 = vld [vmem:[%s9096_s1 + $0xd8] sm:$0xff]  ;;  %4803 = vst.msk [vmem:[%s7142_s10 + $0xa0] sm:$0x3] %vm976_vm2, %v7076_v2  ;;  %vm5310_vm13 = vcmask 60417  }
  0x18   : > { %6960 = vmatprep.subr.msk.bf16.mxu0 %vm1307_vm1, %v7217_v25  ;;  %6955 = vmatprep.subr.msk.bf16.mxu1 %vm1307_vm1, %v7236_v30  ;;  %v509_v34 = vld [vmem:[%s9096_s1 + $0xd0] sm:$0xff]  ;;  %v512_v35 = vld [vmem:[%s9096_s1 + $0xe8] sm:$0xff]  ;;  %v511_v36 = vld [vmem:[%s9096_s1 + $0xe0] sm:$0xff]  ;;  %vm4912_vm12 = vsmask.f32 5392  ;;  %s5644_s24 = sshll.u32 %s9199_s22, 1 }
  0x19   : > { %v514_v37 = vld [vmem:[%s9096_s1 + $0xf8] sm:$0xff]  ;;  %v513_v38 = vld [vmem:[%s9096_s1 + $0xf0] sm:$0xff]  ;;  %v516_v39 = vld [vmem:[%s9096_s1 + $0x108] sm:$0xff]  ;;  %vm5311_vm14 = vsmask.f32 7942  ;;  %s262_s27 = scalar_lea.vmem %s9101_s6, %s5644_s24 }
  0x1a   : > { %v515_v40 = vld [vmem:[%s9096_s1 + $0x100] sm:$0xff]  ;;  %v518_v42 = vld [vmem:[%s9096_s1 + $0x118] sm:$0xff]  ;;  %v517_v43 = vld [vmem:[%s9096_s1 + $0x110] sm:$0xff] }
  0x1b   : > { %531 = vperm.xlu1 %6975, %v484_v7   ;;  %526 = vperm.xlu0 %6974, %v483_v8   ;;  %v6147_v41 = vld [vmem:[%s7275_s23 + $0x80] sm:$0xff]   ;;  %v6148_v50 = vld [vmem:[%s7275_s23 + $0x88] sm:$0xff]   ;;  %v6149_v58 = vld [vmem:[%s7275_s23 + $0x90] sm:$0xff]  }
  0x1c   : > { %v6119_v44 = vunpack.c.h.bf16 %v6147_v41  ;;  %v6118_v45 = vunpack.c.l.bf16 %v6147_v41  ;;  %v7287_v46 = vld [vmem:[%s9097_s2] ss:$0 sm:$0xff]  ;;  %v520_v51 = vld [vmem:[%s9096_s1 + $0x128] sm:$0xff]  ;;  %v6123_v55 = vunpack.c.h.bf16 %v6148_v50  ;;  %v6122_v57 = vunpack.c.l.bf16 %v6148_v50  ;;  %v522_v59 = vld [vmem:[%s9096_s1 + $0x138] sm:$0xff] }
  0x1d   : > { %v7294_v49 = vld [vmem:[%s9098_s3] ss:$0 sm:$0xff]  ;;  %v521_v60 = vld [vmem:[%s9096_s1 + $0x130] sm:$0xff]  ;;  %v6127_v63 = vunpack.c.h.bf16 %v6149_v58  ;;  %v6126_v3 = vunpack.c.l.bf16 %v6149_v58  ;;  %v6150_v4 = vld [vmem:[%s7275_s23 + $0x98] sm:$0xff]  }
  0x1e   : > { %v386_v47 = vmul.f32 %v6119_v44, %v7287_v46  ;;  %v385_v48 = vmul.f32 %v6118_v45, %v7287_v46  ;;  %v519_v52 = vld [vmem:[%s9096_s1 + $0x120] sm:$0xff]  ;;  %v388_v56 = vmul.f32 %v6123_v55, %v7287_v46  ;;  %v387_v62 = vmul.f32 %v6122_v57, %v7287_v46  ;;  %v4536_v5 = vld [vmem:[%s9096_s1 + $0x13] sm:$0xff]  ;;  %vm4792_vm4 = vmand %vm976_vm2, %vm4791_vm3 }
  0x1f   : > { %571 = vperm.xlu1 %6975, %v492_v9   ;;  %566 = vperm.xlu0 %6974, %v491_v10   ;;  %v390_v1 = vmul.f32 %v6127_v63, %v7287_v46  ;;  %v523_v6 = vld [vmem:[%s9096_s1 + $0x140] sm:$0xf]  ;;  %v389_v8 = vmul.f32 %v6126_v3, %v7287_v46  ;;  %v6131_v9 = vunpack.c.h.bf16 %v6150_v4  ;;  %v4540_v2 = vld [vmem:[%s9096_s1 + $0x33] sm:$0xff]  ;;  %vm8612_vm15 = vmand %vm5310_vm13, %vm5311_vm14 }
  0x20   : > { %v7304_v53 = vadd.f32 %v7294_v49, %v386_v47  ;;  %v7307_v54 = vadd.f32 %v7294_v49, %v385_v48  ;;  %v7318_v61 = vadd.f32 %v7294_v49, %v388_v56  ;;  %v7322_v0 = vadd.f32 %v7294_v49, %v387_v62  ;;  %v4550_v45 = vld [vmem:[%s9096_s1 + $0x83] sm:$0xff]  ;;  %v4549_v47 = vld [vmem:[%s9096_s1 + $0x7b] sm:$0xff]  ;;  %v4552_v63 = vld [vmem:[%s9096_s1 + $0x93] sm:$0xff] }
  0x21   : > { %v7333_v7 = vadd.f32 %v7294_v49, %v390_v1  ;;  %v7337_v10 = vadd.f32 %v7294_v49, %v389_v8  ;;  %v6136_v62 = vld [vmem:[%s7275_s23 + $0x28] sm:$0xff]  }
  0x22   : > { %v4551_v1 = vld [vmem:[%s9096_s1 + $0x8b] sm:$0xff] }
  0x23   : > { %581 = vperm.xlu1 %6975, %v494_v11   ;;  %576 = vperm.xlu0 %6974, %v493_v12   ;;  %v392_v11 = vmul.f32 %v6131_v9, %v7287_v46  ;;  %v6130_v12 = vunpack.c.l.bf16 %v6150_v4 }
  0x27   : > { %591 = vperm.xlu1 %6975, %v496_v13   ;;  %586 = vperm.xlu0 %6974, %v495_v14   ;;  %v304_v13 = vld [vmem:[%s7275_s23 + $0xa0] sm:$0x3]  ;;  %v4538_v14 = vld [vmem:[%s9096_s1 + $0x23] sm:$0xff] }
  0x2b   : > { %601 = vperm.xlu1 %6975, %v498_v15   ;;  %596 = vperm.xlu0 %6974, %v497_v16   ;;  %v4537_v15 = vld [vmem:[%s9096_s1 + $0x1b] sm:$0xff]  ;;  %v345_v16 = vunpack.c.l.bf16 %v304_v13  ;;  %v6075_v13 = vunpack.c.h.bf16 %v6136_v62 }
  0x2d   : > { %v393_v19 = vmul.f32 %v7287_v46, %v345_v16  ;;  %v6139_v16 = vld [vmem:[%s7275_s23 + $0x40] sm:$0xff]  }
  0x2f   : > { %611 = vperm.xlu1 %6975, %v500_v17   ;;  %606 = vperm.xlu0 %6974, %v499_v18   ;;  %v7351_v17 = vadd.f32 %v7294_v49, %v392_v11  ;;  %v391_v18 = vmul.f32 %v6130_v12, %v7287_v46  ;;  %v7368_v24 = vadd.f32 %v7294_v49, %v393_v19 }
  0x31   : > { %v7358_v20 = vadd.f32 %v7294_v49, %v391_v18 }
  0x33   : > { %621 = vperm.xlu1 %6975, %v502_v21   ;;  %616 = vperm.xlu0 %6974, %v501_v22   ;;  %v4793_v21 = vld [vmem:[%s7142_s10 + $0x8] sm:$0x3]  ;;  %v4539_v22 = vld [vmem:[%s9096_s1 + $0x2b] sm:$0xff] }
  0x37   : > { %631 = vperm.xlu1 %6975, %v504_v26   ;;  %626 = vperm.xlu0 %6974, %v503_v27   ;;  %v4794_v26 = vsel %vm4792_vm4, 0, %v4793_v21  ;;  %v4542_v27 = vld [vmem:[%s9096_s1 + $0x43] sm:$0xff]  ;;  %vm5351_vm4 = vcmask 57344  }
  0x38   : > { %4795 = vst [vmem:[%s7142_s10 + $0x8] sm:$0x3] %v4794_v26  ;;  %v4553_v26 = vld [vmem:[%s9096_s1 + $0x9b] sm:$0xff] }
  0x3b   : > { %641 = vperm.xlu1 %6975, %v506_v28   ;;  %636 = vperm.xlu0 %6974, %v505_v29   ;;  %v4541_v28 = vld [vmem:[%s9096_s1 + $0x3b] sm:$0xff]  ;;  %v4544_v29 = vld [vmem:[%s9096_s1 + $0x53] sm:$0xff] }
  0x3f   : > { %651 = vperm.xlu1 %6975, %v508_v31   ;;  %646 = vperm.xlu0 %6974, %v507_v32   ;;  %v4543_v31 = vld [vmem:[%s9096_s1 + $0x4b] sm:$0xff] }
  0x40   : > { %v6133_v32 = vld [vmem:[%s7275_s23 + $0x10] sm:$0xff]  }
  0x43   : > { %661 = vperm.xlu1 %6975, %v510_v33   ;;  %656 = vperm.xlu0 %6974, %v509_v34   ;;  %v4546_v33 = vld [vmem:[%s9096_s1 + $0x63] sm:$0xff]  ;;  %v4545_v34 = vld [vmem:[%s9096_s1 + $0x5b] sm:$0xff] }
  0x47   : > { %671 = vperm.xlu1 %6975, %v512_v35   ;;  %666 = vperm.xlu0 %6974, %v511_v36   ;;  %v6062_v35 = vunpack.c.l.bf16 %v6133_v32  ;;  %v6132_v36 = vld [vmem:[%s7275_s23 + $0x8] sm:$0xff]  }
  0x48   : > { %v6059_v41 = vunpack.c.h.bf16 %v6132_v36 }
  0x4a   : > { %v356_v50 = vmul.f32 %v6059_v41, %v7287_v46 }
  0x4b   : > { %681 = vperm.xlu1 %6975, %v514_v37   ;;  %676 = vperm.xlu0 %6974, %v513_v38   ;;  %v6063_v37 = vunpack.c.h.bf16 %v6133_v32  ;;  %v4548_v38 = vld [vmem:[%s9096_s1 + $0x73] sm:$0xff]  ;;  %v6140_v32 = vld [vmem:[%s7275_s23 + $0x48] sm:$0xff]  }
  0x4c   : > { %v7427_v4 = vadd.f32 %v7294_v49, %v356_v50 }
  0x4d   : > { %v358_v44 = vmul.f32 %v6063_v37, %v7287_v46 }
  0x4f   : > { %691 = vperm.xlu1 %6975, %v516_v39   ;;  %686 = vperm.xlu0 %6974, %v515_v40   ;;  %v4547_v39 = vld [vmem:[%s9096_s1 + $0x6b] sm:$0xff]  ;;  %v6058_v40 = vunpack.c.l.bf16 %v6132_v36  ;;  %v7413_v57 = vadd.f32 %v7294_v49, %v358_v44  ;;  %v6086_v36 = vunpack.c.l.bf16 %v6139_v16  ;;  %v6090_v44 = vunpack.c.l.bf16 %v6140_v32 }
  0x51   : > { %v355_v48 = vmul.f32 %v6058_v40, %v7287_v46  ;;  %v447_v18 = vmax.f32 %v7413_v57, 0.0 }
  0x53   : > { %701 = vperm.xlu1 %6975, %v518_v42   ;;  %696 = vperm.xlu0 %6974, %v517_v43   ;;  %v357_v42 = vmul.f32 %v6062_v35, %v7287_v46  ;;  %v6134_v43 = vld [vmem:[%s7275_s23 + $0x18] sm:$0xff]   ;;  %v7424_v3 = vadd.f32 %v7294_v49, %v355_v48  ;;  %v6087_v35 = vunpack.c.h.bf16 %v6139_v16 }
  0x54   : > { %v6066_v56 = vunpack.c.l.bf16 %v6134_v43 }
  0x55   : > { %v7410_v55 = vadd.f32 %v7294_v49, %v357_v42 }
  0x56   : > { %v359_v9 = vmul.f32 %v6066_v56, %v7287_v46 }
  0x57   : > { %711 = vperm.xlu1 %6975, %v520_v51   ;;  %706 = vperm.xlu0 %6974, %v519_v52   ;;  %v6067_v51 = vunpack.c.h.bf16 %v6134_v43  ;;  %v6053_v52 = vld [vmem:[%s7275_s23] sm:$0xff]   ;;  %v446_v8 = vmax.f32 %v7410_v55, 0.0  ;;  %v6091_v43 = vunpack.c.h.bf16 %v6140_v32 }
  0x58   : > { %v6055_v58 = vunpack.c.h.bf16 %v6053_v52  ;;  %v7455_v41 = vadd.f32 %v7294_v49, %v359_v9 }
  0x5a   : > { %v354_v19 = vmul.f32 %v6055_v58, %v7287_v46  ;;  %v448_v9 = vmax.f32 %v7455_v41, 0.0 }
  0x5b   : > { %721 = vperm.xlu1 %6975, %v522_v59   ;;  %716 = vperm.xlu0 %6974, %v521_v60   ;;  %v6054_v59 = vunpack.c.l.bf16 %v6053_v52  ;;  %v6135_v60 = vld [vmem:[%s7275_s23 + $0x20] sm:$0xff]  }
  0x5c   : > { %v6071_v11 = vunpack.c.h.bf16 %v6135_v60  ;;  %v6070_v12 = vunpack.c.l.bf16 %v6135_v60  ;;  %v7466_v50 = vadd.f32 %v7294_v49, %v354_v19  ;;  %v369_v60 = vmul.f32 %v6086_v36, %v7287_v46  ;;  %v6145_v36 = vld [vmem:[%s7275_s23 + $0x70] sm:$0xff]  }
  0x5d   : > { %v353_v21 = vmul.f32 %v6054_v59, %v7287_v46  ;;  %v370_v59 = vmul.f32 %v6087_v35, %v7287_v46 }
  0x5e   : > { %v362_v37 = vmul.f32 %v6071_v11, %v7287_v46  ;;  %v443_v16 = vmax.f32 %v7466_v50, 0.0  ;;  %v7516_v32 = vadd.f32 %v7294_v49, %v369_v60 }
  0x5f   : > { %4574 = vperm.xlu1 %6975, %v4536_v5   ;;  %726 = vperm.xlu0 %6974, %v523_v6   ;;  %v360_v5 = vmul.f32 %v6067_v51, %v7287_v46  ;;  %v6137_v6 = vld [vmem:[%s7275_s23 + $0x30] sm:$0xff]   ;;  %v7469_v51 = vadd.f32 %v7294_v49, %v353_v21 }
  0x63   : > { %4584 = vperm.xlu1 %6975, %v4538_v14   ;;  %4579 = vperm.xlu0 %6974, %v4537_v15   ;;  %v6074_v14 = vunpack.c.l.bf16 %v6136_v62  ;;  %v6138_v15 = vld [vmem:[%s7275_s23 + $0x38] sm:$0xff]   ;;  %v6141_v62 = vld [vmem:[%s7275_s23 + $0x50] sm:$0xff]  }
  0x65   : > { %v363_v40 = vmul.f32 %v6074_v14, %v7287_v46  ;;  %v4558_v14 = vld [vmem:[%s9096_s1 + $0xc3] sm:$0xff] }
  0x67   : > { %4594 = vperm.xlu1 %6975, %v4540_v2   ;;  %4589 = vperm.xlu0 %6974, %v4539_v22   ;;  %v6079_v2 = vunpack.c.h.bf16 %v6137_v6  ;;  %v4554_v22 = vld [vmem:[%s9096_s1 + $0xa3] sm:$0xff] }
  0x69   : > { %v366_v42 = vmul.f32 %v6079_v2, %v7287_v46  ;;  %v6095_v2 = vunpack.c.h.bf16 %v6141_v62 }
  0x6b   : > { %4604 = vperm.xlu1 %6975, %v4542_v27   ;;  %4599 = vperm.xlu0 %6974, %v4541_v28   ;;  %v444_v27 = vmax.f32 %v7424_v3, 0.0  ;;  %v445_v28 = vmax.f32 %v7427_v4, 0.0  ;;  %v7491_v11 = vadd.f32 %v7294_v49, %v366_v42 }
  0x6f   : > { %4614 = vperm.xlu1 %6975, %v4544_v29   ;;  %4609 = vperm.xlu0 %6974, %v4543_v31   ;;  %v7447_v29 = vadd.f32 %v7294_v49, %v360_v5  ;;  %v6078_v31 = vunpack.c.l.bf16 %v6137_v6  ;;  %v7487_v6 = vadd.f32 %v7294_v49, %v363_v40 }
  0x71   : > { %v449_v48 = vmax.f32 %v7447_v29, 0.0  ;;  %v365_v52 = vmul.f32 %v6078_v31, %v7287_v46  ;;  %v7513_v31 = vadd.f32 %v7294_v49, %v370_v59  ;;  %v6146_v59 = vld [vmem:[%s7275_s23 + $0x78] sm:$0xff]  }
  0x72   : > { %v6115_v19 = vunpack.c.h.bf16 %v6146_v59 }
  0x73   : > { %4624 = vperm.xlu1 %6975, %v4546_v33   ;;  %4619 = vperm.xlu0 %6974, %v4545_v34   ;;  %v6083_v33 = vunpack.c.h.bf16 %v6138_v15  ;;  %v6082_v34 = vunpack.c.l.bf16 %v6138_v15  ;;  %v4557_v15 = vld [vmem:[%s9096_s1 + $0xbb] sm:$0xff]  ;;  %v7504_v21 = vadd.f32 %v7294_v49, %v365_v52  ;;  %v7540_v52 = vsel %vm1307_vm1, %v7217_v25, 0 }
  0x75   : > { %v368_v56 = vmul.f32 %v6083_v33, %v7287_v46  ;;  %v367_v58 = vmul.f32 %v6082_v34, %v7287_v46  ;;  %v6142_v33 = vld [vmem:[%s7275_s23 + $0x58] sm:$0xff]  }
  0x77   : > { %4634 = vperm.xlu1 %6975, %v4548_v38   ;;  %4629 = vperm.xlu0 %6974, %v4547_v39   ;;  %v361_v38 = vmul.f32 %v6070_v12, %v7287_v46  ;;  %v364_v39 = vmul.f32 %v6075_v13, %v7287_v46  ;;  %v372_v12 = vmul.f32 %v6091_v43, %v7287_v46  ;;  %v6143_v43 = vld [vmem:[%s7275_s23 + $0x60] sm:$0xff]  }
  0x78   : > { %v371_v13 = vmul.f32 %v6090_v44, %v7287_v46  ;;  %v4560_v44 = vld [vmem:[%s9096_s1 + $0xd3] sm:$0xff]  ;;  %v6103_v25 = vunpack.c.h.bf16 %v6143_v43 }
  0x79   : > { %v7484_v5 = vadd.f32 %v7294_v49, %v364_v39  ;;  %v7525_v40 = vadd.f32 %v7294_v49, %v372_v12  ;;  %v6098_v39 = vunpack.c.l.bf16 %v6142_v33 }
  0x7a   : > { %v7528_v42 = vadd.f32 %v7294_v49, %v371_v13  ;;  %v6144_v13 = vld [vmem:[%s7275_s23 + $0x68] sm:$0xff]   ;;  %v378_v35 = vmul.f32 %v6103_v25, %v7287_v46 }
  0x7b   : > { %4644 = vperm.xlu1 %6975, %v4550_v45   ;;  %4639 = vperm.xlu0 %6974, %v4549_v47   ;;  %v4556_v45 = vld [vmem:[%s9096_s1 + $0xb3] sm:$0xff]  ;;  %v4555_v47 = vld [vmem:[%s9096_s1 + $0xab] sm:$0xff] }
  0x7f   : > { %4654 = vperm.xlu1 %6975, %v4552_v63   ;;  %4649 = vperm.xlu0 %6974, %v4551_v1   ;;  %v7478_v63 = vadd.f32 %v7294_v49, %v362_v37  ;;  %v7481_v1 = vadd.f32 %v7294_v49, %v361_v38  ;;  %v6094_v37 = vunpack.c.l.bf16 %v6141_v62  ;;  %v6102_v38 = vunpack.c.l.bf16 %v6143_v43 }
  0x80   : > { %v375_v62 = vmul.f32 %v6098_v39, %v7287_v46  ;;  %v6114_v39 = vunpack.c.l.bf16 %v6146_v59 }
  0x81   : > { %v377_v34 = vmul.f32 %v6102_v38, %v7287_v46  ;;  %v4564_v38 = vld [vmem:[%s9096_s1 + $0xf3] sm:$0xff] }
  0x83   : > { %4664 = vperm.xlu1 %6975, %v4554_v22   ;;  %4659 = vperm.xlu0 %6974, %v4553_v26   ;;  %v7507_v22 = vadd.f32 %v7294_v49, %v368_v56  ;;  %v7510_v26 = vadd.f32 %v7294_v49, %v367_v58  ;;  %v374_v56 = vmul.f32 %v6095_v2, %v7287_v46  ;;  %v6099_v58 = vunpack.c.h.bf16 %v6142_v33  ;;  %v4562_v33 = vld [vmem:[%s9096_s1 + $0xe3] sm:$0xff] }
  0x85   : > { %v7564_v55 = vadd.f32 %v7294_v49, %v374_v56  ;;  %v376_v3 = vmul.f32 %v6099_v58, %v7287_v46 }
  0x87   : > { %4674 = vperm.xlu1 %6975, %v4556_v45   ;;  %4669 = vperm.xlu0 %6974, %v4555_v47   ;;  %v4559_v45 = vld [vmem:[%s9096_s1 + $0xcb] sm:$0xff]  ;;  %v373_v47 = vmul.f32 %v6094_v37, %v7287_v46  ;;  %v4561_v37 = vld [vmem:[%s9096_s1 + $0xdb] sm:$0xff]  ;;  %v7590_v4 = vadd.f32 %v7294_v49, %v376_v3  ;;  %v384_v3 = vmul.f32 %v6115_v19, %v7287_v46  ;;  %v4566_v19 = vld [vmem:[%s9096_s1 + $0x103] sm:$0xff] }
  0x89   : > { %v7587_v57 = vadd.f32 %v7294_v49, %v373_v47  ;;  %v7600_v47 = vadd.f32 %v7294_v49, %v378_v35  ;;  %v463_v35 = vmax.f32 %v7564_v55, 0.0 }
  0x8b   : > { %4684 = vperm.xlu1 %6975, %v4558_v14   ;;  %4679 = vperm.xlu0 %6974, %v4557_v15   ;;  %v462_v29 = vmax.f32 %v7587_v57, 0.0 }
  0x8e   : > { %v547_v14 = vpop.permute.xlu1 %546  ;;  %v537_v15 = vpop.permute.xlu0 %536 }
  0x8f   : > { %v733_v2 = vmul.f32 %v547_v14, %v446_v8  ;;  %v731_v60 = vmul.f32 %v537_v15, %v444_v27  ;;  %4694 = vperm.xlu1 %6975, %v4560_v44   ;;  %4689 = vperm.xlu0 %6974, %v4559_v45   ;;  %v6107_v8 = vunpack.c.h.bf16 %v6144_v13  ;;  %v6106_v27 = vunpack.c.l.bf16 %v6144_v13 }
  0x90   : > { %v6111_v45 = vunpack.c.h.bf16 %v6145_v36  ;;  %v6110_v14 = vunpack.c.l.bf16 %v6145_v36  ;;  %v7578_v36 = vsel %vm1307_vm1, %v7236_v30, 0 }
  0x91   : > { %v5979_v43 = vpack.c.bf16 %v733_v2, %v733_v2  ;;  %v5977_v44 = vpack.c.bf16 %v731_v60, %v731_v60  ;;  %v4563_v60 = vld [vmem:[%s9096_s1 + $0xeb] sm:$0xff]  ;;  %v379_v30 = vmul.f32 %v6106_v27, %v7287_v46 }
  0x92   : > { %v552_v15 = vpop.permute.xlu1 %551  ;;  %v542_v12 = vpop.permute.xlu0 %541  ;;  %v381_v13 = vmul.f32 %v6110_v14, %v7287_v46 }
  0x93   : > { %940 = vst.msk [vmem:[#allocation2 + $0x10] sm:$0xf] %vm935_vm0, %v5979_v43  ;;  %938 = vst.msk [vmem:[#allocation2 + $0x8] sm:$0xf] %vm935_vm0, %v5977_v44  ;;  %v734_v56 = vmul.f32 %v552_v15, %v447_v18  ;;  %v732_v58 = vmul.f32 %v542_v12, %v445_v28  ;;  %4704 = vperm.xlu1 %6975, %v4562_v33   ;;  %4699 = vperm.xlu0 %6974, %v4561_v37  }
  0x94   : > { %v380_v18 = vmul.f32 %v6107_v8, %v7287_v46  ;;  %v382_v12 = vmul.f32 %v6111_v45, %v7287_v46  ;;  %v7597_v33 = vadd.f32 %v7294_v49, %v375_v62  ;;  %v7603_v37 = vadd.f32 %v7294_v49, %v377_v34  ;;  %v4565_v34 = vld [vmem:[%s9096_s1 + $0xfb] sm:$0xff] }
  0x95   : > { %v5980_v28 = vpack.c.bf16 %v734_v56, %v734_v56  ;;  %v5978_v59 = vpack.c.bf16 %v732_v58, %v732_v58  ;;  %v383_v62 = vmul.f32 %v6114_v39, %v7287_v46  ;;  %v7632_v45 = vadd.f32 %v7294_v49, %v381_v13 }
  0x96   : > { %v562_v25 = vpop.permute.xlu1 %561  ;;  %v557_v2 = vpop.permute.xlu0 %556  ;;  %v7623_v41 = vadd.f32 %v7294_v49, %v380_v18  ;;  %v7629_v44 = vadd.f32 %v7294_v49, %v382_v12  ;;  %v7637_v39 = vadd.f32 %v7294_v49, %v384_v3 }
  0x97   : > { %941 = vst.msk [vmem:[#allocation2 + $0x14] sm:$0xf] %vm935_vm0, %v5980_v28  ;;  %939 = vst.msk [vmem:[#allocation2 + $0xc] sm:$0xf] %vm935_vm0, %v5978_v59  ;;  %v736_v8 = vmul.f32 %v562_v25, %v449_v48  ;;  %v735_v27 = vmul.f32 %v557_v2, %v448_v9  ;;  %4714 = vperm.xlu1 %6975, %v4564_v38   ;;  %4709 = vperm.xlu0 %6974, %v4563_v60   ;;  %v9123_v60 = vmax.f32 %v7469_v51, 0.0  ;;  %v4567_v28 = vld [vmem:[%s9096_s1 + $0x10b] sm:$0xff] }
  0x98   : > { %v7626_v9 = vadd.f32 %v7294_v49, %v379_v30  ;;  %v4568_v30 = vld [vmem:[%s9096_s1 + $0x113] sm:$0xff]  ;;  %v7653_v12 = vadd.f32 %v7294_v49, %v383_v62  ;;  %v4570_v49 = vld [vmem:[%s9096_s1 + $0x123] sm:$0xff] }
  0x99   : > { %v5982_v43 = vpack.c.bf16 %v736_v8, %v736_v8  ;;  %v5981_v46 = vpack.c.bf16 %v735_v27, %v735_v27 }
  0x9a   : > { %v532_v14 = vpop.permute.xlu1 %531  ;;  %v527_v15 = vpop.permute.xlu0 %526  ;;  %v2453_v25 = vld [vmem:[#allocation2 + $0x8] sm:$0xe] }
  0x9b   : > { %943 = vst.msk [vmem:[#allocation2 + $0x1c] sm:$0xf] %vm935_vm0, %v5982_v43  ;;  %942 = vst.msk [vmem:[#allocation2 + $0x18] sm:$0xf] %vm935_vm0, %v5981_v46  ;;  %v730_v38 = vmul.f32 %v532_v14, %v443_v16  ;;  %v729_v18 = vmul.f32 %v527_v15, %v9123_v60  ;;  %4724 = vperm.xlu1 %6975, %v4566_v19   ;;  %4719 = vperm.xlu0 %6974, %v4565_v34   ;;  %v9124_v43 = vmax.f32 %v7478_v63, 0.0 }
  0x9c   : > { %v9125_v14 = vmax.f32 %v7481_v1, 0.0  ;;  %v9126_v1 = vmax.f32 %v7484_v5, 0.0 }
  0x9d   : > { %v5976_v16 = vpack.c.bf16 %v730_v38, %v730_v38  ;;  %v5975_v13 = vpack.c.bf16 %v729_v18, %v729_v18  ;;  %v4569_v38 = vld [vmem:[%s9096_s1 + $0x11b] sm:$0xff] }
  0x9e   : > { %v572_v8 = vpop.permute.xlu1 %571  ;;  %v567_v27 = vpop.permute.xlu0 %566  ;;  %v7662_v62 = vld [vmem:[#allocation2 + $0xc] sm:$0xf]  ;;  %v7664_v19 = vld [vmem:[#allocation2 + $0x10] sm:$0xff]  }
  0x9f   : > { %937 = vst.msk [vmem:[#allocation2 + $0x4] sm:$0xf] %vm935_vm0, %v5976_v16  ;;  %936 = vst.msk [vmem:[#allocation2] sm:$0xf] %vm935_vm0, %v5975_v13  ;;  %v738_v46 = vmul.f32 %v572_v8, %v9124_v43  ;;  %v737_v15 = vmul.f32 %v567_v27, %v9125_v14  ;;  %4734 = vperm.xlu1 %6975, %v4568_v30   ;;  %4729 = vperm.xlu0 %6974, %v4567_v28   ;;  %v2595_v16 = vshrl.u32 %v7664_v19, 16  ;;  %v6980_v34 = vld [vmem:[#allocation2 + $0x8] sm:$0xff]  }
  0xa0   : > { %v5802_v60 = vcombine.low %v2453_v25, %v7662_v62  ;;  %v2598_v13 = vshll.u32 %v7664_v19, 16  ;;  %v7680_v63 = vld [vmem:[#allocation2 + $0x10] sm:$0xff]  }
  0xa1   : > { %v5984_v28 = vpack.c.bf16 %v738_v46, %v738_v46  ;;  %v5983_v8 = vpack.c.bf16 %v737_v15, %v737_v15  ;;  %v4571_v25 = vld [vmem:[%s9096_s1 + $0x12b] sm:$0x3f]  ;;  %v2597_v18 = vrot.slane %v2595_v16, 1  ;;  %v9127_v46 = vmax.f32 %v7487_v6, 0.0 }
  0xa2   : > { %v2587_v27 = vshrl.u32 %v5802_v60, 16  ;;  %v2590_v43 = vshll.u32 %v5802_v60, 16  ;;  %v582_v14 = vpop.permute.xlu1 %581  ;;  %v577_v3 = vpop.permute.xlu0 %576  ;;  %v2600_v2 = vrot.slane %v2598_v13, 2  ;;  %v7693_v50 = vld [vmem:[#allocation2 + $0x18] sm:$0xff]   ;;  %v1117_v16 = vshll.u32 %v6980_v34, 16 }
  0xa3   : > { %945 = vst.msk [vmem:[#allocation2 + $0x24] sm:$0xf] %vm935_vm0, %v5984_v28  ;;  %944 = vst.msk [vmem:[#allocation2 + $0x20] sm:$0xf] %vm935_vm0, %v5983_v8  ;;  %v740_v51 = vmul.f32 %v582_v14, %v9126_v1  ;;  %v739_v15 = vmul.f32 %v577_v3, %v9127_v46  ;;  %4744 = vperm.xlu1 %6975, %v4570_v49   ;;  %4739 = vperm.xlu0 %6974, %v4569_v38   ;;  %v1125_v13 = vshll.u32 %v7680_v63, 16  ;;  %v7698_v6 = vld [vmem:[#allocation2 + $0x18] sm:$0xff]  }
  0xa4   : > { %v2589_v60 = vrot.slane %v2587_v27, 1  ;;  %v2592_v30 = vrot.slane %v2590_v43, 2  ;;  %v2601_v59 = vor.u32 %v2600_v2, %v2597_v18  ;;  %v2604_v1 = vshrl.u32 %v7693_v50, 16 }
  0xa5   : > { %v5986_v8 = vpack.c.bf16 %v740_v51, %v740_v51  ;;  %v5985_v58 = vpack.c.bf16 %v739_v15, %v739_v15  ;;  %v2607_v38 = vshll.u32 %v7693_v50, 16  ;;  %v1119_v14 = vrot.slane %v1117_v16, 1 }
  0xa6   : > { %v2593_v5 = vor.u32 %v2592_v30, %v2589_v60  ;;  %v592_v3 = vpop.permute.xlu1 %591  ;;  %v587_v49 = vpop.permute.xlu0 %586  ;;  %v978_v27 = vld [vmem:[#allocation2] sm:$0xf]  ;;  %v979_v43 = vld [vmem:[#allocation2 + $0x4] sm:$0xf]  ;;  %v9128_v2 = vmax.f32 %v7491_v11, 0.0  ;;  %v9129_v18 = vmax.f32 %v7504_v21, 0.0 }
  0xa7   : > { %947 = vst.msk [vmem:[#allocation2 + $0x2c] sm:$0xf] %vm935_vm0, %v5986_v8  ;;  %946 = vst.msk [vmem:[#allocation2 + $0x28] sm:$0xf] %vm935_vm0, %v5985_v58  ;;  %4749 = vperm.xlu0 %6974, %v4571_v25   ;;  %v2606_v15 = vrot.slane %v2604_v1, 1  ;;  %v2609_v60 = vrot.slane %v2607_v38, 2  ;;  %v7709_v28 = vcombine.low %v978_v27, %v979_v43 }
  0xa8   : > { %v742_v51 = vmul.f32 %v592_v3, %v9128_v2  ;;  %v741_v30 = vmul.f32 %v587_v49, %v9129_v18  ;;  %v2602_v46 = vsel %vm2585_vm5, %v2593_v5, %v2601_v59  ;;  %v1121_v16 = vshrl.u32 %v6980_v34, 16  ;;  %v7718_v38 = vld [vmem:[%s9099_s4 + $0x18] sm:$0xf] }
  0xa9   : > { %6476 = vmatprep.mubr.msk.bf16.mxu0 %vm1252_vm6, %v2602_v46  ;;  %v1127_v56 = vrot.slane %v1125_v13, 1  ;;  %v1133_v58 = vshll.u32 %v7698_v6, 16  ;;  %v476_v11 = vmax.f32 %v7322_v0, 0.0  ;;  %v2610_v49 = vor.u32 %v2609_v60, %v2606_v15 }
  0xaa   : > { %v5988_v8 = vpack.c.bf16 %v742_v51, %v742_v51  ;;  %v5987_v48 = vpack.c.bf16 %v741_v30, %v741_v30  ;;  %v602_v3 = vpop.permute.xlu1 %601  ;;  %v597_v21 = vpop.permute.xlu0 %596  ;;  %v1112_v25 = vshll.u32 %v7709_v28, 16  ;;  %v1123_v5 = vor.u32 %v1121_v16, %v1119_v14  ;;  %v7726_v51 = vld [vmem:[#allocation2 + $0x20] sm:$0xff]  }
  0xab   : > { %v1129_v1 = vshrl.u32 %v7680_v63, 16  ;;  %v9130_v34 = vmax.f32 %v7507_v22, 0.0  ;;  %v9131_v27 = vmax.f32 %v7510_v26, 0.0  ;;  %v1135_v2 = vrot.slane %v1133_v58, 1  ;;  %v6985_v15 = vld [vmem:[#allocation2 + $0x20] sm:$0xff]  }
  0xac   : > { %949 = vst.msk [vmem:[#allocation2 + $0x34] sm:$0xf] %vm935_vm0, %v5988_v8  ;;  %948 = vst.msk [vmem:[#allocation2 + $0x30] sm:$0xf] %vm935_vm0, %v5987_v48  ;;  %v2611_v63 = vsel %vm2585_vm5, %v2601_v59, %v2610_v49  ;;  %v1110_v18 = vshrl.u32 %v7709_v28, 16  ;;  %v1114_v30 = vrot.slane %v1112_v25, 1  ;;  %v1128_v59 = vsel %vm1108_vm7, %v1123_v5, %v1127_v56 }
  0xad   : > { %v744_v13 = vmul.f32 %v602_v3, %v9130_v34  ;;  %v743_v43 = vmul.f32 %v597_v21, %v9131_v27  ;;  %v1131_v46 = vor.u32 %v1129_v1, %v1127_v56  ;;  %6477 = vmatmul.mubr.msk.bf16.vlgmr.msra.gmra.mrb[0].mxu0 %vm1252_vm6, %v2611_v63  ;;  %v2613_v22 = vshrl.u32 %v7726_v51, 16 }
  0xae   : > { %v1137_v48 = vshrl.u32 %v7698_v6, 16  ;;  %v612_v26 = vpop.permute.xlu1 %611  ;;  %v607_v8 = vpop.permute.xlu0 %606  ;;  %v1115_v58 = vor.u32 %v1114_v30, %v1110_v18  ;;  %6513 = vmatpush3.bf16.msra.mxu0 %v7540_v52  ;;  %v2616_v21 = vshll.u32 %v7726_v51, 16  ;;  %v7737_v25 = vld [vmem:[#allocation2 + $0x28] sm:$0xff]   ;;  %v9132_v1 = vmax.f32 %v7513_v31, 0.0 }
  0xaf   : > { %v5990_v60 = vpack.c.bf16 %v744_v13, %v744_v13  ;;  %v5989_v16 = vpack.c.bf16 %v743_v43, %v743_v43  ;;  %v1136_v3 = vsel %vm1108_vm7, %v1131_v46, %v1135_v2  ;;  %v9133_v34 = vmax.f32 %v7516_v32, 0.0  ;;  %6961 = vmatprep.subr.msk.bf16.mxu0 %vm1307_vm1, %v7718_v38  ;;  %v7750_v18 = vld [vmem:[#allocation2 + $0x28] sm:$0xff]  }
  0xb0   : > { %v746_v6 = vmul.f32 %v612_v26, %v9132_v1  ;;  %v2615_v27 = vrot.slane %v2613_v22, 1  ;;  %v1141_v52 = vshll.u32 %v6985_v15, 16  ;;  %v1120_v56 = vsel %vm1108_vm7, %v1115_v58, %v1119_v14 }
  0xb1   : > { %951 = vst.msk [vmem:[#allocation2 + $0x3c] sm:$0xf] %vm935_vm0, %v5990_v60  ;;  %950 = vst.msk [vmem:[#allocation2 + $0x38] sm:$0xf] %vm935_vm0, %v5989_v16  ;;  %v745_v13 = vmul.f32 %v607_v8, %v9133_v34  ;;  %v2618_v5 = vrot.slane %v2616_v21, 2  ;;  %v2622_v43 = vshrl.u32 %v7737_v25, 16  ;;  %6324 = vmatprep.mubr.msk.bf16.mxu1 %vm1252_vm6, %v1120_v56 }
  0xb2   : > { %v2625_v63 = vshll.u32 %v7737_v25, 16  ;;  %v5992_v30 = vpack.c.bf16 %v746_v6, %v746_v6  ;;  %v1143_v32 = vrot.slane %v1141_v52, 1  ;;  %v1145_v46 = vshrl.u32 %v6985_v15, 16  ;;  %v7756_v60 = vld [vmem:[%s9099_s4 + $0x8] sm:$0xf]  ;;  %6325 = vmatmul.mubr.msk.bf16.vlgmr.msra.gmra.mrb[0].mxu1 %vm1252_vm6, %v1128_v59  ;;  %v622_v14 = vpop.permute.xlu1 %621  ;;  %v617_v16 = vpop.permute.xlu0 %616 }
  0xb3   : > { %v5991_v31 = vpack.c.bf16 %v745_v13, %v745_v13  ;;  %v2619_v22 = vor.u32 %v2618_v5, %v2615_v27  ;;  %v2624_v26 = vrot.slane %v2622_v43, 1  ;;  %v1149_v58 = vshll.u32 %v7750_v18, 16  ;;  %v7760_v21 = vld [vmem:[#allocation2 + $0x30] sm:$0xff]   ;;  %6328 = vmatprep.mubr.msk.bf16.mxu1 %vm1252_vm6, %v1136_v3  ;;  %6361 = vmatpush3.bf16.msra.mxu1 %v7578_v36 }
  0xb4   : > { %v2627_v8 = vrot.slane %v2625_v63, 2  ;;  %953 = vst.msk [vmem:[#allocation2 + $0x44] sm:$0xf] %vm935_vm0, %v5992_v30  ;;  %v9134_v15 = vmax.f32 %v7525_v40, 0.0  ;;  %v9135_v6 = vmax.f32 %v7528_v42, 0.0  ;;  %v1139_v27 = vor.u32 %v1137_v48, %v1135_v2  ;;  %v7771_v56 = vld [vmem:[#allocation2 + $0x30] sm:$0xff]   ;;  %6956 = vmatprep.subr.msk.bf16.mxu1 %vm1307_vm1, %v7756_v60 }
  0xb5   : > { %952 = vst.msk [vmem:[#allocation2 + $0x40] sm:$0xf] %vm935_vm0, %v5991_v31  ;;  %v2620_v59 = vsel %vm2585_vm5, %v2610_v49, %v2619_v22  ;;  %v1151_v52 = vrot.slane %v1149_v58, 1  ;;  %v2631_v42 = vshrl.u32 %v7760_v21, 16  ;;  %v2634_v3 = vshll.u32 %v7760_v21, 16 }
  0xb6   : > { %v748_v1 = vmul.f32 %v622_v14, %v9134_v15  ;;  %v747_v34 = vmul.f32 %v617_v16, %v9135_v6  ;;  %v2628_v13 = vor.u32 %v2627_v8, %v2624_v26  ;;  %6480 = vmatprep.mubr.msk.bf16.mxu0 %vm1252_vm6, %v2620_v59  ;;  %v632_v43 = vpop.permute.xlu1 %631  ;;  %v627_v36 = vpop.permute.xlu0 %626  ;;  %v1144_v2 = vsel %vm1108_vm7, %v1139_v27, %v1143_v32 }
  0xb7   : > { %v1147_v48 = vor.u32 %v1145_v46, %v1143_v32  ;;  %v7784_v30 = vsel %vm1307_vm1, %v7718_v38, 0  ;;  %v750_v31 = vmul.f32 %v632_v43, %v463_v35  ;;  %v749_v14 = vmul.f32 %v627_v36, %v462_v29 }
  0xb8   : > { %v5994_v5 = vpack.c.bf16 %v748_v1, %v748_v1  ;;  %v5993_v40 = vpack.c.bf16 %v747_v34, %v747_v34  ;;  %v2629_v49 = vsel %vm2585_vm5, %v2619_v22, %v2628_v13  ;;  %v7780_v63 = vld [vmem:[#allocation2 + $0x38] sm:$0xff]   ;;  %v2633_v16 = vrot.slane %v2631_v42, 1 }
  0xb9   : > { %6481 = vmatmul.mubr.msk.bf16.gmra.mrb[4].mxu0 %vm1252_vm6, %v2629_v49  ;;  %v2636_v32 = vrot.slane %v2634_v3, 2  ;;  %v1152_v46 = vsel %vm1108_vm7, %v1147_v48, %v1151_v52  ;;  %v2640_v22 = vshrl.u32 %v7780_v63, 16  ;;  %v2643_v38 = vshll.u32 %v7780_v63, 16  ;;  %v7797_v8 = vld [vmem:[#allocation2 + $0x38] sm:$0xff]  }
  0xba   : > { %955 = vst.msk [vmem:[#allocation2 + $0x4c] sm:$0xf] %vm935_vm0, %v5994_v5  ;;  %954 = vst.msk [vmem:[#allocation2 + $0x48] sm:$0xf] %vm935_vm0, %v5993_v40  ;;  %v1157_v26 = vshll.u32 %v7771_v56, 16  ;;  %v5996_v58 = vpack.c.bf16 %v750_v31, %v750_v31  ;;  %v5995_v55 = vpack.c.bf16 %v749_v14, %v749_v14  ;;  %v1153_v57 = vshrl.u32 %v7750_v18, 16  ;;  %6329 = vmatmul.mubr.msk.bf16.gmra.mrb[4].mxu1 %vm1252_vm6, %v1144_v2  ;;  %v642_v29 = vpop.permute.xlu1 %641  ;;  %v637_v15 = vpop.permute.xlu0 %636 }
  0xbb   : > { %v2637_v35 = vor.u32 %v2636_v32, %v2633_v16  ;;  %v2642_v1 = vrot.slane %v2640_v22, 1  ;;  %v2645_v6 = vrot.slane %v2643_v38, 2  ;;  %v1161_v34 = vshrl.u32 %v7771_v56, 16  ;;  %6332 = vmatprep.mubr.msk.bf16.mxu1 %vm1252_vm6, %v1152_v46 }
  0xbc   : > { %v1165_v59 = vshll.u32 %v7797_v8, 16  ;;  %957 = vst.msk [vmem:[#allocation2 + $0x54] sm:$0xf] %vm935_vm0, %v5996_v58  ;;  %956 = vst.msk [vmem:[#allocation2 + $0x50] sm:$0xf] %vm935_vm0, %v5995_v55  ;;  %v9136_v27 = vmax.f32 %v7590_v4, 0.0 }
  0xbd   : > { %v9137_v40 = vmax.f32 %v7597_v33, 0.0  ;;  %v2638_v42 = vsel %vm2585_vm5, %v2628_v13, %v2637_v35  ;;  %v1159_v3 = vrot.slane %v1157_v26, 1  ;;  %v7811_v43 = vld [vmem:[#allocation2 + $0x40] sm:$0xff]   ;;  %v2646_v36 = vor.u32 %v2645_v6, %v2642_v1 }
  0xbe   : > { %v752_v5 = vmul.f32 %v642_v29, %v9136_v27  ;;  %6484 = vmatprep.mubr.msk.bf16.mxu0 %vm1252_vm6, %v2638_v42  ;;  %v1167_v49 = vrot.slane %v1165_v59, 1  ;;  %v7814_v2 = vld [vmem:[#allocation2 + $0x40] sm:$0xff]   ;;  %v2649_v4 = vshrl.u32 %v7811_v43, 16  ;;  %v2652_v33 = vshll.u32 %v7811_v43, 16  ;;  %v652_v14 = vpop.permute.xlu1 %651  ;;  %v647_v16 = vpop.permute.xlu0 %646 }
  0xbf   : > { %v751_v18 = vmul.f32 %v637_v15, %v9137_v40  ;;  %v2647_v32 = vsel %vm2585_vm5, %v2637_v35, %v2646_v36  ;;  %v1155_v13 = vor.u32 %v1153_v57, %v1151_v52  ;;  %v1173_v22 = vshll.u32 %v7814_v2, 16 }
  0xc0   : > { %v5998_v48 = vpack.c.bf16 %v752_v5, %v752_v5  ;;  %v9138_v38 = vmax.f32 %v7600_v47, 0.0  ;;  %v9139_v58 = vmax.f32 %v7603_v37, 0.0  ;;  %v2651_v29 = vrot.slane %v2649_v4, 1 }
  0xc1   : > { %v5997_v31 = vpack.c.bf16 %v751_v18, %v751_v18  ;;  %v7819_v46 = vld [vmem:[#allocation2 + $0x48] sm:$0xff]   ;;  %6485 = vmatmul.mubr.msk.bf16.gmra.mrb[8].mxu0 %vm1252_vm6, %v2647_v32  ;;  %v2654_v15 = vrot.slane %v2652_v33, 2  ;;  %v1160_v52 = vsel %vm1108_vm7, %v1155_v13, %v1159_v3  ;;  %v1163_v35 = vor.u32 %v1161_v34, %v1159_v3 }
  0xc2   : > { %959 = vst.msk [vmem:[#allocation2 + $0x5c] sm:$0xf] %vm935_vm0, %v5998_v48  ;;  %v754_v26 = vmul.f32 %v652_v14, %v9138_v38  ;;  %v753_v55 = vmul.f32 %v647_v16, %v9139_v58  ;;  %v2658_v57 = vshrl.u32 %v7819_v46, 16  ;;  %v2661_v1 = vshll.u32 %v7819_v46, 16  ;;  %v7832_v6 = vld [vmem:[#allocation2 + $0x48] sm:$0xff]   ;;  %6333 = vmatmul.mubr.msk.bf16.gmra.mrb[8].mxu1 %vm1252_vm6, %v1160_v52  ;;  %v662_v37 = vpop.permute.xlu1 %661  ;;  %v657_v40 = vpop.permute.xlu0 %656 }
  0xc3   : > { %958 = vst.msk [vmem:[#allocation2 + $0x58] sm:$0xf] %vm935_vm0, %v5997_v31  ;;  %v2655_v47 = vor.u32 %v2654_v15, %v2651_v29  ;;  %v1175_v5 = vrot.slane %v1173_v22, 1  ;;  %v1168_v18 = vsel %vm1108_vm7, %v1163_v35, %v1167_v49  ;;  %v9140_v34 = vmax.f32 %v7623_v41, 0.0  ;;  %v7845_v16 = vld [vmem:[#allocation2 + $0x50] sm:$0xff]  }
  0xc4   : > { %v6000_v59 = vpack.c.bf16 %v754_v26, %v754_v26  ;;  %v5999_v27 = vpack.c.bf16 %v753_v55, %v753_v55  ;;  %v2660_v42 = vrot.slane %v2658_v57, 1  ;;  %v2663_v48 = vrot.slane %v2661_v1, 2  ;;  %6336 = vmatprep.mubr.msk.bf16.mxu1 %vm1252_vm6, %v1168_v18  ;;  %v3022_v32 = vld [vmem:[#allocation2 + $0x8] sm:$0xc]  ;;  %v7852_v55 = vld [vmem:[#allocation2 + $0x50] sm:$0xff]  }
  0xc5   : > { %v756_v3 = vmul.f32 %v662_v37, %v9140_v34  ;;  %v9141_v31 = vmax.f32 %v7626_v9, 0.0  ;;  %v2656_v33 = vsel %vm2585_vm5, %v2646_v36, %v2655_v47  ;;  %v1181_v14 = vshll.u32 %v7832_v6, 16 }
  0xc6   : > { %961 = vst.msk [vmem:[#allocation2 + $0x64] sm:$0xf] %vm935_vm0, %v6000_v59  ;;  %960 = vst.msk [vmem:[#allocation2 + $0x60] sm:$0xf] %vm935_vm0, %v5999_v27  ;;  %6488 = vmatprep.mubr.msk.bf16.mxu0 %vm1252_vm6, %v2656_v33  ;;  %v2664_v13 = vor.u32 %v2663_v48, %v2660_v42  ;;  %v1169_v22 = vshrl.u32 %v7797_v8, 16  ;;  %v1177_v41 = vshrl.u32 %v7814_v2, 16  ;;  %v672_v29 = vpop.permute.xlu1 %671  ;;  %v667_v15 = vpop.permute.xlu0 %666  ;;  %v5840_v59 = vcombine.low %v3022_v32, %v7662_v62 }
  0xc7   : > { %v755_v4 = vmul.f32 %v657_v40, %v9141_v31  ;;  %v3030_v9 = vrot.slane %v7664_v19, 2  ;;  %v6002_v38 = vpack.c.bf16 %v756_v3, %v756_v3  ;;  %v1183_v58 = vrot.slane %v1181_v14, 1 }
  0xc8   : > { %v2667_v36 = vshrl.u32 %v7845_v16, 16  ;;  %v2665_v52 = vsel %vm2585_vm5, %v2655_v47, %v2664_v13  ;;  %v1171_v35 = vor.u32 %v1169_v22, %v1167_v49  ;;  %v2670_v57 = vshll.u32 %v7845_v16, 16 }
  0xc9   : > { %v6001_v26 = vpack.c.bf16 %v755_v4, %v755_v4  ;;  %963 = vst.msk [vmem:[#allocation2 + $0x6c] sm:$0xf] %vm935_vm0, %v6002_v38  ;;  %v9142_v27 = vmax.f32 %v7629_v44, 0.0  ;;  %v9143_v40 = vmax.f32 %v7632_v45, 0.0  ;;  %6489 = vmatmul.mubr.msk.bf16.gmra.mrb[12].mxu0 %vm1252_vm6, %v2665_v52  ;;  %v1179_v47 = vor.u32 %v1177_v41, %v1175_v5 }
  0xca   : > { %v7856_v1 = vld [vmem:[#allocation2 + $0x58] sm:$0xff]   ;;  %v2669_v49 = vrot.slane %v2667_v36, 1  ;;  %v1176_v48 = vsel %vm1108_vm7, %v1171_v35, %v1175_v5  ;;  %v2672_v34 = vrot.slane %v2670_v57, 2  ;;  %v1189_v45 = vshll.u32 %v7852_v55, 16  ;;  %v682_v33 = vpop.permute.xlu1 %681  ;;  %v677_v14 = vpop.permute.xlu0 %676 }
  0xcb   : > { %962 = vst.msk [vmem:[#allocation2 + $0x68] sm:$0xf] %vm935_vm0, %v6001_v26  ;;  %v758_v37 = vmul.f32 %v672_v29, %v9142_v27  ;;  %v757_v18 = vmul.f32 %v667_v15, %v9143_v40  ;;  %v7866_v42 = vld [vmem:[#allocation2 + $0x58] sm:$0xff]   ;;  %v2676_v62 = vshrl.u32 %v7856_v1, 16  ;;  %v2679_v3 = vshll.u32 %v7856_v1, 16  ;;  %6337 = vmatmul.mubr.msk.bf16.gmra.mrb[12].mxu1 %vm1252_vm6, %v1176_v48 }
  0xcc   : > { %v1184_v44 = vsel %vm1108_vm7, %v1179_v47, %v1183_v58  ;;  %v2673_v32 = vor.u32 %v2672_v34, %v2669_v49  ;;  %v1197_v5 = vshll.u32 %v7866_v42, 16  ;;  %v9144_v38 = vmax.f32 %v7637_v39, 0.0 }
  0xcd   : > { %v6004_v31 = vpack.c.bf16 %v758_v37, %v758_v37  ;;  %v6003_v4 = vpack.c.bf16 %v757_v18, %v757_v18  ;;  %v2678_v22 = vrot.slane %v2676_v62, 1  ;;  %v2681_v41 = vrot.slane %v2679_v3, 2  ;;  %6340 = vmatprep.mubr.msk.bf16.mxu1 %vm1252_vm6, %v1184_v44  ;;  %v7887_v40 = vld [vmem:[#allocation2 + $0x60] sm:$0xff]  }
  0xce   : > { %v760_v26 = vmul.f32 %v682_v33, %v9144_v38  ;;  %v9145_v36 = vmax.f32 %v7653_v12, 0.0  ;;  %v1185_v15 = vshrl.u32 %v7832_v6, 16  ;;  %v3029_v52 = vrot.slane %v5840_v59, 2  ;;  %v692_v12 = vpop.permute.xlu1 %691  ;;  %v687_v47 = vpop.permute.xlu0 %686 }
  0xcf   : > { %965 = vst.msk [vmem:[#allocation2 + $0x74] sm:$0xf] %vm935_vm0, %v6004_v31  ;;  %964 = vst.msk [vmem:[#allocation2 + $0x70] sm:$0xf] %vm935_vm0, %v6003_v4  ;;  %v2674_v35 = vsel %vm2585_vm5, %v2664_v13, %v2673_v32  ;;  %v7884_v57 = vor.u32 %v2681_v41, %v2678_v22  ;;  %v1191_v27 = vrot.slane %v1189_v45, 1  ;;  %v1193_v37 = vshrl.u32 %v7852_v55, 16 }
  0xd0   : > { %v759_v29 = vmul.f32 %v677_v14, %v9145_v36  ;;  %v6006_v18 = vpack.c.bf16 %v760_v26, %v760_v26  ;;  %6492 = vmatprep.mubr.msk.bf16.mxu0 %vm1252_vm6, %v2674_v35  ;;  %v1199_v48 = vrot.slane %v1197_v5, 1  ;;  %v9147_v13 = vmax.f32 %v7304_v53, 0.0 }
  0xd1   : > { %9146 = vst [vmem:[#allocation4_spill] sm:$0xff] %v7884_v57  ;;  %v2683_v49 = vsel %vm2585_vm5, %v2673_v32, %v7884_v57  ;;  %v9148_v62 = vmax.f32 %v7307_v54, 0.0  ;;  %v1187_v31 = vor.u32 %v1185_v15, %v1183_v58  ;;  %v3031_v4 = vsel %vm3028_vm8, %v3029_v52, %v3030_v9  ;;  %v7928_v52 = vld [vmem:[%s9099_s4 + $0x1c] sm:$0xf] }
  0xd2   : > { %v6005_v39 = vpack.c.bf16 %v759_v29, %v759_v29  ;;  %v7892_v59 = vld [vmem:[#allocation2 + $0x68] sm:$0xff]   ;;  %967 = vst.msk [vmem:[#allocation2 + $0x7c] sm:$0xf] %vm935_vm0, %v6006_v18  ;;  %v762_v34 = vmul.f32 %v692_v12, %v9147_v13  ;;  %6493 = vmatmul.mubr.msk.bf16.gmra.mrb[16].mxu0 %vm1252_vm6, %v2683_v49  ;;  %v1195_v44 = vor.u32 %v1193_v37, %v1191_v27  ;;  %v479_v45 = vmax.f32 %v7333_v7, 0.0  ;;  %v702_v58 = vpop.permute.xlu1 %701  ;;  %v697_v41 = vpop.permute.xlu0 %696 }
  0xd3   : > { %v761_v3 = vmul.f32 %v687_v47, %v9148_v62  ;;  %6514 = vmatprep.mubr.msk.bf16.mxu0 %vm1252_vm6, %v3031_v4  ;;  %v478_v33 = vmax.f32 %v7337_v10, 0.0  ;;  %v1205_v53 = vshll.u32 %v7887_v40, 16  ;;  %v1192_v54 = vsel %vm1108_vm7, %v1187_v31, %v1191_v27 }
  0xd4   : > { %966 = vst.msk [vmem:[#allocation2 + $0x78] sm:$0xf] %vm935_vm0, %v6005_v39  ;;  %v6008_v14 = vpack.c.bf16 %v762_v34, %v762_v34  ;;  %v481_v22 = vmax.f32 %v7351_v17, 0.0  ;;  %6341 = vmatmul.mubr.msk.bf16.gmra.mrb[16].mxu1 %vm1252_vm6, %v1192_v54  ;;  %v1200_v5 = vsel %vm1108_vm7, %v1195_v44, %v1199_v48  ;;  %v3032_v38 = vrot.slane %v7693_v50, 2 }
  0xd5   : > { %v6007_v32 = vpack.c.bf16 %v761_v3, %v761_v3  ;;  %v1213_v7 = vshll.u32 %v7892_v59, 16  ;;  %v9149_v10 = vmax.f32 %v7318_v61, 0.0  ;;  %v763_v17 = vmul.f32 %v697_v41, %v476_v11  ;;  %6344 = vmatprep.mubr.msk.bf16.mxu1 %vm1252_vm6, %v1200_v5 }
  0xd6   : > { %969 = vst.msk [vmem:[#allocation2 + $0x84] sm:$0xf] %vm935_vm0, %v6008_v14  ;;  %v3034_v36 = vrot.slane %v7726_v51, 2  ;;  %v480_v29 = vmax.f32 %v7358_v20, 0.0  ;;  %v1207_v15 = vrot.slane %v1205_v53, 1  ;;  %v7923_v50 = vld [vmem:[#allocation2 + $0x70] sm:$0xff]   ;;  %v712_v11 = vpop.permute.xlu1 %711  ;;  %v707_v37 = vpop.permute.xlu0 %706  ;;  %v3033_v20 = vsel %vm3028_vm8, %v3030_v9, %v3032_v38 }
  0xd7   : > { %968 = vst.msk [vmem:[#allocation2 + $0x80] sm:$0xf] %vm935_vm0, %v6007_v32  ;;  %v764_v26 = vmul.f32 %v702_v58, %v9149_v10  ;;  %v6009_v61 = vpack.c.bf16 %v763_v17, %v763_v17  ;;  %v1201_v27 = vshrl.u32 %v7866_v42, 16  ;;  %v1209_v0 = vshrl.u32 %v7887_v40, 16 }
  0xd8   : > { %v1215_v51 = vrot.slane %v1213_v7, 1  ;;  %v766_v39 = vmul.f32 %v712_v11, %v479_v45  ;;  %v765_v12 = vmul.f32 %v707_v37, %v478_v33  ;;  %v3035_v49 = vsel %vm3028_vm8, %v3032_v38, %v3034_v36 }
  0xd9   : > { %v6010_v35 = vpack.c.bf16 %v764_v26, %v764_v26  ;;  %970 = vst.msk [vmem:[#allocation2 + $0x88] sm:$0xf] %vm935_vm0, %v6009_v61  ;;  %v1203_v47 = vor.u32 %v1201_v27, %v1199_v48  ;;  %v1211_v19 = vor.u32 %v1209_v0, %v1207_v15  ;;  %v1221_v9 = vshll.u32 %v7923_v50, 16 }
  0xda   : > { %6515 = vmatmul.mubr.msk.bf16.vlgmr.msra.gmra.mrb[0].mxu0 %vm1252_vm6, %v3033_v20  ;;  %v6012_v13 = vpack.c.bf16 %v766_v39, %v766_v39  ;;  %v6011_v34 = vpack.c.bf16 %v765_v12, %v765_v12  ;;  %v722_v3 = vpop.permute.xlu1 %721  ;;  %v717_v48 = vpop.permute.xlu0 %716  ;;  %v482_v33 = vmax.f32 %v7368_v24, 0.0  ;;  %v3038_v53 = vrot.slane %v7760_v21, 2 }
  0xdb   : > { %v7935_v18 = vld [vmem:[#allocation2 + $0x78] sm:$0xff]   ;;  %971 = vst.msk [vmem:[#allocation2 + $0x8c] sm:$0xf] %vm935_vm0, %v6010_v35  ;;  %6551 = vmatpush3.bf16.msra.mxu0 %v7784_v30  ;;  %6518 = vmatprep.mubr.msk.bf16.mxu0 %vm1252_vm6, %v3035_v49  ;;  %v1208_v62 = vsel %vm1108_vm7, %v1203_v47, %v1207_v15  ;;  %v1216_v31 = vsel %vm1108_vm7, %v1211_v19, %v1215_v51  ;;  %v3036_v30 = vrot.slane %v7737_v25, 2  ;;  %v1223_v14 = vrot.slane %v1221_v9, 1 }
  0xdc   : > { %6962 = vmatprep.subr.msk.bf16.mxu0 %vm1307_vm1, %v7928_v52  ;;  %6345 = vmatmul.mubr.msk.bf16.gmra.mrb[20].mxu1 %vm1252_vm6, %v1208_v62  ;;  %v1229_v4 = vshll.u32 %v7935_v18, 16  ;;  %973 = vst.msk [vmem:[#allocation2 + $0x94] sm:$0xf] %vm935_vm0, %v6012_v13  ;;  %972 = vst.msk [vmem:[#allocation2 + $0x90] sm:$0xf] %vm935_vm0, %v6011_v34  ;;  %v768_v44 = vmul.f32 %v722_v3, %v481_v22  ;;  %v767_v45 = vmul.f32 %v717_v48, %v480_v29 }
  0xdd   : > { %6348 = vmatprep.mubr.msk.bf16.mxu1 %vm1252_vm6, %v1216_v31  ;;  %v1217_v25 = vshrl.u32 %v7892_v59, 16  ;;  %v3037_v5 = vsel %vm3028_vm8, %v3034_v36, %v3036_v30  ;;  %v1225_v38 = vshrl.u32 %v7923_v50, 16  ;;  %v3039_v26 = vsel %vm3028_vm8, %v3036_v30, %v3038_v53  ;;  %v3336_v34 = vld [vmem:[#allocation2 + $0x10] sm:$0xc]  ;;  %v7992_v62 = vld [vmem:[#allocation2 + $0x14] sm:$0xf] }
  0xde   : > { %v7956_v32 = vld [vmem:[#allocation2 + $0x80] sm:$0xff]   ;;  %v6014_v54 = vpack.c.bf16 %v768_v44, %v768_v44  ;;  %v6013_v58 = vpack.c.bf16 %v767_v45, %v767_v45  ;;  %v727_v41 = vpop.permute.xlu0 %726  ;;  %v1231_v22 = vrot.slane %v1229_v4, 1  ;;  %v3040_v27 = vrot.slane %v7780_v63, 2 }
  0xdf   : > { %v769_v24 = vmul.f32 %v727_v41, %v482_v33  ;;  %v1219_v21 = vor.u32 %v1217_v25, %v1215_v51  ;;  %v1227_v36 = vor.u32 %v1225_v38, %v1223_v14  ;;  %v1237_v29 = vshll.u32 %v7956_v32, 16  ;;  %v7998_v30 = vld [vmem:[#allocation2 + $0x60] sm:$0xff]   ;;  %v8019_v41 = vld [vmem:[#allocation2 + $0x68] sm:$0xff]  }
  0xe0   : > { %v7961_v7 = vld [vmem:[#allocation2 + $0x88] sm:$0xf]  ;;  %975 = vst.msk [vmem:[#allocation2 + $0x9c] sm:$0xf] %vm935_vm0, %v6014_v54  ;;  %974 = vst.msk [vmem:[#allocation2 + $0x98] sm:$0xf] %vm935_vm0, %v6013_v58  ;;  %v3041_v51 = vsel %vm3028_vm8, %v3038_v53, %v3040_v27  ;;  %v8001_v4 = vcombine.low %v3336_v34, %v7992_v62 }
  0xe1   : > { %v6015_v15 = vpack.c.bf16 %v769_v24, %v769_v24  ;;  %v1224_v35 = vsel %vm1108_vm7, %v1219_v21, %v1223_v14  ;;  %v1232_v61 = vsel %vm1108_vm7, %v1227_v36, %v1231_v22  ;;  %v3042_v11 = vrot.slane %v7811_v43, 2  ;;  %9151 = vst [vmem:[#allocation6_spill] sm:$0xff] %v7998_v30  ;;  %v8008_v45 = vld [vmem:[#allocation2 + $0x20] sm:$0xff]   ;;  %v8013_v53 = vld [vmem:[#allocation2 + $0x28] sm:$0xff]   ;;  %9152 = vst [vmem:[#allocation7_spill] sm:$0xff] %v8019_v41 }
  0xe2   : > { %v1015_v10 = vld [vmem:[#allocation2 + $0x8c] sm:$0xf]  ;;  %6519 = vmatmul.mubr.msk.bf16.gmra.mrb[4].mxu0 %vm1252_vm6, %v3037_v5  ;;  %v1239_v37 = vrot.slane %v1237_v29, 1  ;;  %v1233_v20 = vshrl.u32 %v7935_v18, 16  ;;  %v1241_v39 = vshrl.u32 %v7956_v32, 16  ;;  %v3044_v9 = vrot.slane %v7819_v46, 2 }
  0xe3   : > { %v7968_v17 = vcombine.low %v7961_v7, %v1015_v10  ;;  %6522 = vmatprep.mubr.msk.bf16.mxu0 %vm1252_vm6, %v3039_v26  ;;  %977 = vst.msk [vmem:[#allocation2 + $0xa0] sm:$0x3] %vm976_vm2, %v6015_v15  ;;  %v3043_v63 = vsel %vm3028_vm8, %v3040_v27, %v3042_v11  ;;  %v3046_v13 = vrot.slane %v7845_v16, 2  ;;  %v8004_v16 = vld [vmem:[#allocation2 + $0x18] sm:$0xff]   ;;  %v3048_v44 = vrot.slane %v7856_v1, 2  ;;  %v8029_v36 = vld [vmem:[#allocation2 + $0x70] sm:$0xff]  }
  0xe4   : > { %6349 = vmatmul.mubr.msk.bf16.gmra.mrb[24].mxu1 %vm1252_vm6, %v1224_v35  ;;  %v1235_v47 = vor.u32 %v1233_v20, %v1231_v22  ;;  %v1243_v49 = vor.u32 %v1241_v39, %v1239_v37  ;;  %v3045_v3 = vsel %vm3028_vm8, %v3042_v11, %v3044_v9  ;;  %v3050_v33 = vrot.slane %v7998_v30, 2  ;;  %v8022_v22 = vld [vmem:[#allocation2 + $0x30] sm:$0xff]   ;;  %9153 = vst [vmem:[#allocation8_spill] sm:$0xff] %v8029_v36  ;;  %v8033_v15 = vld [vmem:[#allocation2 + $0x38] sm:$0xff]   ;;  %v8045_v39 = vld [vmem:[#allocation2 + $0x8] sm:$0xff]  }
  0xe5   : > { %9150 = vst [vmem:[#allocation5_spill] sm:$0xff] %v7968_v17  ;;  %v1245_v0 = vshll.u32 %v7968_v17, 16  ;;  %6352 = vmatprep.mubr.msk.bf16.mxu1 %vm1252_vm6, %v1232_v61  ;;  %v1249_v48 = vshrl.u32 %v7968_v17, 16  ;;  %v3047_v31 = vsel %vm3028_vm8, %v3044_v9, %v3046_v13  ;;  %v3783_v14 = vshrl.u32 %v8001_v4, 16 }
  0xe6   : > { %v1240_v19 = vsel %vm1108_vm7, %v1235_v47, %v1239_v37  ;;  %v3786_v54 = vshll.u32 %v8001_v4, 16  ;;  %v3791_v58 = vshrl.u32 %v8004_v16, 16  ;;  %v3794_v25 = vshll.u32 %v8004_v16, 16  ;;  %v8037_v37 = vld [vmem:[#allocation2 + $0x78] sm:$0xff]  }
  0xe7   : > { %v1247_v12 = vrot.slane %v1245_v0, 1  ;;  %v3785_v1 = vrot.slane %v3783_v14, 2  ;;  %v3049_v38 = vsel %vm3028_vm8, %v3046_v13, %v3048_v44  ;;  %v3800_v24 = vshrl.u32 %v8008_v45, 16  ;;  %9154 = vst [vmem:[#allocation9_spill] sm:$0xff] %v8037_v37  ;;  %v8061_v13 = vld [vmem:[#allocation2 + $0x80] sm:$0xff]  }
  0xe8   : > { %v3788_v5 = vrot.slane %v3786_v54, 3  ;;  %v3796_v10 = vrot.slane %v3794_v25, 3  ;;  %v3051_v21 = vsel %vm3028_vm8, %v3048_v44, %v3050_v33  ;;  %v1805_v26 = vsel %vm1307_vm1, %v7756_v60, 0  ;;  %v8042_v60 = vld [vmem:[%s9099_s4 + $0xc] sm:$0xf]  ;;  %9155 = vst [vmem:[#allocation10_spill] sm:$0xff] %v8061_v13 }
  0xe9   : > { %v1248_v43 = vsel %vm1108_vm7, %v1243_v49, %v1247_v12  ;;  %v1251_v46 = vor.u32 %v1249_v48, %v1247_v12  ;;  %v3803_v29 = vshll.u32 %v8008_v45, 16  ;;  %v3802_v27 = vrot.slane %v3800_v24, 2  ;;  %v8049_v12 = vld [vmem:[#allocation2 + $0x40] sm:$0xff]   ;;  %v8063_v48 = vld [vmem:[#allocation2 + $0x48] sm:$0xff]  }
  0xea   : > { %6523 = vmatmul.mubr.msk.bf16.gmra.mrb[8].mxu0 %vm1252_vm6, %v3041_v51  ;;  %v3789_v35 = vor.u32 %v3788_v5, %v3785_v1  ;;  %v3809_v0 = vshrl.u32 %v8013_v53, 16  ;;  %v3052_v11 = vrot.slane %v8019_v41, 2  ;;  %v3812_v51 = vshll.u32 %v8013_v53, 16  ;;  %v8074_v5 = vld [vmem:[#allocation2 + $0x50] sm:$0xff]   ;;  %v8148_v41 = vld [vmem:[#allocation2 + $0x28] sm:$0xff]  }
  0xeb   : > { %6526 = vmatprep.mubr.msk.bf16.mxu0 %vm1252_vm6, %v3043_v63  ;;  %v3805_v20 = vrot.slane %v3803_v29, 3  ;;  %v3818_v49 = vshrl.u32 %v8022_v22, 16  ;;  %v3054_v9 = vrot.slane %v8029_v36, 2  ;;  %v3827_v44 = vshrl.u32 %v8033_v15, 16  ;;  %v8134_v36 = vld [vmem:[#allocation2 + $0x90] sm:$0xff]  }
  0xec   : > { %6353 = vmatmul.mubr.msk.bf16.gmra.mrb[28].mxu1 %vm1252_vm6, %v1240_v19  ;;  %v3811_v63 = vrot.slane %v3809_v0, 2  ;;  %v3821_v19 = vshll.u32 %v8022_v22, 16  ;;  %v3830_v14 = vshll.u32 %v8033_v15, 16  ;;  %v3053_v54 = vsel %vm3028_vm8, %v3050_v33, %v3052_v11  ;;  %v8080_v33 = vld [vmem:[#allocation2 + $0x58] sm:$0xff]   ;;  %9161 = vst [vmem:[#allocation15_spill] sm:$0xff] %v8134_v36 }
  0xed   : > { %6356 = vmatprep.mubr.msk.bf16.mxu1 %vm1252_vm6, %v1248_v43  ;;  %v8056_v43 = vld [vmem:[#allocation2 + $0x10] sm:$0xff]   ;;  %v3806_v34 = vor.u32 %v3805_v20, %v3802_v27  ;;  %v3836_v24 = vshrl.u32 %v8049_v12, 16  ;;  %v3845_v20 = vshrl.u32 %v8063_v48, 16  ;;  %vm4797_vm2 = vsmask.f32 7938 }
  0xee   : > { %vm5426_vm7 = vcmask 62464  }
  0xef   : > { %v3838_v0 = vrot.slane %v3836_v24, 2 }
  0xf2   : > { %6527 = vmatmul.mubr.msk.bf16.gmra.mrb[12].mxu0 %vm1252_vm6, %v3045_v3  ;;  %v3814_v3 = vrot.slane %v3812_v51, 3 }
  0xf3   : > { %6530 = vmatprep.mubr.msk.bf16.mxu0 %vm1252_vm6, %v3047_v31  ;;  %v3820_v31 = vrot.slane %v3818_v49, 2  ;;  %v9105_v49 = vrot.slane %v7968_v17, 1 }
  0xf4   : > { %6357 = vmatmul.mubr.msk.bf16.gmra.mrb[32].mxu1 %vm1252_vm6, %v1251_v46  ;;  %v3823_v46 = vrot.slane %v3821_v19, 3  ;;  %v3815_v1 = vor.u32 %v3814_v3, %v3811_v63  ;;  %v3848_v63 = vshll.u32 %v8063_v48, 16  ;;  %v8094_v19 = vld [vmem:[#allocation2 + $0x18] sm:$0xff]  }
  0xf5   : > { %6362 = vmatprep.mubr.msk.bf16.mxu1 %vm1252_vm6, %v7709_v28  ;;  %v3793_v28 = vrot.slane %v3791_v58, 2  ;;  %v3056_v58 = vrot.slane %v8037_v37, 2  ;;  %v8126_v37 = vld [vmem:[#allocation2 + $0x70] sm:$0xff]  }
  0xf6   : > { %v8083_v29 = vsel %vm3781_vm9, %v3806_v34, %v3815_v1 }
  0xf7   : > { %v3797_v61 = vor.u32 %v3796_v10, %v3793_v28  ;;  %v3829_v28 = vrot.slane %v3827_v44, 2  ;;  %v3832_v10 = vrot.slane %v3830_v14, 3  ;;  %v3857_v44 = vshll.u32 %v8074_v5, 16  ;;  %v8105_v14 = vld [vmem:[#allocation2 + $0x20] sm:$0xff]  }
  0xf9   : > { %v8052_v47 = vsel %vm3781_vm9, %v3789_v35, %v3797_v61  ;;  %v8072_v25 = vsel %vm3781_vm9, %v3797_v61, %v3806_v34  ;;  %v3839_v35 = vshll.u32 %v8049_v12, 16  ;;  %v3833_v27 = vor.u32 %v3832_v10, %v3829_v28  ;;  %v8098_v34 = vld [vmem:[#allocation2 + $0x60] sm:$0xff]  }
  0xfa   : > { %6531 = vmatmul.mubr.msk.bf16.gmra.mrb[16].mxu0 %vm1252_vm6, %v3049_v38  ;;  %v3824_v38 = vor.u32 %v3823_v46, %v3820_v31  ;;  %v3847_v31 = vrot.slane %v3845_v20, 2  ;;  %v3854_v46 = vshrl.u32 %v8074_v5, 16  ;;  %v3850_v28 = vrot.slane %v3848_v63, 3 }
  0xfb   : > { %6534 = vmatprep.mubr.msk.bf16.mxu0 %vm1252_vm6, %v3051_v21  ;;  %v3055_v21 = vsel %vm3028_vm8, %v3052_v11, %v3054_v9  ;;  %v3841_v51 = vrot.slane %v3839_v35, 3  ;;  %v9106_v11 = vrot.slane %v7956_v32, 1  ;;  %v3863_v10 = vshrl.u32 %v8080_v33, 16 }
  0xfc   : > { %6363 = vmatmul.mubr.msk.bf16.vlgmr.msra.gmra.mrb[0].mxu1 %vm1252_vm6, %v8045_v39  ;;  %v8088_v61 = vsel %vm3781_vm9, %v3815_v1, %v3824_v38  ;;  %v8101_v3 = vsel %vm3781_vm9, %v3824_v38, %v3833_v27  ;;  %v3856_v24 = vrot.slane %v3854_v46, 2  ;;  %v3866_v35 = vshll.u32 %v8080_v33, 16 }
  0xfd   : > { %6366 = vmatprep.mubr.msk.bf16.mxu1 %vm1252_vm6, %v8056_v43  ;;  %6399 = vmatpush3.bf16.msra.mxu1 %v1805_v26  ;;  %9156 = vst [vmem:[#allocation11_spill] sm:$0xff] %v8101_v3  ;;  %v3842_v1 = vor.u32 %v3841_v51, %v3838_v0  ;;  %v8116_v38 = vsel %vm1714_vm10, %v9106_v11, %v9105_v49  ;;  %v8121_v26 = vld [vmem:[#allocation2 + $0x88] sm:$0xff]   ;;  %v3865_v63 = vrot.slane %v3863_v10, 2  ;;  %v3872_v11 = vshrl.u32 %v8098_v34, 16 }
  0xfe   : > { %6957 = vmatprep.subr.msk.bf16.mxu1 %vm1307_vm1, %v8042_v60  ;;  %9157 = vst [vmem:[#allocation12_spill] sm:$0xff] %v8116_v38  ;;  %v3057_v20 = vsel %vm3028_vm8, %v3054_v9, %v3056_v58  ;;  %9158 = vst [vmem:[#allocation13_spill] sm:$0xff] %v8121_v26  ;;  %v3851_v51 = vor.u32 %v3850_v28, %v3847_v31  ;;  %v3868_v49 = vrot.slane %v3866_v35, 3  ;;  %v3875_v46 = vshll.u32 %v8098_v34, 16 }
  0xff   : > { %v8124_v0 = vsel %vm3781_vm9, %v3833_v27, %v3842_v1  ;;  %v8136_v27 = vld [vmem:[#allocation2 + $0x78] sm:$0xff]  }
 0x100   : > { %9159 = vst [vmem:[#allocation14_spill] sm:$0xff] %v8124_v0  ;;  %v8139_v31 = vsel %vm3781_vm9, %v3842_v1, %v3851_v51  ;;  %v3877_v35 = vrot.slane %v3875_v46, 3  ;;  %v8152_v1 = vld [vmem:[#allocation2 + $0x80] sm:$0xff]   ;;  %v8162_v46 = vld [vmem:[#allocation2 + $0x88] sm:$0xff]  }
 0x101   : > { %9162 = vst [vmem:[#allocation16_spill] sm:$0xff] %v8139_v31  ;;  %v3908_v31 = vshrl.u32 %v8152_v1, 16 }
 0x102   : > { %6535 = vmatmul.mubr.msk.bf16.gmra.mrb[20].mxu0 %vm1252_vm6, %v3053_v54  ;;  %v8109_v54 = vld [vmem:[#allocation2 + $0x68] sm:$0xff]  }
 0x103   : > { %6538 = vmatprep.mubr.msk.bf16.mxu0 %vm1252_vm6, %v3055_v21  ;;  %v3859_v21 = vrot.slane %v3857_v44, 3  ;;  %v9160_v44 = vrot.slane %v8061_v13, 2  ;;  %v3881_v28 = vshrl.u32 %v8109_v54, 16 }
 0x104   : > { %6367 = vmatmul.mubr.msk.bf16.gmra.mrb[4].mxu1 %vm1252_vm6, %v8094_v19 }
 0x105   : > { %6370 = vmatprep.mubr.msk.bf16.mxu1 %vm1252_vm6, %v8105_v14  ;;  %v3860_v57 = vor.u32 %v3859_v21, %v3856_v24  ;;  %v3059_v9 = vsel %vm3028_vm8, %v3056_v58, %v9160_v44  ;;  %v3869_v24 = vor.u32 %v3868_v49, %v3865_v63  ;;  %v3874_v21 = vrot.slane %v3872_v11, 2 }
 0x106   : > { %v3883_v58 = vrot.slane %v3881_v28, 2  ;;  %v3884_v44 = vshll.u32 %v8109_v54, 16  ;;  %v3890_v49 = vshrl.u32 %v8126_v37, 16  ;;  %v3893_v11 = vshll.u32 %v8126_v37, 16 }
 0x107   : > { %v8144_v10 = vsel %vm3781_vm9, %v3851_v51, %v3860_v57  ;;  %v3878_v51 = vor.u32 %v3877_v35, %v3874_v21  ;;  %v3062_v63 = vrot.slane %v8134_v36, 2  ;;  %v3902_v21 = vshll.u32 %v8136_v27, 16 }
 0x108   : > { %9163 = vst [vmem:[#allocation17_spill] sm:$0xff] %v8144_v10  ;;  %v3886_v28 = vrot.slane %v3884_v44, 3  ;;  %v3895_v23 = vrot.slane %v3893_v11, 3  ;;  %v9166_v35 = vrot.slane %v8061_v13, 2  ;;  %v8174_v10 = vld [vmem:[#allocation2 + $0x90] sm:$0xff]   ;;  %v8180_v11 = vld [vmem:[#allocation2 + $0x98] sm:$0xff]  }
 0x109   : > { %v8166_v30 = vsel %vm3781_vm9, %v3869_v24, %v3878_v51  ;;  %v3904_v38 = vrot.slane %v3902_v21, 3  ;;  %v4222_v13 = vld [vmem:[#allocation2 + $0x10] sm:$0x8] }
 0x10a   : > { %6539 = vmatmul.mubr.msk.bf16.gmra.mrb[24].mxu0 %vm1252_vm6, %v3057_v20  ;;  %v3060_v20 = vrot.slane %v8121_v26, 2  ;;  %v3899_v26 = vshrl.u32 %v8136_v27, 16  ;;  %9165 = vst [vmem:[#allocation19_spill] sm:$0xff] %v8166_v30 }
 0x10b   : > { %6542 = vmatprep.mubr.msk.bf16.mxu0 %vm1252_vm6, %v3059_v9  ;;  %v8155_v9 = vsel %vm3781_vm9, %v3860_v57, %v3869_v24  ;;  %v3892_v57 = vrot.slane %v3890_v49, 2  ;;  %v3911_v24 = vshll.u32 %v8152_v1, 16 }
 0x10c   : > { %6371 = vmatmul.mubr.msk.bf16.gmra.mrb[8].mxu1 %vm1252_vm6, %v8148_v41  ;;  %9164 = vst [vmem:[#allocation18_spill] sm:$0xff] %v8155_v9  ;;  %v3061_v17 = vsel %vm3028_vm8, %v9166_v35, %v3060_v20  ;;  %v8172_v9 = vld [vmem:[#allocation2 + $0x98] ss:$0 sps:$4 sm:$0x11]   ;;  %v3901_v36 = vrot.slane %v3899_v26, 2  ;;  %v3063_v49 = vsel %vm3028_vm8, %v3060_v20, %v3062_v63  ;;  %v3920_v20 = vshll.u32 %v8162_v46, 16 }
 0x10d   : > { %6374 = vmatprep.mubr.msk.bf16.mxu1 %vm1252_vm6, %v7771_v56  ;;  %9167 = vst [vmem:[#allocation20_spill] sm:$0xff] %v8172_v9  ;;  %v3887_v56 = vor.u32 %v3886_v28, %v3883_v58  ;;  %v3896_v44 = vor.u32 %v3895_v23, %v3892_v57  ;;  %v3917_v58 = vshrl.u32 %v8162_v46, 16  ;;  %v3910_v28 = vrot.slane %v3908_v31, 2 }
 0x10e   : > { %v3905_v26 = vor.u32 %v3904_v38, %v3901_v36  ;;  %v3913_v57 = vrot.slane %v3911_v24, 3  ;;  %v3064_v21 = vrot.slane %v8172_v9, 2  ;;  %v8199_v36 = vld [vmem:[#allocation2 + $0xa0] ss:$0 sps:$4 sm:$0x33]   ;;  %v3469_v38 = vrot.slane %v8004_v16, 2 }
 0x10f   : > { %v8183_v35 = vsel %vm3781_vm9, %v3878_v51, %v3887_v56  ;;  %v8188_v23 = vsel %vm3781_vm9, %v3887_v56, %v3896_v44  ;;  %v3929_v56 = vshll.u32 %v8174_v10, 16  ;;  %v3922_v31 = vrot.slane %v3920_v20, 3 }
 0x110   : > { %9168 = vst [vmem:[#allocation21_spill] sm:$0xff] %v8183_v35  ;;  %9169 = vst [vmem:[#allocation22_spill] sm:$0xff] %v8188_v23  ;;  %v8195_v51 = vsel %vm3781_vm9, %v3896_v44, %v3905_v26  ;;  %v3914_v35 = vor.u32 %v3913_v57, %v3910_v28  ;;  %v3935_v24 = vshrl.u32 %v8180_v11, 16  ;;  %v3938_v57 = vshll.u32 %v8180_v11, 16 }
 0x111   : > { %9170 = vst [vmem:[#allocation23_spill] sm:$0xff] %v8195_v51  ;;  %v3931_v28 = vrot.slane %v3929_v56, 3  ;;  %v3065_v9 = vsel %vm3028_vm8, %v3062_v63, %v3064_v21  ;;  %v3468_v51 = vrot.slane %v8001_v4, 2  ;;  %v3944_v20 = vshrl.u32 %v8199_v36, 16 }
 0x112   : > { %6543 = vmatmul.mubr.msk.bf16.gmra.mrb[28].mxu0 %vm1252_vm6, %v3061_v17  ;;  %v3919_v17 = vrot.slane %v3917_v58, 2  ;;  %v8207_v44 = vsel %vm3781_vm9, %v3905_v26, %v3914_v35  ;;  %v3940_v0 = vrot.slane %v3938_v57, 3  ;;  %v3947_v3 = vshll.u32 %v8199_v36, 16 }
 0x113   : > { %6546 = vmatprep.mubr.msk.bf16.mxu0 %vm1252_vm6, %v3063_v49  ;;  %v3926_v49 = vshrl.u32 %v8174_v10, 16  ;;  %v3946_v26 = vrot.slane %v3944_v20, 2  ;;  %v4232_v56 = vrot.slane %v8008_v45, 3  ;;  %v4244_v20 = vrot.slane %v8074_v5, 3 }
 0x114   : > { %6375 = vmatmul.mubr.msk.bf16.gmra.mrb[12].mxu1 %vm1252_vm6, %v7797_v8  ;;  %v5918_v8 = vcombine.low %v4222_v13, %v7992_v62  ;;  %v3923_v23 = vor.u32 %v3922_v31, %v3919_v17  ;;  %v3470_v62 = vsel %vm3028_vm8, %v3468_v51, %v3469_v38  ;;  %v3949_v21 = vrot.slane %v3947_v3, 3 }
 0x115   : > { %6378 = vmatprep.mubr.msk.bf16.mxu1 %vm1252_vm6, %v7814_v2  ;;  %v3928_v58 = vrot.slane %v3926_v49, 2  ;;  %v3937_v2 = vrot.slane %v3935_v24, 2  ;;  %v4230_v49 = vrot.slane %v8004_v16, 3  ;;  %v3473_v3 = vrot.slane %v8013_v53, 2  ;;  %v8255_v24 = vld [vmem:[%s9099_s4 + $0x20] sm:$0xf] }
 0x116   : > { %v8217_v13 = vsel %vm3781_vm9, %v3914_v35, %v3923_v23  ;;  %v4229_v17 = vrot.slane %v5918_v8, 3  ;;  %v3950_v51 = vor.u32 %v3949_v21, %v3946_v26  ;;  %v4007_v31 = vsel %vm1307_vm1, %v7928_v52, 0 }
 0x117   : > { %v3932_v30 = vor.u32 %v3931_v28, %v3928_v58  ;;  %v3941_v63 = vor.u32 %v3940_v0, %v3937_v2  ;;  %v8239_v0 = vsel %vm4228_vm11, %v4230_v49, %v4232_v56  ;;  %v4240_v58 = vrot.slane %v8049_v12, 3 }
 0x118   : > { %v8236_v16 = vsel %vm4228_vm11, %v4229_v17, %v4230_v49  ;;  %v4242_v28 = vrot.slane %v8063_v48, 3  ;;  %v4248_v21 = vrot.slane %v8098_v34, 3  ;;  %v3477_v17 = vrot.slane %v8033_v15, 2 }
 0x119   : > { %v8221_v4 = vsel %vm3781_vm9, %v3923_v23, %v3932_v30  ;;  %v8229_v35 = vsel %vm3781_vm9, %v3932_v30, %v3941_v63  ;;  %v4234_v23 = vrot.slane %v8013_v53, 3 }
 0x11a   : > { %6547 = vmatmul.mubr.msk.bf16.gmra.mrb[32].mxu0 %vm1252_vm6, %v3065_v9  ;;  %v3471_v9 = vrot.slane %v8008_v45, 2  ;;  %v4236_v45 = vrot.slane %v8022_v22, 3  ;;  %v8272_v2 = vsel %vm4228_vm11, %v4240_v58, %v4242_v28  ;;  %v8282_v26 = vsel %vm4228_vm11, %v4242_v28, %v4244_v20 }
 0x11b   : > { %6552 = vmatprep.mubr.msk.bf16.mxu0 %vm1252_vm6, %v3470_v62  ;;  %v8245_v30 = vsel %vm4228_vm11, %v4232_v56, %v4234_v23  ;;  %v4246_v62 = vrot.slane %v8080_v33, 3  ;;  %v4250_v56 = vrot.slane %v8109_v54, 3 }
 0x11c   : > { %6379 = vmatmul.mubr.msk.bf16.gmra.mrb[16].mxu1 %vm1252_vm6, %v7832_v6  ;;  %v8242_v6 = vsel %vm3781_vm9, %v3941_v63, %v3950_v51  ;;  %v3472_v53 = vsel %vm3028_vm8, %v3469_v38, %v3471_v9  ;;  %v8258_v8 = vsel %vm4228_vm11, %v4234_v23, %v4236_v45  ;;  %v3474_v52 = vsel %vm3028_vm8, %v3471_v9, %v3473_v3 }
 0x11d   : > { %6382 = vmatprep.mubr.msk.bf16.mxu1 %vm1252_vm6, %v7852_v55  ;;  %v4238_v55 = vrot.slane %v8033_v15, 3  ;;  %v3475_v63 = vrot.slane %v8022_v22, 2  ;;  %v8289_v49 = vsel %vm4228_vm11, %v4244_v20, %v4246_v62  ;;  %v8293_v9 = vsel %vm4228_vm11, %v4246_v62, %v4248_v21  ;;  %v1708_v62 = vld [vmem:[#allocation2] sm:$0xe] }
 0x11e   : > { %v4252_v22 = vrot.slane %v8126_v37, 3  ;;  %v4254_v23 = vrot.slane %v8136_v27, 3 }
 0x11f   : > { %v8265_v57 = vsel %vm4228_vm11, %v4236_v45, %v4238_v55  ;;  %v8269_v38 = vsel %vm4228_vm11, %v4238_v55, %v4240_v58  ;;  %v3476_v51 = vsel %vm3028_vm8, %v3473_v3, %v3475_v63  ;;  %v3479_v3 = vrot.slane %v8049_v12, 2 }
 0x120   : > { %v8303_v15 = vsel %vm4228_vm11, %v4250_v56, %v4252_v22  ;;  %v8308_v45 = vsel %vm4228_vm11, %v4252_v22, %v4254_v23  ;;  %v3481_v55 = vrot.slane %v8063_v48, 2  ;;  %v4258_v58 = vrot.slane %v8162_v46, 3  ;;  %v7058_v22 = vld [vmem:[#allocation2 + $0x4] sm:$0xf] }
 0x121   : > { %v3480_v20 = vsel %vm3028_vm8, %v3477_v17, %v3479_v3 }
 0x122   : > { %6553 = vmatmul.mubr.msk.bf16.vlgmr.msra.gmra.mrb[0].mxu0 %vm1252_vm6, %v3472_v53  ;;  %v3482_v12 = vsel %vm3028_vm8, %v3479_v3, %v3481_v55 }
 0x123   : > { %6589 = vmatpush3.bf16.msra.mxu0 %v4007_v31  ;;  %6556 = vmatprep.mubr.msk.bf16.mxu0 %vm1252_vm6, %v3474_v52  ;;  %v4256_v31 = vrot.slane %v8152_v1, 3  ;;  %v4260_v52 = vrot.slane %v8174_v10, 3 }
 0x124   : > { %6963 = vmatprep.subr.msk.bf16.mxu0 %vm1307_vm1, %v8255_v24  ;;  %6383 = vmatmul.mubr.msk.bf16.gmra.mrb[20].mxu1 %vm1252_vm6, %v7866_v42  ;;  %v8296_v42 = vsel %vm4228_vm11, %v4248_v21, %v4250_v56 }
 0x125   : > { %6386 = vmatprep.mubr.msk.bf16.mxu1 %vm1252_vm6, %v7887_v40  ;;  %v3478_v40 = vsel %vm3028_vm8, %v3475_v63, %v3477_v17  ;;  %v8318_v53 = vsel %vm4228_vm11, %v4254_v23, %v4256_v31  ;;  %v8322_v28 = vsel %vm4228_vm11, %v4256_v31, %v4258_v58  ;;  %v8330_v48 = vsel %vm4228_vm11, %v4258_v58, %v4260_v52 }
 0x126   : > { %v4264_v63 = vrot.slane %v8199_v36, 3  ;;  %v3483_v17 = vrot.slane %v8074_v5, 2  ;;  %v3485_v36 = vrot.slane %v8080_v33, 2  ;;  %v1716_v5 = vrot.slane %v8045_v39, 1 }
 0x127   : > { %v3487_v33 = vrot.slane %v8098_v34, 2 }
 0x128   : > { %v3484_v23 = vsel %vm3028_vm8, %v3481_v55, %v3483_v17  ;;  %v3486_v3 = vsel %vm3028_vm8, %v3483_v17, %v3485_v36  ;;  %v3489_v55 = vrot.slane %v8109_v54, 2  ;;  %v1724_v17 = vrot.slane %v8148_v41, 1 }
 0x12a   : > { %6557 = vmatmul.mubr.msk.bf16.gmra.mrb[4].mxu0 %vm1252_vm6, %v3476_v51  ;;  %v5745_v51 = vcombine.low %v1708_v62, %v7058_v22  ;;  %v3490_v39 = vsel %vm3028_vm8, %v3487_v33, %v3489_v55  ;;  %v7059_v62 = vld [vmem:[%s9099_s4 + $0x10] sm:$0xf] }
 0x12b   : > { %6560 = vmatprep.mubr.msk.bf16.mxu0 %vm1252_vm6, %v3478_v40  ;;  %v1013_v40 = vld [vmem:[#allocation2 + $0x8c] sm:$0x7] }
 0x12c   : > { %6387 = vmatmul.mubr.msk.bf16.gmra.mrb[24].mxu1 %vm1252_vm6, %v7892_v59  ;;  %v4262_v59 = vrot.slane %v8180_v11, 3  ;;  %v1715_v31 = vrot.slane %v5745_v51, 1  ;;  %v5725_v58 = vcombine.low %v7961_v7, %v1013_v40  ;;  %v1720_v7 = vrot.slane %v8094_v19, 1 }
 0x12d   : > { %6390 = vmatprep.mubr.msk.bf16.mxu1 %vm1252_vm6, %v7923_v50  ;;  %v3493_v19 = vrot.slane %v8136_v27, 2  ;;  %v3495_v51 = vrot.slane %v8152_v1, 2 }
 0x12e   : > { %v8335_v21 = vsel %vm4228_vm11, %v4260_v52, %v4262_v59  ;;  %v8338_v56 = vsel %vm4228_vm11, %v4262_v59, %v4264_v63  ;;  %v1717_v52 = vsel %vm1714_vm10, %v1715_v31, %v1716_v5  ;;  %v3488_v59 = vsel %vm3028_vm8, %v3485_v36, %v3487_v33  ;;  %v7060_v36 = vld [vmem:[#allocation2 + $0x30] sm:$0xff]  }
 0x12f   : > { %v1726_v41 = vrot.slane %v7060_v36, 1  ;;  %v3496_v40 = vsel %vm3028_vm8, %v3493_v19, %v3495_v51  ;;  %v1744_v36 = vrot.slane %v7935_v18, 1 }
 0x132   : > { %6561 = vmatmul.mubr.msk.bf16.gmra.mrb[8].mxu0 %vm1252_vm6, %v3480_v20  ;;  %v1718_v20 = vrot.slane %v8056_v43, 1  ;;  %v3491_v43 = vrot.slane %v8126_v37, 2 }
 0x133   : > { %6564 = vmatprep.mubr.msk.bf16.mxu0 %vm1252_vm6, %v3482_v12  ;;  %v2238_v12 = vsel %vm1307_vm1, %v8042_v60, 0  ;;  %v1722_v60 = vrot.slane %v8105_v14, 1  ;;  %v3497_v14 = vrot.slane %v8162_v46, 2  ;;  %v3499_v46 = vrot.slane %v8174_v10, 2 }
 0x134   : > { %6391 = vmatmul.mubr.msk.bf16.gmra.mrb[28].mxu1 %vm1252_vm6, %v7935_v18  ;;  %v1719_v34 = vsel %vm1714_vm10, %v1716_v5, %v1718_v20  ;;  %v1721_v54 = vsel %vm1714_vm10, %v1718_v20, %v1720_v7  ;;  %v3492_v63 = vsel %vm3028_vm8, %v3489_v55, %v3491_v43  ;;  %v3494_v37 = vsel %vm3028_vm8, %v3491_v43, %v3493_v19  ;;  %v7063_v20 = vld [vmem:[#allocation2 + $0x48] sm:$0xff]   ;;  %v7065_v19 = vld [vmem:[#allocation2 + $0x58] sm:$0xff]  }
 0x135   : > { %6394 = vmatprep.mubr.msk.bf16.mxu1 %vm1252_vm6, %v7956_v32  ;;  %v1723_v27 = vsel %vm1714_vm10, %v1720_v7, %v1722_v60  ;;  %v1725_v22 = vsel %vm1714_vm10, %v1722_v60, %v1724_v17  ;;  %v3501_v5 = vrot.slane %v8180_v11, 2  ;;  %v3500_v55 = vsel %vm3028_vm8, %v3497_v14, %v3499_v46  ;;  %v7032_v7 = vld [vmem:[#allocation2 + $0xa0] ss:$0 sps:$4 sm:$0x11]  }
 0x136   : > { %v3503_v11 = vrot.slane %v7032_v7, 2  ;;  %v9174_v18 = vrot.slane %v7956_v32, 1 }
 0x138   : > { %v3504_v43 = vsel %vm3028_vm8, %v3501_v5, %v3503_v11  ;;  %v7037_v11 = vld [vmem:[#allocation2 + $0x28] sm:$0xff]  }
 0x13a   : > { %6565 = vmatmul.mubr.msk.bf16.gmra.mrb[12].mxu0 %vm1252_vm6, %v3484_v23  ;;  %v7061_v23 = vld [vmem:[#allocation2 + $0x38] sm:$0xff]  }
 0x13b   : > { %6568 = vmatprep.mubr.msk.bf16.mxu0 %vm1252_vm6, %v3486_v3  ;;  %v1728_v31 = vrot.slane %v7061_v23, 1  ;;  %v3498_v3 = vsel %vm3028_vm8, %v3495_v51, %v3497_v14  ;;  %v7033_v23 = vld [vmem:[#allocation2 + $0x8] sm:$0xfe]  }
 0x13c   : > { %6395 = vmatmul.mubr.msk.bf16.gmra.mrb[32].mxu1 %vm1252_vm6, %v5725_v58  ;;  %v1727_v58 = vsel %vm1714_vm10, %v1724_v17, %v1726_v41  ;;  %v4321_v17 = vsel %vm1307_vm1, %v8255_v24, 0  ;;  %v1742_v24 = vrot.slane %v7923_v50, 1  ;;  %v9173_v50 = vld [vmem:[#allocation16_spill] sm:$0xff] }
 0x13d   : > { %6400 = vmatprep.mubr.msk.bf16.mxu1 %vm1252_vm6, %v1717_v52  ;;  %v1729_v1 = vsel %vm1714_vm10, %v1726_v41, %v1728_v31  ;;  %v7062_v52 = vld [vmem:[#allocation2 + $0x40] sm:$0xff]  }
 0x13e   : > { %v1730_v33 = vrot.slane %v7062_v52, 1  ;;  %v1745_v41 = vsel %vm1714_vm10, %v1742_v24, %v1744_v36  ;;  %v7035_v52 = vld [vmem:[#allocation2 + $0x18] sm:$0xff]  }
 0x142   : > { %6569 = vmatmul.mubr.msk.bf16.gmra.mrb[16].mxu0 %vm1252_vm6, %v3488_v59  ;;  %v1732_v59 = vrot.slane %v7063_v20, 1  ;;  %v7036_v20 = vld [vmem:[#allocation2 + $0x20] sm:$0xff]  }
 0x143   : > { %6572 = vmatprep.mubr.msk.bf16.mxu0 %vm1252_vm6, %v3490_v39  ;;  %v3502_v39 = vsel %vm3028_vm8, %v3499_v46, %v3501_v5  ;;  %v9176_v46 = vld [vmem:[#allocation17_spill] sm:$0xff]  ;;  %v9177_v5 = vld [vmem:[#allocation18_spill] sm:$0xff]  ;;  %v2153_v7 = vrot.slane %v7036_v20, 1 }
 0x144   : > { %6401 = vmatmul.mubr.msk.bf16.vlgmr.msra.gmra.mrb[0].mxu1 %vm1252_vm6, %v1719_v34  ;;  %v1733_v10 = vsel %vm1714_vm10, %v1730_v33, %v1732_v59  ;;  %v7064_v34 = vld [vmem:[#allocation2 + $0x50] sm:$0xff]  }
 0x145   : > { %6404 = vmatprep.mubr.msk.bf16.mxu1 %vm1252_vm6, %v1721_v54  ;;  %6437 = vmatpush3.bf16.msra.mxu1 %v2238_v12  ;;  %v1731_v12 = vsel %vm1714_vm10, %v1728_v31, %v1730_v33  ;;  %v1734_v54 = vrot.slane %v7064_v34, 1  ;;  %v7034_v31 = vld [vmem:[#allocation2 + $0x10] sm:$0xff]  }
 0x146   : > { %6959 = vmatprep.subr.msk.bf16.mxu1 %vm1307_vm1, %v7059_v62  ;;  %v1736_v62 = vrot.slane %v7065_v19, 1  ;;  %v9178_v33 = vld [vmem:[#allocation5_spill] sm:$0xff]  ;;  %v2155_v19 = vrot.slane %v7037_v11, 1  ;;  %v9186_v11 = vld [vmem:[#allocation7_spill] sm:$0xff]  ;;  %vm8620_vm1 = vmor %vm4791_vm3, %vm4912_vm12 }
 0x147   : > { %v1735_v60 = vsel %vm1714_vm10, %v1732_v59, %v1734_v54  ;;  %v9179_v32 = vrot.slane %v9178_v33, 1  ;;  %v2151_v59 = vrot.slane %v7035_v52, 1  ;;  %vm4798_vm3 = vmand %vm935_vm0, %vm4797_vm2 }
 0x149   : > { %v2154_v34 = vsel %vm1714_vm10, %v2151_v59, %v2153_v7 }
 0x14a   : > { %6573 = vmatmul.mubr.msk.bf16.gmra.mrb[20].mxu0 %vm1252_vm6, %v3492_v63  ;;  %v1737_v63 = vsel %vm1714_vm10, %v1734_v54, %v1736_v62  ;;  %v7038_v54 = vld [vmem:[#allocation2 + $0x30] sm:$0xff]  }
 0x14b   : > { %6576 = vmatprep.mubr.msk.bf16.mxu0 %vm1252_vm6, %v3494_v37  ;;  %v7066_v37 = vld [vmem:[#allocation2 + $0x60] sm:$0xff]  }
 0x14c   : > { %6405 = vmatmul.mubr.msk.bf16.gmra.mrb[4].mxu1 %vm1252_vm6, %v1723_v27  ;;  %v1738_v27 = vrot.slane %v7066_v37, 1  ;;  %v7039_v37 = vld [vmem:[#allocation2 + $0x38] sm:$0xff]  }
 0x14d   : > { %6408 = vmatprep.mubr.msk.bf16.mxu1 %vm1252_vm6, %v1725_v22  ;;  %v7067_v22 = vld [vmem:[#allocation2 + $0x68] sm:$0xff]  }
 0x14e   : > { %v1740_v51 = vrot.slane %v7067_v22, 1  ;;  %v7040_v22 = vld [vmem:[#allocation2 + $0x40] sm:$0xff]  }
 0x150   : > { %v1741_v14 = vsel %vm1714_vm10, %v1738_v27, %v1740_v51 }
 0x152   : > { %6577 = vmatmul.mubr.msk.bf16.gmra.mrb[24].mxu0 %vm1252_vm6, %v3496_v40  ;;  %v9172_v40 = vld [vmem:[#allocation14_spill] sm:$0xff] }
 0x153   : > { %6580 = vmatprep.mubr.msk.bf16.mxu0 %vm1252_vm6, %v3498_v3  ;;  %v9175_v3 = vld [vmem:[#allocation12_spill] sm:$0xff] }
 0x154   : > { %6409 = vmatmul.mubr.msk.bf16.gmra.mrb[8].mxu1 %vm1252_vm6, %v1727_v58  ;;  %v2148_v58 = vrot.slane %v7033_v23, 1 }
 0x155   : > { %6412 = vmatprep.mubr.msk.bf16.mxu1 %vm1252_vm6, %v1729_v1  ;;  %v2149_v1 = vrot.slane %v7034_v31, 1  ;;  %v7048_v31 = vld [vmem:[#allocation2 + $0x70] sm:$0xff]  }
 0x15a   : > { %6581 = vmatmul.mubr.msk.bf16.gmra.mrb[28].mxu0 %vm1252_vm6, %v3500_v55  ;;  %v2150_v55 = vsel %vm1714_vm10, %v2148_v58, %v2149_v1  ;;  %v2173_v58 = vrot.slane %v7048_v31, 1 }
 0x15b   : > { %6584 = vmatprep.mubr.msk.bf16.mxu0 %vm1252_vm6, %v3502_v39  ;;  %v9180_v39 = vld [vmem:[#allocation19_spill] sm:$0xff] }
 0x15c   : > { %6413 = vmatmul.mubr.msk.bf16.gmra.mrb[12].mxu1 %vm1252_vm6, %v1731_v12  ;;  %v9181_v12 = vld [vmem:[#allocation21_spill] sm:$0xff] }
 0x15d   : > { %6416 = vmatprep.mubr.msk.bf16.mxu1 %vm1252_vm6, %v1733_v10  ;;  %v2152_v10 = vsel %vm1714_vm10, %v2149_v1, %v2151_v59  ;;  %v9185_v59 = vld [vmem:[#allocation6_spill] sm:$0xff] }
 0x162   : > { %6585 = vmatmul.mubr.msk.bf16.gmra.mrb[32].mxu0 %vm1252_vm6, %v3504_v43  ;;  %v9182_v43 = vld [vmem:[#allocation3_spill] sm:$0xff] }
 0x163   : > { %6590 = vmatprep.mubr.msk.bf16.mxu0 %vm1252_vm6, %v8052_v47  ;;  %v1739_v47 = vsel %vm1714_vm10, %v1736_v62, %v1738_v27  ;;  %v2157_v62 = vrot.slane %v7038_v54, 1  ;;  %v2697_v54 = vshll.u32 %v9186_v11, 16 }
 0x164   : > { %6417 = vmatmul.mubr.msk.bf16.gmra.mrb[16].mxu1 %vm1252_vm6, %v1735_v60  ;;  %v9183_v60 = vld [vmem:[#allocation22_spill] sm:$0xff] }
 0x165   : > { %6420 = vmatprep.mubr.msk.bf16.mxu1 %vm1252_vm6, %v1737_v63  ;;  %v9184_v63 = vld [vmem:[#allocation23_spill] sm:$0xff]  ;;  %v2158_v27 = vsel %vm1714_vm10, %v2155_v19, %v2157_v62 }
 0x16a   : > { %6591 = vmatmul.mubr.msk.bf16.vlgmr.msra.gmra.mrb[0].mxu0 %vm1252_vm6, %v8072_v25  ;;  %v9171_v25 = vld [vmem:[#allocation11_spill] sm:$0xff] }
 0x16b   : > { %6627 = vmatpush3.bf16.msra.mxu0 %v4321_v17  ;;  %6594 = vmatprep.mubr.msk.bf16.mxu0 %vm1252_vm6, %v8083_v29  ;;  %v1743_v29 = vsel %vm1714_vm10, %v1740_v51, %v1742_v24  ;;  %v2156_v17 = vsel %vm1714_vm10, %v2153_v7, %v2155_v19  ;;  %v2159_v51 = vrot.slane %v7039_v37, 1  ;;  %v7041_v24 = vld [vmem:[#allocation2 + $0x48] sm:$0xff]   ;;  %v2685_v7 = vshrl.u32 %v9185_v59, 16 }
 0x16c   : > { %6421 = vmatmul.mubr.msk.bf16.gmra.mrb[20].mxu1 %vm1252_vm6, %v1739_v47  ;;  %v2161_v47 = vrot.slane %v7040_v22, 1  ;;  %v9187_v19 = vld [vmem:[#allocation8_spill] sm:$0xff] }
 0x16d   : > { %6424 = vmatprep.mubr.msk.bf16.mxu1 %vm1252_vm6, %v1741_v14  ;;  %v2160_v14 = vsel %vm1714_vm10, %v2157_v62, %v2159_v51  ;;  %v2706_v62 = vshll.u32 %v9187_v19, 16 }
 0x172   : > { %6595 = vmatmul.mubr.msk.bf16.gmra.mrb[4].mxu0 %vm1252_vm6, %v8088_v61  ;;  %v1747_v61 = vsel %vm1714_vm10, %v1744_v36, %v9174_v18  ;;  %v2162_v36 = vsel %vm1714_vm10, %v2159_v51, %v2161_v47  ;;  %v9189_v51 = vld [vmem:[#allocation9_spill] sm:$0xff] }
 0x173   : > { %6598 = vmatprep.mubr.msk.bf16.mxu0 %vm1252_vm6, %v9171_v25  ;;  %v7042_v25 = vld [vmem:[#allocation2 + $0x50] sm:$0xff]  }
 0x174   : > { %6425 = vmatmul.mubr.msk.bf16.gmra.mrb[24].mxu1 %vm1252_vm6, %v1743_v29  ;;  %v2163_v29 = vrot.slane %v7041_v24, 1  ;;  %v9190_v24 = vld [vmem:[#allocation10_spill] sm:$0xff] }
 0x175   : > { %6428 = vmatprep.mubr.msk.bf16.mxu1 %vm1252_vm6, %v1745_v41  ;;  %v2165_v41 = vrot.slane %v7042_v25, 1 }
 0x17a   : > { %6599 = vmatmul.mubr.msk.bf16.gmra.mrb[8].mxu0 %vm1252_vm6, %v9172_v40  ;;  %v2166_v40 = vsel %vm1714_vm10, %v2163_v29, %v2165_v41 }
 0x17b   : > { %6602 = vmatprep.mubr.msk.bf16.mxu0 %vm1252_vm6, %v9173_v50  ;;  %v7046_v50 = vld [vmem:[#allocation2 + $0x60] sm:$0xff]  }
 0x17c   : > { %6429 = vmatmul.mubr.msk.bf16.gmra.mrb[28].mxu1 %vm1252_vm6, %v1747_v61  ;;  %v2169_v61 = vrot.slane %v7046_v50, 1 }
 0x17d   : > { %6432 = vmatprep.mubr.msk.bf16.mxu1 %vm1252_vm6, %v9175_v3 }
 0x182   : > { %6603 = vmatmul.mubr.msk.bf16.gmra.mrb[12].mxu0 %vm1252_vm6, %v9176_v46  ;;  %v7050_v46 = vld [vmem:[#allocation2 + $0x80] sm:$0xff]  }
 0x183   : > { %6606 = vmatprep.mubr.msk.bf16.mxu0 %vm1252_vm6, %v9177_v5  ;;  %v2177_v52 = vrot.slane %v7050_v46, 1 }
 0x184   : > { %6433 = vmatmul.mubr.msk.bf16.gmra.mrb[32].mxu1 %vm1252_vm6, %v9179_v32  ;;  %v7052_v32 = vld [vmem:[#allocation2 + $0x90] sm:$0xff]  }
 0x185   : > { %6438 = vmatprep.mubr.msk.bf16.mxu1 %vm1252_vm6, %v2150_v55  ;;  %v2181_v20 = vrot.slane %v7052_v32, 1 }
 0x18a   : > { %6607 = vmatmul.mubr.msk.bf16.gmra.mrb[16].mxu0 %vm1252_vm6, %v9180_v39  ;;  %v2688_v39 = vshll.u32 %v9185_v59, 16 }
 0x18b   : > { %6610 = vmatprep.mubr.msk.bf16.mxu0 %vm1252_vm6, %v9181_v12  ;;  %v2687_v12 = vrot.slane %v2685_v7, 1 }
 0x18c   : > { %6439 = vmatmul.mubr.msk.bf16.vlgmr.msra.gmra.mrb[0].mxu1 %vm1252_vm6, %v2152_v10  ;;  %v2690_v10 = vrot.slane %v2688_v39, 2 }
 0x18d   : > { %6442 = vmatprep.mubr.msk.bf16.mxu1 %vm1252_vm6, %v2154_v34  ;;  %6665 = vmatpush3.bf16.msra.mxu1 %v9182_v43  ;;  %v2694_v34 = vshrl.u32 %v9186_v11, 16 }
 0x18e   : > { %v2691_v43 = vor.u32 %v2690_v10, %v2687_v12 }
 0x192   : > { %6611 = vmatmul.mubr.msk.bf16.gmra.mrb[20].mxu0 %vm1252_vm6, %v9183_v60  ;;  %v2699_v60 = vrot.slane %v2697_v54, 2 }
 0x193   : > { %6614 = vmatprep.mubr.msk.bf16.mxu0 %vm1252_vm6, %v9184_v63  ;;  %v9188_v63 = vld [vmem:[#allocation4_spill] sm:$0xff] }
 0x194   : > { %6443 = vmatmul.mubr.msk.bf16.gmra.mrb[4].mxu1 %vm1252_vm6, %v2156_v17  ;;  %v2692_v17 = vsel %vm2585_vm5, %v9188_v63, %v2691_v43 }
 0x195   : > { %6446 = vmatprep.mubr.msk.bf16.mxu1 %vm1252_vm6, %v2158_v27  ;;  %v2708_v27 = vrot.slane %v2706_v62, 2  ;;  %v4580_v62 = vpop.permute.xlu0 %4579 }
 0x19a   : > { %6615 = vmatmul.mubr.msk.bf16.gmra.mrb[24].mxu0 %vm1252_vm6, %v8207_v44  ;;  %v2164_v44 = vsel %vm1714_vm10, %v2161_v47, %v2163_v29  ;;  %v2712_v47 = vshrl.u32 %v9189_v51, 16 }
 0x19b   : > { %6618 = vmatprep.mubr.msk.bf16.mxu0 %vm1252_vm6, %v8217_v13  ;;  %v7044_v13 = vld [vmem:[#allocation2 + $0x58] sm:$0xff]  }
 0x19c   : > { %6447 = vmatmul.mubr.msk.bf16.gmra.mrb[8].mxu1 %vm1252_vm6, %v2160_v14  ;;  %v2167_v18 = vrot.slane %v7044_v13, 1  ;;  %v2715_v14 = vshll.u32 %v9189_v51, 16  ;;  %v2714_v29 = vrot.slane %v2712_v47, 1 }
 0x19d   : > { %6450 = vmatprep.mubr.msk.bf16.mxu1 %vm1252_vm6, %v2162_v36  ;;  %v2721_v36 = vshrl.u32 %v9190_v24, 16 }
 0x19e   : > { %v2170_v23 = vsel %vm1714_vm10, %v2167_v18, %v2169_v61 }
 0x19f   : > { %v2723_v13 = vrot.slane %v2721_v36, 1 }
 0x1a2   : > { %6619 = vmatmul.mubr.msk.bf16.gmra.mrb[28].mxu0 %vm1252_vm6, %v8221_v4  ;;  %v2168_v4 = vsel %vm1714_vm10, %v2165_v41, %v2167_v18  ;;  %v2717_v41 = vrot.slane %v2715_v14, 2  ;;  %v9191_v18 = vld [vmem:[#allocation13_spill] sm:$0xff] }
 0x1a3   : > { %6622 = vmatprep.mubr.msk.bf16.mxu0 %vm1252_vm6, %v8229_v35  ;;  %v7047_v35 = vld [vmem:[#allocation2 + $0x68] sm:$0xff]  }
 0x1a4   : > { %6451 = vmatmul.mubr.msk.bf16.gmra.mrb[12].mxu1 %vm1252_vm6, %v2164_v44  ;;  %v2171_v3 = vrot.slane %v7047_v35, 1  ;;  %v2718_v50 = vor.u32 %v2717_v41, %v2714_v29  ;;  %v9192_v35 = vld [vmem:[#allocation15_spill] sm:$0xff] }
 0x1a5   : > { %6454 = vmatprep.mubr.msk.bf16.mxu1 %vm1252_vm6, %v2166_v40 }
 0x1a6   : > { %v2174_v1 = vsel %vm1714_vm10, %v2171_v3, %v2173_v58 }
 0x1aa   : > { %6623 = vmatmul.mubr.msk.bf16.gmra.mrb[32].mxu0 %vm1252_vm6, %v8242_v6  ;;  %v7049_v6 = vld [vmem:[#allocation2 + $0x78] sm:$0xff]  }
 0x1ab   : > { %6628 = vmatprep.mubr.msk.bf16.mxu0 %vm1252_vm6, %v8236_v16  ;;  %v2172_v16 = vsel %vm1714_vm10, %v2169_v61, %v2171_v3  ;;  %v2175_v5 = vrot.slane %v7049_v6, 1  ;;  %v2730_v61 = vshrl.u32 %v9191_v18, 16 }
 0x1ac   : > { %6455 = vmatmul.mubr.msk.bf16.gmra.mrb[16].mxu1 %vm1252_vm6, %v2168_v4 }
 0x1ad   : > { %6458 = vmatprep.mubr.msk.bf16.mxu1 %vm1252_vm6, %v2170_v23  ;;  %v2178_v33 = vsel %vm1714_vm10, %v2175_v5, %v2177_v52  ;;  %v2742_v23 = vshll.u32 %v9192_v35, 16  ;;  %v2732_v3 = vrot.slane %v2730_v61, 1 }
 0x1b2   : > { %6629 = vmatmul.mubr.msk.bf16.vlgmr.msra.gmra.mrb[0].mxu0 %vm1252_vm6, %v8239_v0  ;;  %v2176_v0 = vsel %vm1714_vm10, %v2173_v58, %v2175_v5 }
 0x1b3   : > { %6632 = vmatprep.mubr.msk.bf16.mxu0 %vm1252_vm6, %v8245_v30  ;;  %v7051_v30 = vld [vmem:[#allocation2 + $0x88] sm:$0xff]  }
 0x1b4   : > { %6459 = vmatmul.mubr.msk.bf16.gmra.mrb[20].mxu1 %vm1252_vm6, %v2172_v16  ;;  %v2179_v55 = vrot.slane %v7051_v30, 1 }
 0x1b5   : > { %6462 = vmatprep.mubr.msk.bf16.mxu1 %vm1252_vm6, %v2174_v1  ;;  %v2744_v1 = vrot.slane %v2742_v23, 2 }
 0x1ba   : > { %6633 = vmatmul.mubr.msk.bf16.gmra.mrb[4].mxu0 %vm1252_vm6, %v8258_v8  ;;  %v2180_v8 = vsel %vm1714_vm10, %v2177_v52, %v2179_v55 }
 0x1bb   : > { %6636 = vmatprep.mubr.msk.bf16.mxu0 %vm1252_vm6, %v8265_v57  ;;  %v2182_v57 = vsel %vm1714_vm10, %v2179_v55, %v2181_v20 }
 0x1bc   : > { %6463 = vmatmul.mubr.msk.bf16.gmra.mrb[24].mxu1 %vm1252_vm6, %v2176_v0 }
 0x1bd   : > { %6466 = vmatprep.mubr.msk.bf16.mxu1 %vm1252_vm6, %v2178_v33 }
 0x1c2   : > { %6637 = vmatmul.mubr.msk.bf16.gmra.mrb[8].mxu0 %vm1252_vm6, %v8269_v38  ;;  %v2703_v38 = vshrl.u32 %v9187_v19, 16 }
 0x1c3   : > { %6640 = vmatprep.mubr.msk.bf16.mxu0 %vm1252_vm6, %v8272_v2  ;;  %v2696_v2 = vrot.slane %v2694_v34, 1  ;;  %v4575_v34 = vpop.permute.xlu1 %4574 }
 0x1c4   : > { %6467 = vmatmul.mubr.msk.bf16.gmra.mrb[28].mxu1 %vm1252_vm6, %v2180_v8  ;;  %v2705_v37 = vrot.slane %v2703_v38, 1 }
 0x1c5   : > { %6470 = vmatprep.mubr.msk.bf16.mxu1 %vm1252_vm6, %v2182_v57  ;;  %v2700_v22 = vor.u32 %v2699_v60, %v2696_v2 }
 0x1c7   : > { %v2701_v25 = vsel %vm2585_vm5, %v2691_v43, %v2700_v22  ;;  %v4585_v19 = vpop.permute.xlu1 %4584 }
 0x1ca   : > { %6641 = vmatmul.mubr.msk.bf16.gmra.mrb[12].mxu0 %vm1252_vm6, %v8282_v26  ;;  %v2709_v26 = vor.u32 %v2708_v27, %v2705_v37 }
 0x1cb   : > { %6644 = vmatprep.mubr.msk.bf16.mxu0 %vm1252_vm6, %v8289_v49  ;;  %v2724_v49 = vshll.u32 %v9190_v24, 16 }
 0x1cc   : > { %6471 = vmatmul.mubr.msk.bf16.gmra.mrb[32].mxu1 %vm1252_vm6, %v2181_v20  ;;  %v2710_v44 = vsel %vm2585_vm5, %v2700_v22, %v2709_v26  ;;  %v2719_v31 = vsel %vm2585_vm5, %v2709_v26, %v2718_v50  ;;  %v8604_v22 = vpop.permute.xlu1 %4594  ;;  %v4590_v26 = vpop.permute.xlu0 %4589 }
 0x1cd   : > { %6496 = vmatprep.mubr.msk.bf16.mxu1 %vm1252_vm6, %v2692_v17  ;;  %v2726_v40 = vrot.slane %v2724_v49, 2 }
 0x1cf   : > { %v2727_v4 = vor.u32 %v2726_v40, %v2723_v13 }
 0x1d1   : > { %v2728_v16 = vsel %vm2585_vm5, %v2718_v50, %v2727_v4 }
 0x1d2   : > { %6645 = vmatmul.mubr.msk.bf16.gmra.mrb[16].mxu0 %vm1252_vm6, %v8293_v9  ;;  %v2733_v9 = vshll.u32 %v9191_v18, 16 }
 0x1d3   : > { %6648 = vmatprep.mubr.msk.bf16.mxu0 %vm1252_vm6, %v8296_v42  ;;  %v2739_v42 = vshrl.u32 %v9192_v35, 16 }
 0x1d4   : > { %6497 = vmatmul.mubr.msk.bf16.vlgmr.msra.gmra.mrb[20].mxu1 %vm1252_vm6, %v2701_v25  ;;  %v2735_v58 = vrot.slane %v2733_v9, 2 }
 0x1d5   : > { %6500 = vmatprep.mubr.msk.bf16.mxu1 %vm1252_vm6, %v2710_v44  ;;  %v2741_v6 = vrot.slane %v2739_v42, 1 }
 0x1d6   : > { %v2736_v46 = vor.u32 %v2735_v58, %v2732_v3 }
 0x1d7   : > { %v2745_v5 = vor.u32 %v2744_v1, %v2741_v6 }
 0x1d9   : > { %v2746_v0 = vsel %vm2585_vm5, %v2736_v46, %v2745_v5 }
 0x1da   : > { %6649 = vmatmul.mubr.msk.bf16.gmra.mrb[20].mxu0 %vm1252_vm6, %v8303_v15  ;;  %v2737_v15 = vsel %vm2585_vm5, %v2727_v4, %v2736_v46 }
 0x1db   : > { %6652 = vmatprep.mubr.msk.bf16.mxu0 %vm1252_vm6, %v8308_v45  ;;  %v9193_v45 = vld [vmem:[#allocation20_spill] sm:$0xff] }
 0x1dc   : > { %6501 = vmatmul.mubr.msk.bf16.gmra.mrb[24].mxu1 %vm1252_vm6, %v2719_v31  ;;  %v2748_v52 = vshll.u32 %v9193_v45, 16  ;;  %v4605_v31 = vpop.permute.xlu1 %4604 }
 0x1dd   : > { %6504 = vmatprep.mubr.msk.bf16.mxu1 %vm1252_vm6, %v2728_v16 }
 0x1de   : > { %v2750_v30 = vrot.slane %v2748_v52, 2 }
 0x1e2   : > { %6653 = vmatmul.mubr.msk.bf16.gmra.mrb[24].mxu0 %vm1252_vm6, %v8318_v53  ;;  %v2751_v53 = vsel %vm2585_vm5, %v2745_v5, %v2750_v30  ;;  %vm5352_vm5 = vsmask.f32 256 }
 0x1e3   : > { %6656 = vmatprep.mubr.msk.bf16.mxu0 %vm1252_vm6, %v8322_v28  ;;  %vm5353_vm8 = vmand %vm5351_vm4, %vm5352_vm5 }
 0x1e4   : > { %6505 = vmatmul.mubr.msk.bf16.gmra.mrb[28].mxu1 %vm1252_vm6, %v2737_v15 }
 0x1e5   : > { %6508 = vmatprep.mubr.msk.bf16.mxu1 %vm1252_vm6, %v2746_v0 }
 0x1ea   : > { %6657 = vmatmul.mubr.msk.bf16.gmra.mrb[28].mxu0 %vm1252_vm6, %v8330_v48 }
 0x1eb   : > { %6660 = vmatprep.mubr.msk.bf16.mxu0 %vm1252_vm6, %v8335_v21 }
 0x1ec   : > { %6509 = vmatmul.mubr.msk.bf16.gmra.mrb[32].mxu1 %vm1252_vm6, %v2751_v53  ;;  %v5313_v53 = vld [vmem:[%s7142_s10 + $0x8] sm:$0xe] }
 0x1f2   : > { %6661 = vmatmul.mubr.msk.bf16.gmra.mrb[32].mxu0 %vm1252_vm6, %v8338_v56 }
 0x25f   : > { %v6440_v28 = vpop.f32.mrb[0].mxu1 }
 0x260   : > { %v2274_v33 = vpop.f32.mrb[1].mxu1 }
 0x261   : > { %v6441_v32 = vpop.f32.mrb[2].mxu1 }
 0x262   : > { %v2277_v55 = vpop.f32.mrb[3].mxu1 }
 0x267   : > { %v8572_v20 = vpop.f32.mrb[4].mxu1 }
 0x268   : > { %v8574_v59 = vpop.f32.mrb[5].mxu1 }
 0x269   : > { %v8576_v7 = vpop.f32.mrb[6].mxu1 }
 0x26a   : > { %v8578_v48 = vpop.f32.mrb[7].mxu1 }
 0x26f   : > { %v8580_v21 = vpop.f32.mrb[8].mxu1 }
 0x270   : > { %v8582_v39 = vpop.f32.mrb[9].mxu1 }
 0x271   : > { %v8584_v8 = vpop.f32.mrb[10].mxu1 }
 0x272   : > { %v8586_v57 = vpop.f32.mrb[11].mxu1 }
 0x277   : > { %v8588_v56 = vpop.f32.mrb[12].mxu1 }
 0x278   : > { %v8590_v12 = vpop.f32.mrb[13].mxu1 }
 0x279   : > { %v8592_v10 = vpop.f32.mrb[14].mxu1 }
 0x27a   : > { %v8594_v11 = vpop.f32.mrb[15].mxu1 }
 0x27f   : > { %v8596_v54 = vpop.f32.mrb[16].mxu1 }
 0x280   : > { %v8598_v43 = vpop.f32.mrb[17].mxu1 }
 0x281   : > { %v8600_v38 = vpop.f32.mrb[18].mxu1 }
 0x282   : > { %v8602_v2 = vpop.f32.mrb[19].mxu1 }
 0x285   : > { %v6630_v60 = vpop.f32.mrb[0].mxu0 }
 0x286   : > { %v6666_v63 = vadd.f32 %v6630_v60, %v6440_v28  ;;  %v4357_v17 = vpop.f32.mrb[1].mxu0 }
 0x287   : > { %v6667_v37 = vadd.f32 %v4357_v17, %v2274_v33  ;;  %v6631_v27 = vpop.f32.mrb[2].mxu0 }
 0x288   : > { %v4754_v51 = vmul.f32 %v6666_v63, %v4585_v19  ;;  %v6668_v47 = vadd.f32 %v6631_v27, %v6441_v32  ;;  %v4360_v14 = vpop.f32.mrb[3].mxu0  ;;  %v4600_v19 = vpop.permute.xlu0 %4599 }
 0x289   : > { %v4752_v24 = vmul.f32 %v6667_v37, %v4575_v34  ;;  %v6669_v36 = vadd.f32 %v4360_v14, %v2277_v55 }
 0x28a   : > { %v6018_v49 = vpack.c.bf16 %v4754_v51, %v4754_v51  ;;  %v5439_v25 = vmul.f32 %v4754_v51, %v4754_v51  ;;  %v4755_v29 = vmul.f32 %v6668_v47, %v4590_v26  ;;  %v5360_v18 = vsel %vm1252_vm6, %v4754_v51, 0.0 }
 0x28b   : > { %v6016_v41 = vpack.c.bf16 %v4752_v24, %v4752_v24  ;;  %v5437_v44 = vmul.f32 %v4752_v24, %v4752_v24  ;;  %v4753_v13 = vmul.f32 %v6669_v36, %v4580_v62  ;;  %v5357_v42 = vsel %vm1252_vm6, %v4752_v24, 0.0 }
 0x28c   : > { %v4934_v40 = vshrl.u32 %v6018_v49, 16  ;;  %v4937_v50 = vshll.u32 %v6018_v49, 16  ;;  %v6019_v61 = vpack.c.bf16 %v4755_v29, %v4755_v29  ;;  %v5476_v9 = vsel %vm1252_vm6, %v5439_v25, 0.0  ;;  %v8629_v49 = vpop.permute.xlu1 %4614 }
 0x28d   : > { %v4915_v4 = vshrl.u32 %v6016_v41, 16  ;;  %v4918_v35 = vshll.u32 %v6016_v41, 16  ;;  %v6634_v23 = vpop.f32.mrb[4].mxu0  ;;  %v5473_v15 = vsel %vm1252_vm6, %v5437_v44, 0.0  ;;  %v6017_v45 = vpack.c.bf16 %v4753_v13, %v4753_v13 }
 0x28e   : > { %v4936_v3 = vrot.slane %v4934_v40, 6  ;;  %v4939_v58 = vrot.slane %v4937_v50, 7  ;;  %v4944_v16 = vshrl.u32 %v6019_v61, 16  ;;  %v4947_v6 = vshll.u32 %v6019_v61, 16  ;;  %v4373_v1 = vpop.f32.mrb[5].mxu0 }
 0x28f   : > { %v4917_v46 = vrot.slane %v4915_v4, 6  ;;  %v4920_v5 = vrot.slane %v4918_v35, 7  ;;  %v6635_v52 = vpop.f32.mrb[6].mxu0  ;;  %v5358_v32 = vsel %vm1252_vm6, %v4753_v13, 0.0  ;;  %v5362_v60 = vsel %vm1252_vm6, %v4755_v29, 0.0 }
 0x290   : > { %v4940_v0 = vor.u32 %v4939_v58, %v4936_v3  ;;  %v4946_v28 = vrot.slane %v4944_v16, 6  ;;  %v4949_v33 = vrot.slane %v4947_v6, 7  ;;  %v4376_v55 = vpop.f32.mrb[7].mxu0  ;;  %v4924_v63 = vshrl.u32 %v6017_v45, 16  ;;  %v4610_v16 = vpop.permute.xlu0 %4609 }
 0x291   : > { %v4921_v62 = vor.u32 %v4920_v5, %v4917_v46  ;;  %v4927_v17 = vshll.u32 %v6017_v45, 16  ;;  %v5359_v51 = vadd.f32 %v5358_v32, %v5357_v42  ;;  %v5438_v47 = vmul.f32 %v4753_v13, %v4753_v13 }
 0x292   : > { %v4942_v37 = vrot.slane %v4940_v0, 4  ;;  %v8625_v27 = vor.u32 %v4949_v33, %v4946_v28  ;;  %v4926_v24 = vrot.slane %v4924_v63, 6  ;;  %v5440_v41 = vmul.f32 %v4755_v29, %v4755_v29 }
 0x293   : > { %v4922_v14 = vrot.slane %v4921_v62, 4  ;;  %v5314_v26 = vsel %vm8612_vm15, %v4921_v62, %v5313_v53  ;;  %v4929_v36 = vrot.slane %v4927_v17, 7  ;;  %v5361_v44 = vadd.f32 %v5360_v18, %v5359_v51 }
 0x294   : > { %5315 = vst [vmem:[%s7142_s10 + $0x8] sm:$0xe] %v5314_v26  ;;  %v4951_v25 = vsel %vm8620_vm1, %v4942_v37, %v8625_v27  ;;  %v5474_v40 = vsel %vm1252_vm6, %v5438_v47, 0.0  ;;  %v6670_v61 = vadd.f32 %v6634_v23, %v8572_v20  ;;  %v6671_v4 = vadd.f32 %v4373_v1, %v8574_v59 }
 0x295   : > { %5318 = vst.msk [vmem:[%s7142_s10 + $0x14] sm:$0xf] %vm935_vm0, %v4951_v25  ;;  %v4930_v13 = vor.u32 %v4929_v36, %v4926_v24  ;;  %v5475_v50 = vadd.f32 %v5474_v40, %v5473_v15  ;;  %v6638_v35 = vpop.f32.mrb[8].mxu0  ;;  %v5363_v42 = vadd.f32 %v5362_v60, %v5361_v44  ;;  %v6672_v3 = vadd.f32 %v6635_v52, %v8576_v7 }
 0x296   : > { %v6673_v58 = vadd.f32 %v4376_v55, %v8578_v48  ;;  %v6674_v29 = vadd.f32 %v6638_v35, %v8580_v21  ;;  %v8643_v18 = vpop.f32.mrb[9].mxu0  ;;  %v4758_v20 = vmul.f32 %v6670_v61, %v4605_v31  ;;  %v5478_v59 = vsel %vm1252_vm6, %v5440_v41, 0.0 }
 0x297   : > { %v4931_v6 = vsel %vm8620_vm1, %v4922_v14, %v4930_v13  ;;  %v4932_v46 = vrot.slane %v4930_v13, 4  ;;  %v5477_v5 = vadd.f32 %v5476_v9, %v5475_v50  ;;  %v8647_v23 = vpop.f32.mrb[10].mxu0  ;;  %v4756_v7 = vmul.f32 %v6671_v4, %v8604_v22  ;;  %v4625_v9 = vpop.permute.xlu1 %4624 }
 0x298   : > { %5316 = vst.msk [vmem:[%s7142_s10 + $0xc] sm:$0xf] %vm935_vm0, %v4931_v6  ;;  %v4759_v48 = vmul.f32 %v6672_v3, %v4610_v16  ;;  %v8653_v21 = vpop.f32.mrb[11].mxu0  ;;  %v4952_v1 = vrot.slane %v8625_v27, 4  ;;  %v6022_v45 = vpack.c.bf16 %v4758_v20, %v4758_v20  ;;  %v4757_v52 = vmul.f32 %v6673_v58, %v4600_v19 }
 0x299   : > { %v4941_v15 = vsel %vm8620_vm1, %v4932_v46, %v4940_v0  ;;  %v6020_v31 = vpack.c.bf16 %v4756_v7, %v4756_v7  ;;  %v5364_v30 = vsel %vm1252_vm6, %v4756_v7, 0.0  ;;  %v5441_v53 = vmul.f32 %v4756_v7, %v4756_v7 }
 0x29a   : > { %5317 = vst.msk [vmem:[%s7142_s10 + $0x10] sm:$0xf] %vm935_vm0, %v4941_v15  ;;  %v5479_v28 = vadd.f32 %v5478_v59, %v5477_v5  ;;  %v4974_v33 = vshrl.u32 %v6022_v45, 16  ;;  %v4977_v22 = vshll.u32 %v6022_v45, 16  ;;  %v5365_v32 = vadd.f32 %v5364_v30, %v5363_v42 }
 0x29b   : > { %v8661_v55 = vmul.f32 %v6674_v29, %v4625_v9  ;;  %v4954_v62 = vshrl.u32 %v6020_v31, 16  ;;  %v4957_v60 = vshll.u32 %v6020_v31, 16  ;;  %v5480_v63 = vsel %vm1252_vm6, %v5441_v53, 0.0  ;;  %v4620_v31 = vpop.permute.xlu0 %4619 }
 0x29c   : > { %v6023_v0 = vpack.c.bf16 %v4759_v48, %v4759_v48  ;;  %v4976_v17 = vrot.slane %v4974_v33, 6  ;;  %v4979_v19 = vrot.slane %v4977_v22, 7  ;;  %v5443_v37 = vmul.f32 %v4758_v20, %v4758_v20 }
 0x29d   : > { %v5481_v27 = vadd.f32 %v5480_v63, %v5479_v28  ;;  %v6642_v51 = vpop.f32.mrb[12].mxu0  ;;  %v4956_v47 = vrot.slane %v4954_v62, 6  ;;  %v4959_v14 = vrot.slane %v4957_v60, 7  ;;  %v5444_v41 = vmul.f32 %v4759_v48, %v4759_v48  ;;  %v8689_v62 = vpop.permute.xlu1 %4634 }
 0x29e   : > { %v4984_v26 = vshrl.u32 %v6023_v0, 16  ;;  %v4987_v24 = vshll.u32 %v6023_v0, 16  ;;  %v4405_v36 = vpop.f32.mrb[13].mxu0  ;;  %v4980_v25 = vor.u32 %v4979_v19, %v4976_v17  ;;  %v6021_v44 = vpack.c.bf16 %v4757_v52, %v4757_v52 }
 0x29f   : > { %v5366_v40 = vsel %vm1252_vm6, %v4757_v52, 0.0  ;;  %v8665_v13 = vpop.f32.mrb[14].mxu0  ;;  %v4960_v50 = vor.u32 %v4959_v14, %v4956_v47  ;;  %v5368_v58 = vsel %vm1252_vm6, %v4758_v20, 0.0  ;;  %v5442_v45 = vmul.f32 %v4757_v52, %v4757_v52 }
 0x2a0   : > { %v4986_v61 = vrot.slane %v4984_v26, 6  ;;  %v4989_v4 = vrot.slane %v4987_v24, 7  ;;  %v5367_v35 = vadd.f32 %v5366_v40, %v5365_v32  ;;  %v8667_v42 = vpop.f32.mrb[15].mxu0  ;;  %v4982_v3 = vrot.slane %v4980_v25, 4 }
 0x2a1   : > { %v4964_v29 = vshrl.u32 %v6021_v44, 16  ;;  %v4967_v16 = vshll.u32 %v6021_v44, 16  ;;  %v4961_v6 = vsel %vm8620_vm1, %v4952_v1, %v4960_v50  ;;  %v4962_v46 = vrot.slane %v4960_v50, 4 }
 0x2a2   : > { %v8672_v5 = vor.u32 %v4989_v4, %v4986_v61  ;;  %v5369_v59 = vadd.f32 %v5368_v58, %v5367_v35  ;;  %5319 = vst.msk [vmem:[%s7142_s10 + $0x18] sm:$0xf] %vm935_vm0, %v4961_v6  ;;  %v6026_v9 = vpack.c.bf16 %v8661_v55, %v8661_v55  ;;  %v5484_v20 = vsel %vm1252_vm6, %v5443_v37, 0.0 }
 0x2a3   : > { %v4966_v7 = vrot.slane %v4964_v29, 6  ;;  %v4969_v15 = vrot.slane %v4967_v16, 7  ;;  %v5370_v1 = vsel %vm1252_vm6, %v4759_v48, 0.0  ;;  %v5486_v53 = vsel %vm1252_vm6, %v5444_v41, 0.0 }
 0x2a4   : > { %v4991_v30 = vsel %vm8620_vm1, %v4982_v3, %v8672_v5  ;;  %v5482_v52 = vsel %vm1252_vm6, %v5442_v45, 0.0  ;;  %v5014_v33 = vshrl.u32 %v6026_v9, 16  ;;  %v5017_v22 = vshll.u32 %v6026_v9, 16 }
 0x2a5   : > { %5322 = vst.msk [vmem:[%s7142_s10 + $0x24] sm:$0xf] %vm935_vm0, %v4991_v30  ;;  %v4970_v28 = vor.u32 %v4969_v15, %v4966_v7  ;;  %v8687_v32 = vpop.f32.mrb[16].mxu0  ;;  %v4992_v60 = vrot.slane %v8672_v5, 4  ;;  %v5483_v63 = vadd.f32 %v5482_v52, %v5481_v27  ;;  %v6675_v48 = vadd.f32 %v8643_v18, %v8582_v39 }
 0x2a6   : > { %v5371_v0 = vadd.f32 %v5370_v1, %v5369_v59  ;;  %v8694_v17 = vpop.f32.mrb[17].mxu0  ;;  %v5016_v47 = vrot.slane %v5014_v33, 6  ;;  %v5019_v14 = vrot.slane %v5017_v22, 7  ;;  %v6676_v39 = vadd.f32 %v8647_v23, %v8584_v8  ;;  %v4630_v8 = vpop.permute.xlu0 %4629 }
 0x2a7   : > { %v4971_v19 = vsel %vm8620_vm1, %v4962_v46, %v4970_v28  ;;  %v4972_v37 = vrot.slane %v4970_v28, 4  ;;  %v8698_v26 = vpop.f32.mrb[18].mxu0  ;;  %v5485_v24 = vadd.f32 %v5484_v20, %v5483_v63  ;;  %v4760_v27 = vmul.f32 %v6675_v48, %v8629_v49  ;;  %v8707_v41 = vpop.f32.mrb[20].mxu1 }
 0x2a8   : > { %5320 = vst.msk [vmem:[%s7142_s10 + $0x1c] sm:$0xf] %vm935_vm0, %v4971_v19  ;;  %v6677_v18 = vadd.f32 %v8653_v21, %v8586_v57  ;;  %v8709_v44 = vpop.f32.mrb[19].mxu0  ;;  %v8713_v50 = vor.u32 %v5019_v14, %v5016_v47  ;;  %v6678_v61 = vadd.f32 %v6642_v51, %v8588_v56  ;;  %v8717_v4 = vadd.f32 %v4405_v36, %v8590_v12  ;;  %v8719_v49 = vpop.f32.mrb[21].mxu1 }
 0x2a9   : > { %v4981_v40 = vsel %vm8620_vm1, %v4972_v37, %v4980_v25  ;;  %v6024_v57 = vpack.c.bf16 %v4760_v27, %v4760_v27  ;;  %v5372_v23 = vsel %vm1252_vm6, %v4760_v27, 0.0  ;;  %v5445_v21 = vmul.f32 %v4760_v27, %v4760_v27  ;;  %v8724_v3 = vpop.f32.mrb[22].mxu1  ;;  %v4645_v36 = vpop.permute.xlu1 %4644 }
 0x2aa   : > { %5321 = vst.msk [vmem:[%s7142_s10 + $0x20] sm:$0xf] %vm935_vm0, %v4981_v40  ;;  %v5487_v35 = vadd.f32 %v5486_v53, %v5485_v24  ;;  %v5376_v25 = vsel %vm1252_vm6, %v8661_v55, 0.0  ;;  %v5373_v58 = vadd.f32 %v5372_v23, %v5371_v0  ;;  %v4763_v56 = vmul.f32 %v6676_v39, %v4630_v8  ;;  %v8728_v12 = vpop.f32.mrb[23].mxu1 }
 0x2ab   : > { %v4761_v51 = vmul.f32 %v6677_v18, %v4620_v31  ;;  %v5447_v29 = vmul.f32 %v8661_v55, %v8661_v55  ;;  %v4994_v16 = vshrl.u32 %v6024_v57, 16  ;;  %v4997_v6 = vshll.u32 %v6024_v57, 16 }
 0x2ac   : > { %v5488_v46 = vsel %vm1252_vm6, %v5445_v21, 0.0  ;;  %v5022_v59 = vrot.slane %v8713_v50, 4  ;;  %v6027_v15 = vpack.c.bf16 %v4763_v56, %v4763_v56  ;;  %v8734_v45 = vmul.f32 %v6678_v61, %v4645_v36  ;;  %v4640_v21 = vpop.permute.xlu0 %4639 }
 0x2ad   : > { %v5489_v7 = vadd.f32 %v5488_v46, %v5487_v35  ;;  %v8736_v9 = vpop.f32.mrb[20].mxu0  ;;  %v4996_v20 = vrot.slane %v4994_v16, 6  ;;  %v4999_v31 = vrot.slane %v4997_v6, 7  ;;  %v6025_v30 = vpack.c.bf16 %v4761_v51, %v4761_v51  ;;  %v8766_v46 = vpop.permute.xlu1 %4654 }
 0x2ae   : > { %v5374_v1 = vsel %vm1252_vm6, %v4761_v51, 0.0  ;;  %v8739_v53 = vpop.f32.mrb[21].mxu0  ;;  %v5024_v55 = vshrl.u32 %v6027_v15, 16  ;;  %v5027_v28 = vshll.u32 %v6027_v15, 16  ;;  %v5448_v52 = vmul.f32 %v4763_v56, %v4763_v56 }
 0x2af   : > { %v5375_v33 = vadd.f32 %v5374_v1, %v5373_v58  ;;  %v8741_v22 = vpop.f32.mrb[22].mxu0  ;;  %v5000_v63 = vor.u32 %v4999_v31, %v4996_v20  ;;  %v5004_v48 = vshrl.u32 %v6025_v30, 16  ;;  %v5007_v0 = vshll.u32 %v6025_v30, 16  ;;  %v8743_v37 = vpop.f32.mrb[24].mxu1 }
 0x2b0   : > { %v5446_v19 = vmul.f32 %v4761_v51, %v4761_v51  ;;  %v8745_v47 = vpop.f32.mrb[23].mxu0  ;;  %v5026_v14 = vrot.slane %v5024_v55, 6  ;;  %v5029_v24 = vrot.slane %v5027_v28, 7  ;;  %v6030_v39 = vpack.c.bf16 %v8734_v45, %v8734_v45  ;;  %v8749_v18 = vpop.f32.mrb[25].mxu1 }
 0x2b1   : > { %v5377_v27 = vadd.f32 %v5376_v25, %v5375_v33  ;;  %v5001_v40 = vsel %vm8620_vm1, %v4992_v60, %v5000_v63  ;;  %v5002_v61 = vrot.slane %v5000_v63, 4  ;;  %v5006_v8 = vrot.slane %v5004_v48, 6  ;;  %v8755_v23 = vpop.f32.mrb[26].mxu1 }
 0x2b2   : > { %v5009_v57 = vrot.slane %v5007_v0, 7  ;;  %5323 = vst.msk [vmem:[%s7142_s10 + $0x28] sm:$0xf] %vm935_vm0, %v5001_v40  ;;  %v8759_v35 = vor.u32 %v5029_v24, %v5026_v14  ;;  %v5490_v25 = vsel %vm1252_vm6, %v5446_v19, 0.0  ;;  %v5054_v58 = vshrl.u32 %v6030_v39, 16  ;;  %v8762_v36 = vpop.f32.mrb[27].mxu1 }
 0x2b3   : > { %v5057_v51 = vshll.u32 %v6030_v39, 16  ;;  %v5492_v5 = vsel %vm1252_vm6, %v5447_v29, 0.0  ;;  %v5378_v60 = vsel %vm1252_vm6, %v4763_v56, 0.0  ;;  %v5491_v6 = vadd.f32 %v5490_v25, %v5489_v7 }
 0x2b4   : > { %v5010_v16 = vor.u32 %v5009_v57, %v5006_v8  ;;  %v5031_v15 = vsel %vm8620_vm1, %v5022_v59, %v8759_v35  ;;  %v5494_v20 = vsel %vm1252_vm6, %v5448_v52, 0.0  ;;  %v5056_v31 = vrot.slane %v5054_v58, 6  ;;  %v4665_v8 = vpop.permute.xlu1 %4664 }
 0x2b5   : > { %v5059_v30 = vrot.slane %v5057_v51, 7  ;;  %v8772_v1 = vpop.f32.mrb[24].mxu0  ;;  %5326 = vst.msk [vmem:[%s7142_s10 + $0x34] sm:$0xf] %vm935_vm0, %v5031_v15  ;;  %v5493_v55 = vadd.f32 %v5492_v5, %v5491_v6  ;;  %v5384_v7 = vsel %vm1252_vm6, %v8734_v45, 0.0  ;;  %v4764_v52 = vmul.f32 %v8717_v4, %v8689_v62  ;;  %v4650_v4 = vpop.permute.xlu0 %4649 }
 0x2b6   : > { %v5011_v29 = vsel %vm8620_vm1, %v5002_v61, %v5010_v16  ;;  %v5012_v56 = vrot.slane %v5010_v16, 4  ;;  %v8780_v28 = vpop.f32.mrb[25].mxu0  ;;  %v5379_v33 = vadd.f32 %v5378_v60, %v5377_v27  ;;  %v6680_v63 = vadd.f32 %v8665_v13, %v8592_v10 }
 0x2b7   : > { %5324 = vst.msk [vmem:[%s7142_s10 + $0x2c] sm:$0xf] %vm935_vm0, %v5011_v29  ;;  %v8784_v59 = vor.u32 %v5059_v30, %v5056_v31  ;;  %v8790_v48 = vpop.f32.mrb[26].mxu0  ;;  %v5495_v19 = vadd.f32 %v5494_v20, %v5493_v55  ;;  %v6681_v14 = vadd.f32 %v8667_v42, %v8594_v11  ;;  %v6682_v24 = vadd.f32 %v8687_v32, %v8596_v54  ;;  %v8799_v39 = vpop.f32.mrb[28].mxu1 }
 0x2b8   : > { %v5021_v0 = vsel %vm8620_vm1, %v5012_v56, %v8713_v50  ;;  %v8801_v62 = vpop.f32.mrb[27].mxu0  ;;  %v5451_v10 = vmul.f32 %v8734_v45, %v8734_v45  ;;  %v6028_v13 = vpack.c.bf16 %v4764_v52, %v4764_v52  ;;  %v5380_v50 = vsel %vm1252_vm6, %v4764_v52, 0.0  ;;  %v8808_v40 = vpop.f32.mrb[29].mxu1 }
 0x2b9   : > { %5325 = vst.msk [vmem:[%s7142_s10 + $0x30] sm:$0xf] %vm935_vm0, %v5021_v0  ;;  %v5449_v27 = vmul.f32 %v4764_v52, %v4764_v52  ;;  %v5032_v11 = vrot.slane %v8759_v35, 4  ;;  %v5381_v42 = vadd.f32 %v5380_v50, %v5379_v33  ;;  %v4767_v54 = vmul.f32 %v6680_v63, %v4650_v4  ;;  %v8811_v61 = vpop.f32.mrb[30].mxu1 }
 0x2ba   : > { %v4765_v32 = vmul.f32 %v6681_v14, %v4640_v21  ;;  %v5034_v57 = vshrl.u32 %v6028_v13, 16  ;;  %v5037_v25 = vshll.u32 %v6028_v13, 16  ;;  %v6683_v45 = vadd.f32 %v8694_v17, %v8598_v43  ;;  %v8816_v51 = vpop.f32.mrb[31].mxu1 }
 0x2bb   : > { %v5496_v58 = vsel %vm1252_vm6, %v5449_v27, 0.0  ;;  %v5062_v5 = vrot.slane %v8784_v59, 4  ;;  %v6031_v16 = vpack.c.bf16 %v4767_v54, %v4767_v54  ;;  %v8819_v35 = vmul.f32 %v6682_v24, %v4665_v8 }
 0x2bc   : > { %v5497_v60 = vadd.f32 %v5496_v58, %v5495_v19  ;;  %v5036_v6 = vrot.slane %v5034_v57, 6  ;;  %v5039_v21 = vrot.slane %v5037_v25, 7  ;;  %v6029_v15 = vpack.c.bf16 %v4765_v32, %v4765_v32 }
 0x2bd   : > { %v5382_v20 = vsel %vm1252_vm6, %v4765_v32, 0.0  ;;  %v8822_v31 = vpop.f32.mrb[28].mxu0  ;;  %v5064_v30 = vshrl.u32 %v6031_v16, 16  ;;  %v5067_v29 = vshll.u32 %v6031_v16, 16  ;;  %v5452_v56 = vmul.f32 %v4767_v54, %v4767_v54 }
 0x2be   : > { %v5383_v55 = vadd.f32 %v5382_v20, %v5381_v42  ;;  %v8824_v43 = vpop.f32.mrb[29].mxu0  ;;  %v5040_v17 = vor.u32 %v5039_v21, %v5036_v6  ;;  %v5044_v52 = vshrl.u32 %v6029_v15, 16  ;;  %v5047_v33 = vshll.u32 %v6029_v15, 16 }
 0x2bf   : > { %v5450_v63 = vmul.f32 %v4765_v32, %v4765_v32  ;;  %v8826_v0 = vpop.f32.mrb[30].mxu0  ;;  %v5066_v19 = vrot.slane %v5064_v30, 6  ;;  %v5069_v14 = vrot.slane %v5067_v29, 7  ;;  %v6034_v4 = vpack.c.bf16 %v8819_v35, %v8819_v35  ;;  %v8830_v13 = vpop.f32.mrb[32].mxu1 }
 0x2c0   : > { %v5385_v24 = vadd.f32 %v5384_v7, %v5383_v55  ;;  %v8832_v50 = vpop.f32.mrb[31].mxu0  ;;  %v5041_v27 = vsel %vm8620_vm1, %v5032_v11, %v5040_v17  ;;  %v5042_v42 = vrot.slane %v5040_v17, 4  ;;  %v5046_v8 = vrot.slane %v5044_v52, 6  ;;  %v8836_v25 = vpop.f32.mrb[33].mxu1 }
 0x2c1   : > { %v5049_v57 = vrot.slane %v5047_v33, 7  ;;  %v4660_v32 = vpop.permute.xlu0 %4659  ;;  %5327 = vst.msk [vmem:[%s7142_s10 + $0x38] sm:$0xf] %vm935_vm0, %v5041_v27  ;;  %v8840_v7 = vor.u32 %v5069_v14, %v5066_v19  ;;  %v5498_v58 = vsel %vm1252_vm6, %v5450_v63, 0.0  ;;  %v5094_v16 = vshrl.u32 %v6034_v4, 16  ;;  %v8843_v21 = vpop.f32.mrb[34].mxu1 }
 0x2c2   : > { %v5097_v6 = vshll.u32 %v6034_v4, 16  ;;  %v5500_v15 = vsel %vm1252_vm6, %v5451_v10, 0.0  ;;  %v5386_v11 = vsel %vm1252_vm6, %v4767_v54, 0.0  ;;  %v5499_v30 = vadd.f32 %v5498_v58, %v5497_v60  ;;  %v8847_v29 = vpop.f32.mrb[35].mxu1  ;;  %v8849_v55 = vpop.permute.xlu1 %4674 }
 0x2c3   : > { %v5050_v20 = vor.u32 %v5049_v57, %v5046_v8  ;;  %v5071_v17 = vsel %vm8620_vm1, %v5062_v5, %v8840_v7  ;;  %v5502_v52 = vsel %vm1252_vm6, %v5452_v56, 0.0  ;;  %v5096_v33 = vrot.slane %v5094_v16, 6 }
 0x2c4   : > { %v5099_v63 = vrot.slane %v5097_v6, 7  ;;  %5330 = vst.msk [vmem:[%s7142_s10 + $0x44] sm:$0xf] %vm935_vm0, %v5071_v17  ;;  %v5501_v60 = vadd.f32 %v5500_v15, %v5499_v30  ;;  %v5392_v19 = vsel %vm1252_vm6, %v8819_v35, 0.0  ;;  %v4768_v56 = vmul.f32 %v6683_v45, %v8766_v46 }
 0x2c5   : > { %v5051_v10 = vsel %vm8620_vm1, %v5042_v42, %v5050_v20  ;;  %v5052_v54 = vrot.slane %v5050_v20, 4  ;;  %v8861_v14 = vpop.f32.mrb[32].mxu0  ;;  %v5387_v4 = vadd.f32 %v5386_v11, %v5385_v24  ;;  %v6684_v27 = vadd.f32 %v8698_v26, %v8600_v38  ;;  %v4670_v46 = vpop.permute.xlu0 %4669 }
 0x2c6   : > { %5328 = vst.msk [vmem:[%s7142_s10 + $0x3c] sm:$0xf] %vm935_vm0, %v5051_v10  ;;  %v8865_v5 = vor.u32 %v5099_v63, %v5096_v33  ;;  %v8870_v8 = vpop.f32.mrb[33].mxu0  ;;  %v5503_v57 = vadd.f32 %v5502_v52, %v5501_v60  ;;  %v6685_v58 = vadd.f32 %v8709_v44, %v8602_v2  ;;  %v6686_v16 = vadd.f32 %v8736_v9, %v8707_v41  ;;  %v4685_v41 = vpop.permute.xlu1 %4684 }
 0x2c7   : > { %v5061_v42 = vsel %vm8620_vm1, %v5052_v54, %v8784_v59  ;;  %v8879_v6 = vpop.f32.mrb[34].mxu0  ;;  %v5455_v38 = vmul.f32 %v8819_v35, %v8819_v35  ;;  %v6032_v26 = vpack.c.bf16 %v4768_v56, %v4768_v56  ;;  %v5388_v45 = vsel %vm1252_vm6, %v4768_v56, 0.0 }
 0x2c8   : > { %5329 = vst.msk [vmem:[%s7142_s10 + $0x40] sm:$0xf] %vm935_vm0, %v5061_v42  ;;  %v5453_v24 = vmul.f32 %v4768_v56, %v4768_v56  ;;  %v8886_v59 = vpop.f32.mrb[35].mxu0  ;;  %v5072_v15 = vrot.slane %v8840_v7, 4  ;;  %v5389_v2 = vadd.f32 %v5388_v45, %v5387_v4  ;;  %v4771_v44 = vmul.f32 %v6684_v27, %v4670_v46 }
 0x2c9   : > { %v4769_v11 = vmul.f32 %v6685_v58, %v4660_v32  ;;  %v5074_v9 = vshrl.u32 %v6032_v26, 16  ;;  %v5077_v20 = vshll.u32 %v6032_v26, 16  ;;  %v6687_v17 = vadd.f32 %v8739_v53, %v8719_v49 }
 0x2ca   : > { %v5504_v30 = vsel %vm1252_vm6, %v5453_v24, 0.0  ;;  %v5102_v35 = vrot.slane %v8865_v5, 4  ;;  %v6035_v33 = vpack.c.bf16 %v4771_v44, %v4771_v44  ;;  %v4774_v63 = vmul.f32 %v6686_v16, %v4685_v41 }
 0x2cb   : > { %v5505_v52 = vadd.f32 %v5504_v30, %v5503_v57  ;;  %v5076_v10 = vrot.slane %v5074_v9, 6  ;;  %v5079_v54 = vrot.slane %v5077_v20, 7  ;;  %v6033_v60 = vpack.c.bf16 %v4769_v11, %v4769_v11  ;;  %v4680_v20 = vpop.permute.xlu0 %4679 }
 0x2cc   : > { %v5390_v7 = vsel %vm1252_vm6, %v4769_v11, 0.0  ;;  %v5104_v56 = vshrl.u32 %v6035_v33, 16  ;;  %v5107_v32 = vshll.u32 %v6035_v33, 16  ;;  %v5456_v4 = vmul.f32 %v4771_v44, %v4771_v44 }
 0x2cd   : > { %v5391_v27 = vadd.f32 %v5390_v7, %v5389_v2  ;;  %v5080_v42 = vor.u32 %v5079_v54, %v5076_v10  ;;  %v5084_v58 = vshrl.u32 %v6033_v60, 16  ;;  %v5087_v46 = vshll.u32 %v6033_v60, 16  ;;  %v8903_v60 = vpop.permute.xlu1 %4694 }
 0x2ce   : > { %v5454_v26 = vmul.f32 %v4769_v11, %v4769_v11  ;;  %v5106_v49 = vrot.slane %v5104_v56, 6  ;;  %v5109_v53 = vrot.slane %v5107_v32, 7  ;;  %v6038_v57 = vpack.c.bf16 %v4774_v63, %v4774_v63 }
 0x2cf   : > { %v5393_v45 = vadd.f32 %v5392_v19, %v5391_v27  ;;  %v5081_v16 = vsel %vm8620_vm1, %v5072_v15, %v5080_v42  ;;  %v5082_v24 = vrot.slane %v5080_v42, 4  ;;  %v5086_v41 = vrot.slane %v5084_v58, 6 }
 0x2d0   : > { %v5089_v9 = vrot.slane %v5087_v46, 7  ;;  %5331 = vst.msk [vmem:[%s7142_s10 + $0x48] sm:$0xf] %vm935_vm0, %v5081_v16  ;;  %v8898_v30 = vor.u32 %v5109_v53, %v5106_v49  ;;  %v5506_v2 = vsel %vm1252_vm6, %v5454_v26, 0.0  ;;  %v5134_v33 = vshrl.u32 %v6038_v57, 16  ;;  %v4690_v16 = vpop.permute.xlu0 %4689 }
 0x2d1   : > { %v5137_v11 = vshll.u32 %v6038_v57, 16  ;;  %v5508_v19 = vsel %vm1252_vm6, %v5455_v38, 0.0  ;;  %v5394_v10 = vsel %vm1252_vm6, %v4771_v44, 0.0  ;;  %v5507_v15 = vadd.f32 %v5506_v2, %v5505_v52 }
 0x2d2   : > { %v5090_v54 = vor.u32 %v5089_v9, %v5086_v41  ;;  %v5111_v7 = vsel %vm8620_vm1, %v5102_v35, %v8898_v30  ;;  %v5510_v56 = vsel %vm1252_vm6, %v5456_v4, 0.0  ;;  %v5136_v32 = vrot.slane %v5134_v33, 6  ;;  %v4705_v9 = vpop.permute.xlu1 %4704 }
 0x2d3   : > { %v5139_v27 = vrot.slane %v5137_v11, 7  ;;  %5334 = vst.msk [vmem:[%s7142_s10 + $0x54] sm:$0xf] %vm935_vm0, %v5111_v7  ;;  %v5509_v44 = vadd.f32 %v5508_v19, %v5507_v15  ;;  %v5400_v52 = vsel %vm1252_vm6, %v4774_v63, 0.0  ;;  %v4772_v35 = vmul.f32 %v6687_v17, %v8849_v55 }
 0x2d4   : > { %v5091_v38 = vsel %vm8620_vm1, %v5082_v24, %v5090_v54  ;;  %v5092_v42 = vrot.slane %v5090_v54, 4  ;;  %v5395_v46 = vadd.f32 %v5394_v10, %v5393_v45  ;;  %v6688_v4 = vadd.f32 %v8741_v22, %v8724_v3 }
 0x2d5   : > { %5332 = vst.msk [vmem:[%s7142_s10 + $0x4c] sm:$0xf] %vm935_vm0, %v5091_v38  ;;  %v8916_v58 = vor.u32 %v5139_v27, %v5136_v32  ;;  %v5511_v49 = vadd.f32 %v5510_v56, %v5509_v44  ;;  %v6689_v53 = vadd.f32 %v8745_v47, %v8728_v12  ;;  %v6690_v57 = vadd.f32 %v8772_v1, %v8743_v37 }
 0x2d6   : > { %v5101_v26 = vsel %vm8620_vm1, %v5092_v42, %v8865_v5  ;;  %v5459_v24 = vmul.f32 %v4774_v63, %v4774_v63  ;;  %v6036_v55 = vpack.c.bf16 %v4772_v35, %v4772_v35  ;;  %v5396_v17 = vsel %vm1252_vm6, %v4772_v35, 0.0 }
 0x2d7   : > { %5333 = vst.msk [vmem:[%s7142_s10 + $0x50] sm:$0xf] %vm935_vm0, %v5101_v26  ;;  %v5457_v45 = vmul.f32 %v4772_v35, %v4772_v35  ;;  %v5112_v3 = vrot.slane %v8898_v30, 4  ;;  %v5397_v22 = vadd.f32 %v5396_v17, %v5395_v46  ;;  %v4775_v41 = vmul.f32 %v6688_v4, %v4690_v16 }
 0x2d8   : > { %v4773_v5 = vmul.f32 %v6689_v53, %v4680_v20  ;;  %v5114_v2 = vshrl.u32 %v6036_v55, 16  ;;  %v5117_v33 = vshll.u32 %v6036_v55, 16  ;;  %v6691_v37 = vadd.f32 %v8780_v28, %v8749_v18  ;;  %v4700_v53 = vpop.permute.xlu0 %4699 }
 0x2d9   : > { %v5512_v12 = vsel %vm1252_vm6, %v5457_v45, 0.0  ;;  %v5142_v47 = vrot.slane %v8916_v58, 4  ;;  %v6039_v63 = vpack.c.bf16 %v4775_v41, %v4775_v41  ;;  %v4778_v11 = vmul.f32 %v6690_v57, %v4705_v9 }
 0x2da   : > { %v5513_v1 = vadd.f32 %v5512_v12, %v5511_v49  ;;  %v5116_v19 = vrot.slane %v5114_v2, 6  ;;  %v5119_v10 = vrot.slane %v5117_v33, 7  ;;  %v6037_v54 = vpack.c.bf16 %v4773_v5, %v4773_v5 }
 0x2db   : > { %v5398_v30 = vsel %vm1252_vm6, %v4773_v5, 0.0  ;;  %v5144_v15 = vshrl.u32 %v6039_v63, 16  ;;  %v5147_v20 = vshll.u32 %v6039_v63, 16  ;;  %v5460_v7 = vmul.f32 %v4775_v41, %v4775_v41 }
 0x2dc   : > { %v5399_v56 = vadd.f32 %v5398_v30, %v5397_v22  ;;  %v5120_v32 = vor.u32 %v5119_v10, %v5116_v19  ;;  %v5124_v27 = vshrl.u32 %v6037_v54, 16  ;;  %v5127_v38 = vshll.u32 %v6037_v54, 16 }
 0x2dd   : > { %v5458_v42 = vmul.f32 %v4773_v5, %v4773_v5  ;;  %v5146_v18 = vrot.slane %v5144_v15, 6  ;;  %v5149_v28 = vrot.slane %v5147_v20, 7  ;;  %v6042_v35 = vpack.c.bf16 %v4778_v11, %v4778_v11  ;;  %v8946_v5 = vpop.permute.xlu1 %4714 }
 0x2de   : > { %v5401_v44 = vadd.f32 %v5400_v52, %v5399_v56  ;;  %v5121_v46 = vsel %vm8620_vm1, %v5112_v3, %v5120_v32  ;;  %v5122_v4 = vrot.slane %v5120_v32, 4  ;;  %v5126_v26 = vrot.slane %v5124_v27, 6  ;;  %v4710_v56 = vpop.permute.xlu0 %4709 }
 0x2df   : > { %v5129_v49 = vrot.slane %v5127_v38, 7  ;;  %5335 = vst.msk [vmem:[%s7142_s10 + $0x58] sm:$0xf] %vm935_vm0, %v5121_v46  ;;  %v8941_v57 = vor.u32 %v5149_v28, %v5146_v18  ;;  %v5514_v16 = vsel %vm1252_vm6, %v5458_v42, 0.0  ;;  %v5174_v55 = vshrl.u32 %v6042_v35, 16 }
 0x2e0   : > { %v5177_v17 = vshll.u32 %v6042_v35, 16  ;;  %v5516_v52 = vsel %vm1252_vm6, %v5459_v24, 0.0  ;;  %v5402_v45 = vsel %vm1252_vm6, %v4775_v41, 0.0  ;;  %v5515_v3 = vadd.f32 %v5514_v16, %v5513_v1 }
 0x2e1   : > { %v5130_v22 = vor.u32 %v5129_v49, %v5126_v26  ;;  %v5151_v9 = vsel %vm8620_vm1, %v5142_v47, %v8941_v57  ;;  %v5518_v2 = vsel %vm1252_vm6, %v5460_v7, 0.0  ;;  %v5176_v33 = vrot.slane %v5174_v55, 6  ;;  %v4725_v42 = vpop.permute.xlu1 %4724 }
 0x2e2   : > { %v5179_v12 = vrot.slane %v5177_v17, 7  ;;  %5338 = vst.msk [vmem:[%s7142_s10 + $0x64] sm:$0xf] %vm935_vm0, %v5151_v9  ;;  %v5517_v41 = vadd.f32 %v5516_v52, %v5515_v3  ;;  %v5408_v1 = vsel %vm1252_vm6, %v4778_v11, 0.0  ;;  %v4776_v47 = vmul.f32 %v6691_v37, %v8903_v60 }
 0x2e3   : > { %v5131_v24 = vsel %vm8620_vm1, %v5122_v4, %v5130_v22  ;;  %v5132_v63 = vrot.slane %v5130_v22, 4  ;;  %v5403_v10 = vadd.f32 %v5402_v45, %v5401_v44  ;;  %v6692_v54 = vadd.f32 %v8790_v48, %v8755_v23 }
 0x2e4   : > { %5336 = vst.msk [vmem:[%s7142_s10 + $0x5c] sm:$0xf] %vm935_vm0, %v5131_v24  ;;  %v8959_v19 = vor.u32 %v5179_v12, %v5176_v33  ;;  %v5519_v15 = vadd.f32 %v5518_v2, %v5517_v41  ;;  %v6693_v20 = vadd.f32 %v8801_v62, %v8762_v36  ;;  %v6694_v7 = vadd.f32 %v8822_v31, %v8799_v39  ;;  %v4720_v24 = vpop.permute.xlu0 %4719 }
 0x2e5   : > { %v5141_v30 = vsel %vm8620_vm1, %v5132_v63, %v8916_v58  ;;  %v5463_v32 = vmul.f32 %v4778_v11, %v4778_v11  ;;  %v6040_v60 = vpack.c.bf16 %v4776_v47, %v4776_v47  ;;  %v5404_v37 = vsel %vm1252_vm6, %v4776_v47, 0.0 }
 0x2e6   : > { %5337 = vst.msk [vmem:[%s7142_s10 + $0x60] sm:$0xf] %vm935_vm0, %v5141_v30  ;;  %v5461_v27 = vmul.f32 %v4776_v47, %v4776_v47  ;;  %v5152_v23 = vrot.slane %v8941_v57, 4  ;;  %v5405_v48 = vadd.f32 %v5404_v37, %v5403_v10  ;;  %v4779_v38 = vmul.f32 %v6692_v54, %v4710_v56 }
 0x2e7   : > { %v4777_v58 = vmul.f32 %v6693_v20, %v4700_v53  ;;  %v5154_v18 = vshrl.u32 %v6040_v60, 16  ;;  %v5157_v28 = vshll.u32 %v6040_v60, 16  ;;  %v6695_v39 = vadd.f32 %v8824_v43, %v8808_v40  ;;  %v8989_v20 = vpop.permute.xlu1 %4734 }
 0x2e8   : > { %v5520_v36 = vsel %vm1252_vm6, %v5461_v27, 0.0  ;;  %v5182_v62 = vrot.slane %v8959_v19, 4  ;;  %v6043_v11 = vpack.c.bf16 %v4779_v38, %v4779_v38  ;;  %v4782_v44 = vmul.f32 %v6694_v7, %v4725_v42 }
 0x2e9   : > { %v5521_v31 = vadd.f32 %v5520_v36, %v5519_v15  ;;  %v5156_v35 = vrot.slane %v5154_v18, 6  ;;  %v5159_v46 = vrot.slane %v5157_v28, 7  ;;  %v6041_v4 = vpack.c.bf16 %v4777_v58, %v4777_v58 }
 0x2ea   : > { %v5406_v26 = vsel %vm1252_vm6, %v4777_v58, 0.0  ;;  %v5184_v49 = vshrl.u32 %v6043_v11, 16  ;;  %v5187_v53 = vshll.u32 %v6043_v11, 16  ;;  %v5464_v57 = vmul.f32 %v4779_v38, %v4779_v38  ;;  %v4730_v11 = vpop.permute.xlu0 %4729 }
 0x2eb   : > { %v5407_v16 = vadd.f32 %v5406_v26, %v5405_v48  ;;  %v5160_v55 = vor.u32 %v5159_v46, %v5156_v35  ;;  %v5164_v17 = vshrl.u32 %v6041_v4, 16  ;;  %v5167_v52 = vshll.u32 %v6041_v4, 16  ;;  %v4745_v26 = vpop.permute.xlu1 %4744 }
 0x2ec   : > { %v5462_v45 = vmul.f32 %v4777_v58, %v4777_v58  ;;  %v5186_v40 = vrot.slane %v5184_v49, 6  ;;  %v5189_v43 = vrot.slane %v5187_v53, 7  ;;  %v6046_v3 = vpack.c.bf16 %v4782_v44, %v4782_v44 }
 0x2ed   : > { %v5409_v22 = vadd.f32 %v5408_v1, %v5407_v16  ;;  %v5161_v9 = vsel %vm8620_vm1, %v5152_v23, %v5160_v55  ;;  %v5162_v2 = vrot.slane %v5160_v55, 4  ;;  %v5166_v33 = vrot.slane %v5164_v17, 6 }
 0x2ee   : > { %v5169_v12 = vrot.slane %v5167_v52, 7  ;;  %5339 = vst.msk [vmem:[%s7142_s10 + $0x68] sm:$0xf] %vm935_vm0, %v5161_v9  ;;  %v8984_v63 = vor.u32 %v5189_v43, %v5186_v40  ;;  %v5522_v41 = vsel %vm1252_vm6, %v5462_v45, 0.0  ;;  %v5214_v47 = vshrl.u32 %v6046_v3, 16 }
 0x2ef   : > { %v5217_v10 = vshll.u32 %v6046_v3, 16  ;;  %v5524_v1 = vsel %vm1252_vm6, %v5463_v32, 0.0  ;;  %v5410_v54 = vsel %vm1252_vm6, %v4779_v38, 0.0  ;;  %v5523_v15 = vadd.f32 %v5522_v41, %v5521_v31 }
 0x2f0   : > { %v5170_v30 = vor.u32 %v5169_v12, %v5166_v33  ;;  %v5191_v7 = vsel %vm8620_vm1, %v5182_v62, %v8984_v63  ;;  %v5526_v56 = vsel %vm1252_vm6, %v5464_v57, 0.0  ;;  %v5216_v60 = vrot.slane %v5214_v47, 6 }
 0x2f1   : > { %v5219_v37 = vrot.slane %v5217_v10, 7  ;;  %5342 = vst.msk [vmem:[%s7142_s10 + $0x74] sm:$0xf] %vm935_vm0, %v5191_v7  ;;  %v5525_v23 = vadd.f32 %v5524_v1, %v5523_v15  ;;  %v5416_v48 = vsel %vm1252_vm6, %v4782_v44, 0.0  ;;  %v4780_v58 = vmul.f32 %v6695_v39, %v8946_v5  ;;  %v4740_v1 = vpop.permute.xlu0 %4739 }
 0x2f2   : > { %v5171_v32 = vsel %vm8620_vm1, %v5162_v2, %v5170_v30  ;;  %v5172_v27 = vrot.slane %v5170_v30, 4  ;;  %v5411_v42 = vadd.f32 %v5410_v54, %v5409_v22  ;;  %v6696_v18 = vadd.f32 %v8826_v0, %v8811_v61 }
 0x2f3   : > { %5340 = vst.msk [vmem:[%s7142_s10 + $0x6c] sm:$0xf] %vm935_vm0, %v5171_v32  ;;  %v9002_v38 = vor.u32 %v5219_v37, %v5216_v60  ;;  %v5527_v36 = vadd.f32 %v5526_v56, %v5525_v23  ;;  %v6697_v62 = vadd.f32 %v8832_v50, %v8816_v51  ;;  %v6698_v31 = vadd.f32 %v8861_v14, %v8830_v13 }
 0x2f4   : > { %v5181_v28 = vsel %vm8620_vm1, %v5172_v27, %v8959_v19  ;;  %v5467_v35 = vmul.f32 %v4782_v44, %v4782_v44  ;;  %v6044_v5 = vpack.c.bf16 %v4780_v58, %v4780_v58  ;;  %v5412_v39 = vsel %vm1252_vm6, %v4780_v58, 0.0 }
 0x2f5   : > { %5341 = vst.msk [vmem:[%s7142_s10 + $0x70] sm:$0xf] %vm935_vm0, %v5181_v28  ;;  %v5465_v46 = vmul.f32 %v4780_v58, %v4780_v58  ;;  %v5192_v61 = vrot.slane %v8984_v63, 4  ;;  %v5413_v0 = vadd.f32 %v5412_v39, %v5411_v42  ;;  %v4783_v4 = vmul.f32 %v6696_v18, %v4730_v11  ;;  %v4750_v39 = vpop.permute.xlu0 %4749 }
 0x2f6   : > { %v4781_v19 = vmul.f32 %v6697_v62, %v4720_v24  ;;  %v5194_v49 = vshrl.u32 %v6044_v5, 16  ;;  %v5197_v53 = vshll.u32 %v6044_v5, 16  ;;  %v6699_v13 = vadd.f32 %v8870_v8, %v8836_v25 }
 0x2f7   : > { %v5528_v51 = vsel %vm1252_vm6, %v5465_v46, 0.0  ;;  %v5222_v50 = vrot.slane %v9002_v38, 4  ;;  %v6047_v44 = vpack.c.bf16 %v4783_v4, %v4783_v4  ;;  %v9022_v57 = vmul.f32 %v6698_v31, %v4745_v26  ;;  %v4799_v31 = vld [vmem:[%s7142_s10 + $0x98] sm:$0xf] }
 0x2f8   : > { %v5529_v14 = vadd.f32 %v5528_v51, %v5527_v36  ;;  %v5196_v16 = vrot.slane %v5194_v49, 6  ;;  %v5199_v55 = vrot.slane %v5197_v53, 7  ;;  %v6045_v17 = vpack.c.bf16 %v4781_v19, %v4781_v19 }
 0x2f9   : > { %v5414_v52 = vsel %vm1252_vm6, %v4781_v19, 0.0  ;;  %v5224_v45 = vshrl.u32 %v6047_v44, 16  ;;  %v5227_v40 = vshll.u32 %v6047_v44, 16  ;;  %v5468_v43 = vmul.f32 %v4783_v4, %v4783_v4 }
 0x2fa   : > { %v5415_v22 = vadd.f32 %v5414_v52, %v5413_v0  ;;  %v5200_v3 = vor.u32 %v5199_v55, %v5196_v16  ;;  %v5204_v9 = vshrl.u32 %v6045_v17, 16  ;;  %v5207_v2 = vshll.u32 %v6045_v17, 16 }
 0x2fb   : > { %v5466_v25 = vmul.f32 %v4781_v19, %v4781_v19  ;;  %v5226_v8 = vrot.slane %v5224_v45, 6  ;;  %v5229_v33 = vrot.slane %v5227_v40, 7  ;;  %v6050_v24 = vpack.c.bf16 %v9022_v57, %v9022_v57 }
 0x2fc   : > { %v5417_v12 = vadd.f32 %v5416_v48, %v5415_v22  ;;  %v5201_v63 = vsel %vm8620_vm1, %v5192_v61, %v5200_v3  ;;  %v5202_v41 = vrot.slane %v5200_v3, 4  ;;  %v5206_v47 = vrot.slane %v5204_v9, 6 }
 0x2fd   : > { %v5209_v10 = vrot.slane %v5207_v2, 7  ;;  %5343 = vst.msk [vmem:[%s7142_s10 + $0x78] sm:$0xf] %vm935_vm0, %v5201_v63  ;;  %v5230_v54 = vor.u32 %v5229_v33, %v5226_v8  ;;  %v5530_v30 = vsel %vm1252_vm6, %v5466_v25, 0.0  ;;  %v5254_v15 = vshrl.u32 %v6050_v24, 16 }
 0x2fe   : > { %v5531_v56 = vadd.f32 %v5530_v30, %v5529_v14  ;;  %v5257_v60 = vshll.u32 %v6050_v24, 16  ;;  %v5532_v37 = vsel %vm1252_vm6, %v5467_v35, 0.0  ;;  %v5418_v27 = vsel %vm1252_vm6, %v4783_v4, 0.0 }
 0x2ff   : > { %v5210_v7 = vor.u32 %v5209_v10, %v5206_v47  ;;  %v5231_v32 = vsel %vm8620_vm1, %v5222_v50, %v5230_v54  ;;  %v5534_v23 = vsel %vm1252_vm6, %v5468_v43, 0.0  ;;  %v5256_v18 = vrot.slane %v5254_v15, 6 }
 0x300   : > { %5346 = vst.msk [vmem:[%s7142_s10 + $0x84] sm:$0xf] %vm935_vm0, %v5231_v32  ;;  %v5533_v42 = vadd.f32 %v5532_v37, %v5531_v56  ;;  %v4784_v28 = vmul.f32 %v6699_v13, %v8989_v20  ;;  %v5419_v36 = vadd.f32 %v5418_v27, %v5417_v12  ;;  %v6700_v62 = vadd.f32 %v8879_v6, %v8843_v21 }
 0x301   : > { %v5211_v48 = vsel %vm8620_vm1, %v5202_v41, %v5210_v7  ;;  %v5212_v58 = vrot.slane %v5210_v7, 4  ;;  %v5259_v35 = vrot.slane %v5257_v60, 7  ;;  %v4800_v6 = vsel %vm4798_vm3, 0, %v4799_v31 }
 0x302   : > { %5344 = vst.msk [vmem:[%s7142_s10 + $0x7c] sm:$0xf] %vm935_vm0, %v5211_v48  ;;  %v5535_v5 = vadd.f32 %v5534_v23, %v5533_v42  ;;  %v6048_v46 = vpack.c.bf16 %v4784_v28, %v4784_v28  ;;  %v5420_v61 = vsel %vm1252_vm6, %v4784_v28, 0.0  ;;  %v5469_v20 = vmul.f32 %v4784_v28, %v4784_v28  ;;  %4801 = vst [vmem:[%s7142_s10 + $0x98] sm:$0xf] %v4800_v6 }
 0x303   : > { %v5221_v11 = vsel %vm8620_vm1, %v5212_v58, %v9002_v38  ;;  %v5421_v0 = vadd.f32 %v5420_v61, %v5419_v36  ;;  %v4787_v21 = vmul.f32 %v6700_v62, %v4750_v39  ;;  %v5260_v26 = vor.u32 %v5259_v35, %v5256_v18 }
 0x304   : > { %5345 = vst.msk [vmem:[%s7142_s10 + $0x80] sm:$0xf] %vm935_vm0, %v5221_v11  ;;  %v5234_v4 = vshrl.u32 %v6048_v46, 16  ;;  %v5237_v19 = vshll.u32 %v6048_v46, 16  ;;  %v5536_v38 = vsel %vm1252_vm6, %v5469_v20, 0.0  ;;  %v6701_v50 = vadd.f32 %v8886_v59, %v8847_v29 }
 0x305   : > { %v5537_v49 = vadd.f32 %v5536_v38, %v5535_v5  ;;  %v6051_v53 = vpack.c.bf16 %v4787_v21, %v4787_v21  ;;  %v5232_v16 = vrot.slane %v5230_v54, 4  ;;  %v5424_v55 = vsel %vm1252_vm6, %v9022_v57, 0.0 }
 0x306   : > { %v5236_v51 = vrot.slane %v5234_v4, 6  ;;  %v5239_v13 = vrot.slane %v5237_v19, 7  ;;  %v4785_v52 = vmul.f32 %v6701_v50, %v4740_v1  ;;  %v5262_v45 = vrot.slane %v5260_v26, 4 }
 0x307   : > { %v5264_v14 = vshrl.u32 %v6051_v53, 16  ;;  %v5267_v44 = vshll.u32 %v6051_v53, 16  ;;  %v5471_v22 = vmul.f32 %v9022_v57, %v9022_v57  ;;  %v5427_v12 = vsel %vm5426_vm7, %v4787_v21, 0.0 }
 0x308   : > { %v5240_v17 = vor.u32 %v5239_v13, %v5236_v51  ;;  %v6049_v59 = vpack.c.bf16 %v4785_v52, %v4785_v52  ;;  %v5422_v3 = vsel %vm1252_vm6, %v4785_v52, 0.0  ;;  %v5470_v33 = vmul.f32 %v4785_v52, %v4785_v52 }
 0x309   : > { %v5266_v40 = vrot.slane %v5264_v14, 6  ;;  %v5269_v43 = vrot.slane %v5267_v44, 7  ;;  %v5354_v25 = vld [vmem:[%s7142_s10 + $0x98] sm:$0x1]  ;;  %v5423_v8 = vadd.f32 %v5422_v3, %v5421_v0  ;;  %v5472_v57 = vmul.f32 %v4787_v21, %v4787_v21 }
 0x30a   : > { %v5241_v29 = vsel %vm8620_vm1, %v5232_v16, %v5240_v17  ;;  %v5244_v24 = vshrl.u32 %v6049_v59, 16  ;;  %v5247_v63 = vshll.u32 %v6049_v59, 16  ;;  %v5538_v1 = vsel %vm1252_vm6, %v5470_v33, 0.0 }
 0x30b   : > { %5347 = vst.msk [vmem:[%s7142_s10 + $0x88] sm:$0xf] %vm935_vm0, %v5241_v29  ;;  %v5270_v9 = vor.u32 %v5269_v43, %v5266_v40  ;;  %v5272_v2 = vrot.slane %v5266_v40, 4  ;;  %v5425_v10 = vadd.f32 %v5424_v55, %v5423_v8  ;;  %v5242_v54 = vrot.slane %v5240_v17, 4 }
 0x30c   : > { %v5246_v30 = vrot.slane %v5244_v24, 6  ;;  %v5249_v15 = vrot.slane %v5247_v63, 7  ;;  %v5539_v7 = vadd.f32 %v5538_v1, %v5537_v49  ;;  %v5540_v56 = vsel %vm1252_vm6, %v5471_v22, 0.0 }
 0x30d   : > { %v5271_v41 = vsel %vm8620_vm1, %v5262_v45, %v5270_v9  ;;  %v5355_v47 = vsel %vm5353_vm8, %v5272_v2, %v5354_v25  ;;  %v5428_v60 = vadd.f32 %v5427_v12, %v5425_v10  ;;  %v5542_v27 = vsel %vm5426_vm7, %v5472_v57, 0.0 }
 0x30e   : > { %5350 = vst.msk [vmem:[%s7142_s10 + $0x94] sm:$0xf] %vm935_vm0, %v5271_v41  ;;  %5356 = vst [vmem:[%s7142_s10 + $0x98] sm:$0x1] %v5355_v47  ;;  %v5250_v37 = vor.u32 %v5249_v15, %v5246_v30  ;;  %v5541_v32 = vadd.f32 %v5540_v56, %v5539_v7 }
 0x30f   : > { %v5429_v23 = vrot.slane %v5428_v60, 4 }
 0x310   : > { %v5251_v48 = vsel %vm8620_vm1, %v5242_v54, %v5250_v37  ;;  %v5252_v58 = vrot.slane %v5250_v37, 4  ;;  %v5543_v42 = vadd.f32 %v5542_v27, %v5541_v32 }
 0x311   : > { %5348 = vst.msk [vmem:[%s7142_s10 + $0x8c] sm:$0xf] %vm935_vm0, %v5251_v48  ;;  %v5430_v18 = vadd.f32 %v5429_v23, %v5428_v60 }
 0x312   : > { %v5261_v28 = vsel %vm8620_vm1, %v5252_v58, %v5260_v26  ;;  %v5544_v36 = vrot.slane %v5543_v42, 4 }
 0x313   : > { %5349 = vst.msk [vmem:[%s7142_s10 + $0x90] sm:$0xf] %vm935_vm0, %v5261_v28  ;;  %v5431_v62 = vrot.slane %v5430_v18, 2 }
 0x314   : > { %v5545_v31 = vadd.f32 %v5544_v36, %v5543_v42 }
 0x315   : > { %v5432_v11 = vadd.f32 %v5431_v62, %v5430_v18 }
 0x316   : > { %v5546_v35 = vrot.slane %v5545_v31, 2 }
 0x317   : > { %v5433_v5 = vrot.slane %v5432_v11, 1 }
 0x318   : > { %v5547_v39 = vadd.f32 %v5546_v35, %v5545_v31 }
 0x319   : > { %v5434_v46 = vadd.f32 %v5433_v5, %v5432_v11 }
 0x31a   : > { %v5548_v61 = vrot.slane %v5547_v39, 1 }
 0x31b   : > { %5436 = vst.msk [vmem:[%s262_s27] sm:$0x1] %vm5351_vm4, %v5434_v46 }
 0x31c   : > { %v5549_v34 = vadd.f32 %v5548_v61, %v5547_v39 }
 0x31e   : > { %5550 = vst.msk [vmem:[%s262_s27 + $0x1] sm:$0x1] %vm5351_vm4, %v5549_v34 }
 0x31f PF: > { %s17_s21 = sadd.s32 1, %s7074_s21  }
 0x320   : > { %p14_p4 = scmp.ge.s32.totalorder %s17_s21, 4  }
 0x322   :  { %16 = sbr.rel (!%p14_p4) target bundleno = 1 (0x1), region = 90 }

</bundles_post_ra>
